<compile_context>
chip_gen: v7x
topology: tpu7x:2x2x1
jax: 0.10.0
libtpu: 0.0.40
codegen_flags: <defaults>
</compile_context>

<pallas_src>
import functools

import jax
import jax.numpy as jnp
from jax import lax
from jax.experimental import pallas as pl
from jax.experimental.pallas import tpu as pltpu


# ----------------------------------------------------------------------------
# Pallas kernels: tiled  out = act(x @ w + b)
#   bf16 operands on the MXU, f32 accumulation.
#   grid = (M_tiles, N_tiles, K_tiles); K (reduction) innermost / "arbitrary".
# ----------------------------------------------------------------------------
def _epilogue(r_f32, b_ref, o_ref, activation):
    r = r_f32 + b_ref[...]                       # bias in f32
    if activation == "relu":
        r = jnp.maximum(r, 0.0)
    elif activation == "softmax":
        m = jnp.max(r, axis=-1, keepdims=True)
        e = jnp.exp(r - m)
        s = jnp.sum(e, axis=-1, keepdims=True)
        r = e * pl.reciprocal(s, approx=True)    # EUP reciprocal (free slot)
    o_ref[...] = r.astype(o_ref.dtype)


def _mm_single_k_kernel(x_ref, w_ref, b_ref, o_ref, *, activation):
    # K fits in one tile: skip the VMEM accumulator round-trip entirely.
    acc = jnp.dot(x_ref[...], w_ref[...], preferred_element_type=jnp.float32)
    _epilogue(acc, b_ref, o_ref, activation)


def _mm_multi_k_kernel(x_ref, w_ref, b_ref, o_ref, acc_ref, *, activation):
    k = pl.program_id(2)

    @pl.when(k == 0)
    def _():
        acc_ref[...] = jnp.zeros_like(acc_ref)

    acc_ref[...] += jnp.dot(
        x_ref[...], w_ref[...], preferred_element_type=jnp.float32
    )

    @pl.when(k == pl.num_programs(2) - 1)
    def _():
        _epilogue(acc_ref[...], b_ref, o_ref, activation)


# Conservative tile sizes that fit every generation (v7x has 64 MiB VMEM):
# worst-case resident blocks are ~(2*tm*tk + 2*tk*tn + 2*tm*tn)*2B + tm*tn*4B
# which is well under 8 MiB at these settings.
_TM = 256        # M tile ("parallel" axis), multiple of 8
_TN_MAX = 512    # output-lane tile, multiple of 128 -> unmasked vector stores
_VMEM_LIMIT = 48 * 1024 * 1024


def _pick_k_tile(k):
    """Reduction tile: full K if small, else a 128-multiple divisor <= 512."""
    if k <= 576:
        return k
    for t in (512, 384, 256, 128):
        if k % t == 0:
            return t
    return k


def _pick_n_tile(n):
    if n <= _TN_MAX:
        return n
    for t in (512, 384, 256, 128):
        if n % t == 0:
            return t
    return n


def matmul_bias_act(x, w, b, activation="none", out_dtype=jnp.bfloat16):
    """act(x @ w + b).  x:(M,K) (any float), w:(K,N) bf16, b:(N,)/(1,N) f32."""
    M, K = x.shape
    Kw, N = w.shape
    assert K == Kw, (K, Kw)

    x = x.astype(jnp.bfloat16)                      # no-op if already bf16
    w = w.astype(jnp.bfloat16)                      # pre-cast at init -> no-op
    b = jnp.asarray(b, jnp.float32).reshape(1, N)

    tk = _pick_k_tile(K)
    # Softmax needs the whole output row resident in one block (forced here so
    # future tile-picker changes cannot silently break it).
    tn = N if activation == "softmax" else _pick_n_tile(N)

    # Tile M so VMEM use is independent of M (= batch*H*W for the convs).
    if M > _TM:
        tm = _TM
        m_pad = (-M) % tm
        if m_pad:
            x = jnp.pad(x, ((0, m_pad), (0, 0)))    # zero rows, sliced off below
    else:
        tm = M                                      # small M: single full tile
        m_pad = 0
    Mp = M + m_pad

    nk = K // tk
    grid = (Mp // tm, N // tn, nk)

    if nk == 1:
        kernel = functools.partial(_mm_single_k_kernel, activation=activation)
        scratch_shapes = []
    else:
        kernel = functools.partial(_mm_multi_k_kernel, activation=activation)
        scratch_shapes = [pltpu.VMEM((tm, tn), jnp.float32)]

    out = pl.pallas_call(
        kernel,
        out_shape=jax.ShapeDtypeStruct((Mp, N), out_dtype),
        grid_spec=pltpu.PrefetchScalarGridSpec(
            num_scalar_prefetch=0,
            grid=grid,
            in_specs=[
                pl.BlockSpec((tm, tk), lambda i, j, k: (i, k)),
                pl.BlockSpec((tk, tn), lambda i, j, k: (k, j)),
                pl.BlockSpec((1, tn), lambda i, j, k: (0, j)),
            ],
            out_specs=pl.BlockSpec((tm, tn), lambda i, j, k: (i, j)),
            scratch_shapes=scratch_shapes,
        ),
        compiler_params=pltpu.CompilerParams(
            dimension_semantics=("parallel", "parallel", "arbitrary"),
            vmem_limit_bytes=_VMEM_LIMIT,
        ),
    )(x, w, b)
    return out[:M] if m_pad else out


# ----------------------------------------------------------------------------
# Layer wrappers (glue)
# ----------------------------------------------------------------------------
def conv3x3_relu(x_nhwc, w_mat, b):
    """3x3 conv, stride 1, padding 1, + bias + ReLU (bf16 im2col + Pallas matmul).

    # TODO(synk): replace the materialized im2col with in-kernel 9-tap
    # accumulation; it needs sublane-offset input windows which are fragile at
    # the tiny odd spatial sizes (9/5/3/2) this net produces, so the patch
    # extraction stays as bf16 XLA glue for now.
    """
    n, h, w, cin = x_nhwc.shape
    cout = w_mat.shape[-1]
    xp = jnp.pad(x_nhwc, ((0, 0), (1, 1), (1, 1), (0, 0)))
    cols = [xp[:, dy:dy + h, dx:dx + w, :] for dy in range(3) for dx in range(3)]
    patches = jnp.concatenate(cols, axis=-1).reshape(n * h * w, 9 * cin)
    y = matmul_bias_act(patches, w_mat, b, activation="relu",
                        out_dtype=jnp.bfloat16)
    return y.reshape(n, h, w, cout)


def maxpool_2x2_pad1(x_nhwc):
    """nn.MaxPool2d(kernel_size=2, stride=2, padding=1) — -inf padding.

    Matches the provided module exactly (it uses padding=1 on all 4 pools,
    plus the final AdaptiveMaxPool2d(1)).
    # TODO(synk): pooling kept as lax.reduce_window (XLA) — it is <1% of
    # bytes/flops here and a Pallas version needs strided sublane slicing.
    """
    init = jnp.array(-jnp.inf, dtype=x_nhwc.dtype)
    return lax.reduce_window(
        x_nhwc, init, lax.max,
        window_dimensions=(1, 2, 2, 1),
        window_strides=(1, 2, 2, 1),
        padding=((0, 0), (1, 1), (1, 1), (0, 0)),
    )


# ----------------------------------------------------------------------------
# Parameters (deterministic, PyTorch-default-style uniform init),
# pre-cast to bf16 and pre-reshaped for the kernels.
# ----------------------------------------------------------------------------
_CONV_CHANNELS = [
    (None, 64), (64, 64),                       # block 1
    (64, 128), (128, 128),                      # block 2
    (128, 256), (256, 256), (256, 256),         # block 3
    (256, 512), (512, 512), (512, 512),         # block 4
    (512, 512), (512, 512), (512, 512),         # block 5
]
_POOL_AFTER = {1, 3, 6, 9}  # 0-indexed conv layers followed by a 2x2 maxpool


def _init_conv(key, cin, cout):
    kw, kb = jax.random.split(key)
    bound = 1.0 / (cin * 9) ** 0.5
    w = jax.random.uniform(kw, (3, 3, cin, cout), jnp.float32, -bound, bound)
    b = jax.random.uniform(kb, (cout,), jnp.float32, -bound, bound)
    # im2col matmul layout (9*Cin, Cout), bf16 (MXU dtype), done once here.
    return w.reshape(9 * cin, cout).astype(jnp.bfloat16), b.reshape(1, cout)


def _init_linear(key, din, dout):
    kw, kb = jax.random.split(key)
    bound = 1.0 / din ** 0.5
    w = jax.random.uniform(kw, (din, dout), jnp.float32, -bound, bound)
    b = jax.random.uniform(kb, (dout,), jnp.float32, -bound, bound)
    return w.astype(jnp.bfloat16), b.reshape(1, dout)   # bf16 weight streaming


def init_params(key, num_classes=1000, inp_channels=3):
    keys = jax.random.split(key, 16)
    convs = []
    for i, (cin, cout) in enumerate(_CONV_CHANNELS):
        cin = inp_channels if cin is None else cin
        convs.append(_init_conv(keys[i], cin, cout))
    fcs = [
        _init_linear(keys[13], 512, 4096),
        _init_linear(keys[14], 4096, 4096),
        _init_linear(keys[15], 4096, num_classes),
    ]
    return {"convs": convs, "fcs": fcs}


# ----------------------------------------------------------------------------
# Full forward pass (matches VGGNet.forward)
# ----------------------------------------------------------------------------
def vggnet_forward(params, x_nchw):
    # NCHW -> NHWC; bf16 activations throughout (f32 accumulation in-kernel).
    x = jnp.transpose(x_nchw, (0, 2, 3, 1)).astype(jnp.bfloat16)

    for i, (w, b) in enumerate(params["convs"]):
        x = conv3x3_relu(x, w, b)
        if i in _POOL_AFTER:
            x = maxpool_2x2_pad1(x)

    # AdaptiveMaxPool2d(1) + Flatten -> (N, 512)
    x = jnp.max(x, axis=(1, 2))

    w1, b1 = params["fcs"][0]
    x = matmul_bias_act(x, w1, b1, activation="relu", out_dtype=jnp.bfloat16)
    # TODO(synk): nn.Dropout implemented as inference-mode identity (p=0.5 train RNG not reproduced).
    w2, b2 = params["fcs"][1]
    x = matmul_bias_act(x, w2, b2, activation="relu", out_dtype=jnp.bfloat16)
    # dropout -> identity (inference)
    w3, b3 = params["fcs"][2]
    x = matmul_bias_act(x, w3, b3, activation="softmax", out_dtype=jnp.float32)
    return x


if __name__ == "__main__":
    num_classes = 10
    inp_channels = 3

    key = jax.random.PRNGKey(0)
    kx, kp = jax.random.split(key)
    params = init_params(kp, num_classes=num_classes, inp_channels=inp_channels)
    x = jax.random.normal(kx, (2, inp_channels, 16, 16), jnp.float32)

    fwd = jax.jit(vggnet_forward)
    out = fwd(params, x)
    out = jax.block_until_ready(out)

    assert out.shape == (2, num_classes)
    assert bool(jnp.all(jnp.isfinite(out)))
    # softmax rows sum to 1 (loose tol: bf16 operands + approx EUP reciprocal)
    assert bool(jnp.allclose(jnp.sum(out, axis=-1), 1.0, atol=1e-2))
    print("KERNEL_OK")
</pallas_src>

<mosaic_0001>
module attributes {stable_mosaic.version = 11 : i64} {
  func.func @_mm_single_k_kernel(%arg0: i32, %arg1: i32, %arg2: i32, %arg3: memref<256x27xbf16, #tpu.memory_space<vmem>>, %arg4: memref<27x64xbf16, #tpu.memory_space<vmem>>, %arg5: memref<1x64xf32, #tpu.memory_space<vmem>>, %arg6: memref<256x64xbf16, #tpu.memory_space<vmem>>) attributes {dimension_semantics = [#tpu.dimension_semantics<parallel>, #tpu.dimension_semantics<parallel>, #tpu.dimension_semantics<arbitrary>], iteration_bounds = array<i64: 2, 1, 1>, scalar_prefetch = 0 : i64, scratch_operands = 0 : i64, tpu.core_type = #tpu.core_type<tc>, window_params = [{transform_indices = @transform_0, window_bounds = array<i64: 256, 27>}, {transform_indices = @transform_1, window_bounds = array<i64: 27, 64>}, {transform_indices = @transform_2, window_bounds = array<i64: 1, 64>}, {transform_indices = @transform_3, window_bounds = array<i64: 256, 64>}]} {
    %c0 = arith.constant 0 : index
    %c0_0 = arith.constant 0 : index
    %0 = vector.load %arg3[%c0, %c0_0] : memref<256x27xbf16, #tpu.memory_space<vmem>>, vector<256x27xbf16>
    %c0_1 = arith.constant 0 : index
    %c0_2 = arith.constant 0 : index
    %1 = vector.load %arg4[%c0_1, %c0_2] : memref<27x64xbf16, #tpu.memory_space<vmem>>, vector<27x64xbf16>
    %cst = arith.constant dense<0.000000e+00> : vector<256x64xf32>
    %2 = tpu.matmul %0, %1, %cst {dimension_numbers = #tpu.dot_dimension_numbers<[1], [0], [0], [1], [0, 0, 1, 1], [], []>} : vector<256x27xbf16>, vector<27x64xbf16>, vector<256x64xf32> -> vector<256x64xf32>
    %c0_3 = arith.constant 0 : index
    %c0_4 = arith.constant 0 : index
    %3 = vector.load %arg5[%c0_3, %c0_4] : memref<1x64xf32, #tpu.memory_space<vmem>>, vector<1x64xf32>
    %4 = vector.broadcast %3 : vector<1x64xf32> to vector<256x64xf32>
    %5 = arith.addf %2, %4 : vector<256x64xf32>
    %cst_5 = arith.constant 0.000000e+00 : f32
    %6 = vector.broadcast %cst_5 : f32 to vector<256x64xf32>
    %7 = arith.maximumf %5, %6 : vector<256x64xf32>
    %8 = arith.truncf %7 : vector<256x64xf32> to vector<256x64xbf16>
    %c0_6 = arith.constant 0 : index
    %c0_7 = arith.constant 0 : index
    %9 = vector.load %arg6[%c0_6, %c0_7] : memref<256x64xbf16, #tpu.memory_space<vmem>>, vector<256x64xbf16>
    tpu.vector_store %arg6[%c0_6, %c0_7], %8 {strides = array<i32>} : memref<256x64xbf16, #tpu.memory_space<vmem>>, vector<256x64xbf16>,
    return
  }
  func.func @transform_0(%arg0: i32, %arg1: i32, %arg2: i32) -> (i32, i32) {
    %c0_i32 = arith.constant 0 : i32
    return %arg0, %arg2 : i32, i32
  }
  func.func @transform_1(%arg0: i32, %arg1: i32, %arg2: i32) -> (i32, i32) {
    %c0_i32 = arith.constant 0 : i32
    return %arg2, %arg1 : i32, i32
  }
  func.func @transform_2(%arg0: i32, %arg1: i32, %arg2: i32) -> (i32, i32) {
    %c0_i32 = arith.constant 0 : i32
    %c0_i32_0 = arith.constant 0 : i32
    return %c0_i32, %arg1 : i32, i32
  }
  func.func @transform_3(%arg0: i32, %arg1: i32, %arg2: i32) -> (i32, i32) {
    %c0_i32 = arith.constant 0 : i32
    return %arg0, %arg1 : i32, i32
  }
}

module attributes {stable_mosaic.version = 11 : i64} {
  func.func @_mm_single_k_kernel(%arg0: i32, %arg1: i32, %arg2: i32, %arg3: memref<256x576xbf16, #tpu.memory_space<vmem>>, %arg4: memref<576x64xbf16, #tpu.memory_space<vmem>>, %arg5: memref<1x64xf32, #tpu.memory_space<vmem>>, %arg6: memref<256x64xbf16, #tpu.memory_space<vmem>>) attributes {dimension_semantics = [#tpu.dimension_semantics<parallel>, #tpu.dimension_semantics<parallel>, #tpu.dimension_semantics<arbitrary>], iteration_bounds = array<i64: 2, 1, 1>, scalar_prefetch = 0 : i64, scratch_operands = 0 : i64, tpu.core_type = #tpu.core_type<tc>, window_params = [{transform_indices = @transform_0, window_bounds = array<i64: 256, 576>}, {transform_indices = @transform_1, window_bounds = array<i64: 576, 64>}, {transform_indices = @transform_2, window_bounds = array<i64: 1, 64>}, {transform_indices = @transform_3, window_bounds = array<i64: 256, 64>}]} {
    %c0 = arith.constant 0 : index
    %c0_0 = arith.constant 0 : index
    %0 = vector.load %arg3[%c0, %c0_0] : memref<256x576xbf16, #tpu.memory_space<vmem>>, vector<256x576xbf16>
    %c0_1 = arith.constant 0 : index
    %c0_2 = arith.constant 0 : index
    %1 = vector.load %arg4[%c0_1, %c0_2] : memref<576x64xbf16, #tpu.memory_space<vmem>>, vector<576x64xbf16>
    %cst = arith.constant dense<0.000000e+00> : vector<256x64xf32>
    %2 = tpu.matmul %0, %1, %cst {dimension_numbers = #tpu.dot_dimension_numbers<[1], [0], [0], [1], [0, 0, 1, 1], [], []>} : vector<256x576xbf16>, vector<576x64xbf16>, vector<256x64xf32> -> vector<256x64xf32>
    %c0_3 = arith.constant 0 : index
    %c0_4 = arith.constant 0 : index
    %3 = vector.load %arg5[%c0_3, %c0_4] : memref<1x64xf32, #tpu.memory_space<vmem>>, vector<1x64xf32>
    %4 = vector.broadcast %3 : vector<1x64xf32> to vector<256x64xf32>
    %5 = arith.addf %2, %4 : vector<256x64xf32>
    %cst_5 = arith.constant 0.000000e+00 : f32
    %6 = vector.broadcast %cst_5 : f32 to vector<256x64xf32>
    %7 = arith.maximumf %5, %6 : vector<256x64xf32>
    %8 = arith.truncf %7 : vector<256x64xf32> to vector<256x64xbf16>
    %c0_6 = arith.constant 0 : index
    %c0_7 = arith.constant 0 : index
    %9 = vector.load %arg6[%c0_6, %c0_7] : memref<256x64xbf16, #tpu.memory_space<vmem>>, vector<256x64xbf16>
    tpu.vector_store %arg6[%c0_6, %c0_7], %8 {strides = array<i32>} : memref<256x64xbf16, #tpu.memory_space<vmem>>, vector<256x64xbf16>,
    return
  }
  func.func @transform_0(%arg0: i32, %arg1: i32, %arg2: i32) -> (i32, i32) {
    %c0_i32 = arith.constant 0 : i32
    return %arg0, %arg2 : i32, i32
  }
  func.func @transform_1(%arg0: i32, %arg1: i32, %arg2: i32) -> (i32, i32) {
    %c0_i32 = arith.constant 0 : i32
    return %arg2, %arg1 : i32, i32
  }
  func.func @transform_2(%arg0: i32, %arg1: i32, %arg2: i32) -> (i32, i32) {
    %c0_i32 = arith.constant 0 : i32
    %c0_i32_0 = arith.constant 0 : i32
    return %c0_i32, %arg1 : i32, i32
  }
  func.func @transform_3(%arg0: i32, %arg1: i32, %arg2: i32) -> (i32, i32) {
    %c0_i32 = arith.constant 0 : i32
    return %arg0, %arg1 : i32, i32
  }
}

module attributes {stable_mosaic.version = 11 : i64} {
  func.func @_mm_single_k_kernel(%arg0: i32, %arg1: i32, %arg2: i32, %arg3: memref<162x576xbf16, #tpu.memory_space<vmem>>, %arg4: memref<576x128xbf16, #tpu.memory_space<vmem>>, %arg5: memref<1x128xf32, #tpu.memory_space<vmem>>, %arg6: memref<162x128xbf16, #tpu.memory_space<vmem>>) attributes {dimension_semantics = [#tpu.dimension_semantics<parallel>, #tpu.dimension_semantics<parallel>, #tpu.dimension_semantics<arbitrary>], iteration_bounds = array<i64: 1, 1, 1>, scalar_prefetch = 0 : i64, scratch_operands = 0 : i64, tpu.core_type = #tpu.core_type<tc>, window_params = [{transform_indices = @transform_0, window_bounds = array<i64: 162, 576>}, {transform_indices = @transform_1, window_bounds = array<i64: 576, 128>}, {transform_indices = @transform_2, window_bounds = array<i64: 1, 128>}, {transform_indices = @transform_3, window_bounds = array<i64: 162, 128>}]} {
    %c0 = arith.constant 0 : index
    %c0_0 = arith.constant 0 : index
    %0 = vector.load %arg3[%c0, %c0_0] : memref<162x576xbf16, #tpu.memory_space<vmem>>, vector<162x576xbf16>
    %c0_1 = arith.constant 0 : index
    %c0_2 = arith.constant 0 : index
    %1 = vector.load %arg4[%c0_1, %c0_2] : memref<576x128xbf16, #tpu.memory_space<vmem>>, vector<576x128xbf16>
    %cst = arith.constant dense<0.000000e+00> : vector<162x128xf32>
    %2 = tpu.matmul %0, %1, %cst {dimension_numbers = #tpu.dot_dimension_numbers<[1], [0], [0], [1], [0, 0, 1, 1], [], []>} : vector<162x576xbf16>, vector<576x128xbf16>, vector<162x128xf32> -> vector<162x128xf32>
    %c0_3 = arith.constant 0 : index
    %c0_4 = arith.constant 0 : index
    %3 = vector.load %arg5[%c0_3, %c0_4] : memref<1x128xf32, #tpu.memory_space<vmem>>, vector<1x128xf32>
    %4 = vector.broadcast %3 : vector<1x128xf32> to vector<162x128xf32>
    %5 = arith.addf %2, %4 : vector<162x128xf32>
    %cst_5 = arith.constant 0.000000e+00 : f32
    %6 = vector.broadcast %cst_5 : f32 to vector<162x128xf32>
    %7 = arith.maximumf %5, %6 : vector<162x128xf32>
    %8 = arith.truncf %7 : vector<162x128xf32> to vector<162x128xbf16>
    %c0_6 = arith.constant 0 : index
    %c0_7 = arith.constant 0 : index
    %9 = vector.load %arg6[%c0_6, %c0_7] : memref<162x128xbf16, #tpu.memory_space<vmem>>, vector<162x128xbf16>
    tpu.vector_store %arg6[%c0_6, %c0_7], %8 {strides = array<i32>} : memref<162x128xbf16, #tpu.memory_space<vmem>>, vector<162x128xbf16>,
    return
  }
  func.func @transform_0(%arg0: i32, %arg1: i32, %arg2: i32) -> (i32, i32) {
    %c0_i32 = arith.constant 0 : i32
    return %arg0, %arg2 : i32, i32
  }
  func.func @transform_1(%arg0: i32, %arg1: i32, %arg2: i32) -> (i32, i32) {
    %c0_i32 = arith.constant 0 : i32
    return %arg2, %arg1 : i32, i32
  }
  func.func @transform_2(%arg0: i32, %arg1: i32, %arg2: i32) -> (i32, i32) {
    %c0_i32 = arith.constant 0 : i32
    %c0_i32_0 = arith.constant 0 : i32
    return %c0_i32, %arg1 : i32, i32
  }
  func.func @transform_3(%arg0: i32, %arg1: i32, %arg2: i32) -> (i32, i32) {
    %c0_i32 = arith.constant 0 : i32
    return %arg0, %arg1 : i32, i32
  }
}

module attributes {stable_mosaic.version = 11 : i64} {
  func.func @_mm_multi_k_kernel(%arg0: i32, %arg1: i32, %arg2: i32, %arg3: memref<162x384xbf16, #tpu.memory_space<vmem>>, %arg4: memref<384x128xbf16, #tpu.memory_space<vmem>>, %arg5: memref<1x128xf32, #tpu.memory_space<vmem>>, %arg6: memref<162x128xbf16, #tpu.memory_space<vmem>>, %arg7: memref<162x128xf32, #tpu.memory_space<vmem>>) attributes {dimension_semantics = [#tpu.dimension_semantics<parallel>, #tpu.dimension_semantics<parallel>, #tpu.dimension_semantics<arbitrary>], iteration_bounds = array<i64: 1, 1, 3>, scalar_prefetch = 0 : i64, scratch_operands = 1 : i64, tpu.core_type = #tpu.core_type<tc>, window_params = [{transform_indices = @transform_0, window_bounds = array<i64: 162, 384>}, {transform_indices = @transform_1, window_bounds = array<i64: 384, 128>}, {transform_indices = @transform_2, window_bounds = array<i64: 1, 128>}, {transform_indices = @transform_3, window_bounds = array<i64: 162, 128>}]} {
    %c0_i32 = arith.constant 0 : i32
    %0 = arith.cmpi eq, %arg2, %c0_i32 : i32
    %1 = arith.extui %0 : i1 to i32
    %c0_i32_0 = arith.constant 0 : i32
    %2 = arith.cmpi ne, %1, %c0_i32_0 : i32
    scf.if %2 {
      %cst_9 = arith.constant 0.000000e+00 : f32
      %12 = vector.broadcast %cst_9 : f32 to vector<162x128xf32>
      %c0_10 = arith.constant 0 : index
      %c0_11 = arith.constant 0 : index
      %13 = vector.load %arg7[%c0_10, %c0_11] : memref<162x128xf32, #tpu.memory_space<vmem>>, vector<162x128xf32>
      tpu.vector_store %arg7[%c0_10, %c0_11], %12 {strides = array<i32>} : memref<162x128xf32, #tpu.memory_space<vmem>>, vector<162x128xf32>,
    } else {
    }
    %c0 = arith.constant 0 : index
    %c0_1 = arith.constant 0 : index
    %3 = vector.load %arg7[%c0, %c0_1] : memref<162x128xf32, #tpu.memory_space<vmem>>, vector<162x128xf32>
    %c0_2 = arith.constant 0 : index
    %c0_3 = arith.constant 0 : index
    %4 = vector.load %arg3[%c0_2, %c0_3] : memref<162x384xbf16, #tpu.memory_space<vmem>>, vector<162x384xbf16>
    %c0_4 = arith.constant 0 : index
    %c0_5 = arith.constant 0 : index
    %5 = vector.load %arg4[%c0_4, %c0_5] : memref<384x128xbf16, #tpu.memory_space<vmem>>, vector<384x128xbf16>
    %cst = arith.constant dense<0.000000e+00> : vector<162x128xf32>
    %6 = tpu.matmul %4, %5, %cst {dimension_numbers = #tpu.dot_dimension_numbers<[1], [0], [0], [1], [0, 0, 1, 1], [], []>} : vector<162x384xbf16>, vector<384x128xbf16>, vector<162x128xf32> -> vector<162x128xf32>
    %7 = arith.addf %3, %6 : vector<162x128xf32>
    %c0_6 = arith.constant 0 : index
    %c0_7 = arith.constant 0 : index
    %8 = vector.load %arg7[%c0_6, %c0_7] : memref<162x128xf32, #tpu.memory_space<vmem>>, vector<162x128xf32>
    tpu.vector_store %arg7[%c0_6, %c0_7], %7 {strides = array<i32>} : memref<162x128xf32, #tpu.memory_space<vmem>>, vector<162x128xf32>,
    %c2_i32 = arith.constant 2 : i32
    %9 = arith.cmpi eq, %arg2, %c2_i32 : i32
    %10 = arith.extui %9 : i1 to i32
    %c0_i32_8 = arith.constant 0 : i32
    %11 = arith.cmpi ne, %10, %c0_i32_8 : i32
    scf.if %11 {
      %c0_9 = arith.constant 0 : index
      %c0_10 = arith.constant 0 : index
      %12 = vector.load %arg7[%c0_9, %c0_10] : memref<162x128xf32, #tpu.memory_space<vmem>>, vector<162x128xf32>
      %c0_11 = arith.constant 0 : index
      %c0_12 = arith.constant 0 : index
      %13 = vector.load %arg5[%c0_11, %c0_12] : memref<1x128xf32, #tpu.memory_space<vmem>>, vector<1x128xf32>
      %14 = vector.broadcast %13 : vector<1x128xf32> to vector<162x128xf32>
      %15 = arith.addf %12, %14 : vector<162x128xf32>
      %cst_13 = arith.constant 0.000000e+00 : f32
      %16 = vector.broadcast %cst_13 : f32 to vector<162x128xf32>
      %17 = arith.maximumf %15, %16 : vector<162x128xf32>
      %18 = arith.truncf %17 : vector<162x128xf32> to vector<162x128xbf16>
      %c0_14 = arith.constant 0 : index
      %c0_15 = arith.constant 0 : index
      %19 = vector.load %arg6[%c0_14, %c0_15] : memref<162x128xbf16, #tpu.memory_space<vmem>>, vector<162x128xbf16>
      tpu.vector_store %arg6[%c0_14, %c0_15], %18 {strides = array<i32>} : memref<162x128xbf16, #tpu.memory_space<vmem>>, vector<162x128xbf16>,
    } else {
    }
    return
  }
  func.func @transform_0(%arg0: i32, %arg1: i32, %arg2: i32) -> (i32, i32) {
    %c0_i32 = arith.constant 0 : i32
    return %arg0, %arg2 : i32, i32
  }
  func.func @transform_1(%arg0: i32, %arg1: i32, %arg2: i32) -> (i32, i32) {
    %c0_i32 = arith.constant 0 : i32
    return %arg2, %arg1 : i32, i32
  }
  func.func @transform_2(%arg0: i32, %arg1: i32, %arg2: i32) -> (i32, i32) {
    %c0_i32 = arith.constant 0 : i32
    %c0_i32_0 = arith.constant 0 : i32
    return %c0_i32, %arg1 : i32, i32
  }
  func.func @transform_3(%arg0: i32, %arg1: i32, %arg2: i32) -> (i32, i32) {
    %c0_i32 = arith.constant 0 : i32
    return %arg0, %arg1 : i32, i32
  }
}

module attributes {stable_mosaic.version = 11 : i64} {
  func.func @_mm_multi_k_kernel(%arg0: i32, %arg1: i32, %arg2: i32, %arg3: memref<50x384xbf16, #tpu.memory_space<vmem>>, %arg4: memref<384x256xbf16, #tpu.memory_space<vmem>>, %arg5: memref<1x256xf32, #tpu.memory_space<vmem>>, %arg6: memref<50x256xbf16, #tpu.memory_space<vmem>>, %arg7: memref<50x256xf32, #tpu.memory_space<vmem>>) attributes {dimension_semantics = [#tpu.dimension_semantics<parallel>, #tpu.dimension_semantics<parallel>, #tpu.dimension_semantics<arbitrary>], iteration_bounds = array<i64: 1, 1, 3>, scalar_prefetch = 0 : i64, scratch_operands = 1 : i64, tpu.core_type = #tpu.core_type<tc>, window_params = [{transform_indices = @transform_0, window_bounds = array<i64: 50, 384>}, {transform_indices = @transform_1, window_bounds = array<i64: 384, 256>}, {transform_indices = @transform_2, window_bounds = array<i64: 1, 256>}, {transform_indices = @transform_3, window_bounds = array<i64: 50, 256>}]} {
    %c0_i32 = arith.constant 0 : i32
    %0 = arith.cmpi eq, %arg2, %c0_i32 : i32
    %1 = arith.extui %0 : i1 to i32
    %c0_i32_0 = arith.constant 0 : i32
    %2 = arith.cmpi ne, %1, %c0_i32_0 : i32
    scf.if %2 {
      %cst_9 = arith.constant 0.000000e+00 : f32
      %12 = vector.broadcast %cst_9 : f32 to vector<50x256xf32>
      %c0_10 = arith.constant 0 : index
      %c0_11 = arith.constant 0 : index
      %13 = vector.load %arg7[%c0_10, %c0_11] : memref<50x256xf32, #tpu.memory_space<vmem>>, vector<50x256xf32>
      tpu.vector_store %arg7[%c0_10, %c0_11], %12 {strides = array<i32>} : memref<50x256xf32, #tpu.memory_space<vmem>>, vector<50x256xf32>,
    } else {
    }
    %c0 = arith.constant 0 : index
    %c0_1 = arith.constant 0 : index
    %3 = vector.load %arg7[%c0, %c0_1] : memref<50x256xf32, #tpu.memory_space<vmem>>, vector<50x256xf32>
    %c0_2 = arith.constant 0 : index
    %c0_3 = arith.constant 0 : index
    %4 = vector.load %arg3[%c0_2, %c0_3] : memref<50x384xbf16, #tpu.memory_space<vmem>>, vector<50x384xbf16>
    %c0_4 = arith.constant 0 : index
    %c0_5 = arith.constant 0 : index
    %5 = vector.load %arg4[%c0_4, %c0_5] : memref<384x256xbf16, #tpu.memory_space<vmem>>, vector<384x256xbf16>
    %cst = arith.constant dense<0.000000e+00> : vector<50x256xf32>
    %6 = tpu.matmul %4, %5, %cst {dimension_numbers = #tpu.dot_dimension_numbers<[1], [0], [0], [1], [0, 0, 1, 1], [], []>} : vector<50x384xbf16>, vector<384x256xbf16>, vector<50x256xf32> -> vector<50x256xf32>
    %7 = arith.addf %3, %6 : vector<50x256xf32>
    %c0_6 = arith.constant 0 : index
    %c0_7 = arith.constant 0 : index
    %8 = vector.load %arg7[%c0_6, %c0_7] : memref<50x256xf32, #tpu.memory_space<vmem>>, vector<50x256xf32>
    tpu.vector_store %arg7[%c0_6, %c0_7], %7 {strides = array<i32>} : memref<50x256xf32, #tpu.memory_space<vmem>>, vector<50x256xf32>,
    %c2_i32 = arith.constant 2 : i32
    %9 = arith.cmpi eq, %arg2, %c2_i32 : i32
    %10 = arith.extui %9 : i1 to i32
    %c0_i32_8 = arith.constant 0 : i32
    %11 = arith.cmpi ne, %10, %c0_i32_8 : i32
    scf.if %11 {
      %c0_9 = arith.constant 0 : index
      %c0_10 = arith.constant 0 : index
      %12 = vector.load %arg7[%c0_9, %c0_10] : memref<50x256xf32, #tpu.memory_space<vmem>>, vector<50x256xf32>
      %c0_11 = arith.constant 0 : index
      %c0_12 = arith.constant 0 : index
      %13 = vector.load %arg5[%c0_11, %c0_12] : memref<1x256xf32, #tpu.memory_space<vmem>>, vector<1x256xf32>
      %14 = vector.broadcast %13 : vector<1x256xf32> to vector<50x256xf32>
      %15 = arith.addf %12, %14 : vector<50x256xf32>
      %cst_13 = arith.constant 0.000000e+00 : f32
      %16 = vector.broadcast %cst_13 : f32 to vector<50x256xf32>
      %17 = arith.maximumf %15, %16 : vector<50x256xf32>
      %18 = arith.truncf %17 : vector<50x256xf32> to vector<50x256xbf16>
      %c0_14 = arith.constant 0 : index
      %c0_15 = arith.constant 0 : index
      %19 = vector.load %arg6[%c0_14, %c0_15] : memref<50x256xbf16, #tpu.memory_space<vmem>>, vector<50x256xbf16>
      tpu.vector_store %arg6[%c0_14, %c0_15], %18 {strides = array<i32>} : memref<50x256xbf16, #tpu.memory_space<vmem>>, vector<50x256xbf16>,
    } else {
    }
    return
  }
  func.func @transform_0(%arg0: i32, %arg1: i32, %arg2: i32) -> (i32, i32) {
    %c0_i32 = arith.constant 0 : i32
    return %arg0, %arg2 : i32, i32
  }
  func.func @transform_1(%arg0: i32, %arg1: i32, %arg2: i32) -> (i32, i32) {
    %c0_i32 = arith.constant 0 : i32
    return %arg2, %arg1 : i32, i32
  }
  func.func @transform_2(%arg0: i32, %arg1: i32, %arg2: i32) -> (i32, i32) {
    %c0_i32 = arith.constant 0 : i32
    %c0_i32_0 = arith.constant 0 : i32
    return %c0_i32, %arg1 : i32, i32
  }
  func.func @transform_3(%arg0: i32, %arg1: i32, %arg2: i32) -> (i32, i32) {
    %c0_i32 = arith.constant 0 : i32
    return %arg0, %arg1 : i32, i32
  }
}

module attributes {stable_mosaic.version = 11 : i64} {
  func.func @_mm_multi_k_kernel(%arg0: i32, %arg1: i32, %arg2: i32, %arg3: memref<50x384xbf16, #tpu.memory_space<vmem>>, %arg4: memref<384x256xbf16, #tpu.memory_space<vmem>>, %arg5: memref<1x256xf32, #tpu.memory_space<vmem>>, %arg6: memref<50x256xbf16, #tpu.memory_space<vmem>>, %arg7: memref<50x256xf32, #tpu.memory_space<vmem>>) attributes {dimension_semantics = [#tpu.dimension_semantics<parallel>, #tpu.dimension_semantics<parallel>, #tpu.dimension_semantics<arbitrary>], iteration_bounds = array<i64: 1, 1, 6>, scalar_prefetch = 0 : i64, scratch_operands = 1 : i64, tpu.core_type = #tpu.core_type<tc>, window_params = [{transform_indices = @transform_0, window_bounds = array<i64: 50, 384>}, {transform_indices = @transform_1, window_bounds = array<i64: 384, 256>}, {transform_indices = @transform_2, window_bounds = array<i64: 1, 256>}, {transform_indices = @transform_3, window_bounds = array<i64: 50, 256>}]} {
    %c0_i32 = arith.constant 0 : i32
    %0 = arith.cmpi eq, %arg2, %c0_i32 : i32
    %1 = arith.extui %0 : i1 to i32
    %c0_i32_0 = arith.constant 0 : i32
    %2 = arith.cmpi ne, %1, %c0_i32_0 : i32
    scf.if %2 {
      %cst_9 = arith.constant 0.000000e+00 : f32
      %12 = vector.broadcast %cst_9 : f32 to vector<50x256xf32>
      %c0_10 = arith.constant 0 : index
      %c0_11 = arith.constant 0 : index
      %13 = vector.load %arg7[%c0_10, %c0_11] : memref<50x256xf32, #tpu.memory_space<vmem>>, vector<50x256xf32>
      tpu.vector_store %arg7[%c0_10, %c0_11], %12 {strides = array<i32>} : memref<50x256xf32, #tpu.memory_space<vmem>>, vector<50x256xf32>,
    } else {
    }
    %c0 = arith.constant 0 : index
    %c0_1 = arith.constant 0 : index
    %3 = vector.load %arg7[%c0, %c0_1] : memref<50x256xf32, #tpu.memory_space<vmem>>, vector<50x256xf32>
    %c0_2 = arith.constant 0 : index
    %c0_3 = arith.constant 0 : index
    %4 = vector.load %arg3[%c0_2, %c0_3] : memref<50x384xbf16, #tpu.memory_space<vmem>>, vector<50x384xbf16>
    %c0_4 = arith.constant 0 : index
    %c0_5 = arith.constant 0 : index
    %5 = vector.load %arg4[%c0_4, %c0_5] : memref<384x256xbf16, #tpu.memory_space<vmem>>, vector<384x256xbf16>
    %cst = arith.constant dense<0.000000e+00> : vector<50x256xf32>
    %6 = tpu.matmul %4, %5, %cst {dimension_numbers = #tpu.dot_dimension_numbers<[1], [0], [0], [1], [0, 0, 1, 1], [], []>} : vector<50x384xbf16>, vector<384x256xbf16>, vector<50x256xf32> -> vector<50x256xf32>
    %7 = arith.addf %3, %6 : vector<50x256xf32>
    %c0_6 = arith.constant 0 : index
    %c0_7 = arith.constant 0 : index
    %8 = vector.load %arg7[%c0_6, %c0_7] : memref<50x256xf32, #tpu.memory_space<vmem>>, vector<50x256xf32>
    tpu.vector_store %arg7[%c0_6, %c0_7], %7 {strides = array<i32>} : memref<50x256xf32, #tpu.memory_space<vmem>>, vector<50x256xf32>,
    %c5_i32 = arith.constant 5 : i32
    %9 = arith.cmpi eq, %arg2, %c5_i32 : i32
    %10 = arith.extui %9 : i1 to i32
    %c0_i32_8 = arith.constant 0 : i32
    %11 = arith.cmpi ne, %10, %c0_i32_8 : i32
    scf.if %11 {
      %c0_9 = arith.constant 0 : index
      %c0_10 = arith.constant 0 : index
      %12 = vector.load %arg7[%c0_9, %c0_10] : memref<50x256xf32, #tpu.memory_space<vmem>>, vector<50x256xf32>
      %c0_11 = arith.constant 0 : index
      %c0_12 = arith.constant 0 : index
      %13 = vector.load %arg5[%c0_11, %c0_12] : memref<1x256xf32, #tpu.memory_space<vmem>>, vector<1x256xf32>
      %14 = vector.broadcast %13 : vector<1x256xf32> to vector<50x256xf32>
      %15 = arith.addf %12, %14 : vector<50x256xf32>
      %cst_13 = arith.constant 0.000000e+00 : f32
      %16 = vector.broadcast %cst_13 : f32 to vector<50x256xf32>
      %17 = arith.maximumf %15, %16 : vector<50x256xf32>
      %18 = arith.truncf %17 : vector<50x256xf32> to vector<50x256xbf16>
      %c0_14 = arith.constant 0 : index
      %c0_15 = arith.constant 0 : index
      %19 = vector.load %arg6[%c0_14, %c0_15] : memref<50x256xbf16, #tpu.memory_space<vmem>>, vector<50x256xbf16>
      tpu.vector_store %arg6[%c0_14, %c0_15], %18 {strides = array<i32>} : memref<50x256xbf16, #tpu.memory_space<vmem>>, vector<50x256xbf16>,
    } else {
    }
    return
  }
  func.func @transform_0(%arg0: i32, %arg1: i32, %arg2: i32) -> (i32, i32) {
    %c0_i32 = arith.constant 0 : i32
    return %arg0, %arg2 : i32, i32
  }
  func.func @transform_1(%arg0: i32, %arg1: i32, %arg2: i32) -> (i32, i32) {
    %c0_i32 = arith.constant 0 : i32
    return %arg2, %arg1 : i32, i32
  }
  func.func @transform_2(%arg0: i32, %arg1: i32, %arg2: i32) -> (i32, i32) {
    %c0_i32 = arith.constant 0 : i32
    %c0_i32_0 = arith.constant 0 : i32
    return %c0_i32, %arg1 : i32, i32
  }
  func.func @transform_3(%arg0: i32, %arg1: i32, %arg2: i32) -> (i32, i32) {
    %c0_i32 = arith.constant 0 : i32
    return %arg0, %arg1 : i32, i32
  }
}

module attributes {stable_mosaic.version = 11 : i64} {
  func.func @_mm_multi_k_kernel(%arg0: i32, %arg1: i32, %arg2: i32, %arg3: memref<18x384xbf16, #tpu.memory_space<vmem>>, %arg4: memref<384x512xbf16, #tpu.memory_space<vmem>>, %arg5: memref<1x512xf32, #tpu.memory_space<vmem>>, %arg6: memref<18x512xbf16, #tpu.memory_space<vmem>>, %arg7: memref<18x512xf32, #tpu.memory_space<vmem>>) attributes {dimension_semantics = [#tpu.dimension_semantics<parallel>, #tpu.dimension_semantics<parallel>, #tpu.dimension_semantics<arbitrary>], iteration_bounds = array<i64: 1, 1, 6>, scalar_prefetch = 0 : i64, scratch_operands = 1 : i64, tpu.core_type = #tpu.core_type<tc>, window_params = [{transform_indices = @transform_0, window_bounds = array<i64: 18, 384>}, {transform_indices = @transform_1, window_bounds = array<i64: 384, 512>}, {transform_indices = @transform_2, window_bounds = array<i64: 1, 512>}, {transform_indices = @transform_3, window_bounds = array<i64: 18, 512>}]} {
    %c0_i32 = arith.constant 0 : i32
    %0 = arith.cmpi eq, %arg2, %c0_i32 : i32
    %1 = arith.extui %0 : i1 to i32
    %c0_i32_0 = arith.constant 0 : i32
    %2 = arith.cmpi ne, %1, %c0_i32_0 : i32
    scf.if %2 {
      %cst_9 = arith.constant 0.000000e+00 : f32
      %12 = vector.broadcast %cst_9 : f32 to vector<18x512xf32>
      %c0_10 = arith.constant 0 : index
      %c0_11 = arith.constant 0 : index
      %13 = vector.load %arg7[%c0_10, %c0_11] : memref<18x512xf32, #tpu.memory_space<vmem>>, vector<18x512xf32>
      tpu.vector_store %arg7[%c0_10, %c0_11], %12 {strides = array<i32>} : memref<18x512xf32, #tpu.memory_space<vmem>>, vector<18x512xf32>,
    } else {
    }
    %c0 = arith.constant 0 : index
    %c0_1 = arith.constant 0 : index
    %3 = vector.load %arg7[%c0, %c0_1] : memref<18x512xf32, #tpu.memory_space<vmem>>, vector<18x512xf32>
    %c0_2 = arith.constant 0 : index
    %c0_3 = arith.constant 0 : index
    %4 = vector.load %arg3[%c0_2, %c0_3] : memref<18x384xbf16, #tpu.memory_space<vmem>>, vector<18x384xbf16>
    %c0_4 = arith.constant 0 : index
    %c0_5 = arith.constant 0 : index
    %5 = vector.load %arg4[%c0_4, %c0_5] : memref<384x512xbf16, #tpu.memory_space<vmem>>, vector<384x512xbf16>
    %cst = arith.constant dense<0.000000e+00> : vector<18x512xf32>
    %6 = tpu.matmul %4, %5, %cst {dimension_numbers = #tpu.dot_dimension_numbers<[1], [0], [0], [1], [0, 0, 1, 1], [], []>} : vector<18x384xbf16>, vector<384x512xbf16>, vector<18x512xf32> -> vector<18x512xf32>
    %7 = arith.addf %3, %6 : vector<18x512xf32>
    %c0_6 = arith.constant 0 : index
    %c0_7 = arith.constant 0 : index
    %8 = vector.load %arg7[%c0_6, %c0_7] : memref<18x512xf32, #tpu.memory_space<vmem>>, vector<18x512xf32>
    tpu.vector_store %arg7[%c0_6, %c0_7], %7 {strides = array<i32>} : memref<18x512xf32, #tpu.memory_space<vmem>>, vector<18x512xf32>,
    %c5_i32 = arith.constant 5 : i32
    %9 = arith.cmpi eq, %arg2, %c5_i32 : i32
    %10 = arith.extui %9 : i1 to i32
    %c0_i32_8 = arith.constant 0 : i32
    %11 = arith.cmpi ne, %10, %c0_i32_8 : i32
    scf.if %11 {
      %c0_9 = arith.constant 0 : index
      %c0_10 = arith.constant 0 : index
      %12 = vector.load %arg7[%c0_9, %c0_10] : memref<18x512xf32, #tpu.memory_space<vmem>>, vector<18x512xf32>
      %c0_11 = arith.constant 0 : index
      %c0_12 = arith.constant 0 : index
      %13 = vector.load %arg5[%c0_11, %c0_12] : memref<1x512xf32, #tpu.memory_space<vmem>>, vector<1x512xf32>
      %14 = vector.broadcast %13 : vector<1x512xf32> to vector<18x512xf32>
      %15 = arith.addf %12, %14 : vector<18x512xf32>
      %cst_13 = arith.constant 0.000000e+00 : f32
      %16 = vector.broadcast %cst_13 : f32 to vector<18x512xf32>
      %17 = arith.maximumf %15, %16 : vector<18x512xf32>
      %18 = arith.truncf %17 : vector<18x512xf32> to vector<18x512xbf16>
      %c0_14 = arith.constant 0 : index
      %c0_15 = arith.constant 0 : index
      %19 = vector.load %arg6[%c0_14, %c0_15] : memref<18x512xbf16, #tpu.memory_space<vmem>>, vector<18x512xbf16>
      tpu.vector_store %arg6[%c0_14, %c0_15], %18 {strides = array<i32>} : memref<18x512xbf16, #tpu.memory_space<vmem>>, vector<18x512xbf16>,
    } else {
    }
    return
  }
  func.func @transform_0(%arg0: i32, %arg1: i32, %arg2: i32) -> (i32, i32) {
    %c0_i32 = arith.constant 0 : i32
    return %arg0, %arg2 : i32, i32
  }
  func.func @transform_1(%arg0: i32, %arg1: i32, %arg2: i32) -> (i32, i32) {
    %c0_i32 = arith.constant 0 : i32
    return %arg2, %arg1 : i32, i32
  }
  func.func @transform_2(%arg0: i32, %arg1: i32, %arg2: i32) -> (i32, i32) {
    %c0_i32 = arith.constant 0 : i32
    %c0_i32_0 = arith.constant 0 : i32
    return %c0_i32, %arg1 : i32, i32
  }
  func.func @transform_3(%arg0: i32, %arg1: i32, %arg2: i32) -> (i32, i32) {
    %c0_i32 = arith.constant 0 : i32
    return %arg0, %arg1 : i32, i32
  }
}

module attributes {stable_mosaic.version = 11 : i64} {
  func.func @_mm_multi_k_kernel(%arg0: i32, %arg1: i32, %arg2: i32, %arg3: memref<18x512xbf16, #tpu.memory_space<vmem>>, %arg4: memref<512x512xbf16, #tpu.memory_space<vmem>>, %arg5: memref<1x512xf32, #tpu.memory_space<vmem>>, %arg6: memref<18x512xbf16, #tpu.memory_space<vmem>>, %arg7: memref<18x512xf32, #tpu.memory_space<vmem>>) attributes {dimension_semantics = [#tpu.dimension_semantics<parallel>, #tpu.dimension_semantics<parallel>, #tpu.dimension_semantics<arbitrary>], iteration_bounds = array<i64: 1, 1, 9>, scalar_prefetch = 0 : i64, scratch_operands = 1 : i64, tpu.core_type = #tpu.core_type<tc>, window_params = [{transform_indices = @transform_0, window_bounds = array<i64: 18, 512>}, {transform_indices = @transform_1, window_bounds = array<i64: 512, 512>}, {transform_indices = @transform_2, window_bounds = array<i64: 1, 512>}, {transform_indices = @transform_3, window_bounds = array<i64: 18, 512>}]} {
    %c0_i32 = arith.constant 0 : i32
    %0 = arith.cmpi eq, %arg2, %c0_i32 : i32
    %1 = arith.extui %0 : i1 to i32
    %c0_i32_0 = arith.constant 0 : i32
    %2 = arith.cmpi ne, %1, %c0_i32_0 : i32
    scf.if %2 {
      %cst_9 = arith.constant 0.000000e+00 : f32
      %12 = vector.broadcast %cst_9 : f32 to vector<18x512xf32>
      %c0_10 = arith.constant 0 : index
      %c0_11 = arith.constant 0 : index
      %13 = vector.load %arg7[%c0_10, %c0_11] : memref<18x512xf32, #tpu.memory_space<vmem>>, vector<18x512xf32>
      tpu.vector_store %arg7[%c0_10, %c0_11], %12 {strides = array<i32>} : memref<18x512xf32, #tpu.memory_space<vmem>>, vector<18x512xf32>,
    } else {
    }
    %c0 = arith.constant 0 : index
    %c0_1 = arith.constant 0 : index
    %3 = vector.load %arg7[%c0, %c0_1] : memref<18x512xf32, #tpu.memory_space<vmem>>, vector<18x512xf32>
    %c0_2 = arith.constant 0 : index
    %c0_3 = arith.constant 0 : index
    %4 = vector.load %arg3[%c0_2, %c0_3] : memref<18x512xbf16, #tpu.memory_space<vmem>>, vector<18x512xbf16>
    %c0_4 = arith.constant 0 : index
    %c0_5 = arith.constant 0 : index
    %5 = vector.load %arg4[%c0_4, %c0_5] : memref<512x512xbf16, #tpu.memory_space<vmem>>, vector<512x512xbf16>
    %cst = arith.constant dense<0.000000e+00> : vector<18x512xf32>
    %6 = tpu.matmul %4, %5, %cst {dimension_numbers = #tpu.dot_dimension_numbers<[1], [0], [0], [1], [0, 0, 1, 1], [], []>} : vector<18x512xbf16>, vector<512x512xbf16>, vector<18x512xf32> -> vector<18x512xf32>
    %7 = arith.addf %3, %6 : vector<18x512xf32>
    %c0_6 = arith.constant 0 : index
    %c0_7 = arith.constant 0 : index
    %8 = vector.load %arg7[%c0_6, %c0_7] : memref<18x512xf32, #tpu.memory_space<vmem>>, vector<18x512xf32>
    tpu.vector_store %arg7[%c0_6, %c0_7], %7 {strides = array<i32>} : memref<18x512xf32, #tpu.memory_space<vmem>>, vector<18x512xf32>,
    %c8_i32 = arith.constant 8 : i32
    %9 = arith.cmpi eq, %arg2, %c8_i32 : i32
    %10 = arith.extui %9 : i1 to i32
    %c0_i32_8 = arith.constant 0 : i32
    %11 = arith.cmpi ne, %10, %c0_i32_8 : i32
    scf.if %11 {
      %c0_9 = arith.constant 0 : index
      %c0_10 = arith.constant 0 : index
      %12 = vector.load %arg7[%c0_9, %c0_10] : memref<18x512xf32, #tpu.memory_space<vmem>>, vector<18x512xf32>
      %c0_11 = arith.constant 0 : index
      %c0_12 = arith.constant 0 : index
      %13 = vector.load %arg5[%c0_11, %c0_12] : memref<1x512xf32, #tpu.memory_space<vmem>>, vector<1x512xf32>
      %14 = vector.broadcast %13 : vector<1x512xf32> to vector<18x512xf32>
      %15 = arith.addf %12, %14 : vector<18x512xf32>
      %cst_13 = arith.constant 0.000000e+00 : f32
      %16 = vector.broadcast %cst_13 : f32 to vector<18x512xf32>
      %17 = arith.maximumf %15, %16 : vector<18x512xf32>
      %18 = arith.truncf %17 : vector<18x512xf32> to vector<18x512xbf16>
      %c0_14 = arith.constant 0 : index
      %c0_15 = arith.constant 0 : index
      %19 = vector.load %arg6[%c0_14, %c0_15] : memref<18x512xbf16, #tpu.memory_space<vmem>>, vector<18x512xbf16>
      tpu.vector_store %arg6[%c0_14, %c0_15], %18 {strides = array<i32>} : memref<18x512xbf16, #tpu.memory_space<vmem>>, vector<18x512xbf16>,
    } else {
    }
    return
  }
  func.func @transform_0(%arg0: i32, %arg1: i32, %arg2: i32) -> (i32, i32) {
    %c0_i32 = arith.constant 0 : i32
    return %arg0, %arg2 : i32, i32
  }
  func.func @transform_1(%arg0: i32, %arg1: i32, %arg2: i32) -> (i32, i32) {
    %c0_i32 = arith.constant 0 : i32
    return %arg2, %arg1 : i32, i32
  }
  func.func @transform_2(%arg0: i32, %arg1: i32, %arg2: i32) -> (i32, i32) {
    %c0_i32 = arith.constant 0 : i32
    %c0_i32_0 = arith.constant 0 : i32
    return %c0_i32, %arg1 : i32, i32
  }
  func.func @transform_3(%arg0: i32, %arg1: i32, %arg2: i32) -> (i32, i32) {
    %c0_i32 = arith.constant 0 : i32
    return %arg0, %arg1 : i32, i32
  }
}

module attributes {stable_mosaic.version = 11 : i64} {
  func.func @_mm_multi_k_kernel(%arg0: i32, %arg1: i32, %arg2: i32, %arg3: memref<8x512xbf16, #tpu.memory_space<vmem>>, %arg4: memref<512x512xbf16, #tpu.memory_space<vmem>>, %arg5: memref<1x512xf32, #tpu.memory_space<vmem>>, %arg6: memref<8x512xbf16, #tpu.memory_space<vmem>>, %arg7: memref<8x512xf32, #tpu.memory_space<vmem>>) attributes {dimension_semantics = [#tpu.dimension_semantics<parallel>, #tpu.dimension_semantics<parallel>, #tpu.dimension_semantics<arbitrary>], iteration_bounds = array<i64: 1, 1, 9>, scalar_prefetch = 0 : i64, scratch_operands = 1 : i64, tpu.core_type = #tpu.core_type<tc>, window_params = [{transform_indices = @transform_0, window_bounds = array<i64: 8, 512>}, {transform_indices = @transform_1, window_bounds = array<i64: 512, 512>}, {transform_indices = @transform_2, window_bounds = array<i64: 1, 512>}, {transform_indices = @transform_3, window_bounds = array<i64: 8, 512>}]} {
    %c0_i32 = arith.constant 0 : i32
    %0 = arith.cmpi eq, %arg2, %c0_i32 : i32
    %1 = arith.extui %0 : i1 to i32
    %c0_i32_0 = arith.constant 0 : i32
    %2 = arith.cmpi ne, %1, %c0_i32_0 : i32
    scf.if %2 {
      %cst_9 = arith.constant 0.000000e+00 : f32
      %12 = vector.broadcast %cst_9 : f32 to vector<8x512xf32>
      %c0_10 = arith.constant 0 : index
      %c0_11 = arith.constant 0 : index
      %13 = vector.load %arg7[%c0_10, %c0_11] : memref<8x512xf32, #tpu.memory_space<vmem>>, vector<8x512xf32>
      tpu.vector_store %arg7[%c0_10, %c0_11], %12 {strides = array<i32>} : memref<8x512xf32, #tpu.memory_space<vmem>>, vector<8x512xf32>,
    } else {
    }
    %c0 = arith.constant 0 : index
    %c0_1 = arith.constant 0 : index
    %3 = vector.load %arg7[%c0, %c0_1] : memref<8x512xf32, #tpu.memory_space<vmem>>, vector<8x512xf32>
    %c0_2 = arith.constant 0 : index
    %c0_3 = arith.constant 0 : index
    %4 = vector.load %arg3[%c0_2, %c0_3] : memref<8x512xbf16, #tpu.memory_space<vmem>>, vector<8x512xbf16>
    %c0_4 = arith.constant 0 : index
    %c0_5 = arith.constant 0 : index
    %5 = vector.load %arg4[%c0_4, %c0_5] : memref<512x512xbf16, #tpu.memory_space<vmem>>, vector<512x512xbf16>
    %cst = arith.constant dense<0.000000e+00> : vector<8x512xf32>
    %6 = tpu.matmul %4, %5, %cst {dimension_numbers = #tpu.dot_dimension_numbers<[1], [0], [0], [1], [0, 0, 1, 1], [], []>} : vector<8x512xbf16>, vector<512x512xbf16>, vector<8x512xf32> -> vector<8x512xf32>
    %7 = arith.addf %3, %6 : vector<8x512xf32>
    %c0_6 = arith.constant 0 : index
    %c0_7 = arith.constant 0 : index
    %8 = vector.load %arg7[%c0_6, %c0_7] : memref<8x512xf32, #tpu.memory_space<vmem>>, vector<8x512xf32>
    tpu.vector_store %arg7[%c0_6, %c0_7], %7 {strides = array<i32>} : memref<8x512xf32, #tpu.memory_space<vmem>>, vector<8x512xf32>,
    %c8_i32 = arith.constant 8 : i32
    %9 = arith.cmpi eq, %arg2, %c8_i32 : i32
    %10 = arith.extui %9 : i1 to i32
    %c0_i32_8 = arith.constant 0 : i32
    %11 = arith.cmpi ne, %10, %c0_i32_8 : i32
    scf.if %11 {
      %c0_9 = arith.constant 0 : index
      %c0_10 = arith.constant 0 : index
      %12 = vector.load %arg7[%c0_9, %c0_10] : memref<8x512xf32, #tpu.memory_space<vmem>>, vector<8x512xf32>
      %c0_11 = arith.constant 0 : index
      %c0_12 = arith.constant 0 : index
      %13 = vector.load %arg5[%c0_11, %c0_12] : memref<1x512xf32, #tpu.memory_space<vmem>>, vector<1x512xf32>
      %14 = vector.broadcast %13 : vector<1x512xf32> to vector<8x512xf32>
      %15 = arith.addf %12, %14 : vector<8x512xf32>
      %cst_13 = arith.constant 0.000000e+00 : f32
      %16 = vector.broadcast %cst_13 : f32 to vector<8x512xf32>
      %17 = arith.maximumf %15, %16 : vector<8x512xf32>
      %18 = arith.truncf %17 : vector<8x512xf32> to vector<8x512xbf16>
      %c0_14 = arith.constant 0 : index
      %c0_15 = arith.constant 0 : index
      %19 = vector.load %arg6[%c0_14, %c0_15] : memref<8x512xbf16, #tpu.memory_space<vmem>>, vector<8x512xbf16>
      tpu.vector_store %arg6[%c0_14, %c0_15], %18 {strides = array<i32>} : memref<8x512xbf16, #tpu.memory_space<vmem>>, vector<8x512xbf16>,
    } else {
    }
    return
  }
  func.func @transform_0(%arg0: i32, %arg1: i32, %arg2: i32) -> (i32, i32) {
    %c0_i32 = arith.constant 0 : i32
    return %arg0, %arg2 : i32, i32
  }
  func.func @transform_1(%arg0: i32, %arg1: i32, %arg2: i32) -> (i32, i32) {
    %c0_i32 = arith.constant 0 : i32
    return %arg2, %arg1 : i32, i32
  }
  func.func @transform_2(%arg0: i32, %arg1: i32, %arg2: i32) -> (i32, i32) {
    %c0_i32 = arith.constant 0 : i32
    %c0_i32_0 = arith.constant 0 : i32
    return %c0_i32, %arg1 : i32, i32
  }
  func.func @transform_3(%arg0: i32, %arg1: i32, %arg2: i32) -> (i32, i32) {
    %c0_i32 = arith.constant 0 : i32
    return %arg0, %arg1 : i32, i32
  }
}

module attributes {stable_mosaic.version = 11 : i64} {
  func.func @_mm_single_k_kernel(%arg0: i32, %arg1: i32, %arg2: i32, %arg3: memref<2x512xbf16, #tpu.memory_space<vmem>>, %arg4: memref<512x512xbf16, #tpu.memory_space<vmem>>, %arg5: memref<1x512xf32, #tpu.memory_space<vmem>>, %arg6: memref<2x512xbf16, #tpu.memory_space<vmem>>) attributes {dimension_semantics = [#tpu.dimension_semantics<parallel>, #tpu.dimension_semantics<parallel>, #tpu.dimension_semantics<arbitrary>], iteration_bounds = array<i64: 1, 8, 1>, scalar_prefetch = 0 : i64, scratch_operands = 0 : i64, tpu.core_type = #tpu.core_type<tc>, window_params = [{transform_indices = @transform_0, window_bounds = array<i64: 2, 512>}, {transform_indices = @transform_1, window_bounds = array<i64: 512, 512>}, {transform_indices = @transform_2, window_bounds = array<i64: 1, 512>}, {transform_indices = @transform_3, window_bounds = array<i64: 2, 512>}]} {
    %c0 = arith.constant 0 : index
    %c0_0 = arith.constant 0 : index
    %0 = vector.load %arg3[%c0, %c0_0] : memref<2x512xbf16, #tpu.memory_space<vmem>>, vector<2x512xbf16>
    %c0_1 = arith.constant 0 : index
    %c0_2 = arith.constant 0 : index
    %1 = vector.load %arg4[%c0_1, %c0_2] : memref<512x512xbf16, #tpu.memory_space<vmem>>, vector<512x512xbf16>
    %cst = arith.constant dense<0.000000e+00> : vector<2x512xf32>
    %2 = tpu.matmul %0, %1, %cst {dimension_numbers = #tpu.dot_dimension_numbers<[1], [0], [0], [1], [0, 0, 1, 1], [], []>} : vector<2x512xbf16>, vector<512x512xbf16>, vector<2x512xf32> -> vector<2x512xf32>
    %c0_3 = arith.constant 0 : index
    %c0_4 = arith.constant 0 : index
    %3 = vector.load %arg5[%c0_3, %c0_4] : memref<1x512xf32, #tpu.memory_space<vmem>>, vector<1x512xf32>
    %4 = vector.broadcast %3 : vector<1x512xf32> to vector<2x512xf32>
    %5 = arith.addf %2, %4 : vector<2x512xf32>
    %cst_5 = arith.constant 0.000000e+00 : f32
    %6 = vector.broadcast %cst_5 : f32 to vector<2x512xf32>
    %7 = arith.maximumf %5, %6 : vector<2x512xf32>
    %8 = arith.truncf %7 : vector<2x512xf32> to vector<2x512xbf16>
    %c0_6 = arith.constant 0 : index
    %c0_7 = arith.constant 0 : index
    %9 = vector.load %arg6[%c0_6, %c0_7] : memref<2x512xbf16, #tpu.memory_space<vmem>>, vector<2x512xbf16>
    tpu.vector_store %arg6[%c0_6, %c0_7], %8 {strides = array<i32>} : memref<2x512xbf16, #tpu.memory_space<vmem>>, vector<2x512xbf16>,
    return
  }
  func.func @transform_0(%arg0: i32, %arg1: i32, %arg2: i32) -> (i32, i32) {
    %c0_i32 = arith.constant 0 : i32
    return %arg0, %arg2 : i32, i32
  }
  func.func @transform_1(%arg0: i32, %arg1: i32, %arg2: i32) -> (i32, i32) {
    %c0_i32 = arith.constant 0 : i32
    return %arg2, %arg1 : i32, i32
  }
  func.func @transform_2(%arg0: i32, %arg1: i32, %arg2: i32) -> (i32, i32) {
    %c0_i32 = arith.constant 0 : i32
    %c0_i32_0 = arith.constant 0 : i32
    return %c0_i32, %arg1 : i32, i32
  }
  func.func @transform_3(%arg0: i32, %arg1: i32, %arg2: i32) -> (i32, i32) {
    %c0_i32 = arith.constant 0 : i32
    return %arg0, %arg1 : i32, i32
  }
}

module attributes {stable_mosaic.version = 11 : i64} {
  func.func @_mm_multi_k_kernel(%arg0: i32, %arg1: i32, %arg2: i32, %arg3: memref<8x512xbf16, #tpu.memory_space<vmem>>, %arg4: memref<512x512xbf16, #tpu.memory_space<vmem>>, %arg5: memref<1x512xf32, #tpu.memory_space<vmem>>, %arg6: memref<8x512xbf16, #tpu.memory_space<vmem>>, %arg7: memref<8x512xf32, #tpu.memory_space<vmem>>) attributes {dimension_semantics = [#tpu.dimension_semantics<parallel>, #tpu.dimension_semantics<parallel>, #tpu.dimension_semantics<arbitrary>], iteration_bounds = array<i64: 1, 1, 9>, scalar_prefetch = 0 : i64, scratch_operands = 1 : i64, tpu.core_type = #tpu.core_type<tc>, window_params = [{transform_indices = @transform_0, window_bounds = array<i64: 8, 512>}, {transform_indices = @transform_1, window_bounds = array<i64: 512, 512>}, {transform_indices = @transform_2, window_bounds = array<i64: 1, 512>}, {transform_indices = @transform_3, window_bounds = array<i64: 8, 512>}]} {
    %c0_i32 = arith.constant 0 : i32
    %0 = arith.cmpi eq, %arg2, %c0_i32 : i32
    %1 = arith.extui %0 : i1 to i32
    %c0_i32_0 = arith.constant 0 : i32
    %2 = arith.cmpi ne, %1, %c0_i32_0 : i32
    scf.if %2 {
      %cst_9 = arith.constant 0.000000e+00 : f32
      %12 = vector.broadcast %cst_9 : f32 to vector<8x512xf32>
      %c0_10 = arith.constant 0 : index
      %c0_11 = arith.constant 0 : index
      %13 = vector.load %arg7[%c0_10, %c0_11] : memref<8x512xf32, #tpu.memory_space<vmem>>, vector<8x512xf32>
      tpu.vector_store %arg7[%c0_10, %c0_11], %12 {strides = array<i32>} : memref<8x512xf32, #tpu.memory_space<vmem>>, vector<8x512xf32>,
    } else {
    }
    %c0 = arith.constant 0 : index
    %c0_1 = arith.constant 0 : index
    %3 = vector.load %arg7[%c0, %c0_1] : memref<8x512xf32, #tpu.memory_space<vmem>>, vector<8x512xf32>
    %c0_2 = arith.constant 0 : index
    %c0_3 = arith.constant 0 : index
    %4 = vector.load %arg3[%c0_2, %c0_3] : memref<8x512xbf16, #tpu.memory_space<vmem>>, vector<8x512xbf16>
    %c0_4 = arith.constant 0 : index
    %c0_5 = arith.constant 0 : index
    %5 = vector.load %arg4[%c0_4, %c0_5] : memref<512x512xbf16, #tpu.memory_space<vmem>>, vector<512x512xbf16>
    %cst = arith.constant dense<0.000000e+00> : vector<8x512xf32>
    %6 = tpu.matmul %4, %5, %cst {dimension_numbers = #tpu.dot_dimension_numbers<[1], [0], [0], [1], [0, 0, 1, 1], [], []>} : vector<8x512xbf16>, vector<512x512xbf16>, vector<8x512xf32> -> vector<8x512xf32>
    %7 = arith.addf %3, %6 : vector<8x512xf32>
    %c0_6 = arith.constant 0 : index
    %c0_7 = arith.constant 0 : index
    %8 = vector.load %arg7[%c0_6, %c0_7] : memref<8x512xf32, #tpu.memory_space<vmem>>, vector<8x512xf32>
    tpu.vector_store %arg7[%c0_6, %c0_7], %7 {strides = array<i32>} : memref<8x512xf32, #tpu.memory_space<vmem>>, vector<8x512xf32>,
    %c8_i32 = arith.constant 8 : i32
    %9 = arith.cmpi eq, %arg2, %c8_i32 : i32
    %10 = arith.extui %9 : i1 to i32
    %c0_i32_8 = arith.constant 0 : i32
    %11 = arith.cmpi ne, %10, %c0_i32_8 : i32
    scf.if %11 {
      %c0_9 = arith.constant 0 : index
      %c0_10 = arith.constant 0 : index
      %12 = vector.load %arg7[%c0_9, %c0_10] : memref<8x512xf32, #tpu.memory_space<vmem>>, vector<8x512xf32>
      %c0_11 = arith.constant 0 : index
      %c0_12 = arith.constant 0 : index
      %13 = vector.load %arg5[%c0_11, %c0_12] : memref<1x512xf32, #tpu.memory_space<vmem>>, vector<1x512xf32>
      %14 = vector.broadcast %13 : vector<1x512xf32> to vector<8x512xf32>
      %15 = arith.addf %12, %14 : vector<8x512xf32>
      %cst_13 = arith.constant 0.000000e+00 : f32
      %16 = vector.broadcast %cst_13 : f32 to vector<8x512xf32>
      %17 = arith.maximumf %15, %16 : vector<8x512xf32>
      %18 = arith.truncf %17 : vector<8x512xf32> to vector<8x512xbf16>
      %c0_14 = arith.constant 0 : index
      %c0_15 = arith.constant 0 : index
      %19 = vector.load %arg6[%c0_14, %c0_15] : memref<8x512xbf16, #tpu.memory_space<vmem>>, vector<8x512xbf16>
      tpu.vector_store %arg6[%c0_14, %c0_15], %18 {strides = array<i32>} : memref<8x512xbf16, #tpu.memory_space<vmem>>, vector<8x512xbf16>,
    } else {
    }
    return
  }
  func.func @transform_0(%arg0: i32, %arg1: i32, %arg2: i32) -> (i32, i32) {
    %c0_i32 = arith.constant 0 : i32
    return %arg0, %arg2 : i32, i32
  }
  func.func @transform_1(%arg0: i32, %arg1: i32, %arg2: i32) -> (i32, i32) {
    %c0_i32 = arith.constant 0 : i32
    return %arg2, %arg1 : i32, i32
  }
  func.func @transform_2(%arg0: i32, %arg1: i32, %arg2: i32) -> (i32, i32) {
    %c0_i32 = arith.constant 0 : i32
    %c0_i32_0 = arith.constant 0 : i32
    return %c0_i32, %arg1 : i32, i32
  }
  func.func @transform_3(%arg0: i32, %arg1: i32, %arg2: i32) -> (i32, i32) {
    %c0_i32 = arith.constant 0 : i32
    return %arg0, %arg1 : i32, i32
  }
}

module attributes {stable_mosaic.version = 11 : i64} {
  func.func @_mm_multi_k_kernel(%arg0: i32, %arg1: i32, %arg2: i32, %arg3: memref<2x512xbf16, #tpu.memory_space<vmem>>, %arg4: memref<512x512xbf16, #tpu.memory_space<vmem>>, %arg5: memref<1x512xf32, #tpu.memory_space<vmem>>, %arg6: memref<2x512xbf16, #tpu.memory_space<vmem>>, %arg7: memref<2x512xf32, #tpu.memory_space<vmem>>) attributes {dimension_semantics = [#tpu.dimension_semantics<parallel>, #tpu.dimension_semantics<parallel>, #tpu.dimension_semantics<arbitrary>], iteration_bounds = array<i64: 1, 8, 8>, scalar_prefetch = 0 : i64, scratch_operands = 1 : i64, tpu.core_type = #tpu.core_type<tc>, window_params = [{transform_indices = @transform_0, window_bounds = array<i64: 2, 512>}, {transform_indices = @transform_1, window_bounds = array<i64: 512, 512>}, {transform_indices = @transform_2, window_bounds = array<i64: 1, 512>}, {transform_indices = @transform_3, window_bounds = array<i64: 2, 512>}]} {
    %c0_i32 = arith.constant 0 : i32
    %0 = arith.cmpi eq, %arg2, %c0_i32 : i32
    %1 = arith.extui %0 : i1 to i32
    %c0_i32_0 = arith.constant 0 : i32
    %2 = arith.cmpi ne, %1, %c0_i32_0 : i32
    scf.if %2 {
      %cst_9 = arith.constant 0.000000e+00 : f32
      %12 = vector.broadcast %cst_9 : f32 to vector<2x512xf32>
      %c0_10 = arith.constant 0 : index
      %c0_11 = arith.constant 0 : index
      %13 = vector.load %arg7[%c0_10, %c0_11] : memref<2x512xf32, #tpu.memory_space<vmem>>, vector<2x512xf32>
      tpu.vector_store %arg7[%c0_10, %c0_11], %12 {strides = array<i32>} : memref<2x512xf32, #tpu.memory_space<vmem>>, vector<2x512xf32>,
    } else {
    }
    %c0 = arith.constant 0 : index
    %c0_1 = arith.constant 0 : index
    %3 = vector.load %arg7[%c0, %c0_1] : memref<2x512xf32, #tpu.memory_space<vmem>>, vector<2x512xf32>
    %c0_2 = arith.constant 0 : index
    %c0_3 = arith.constant 0 : index
    %4 = vector.load %arg3[%c0_2, %c0_3] : memref<2x512xbf16, #tpu.memory_space<vmem>>, vector<2x512xbf16>
    %c0_4 = arith.constant 0 : index
    %c0_5 = arith.constant 0 : index
    %5 = vector.load %arg4[%c0_4, %c0_5] : memref<512x512xbf16, #tpu.memory_space<vmem>>, vector<512x512xbf16>
    %cst = arith.constant dense<0.000000e+00> : vector<2x512xf32>
    %6 = tpu.matmul %4, %5, %cst {dimension_numbers = #tpu.dot_dimension_numbers<[1], [0], [0], [1], [0, 0, 1, 1], [], []>} : vector<2x512xbf16>, vector<512x512xbf16>, vector<2x512xf32> -> vector<2x512xf32>
    %7 = arith.addf %3, %6 : vector<2x512xf32>
    %c0_6 = arith.constant 0 : index
    %c0_7 = arith.constant 0 : index
    %8 = vector.load %arg7[%c0_6, %c0_7] : memref<2x512xf32, #tpu.memory_space<vmem>>, vector<2x512xf32>
    tpu.vector_store %arg7[%c0_6, %c0_7], %7 {strides = array<i32>} : memref<2x512xf32, #tpu.memory_space<vmem>>, vector<2x512xf32>,
    %c7_i32 = arith.constant 7 : i32
    %9 = arith.cmpi eq, %arg2, %c7_i32 : i32
    %10 = arith.extui %9 : i1 to i32
    %c0_i32_8 = arith.constant 0 : i32
    %11 = arith.cmpi ne, %10, %c0_i32_8 : i32
    scf.if %11 {
      %c0_9 = arith.constant 0 : index
      %c0_10 = arith.constant 0 : index
      %12 = vector.load %arg7[%c0_9, %c0_10] : memref<2x512xf32, #tpu.memory_space<vmem>>, vector<2x512xf32>
      %c0_11 = arith.constant 0 : index
      %c0_12 = arith.constant 0 : index
      %13 = vector.load %arg5[%c0_11, %c0_12] : memref<1x512xf32, #tpu.memory_space<vmem>>, vector<1x512xf32>
      %14 = vector.broadcast %13 : vector<1x512xf32> to vector<2x512xf32>
      %15 = arith.addf %12, %14 : vector<2x512xf32>
      %cst_13 = arith.constant 0.000000e+00 : f32
      %16 = vector.broadcast %cst_13 : f32 to vector<2x512xf32>
      %17 = arith.maximumf %15, %16 : vector<2x512xf32>
      %18 = arith.truncf %17 : vector<2x512xf32> to vector<2x512xbf16>
      %c0_14 = arith.constant 0 : index
      %c0_15 = arith.constant 0 : index
      %19 = vector.load %arg6[%c0_14, %c0_15] : memref<2x512xbf16, #tpu.memory_space<vmem>>, vector<2x512xbf16>
      tpu.vector_store %arg6[%c0_14, %c0_15], %18 {strides = array<i32>} : memref<2x512xbf16, #tpu.memory_space<vmem>>, vector<2x512xbf16>,
    } else {
    }
    return
  }
  func.func @transform_0(%arg0: i32, %arg1: i32, %arg2: i32) -> (i32, i32) {
    %c0_i32 = arith.constant 0 : i32
    return %arg0, %arg2 : i32, i32
  }
  func.func @transform_1(%arg0: i32, %arg1: i32, %arg2: i32) -> (i32, i32) {
    %c0_i32 = arith.constant 0 : i32
    return %arg2, %arg1 : i32, i32
  }
  func.func @transform_2(%arg0: i32, %arg1: i32, %arg2: i32) -> (i32, i32) {
    %c0_i32 = arith.constant 0 : i32
    %c0_i32_0 = arith.constant 0 : i32
    return %c0_i32, %arg1 : i32, i32
  }
  func.func @transform_3(%arg0: i32, %arg1: i32, %arg2: i32) -> (i32, i32) {
    %c0_i32 = arith.constant 0 : i32
    return %arg0, %arg1 : i32, i32
  }
}

module attributes {stable_mosaic.version = 11 : i64} {
  func.func @_mm_multi_k_kernel(%arg0: i32, %arg1: i32, %arg2: i32, %arg3: memref<2x512xbf16, #tpu.memory_space<vmem>>, %arg4: memref<512x10xbf16, #tpu.memory_space<vmem>>, %arg5: memref<1x10xf32, #tpu.memory_space<vmem>>, %arg6: memref<2x10xf32, #tpu.memory_space<vmem>>, %arg7: memref<2x10xf32, #tpu.memory_space<vmem>>) attributes {dimension_semantics = [#tpu.dimension_semantics<parallel>, #tpu.dimension_semantics<parallel>, #tpu.dimension_semantics<arbitrary>], iteration_bounds = array<i64: 1, 1, 8>, scalar_prefetch = 0 : i64, scratch_operands = 1 : i64, tpu.core_type = #tpu.core_type<tc>, window_params = [{transform_indices = @transform_0, window_bounds = array<i64: 2, 512>}, {transform_indices = @transform_1, window_bounds = array<i64: 512, 10>}, {transform_indices = @transform_2, window_bounds = array<i64: 1, 10>}, {transform_indices = @transform_3, window_bounds = array<i64: 2, 10>}]} {
    %c0_i32 = arith.constant 0 : i32
    %0 = arith.cmpi eq, %arg2, %c0_i32 : i32
    %1 = arith.extui %0 : i1 to i32
    %c0_i32_0 = arith.constant 0 : i32
    %2 = arith.cmpi ne, %1, %c0_i32_0 : i32
    scf.if %2 {
      %cst_9 = arith.constant 0.000000e+00 : f32
      %12 = vector.broadcast %cst_9 : f32 to vector<2x10xf32>
      %c0_10 = arith.constant 0 : index
      %c0_11 = arith.constant 0 : index
      %13 = vector.load %arg7[%c0_10, %c0_11] : memref<2x10xf32, #tpu.memory_space<vmem>>, vector<2x10xf32>
      tpu.vector_store %arg7[%c0_10, %c0_11], %12 {strides = array<i32>} : memref<2x10xf32, #tpu.memory_space<vmem>>, vector<2x10xf32>,
    } else {
    }
    %c0 = arith.constant 0 : index
    %c0_1 = arith.constant 0 : index
    %3 = vector.load %arg7[%c0, %c0_1] : memref<2x10xf32, #tpu.memory_space<vmem>>, vector<2x10xf32>
    %c0_2 = arith.constant 0 : index
    %c0_3 = arith.constant 0 : index
    %4 = vector.load %arg3[%c0_2, %c0_3] : memref<2x512xbf16, #tpu.memory_space<vmem>>, vector<2x512xbf16>
    %c0_4 = arith.constant 0 : index
    %c0_5 = arith.constant 0 : index
    %5 = vector.load %arg4[%c0_4, %c0_5] : memref<512x10xbf16, #tpu.memory_space<vmem>>, vector<512x10xbf16>
    %cst = arith.constant dense<0.000000e+00> : vector<2x10xf32>
    %6 = tpu.matmul %4, %5, %cst {dimension_numbers = #tpu.dot_dimension_numbers<[1], [0], [0], [1], [0, 0, 1, 1], [], []>} : vector<2x512xbf16>, vector<512x10xbf16>, vector<2x10xf32> -> vector<2x10xf32>
    %7 = arith.addf %3, %6 : vector<2x10xf32>
    %c0_6 = arith.constant 0 : index
    %c0_7 = arith.constant 0 : index
    %8 = vector.load %arg7[%c0_6, %c0_7] : memref<2x10xf32, #tpu.memory_space<vmem>>, vector<2x10xf32>
    tpu.vector_store %arg7[%c0_6, %c0_7], %7 {strides = array<i32>} : memref<2x10xf32, #tpu.memory_space<vmem>>, vector<2x10xf32>,
    %c7_i32 = arith.constant 7 : i32
    %9 = arith.cmpi eq, %arg2, %c7_i32 : i32
    %10 = arith.extui %9 : i1 to i32
    %c0_i32_8 = arith.constant 0 : i32
    %11 = arith.cmpi ne, %10, %c0_i32_8 : i32
    scf.if %11 {
      %c0_9 = arith.constant 0 : index
      %c0_10 = arith.constant 0 : index
      %12 = vector.load %arg7[%c0_9, %c0_10] : memref<2x10xf32, #tpu.memory_space<vmem>>, vector<2x10xf32>
      %c0_11 = arith.constant 0 : index
      %c0_12 = arith.constant 0 : index
      %13 = vector.load %arg5[%c0_11, %c0_12] : memref<1x10xf32, #tpu.memory_space<vmem>>, vector<1x10xf32>
      %14 = vector.broadcast %13 : vector<1x10xf32> to vector<2x10xf32>
      %15 = arith.addf %12, %14 : vector<2x10xf32>
      %cst_13 = arith.constant dense<0xFF800000> : vector<2xf32>
      %16 = vector.multi_reduction <maximumf>, %15, %cst_13 [1] : vector<2x10xf32> to vector<2xf32>
      %17 = vector.shape_cast %16 : vector<2xf32> to vector<2x1xf32>
      %18 = vector.broadcast %17 : vector<2x1xf32> to vector<2x10xf32>
      %19 = arith.subf %15, %18 : vector<2x10xf32>
      %20 = math.exp %19 : vector<2x10xf32>
      %cst_14 = arith.constant dense<0.000000e+00> : vector<2xf32>
      %21 = vector.multi_reduction <add>, %20, %cst_14 [1] : vector<2x10xf32> to vector<2xf32>
      %22 = vector.shape_cast %21 : vector<2xf32> to vector<2x1xf32>
      %23 = tpu.reciprocal %22 {approx = true} : vector<2x1xf32> -> vector<2x1xf32>
      %24 = vector.broadcast %23 : vector<2x1xf32> to vector<2x10xf32>
      %25 = arith.mulf %20, %24 : vector<2x10xf32>
      %c0_15 = arith.constant 0 : index
      %c0_16 = arith.constant 0 : index
      %26 = vector.load %arg6[%c0_15, %c0_16] : memref<2x10xf32, #tpu.memory_space<vmem>>, vector<2x10xf32>
      tpu.vector_store %arg6[%c0_15, %c0_16], %25 {strides = array<i32>} : memref<2x10xf32, #tpu.memory_space<vmem>>, vector<2x10xf32>,
    } else {
    }
    return
  }
  func.func @transform_0(%arg0: i32, %arg1: i32, %arg2: i32) -> (i32, i32) {
    %c0_i32 = arith.constant 0 : i32
    return %arg0, %arg2 : i32, i32
  }
  func.func @transform_1(%arg0: i32, %arg1: i32, %arg2: i32) -> (i32, i32) {
    %c0_i32 = arith.constant 0 : i32
    return %arg2, %arg1 : i32, i32
  }
  func.func @transform_2(%arg0: i32, %arg1: i32, %arg2: i32) -> (i32, i32) {
    %c0_i32 = arith.constant 0 : i32
    %c0_i32_0 = arith.constant 0 : i32
    return %c0_i32, %arg1 : i32, i32
  }
  func.func @transform_3(%arg0: i32, %arg1: i32, %arg2: i32) -> (i32, i32) {
    %c0_i32 = arith.constant 0 : i32
    return %arg0, %arg1 : i32, i32
  }
}

</mosaic_0001>

<bundles_post_ra>
// kernel: vggnet_forward.16
= control target key start
LH: loop header
LB: loop body
LE: loop exit
PB: predicated region body
PF: predicated region fallthrough
CT: control target
= control target key end

     0   :  { %8 = vsyncpa [#allocation3], 0  ;;  %s1518_s0 = inlined_call_operand.vmem [shape: bf16[512,27], index: 0, kind: input, shape index: {}]   ;;  %s1519_s1 = inlined_call_operand.hbm [shape: bf16[27,64], index: 1, kind: input, shape index: {}]   ;;  %s1520_s2 = inlined_call_operand.hbm [shape: f32[1,64], index: 2, kind: input, shape index: {}]   ;;  %s1521_s3 = inlined_call_operand.vmem [shape: bf16[512,64], index: 3, kind: output, shape index: {}]  }
   0x1   :  { %9 = vsyncpa [#allocation5], 0  ;;  %s1264_s12 = smov 0   ;;  %s1266_s13 = smov 0  }
   0x2   :  { %s1268_s14 = smov 0  }
   0x3 LB: > { %s913_s15 = sadd.s32 4294967295, %s1237_s14   ;;  %s34_s16 = sadd.s32 1, %s1233_s13  ;;  %s1237_s14 = sphi %s1268_s14, %s15_s14   ;;  %s1233_s13 = sphi %s1266_s13, %s1531_s13   ;;  %s1229_s12 = sphi %s1264_s12, %s1530_s12  }
   0x4   : > { %p36_p0 = scmp.ge.s32.totalorder %s34_s16, 2  ;;  %p915_p1 = scmp.ge.s32.totalorder %s1237_s14, 1 }
   0x5   : > { %p149_p2 = scmp.lt.s32.totalorder %s1237_s14, 3  ;;  %p1289_p4 = scmp.eq.s32.totalorder %s913_s15, 0 }
   0x6   : > { %s1533_s16 = smov (%p36_p0, %s34_s16), 0  ;;  %s1239_s19 = smov [#allocation2]  }
   0x7   : > { %p1285_p3 = pnand %p915_p1, %p149_p2  ;;  %s165_s20 = sshll.u32 %s1239_s19, 4  ;;  %s166_s20 = int_to_ptr.vmem [resolvable:$true] %s165_s20 }
   0x8   : > { %s1526_s18 = scalar_select %p1289_p4, 1, 0 }
   0x9   : > { %s1525_s17 = scalar_select %p1285_p3, 1, 0 }
   0xa   : > { %p1093_p5 = pneg %p1285_p3  ;;  %s1240_s22 = smov [#allocation4]  }
   0xb   : > { %s181_s23 = sshll.u32 %s1240_s22, 4  ;;  %s1151_s26 = scalar_lea.hbm %s1519_s1, 256  ;;  %s1301_s23 = int_to_ptr.vmem [resolvable:$true] %s181_s23 }
   0xc   : > { %p1297_p6 = pnand %p1289_p4, %p1093_p5  ;;  %p1152_p7 = scmp.ne.s32.totalorder %s1519_s1, %s1151_s26 }
   0xd   : > { %p1158_p11 = scmp.lt.u32.totalorder %s1151_s26, %s1519_s1 }
   0xe   : > { %p1153_p8 = pneg %p1297_p6 }
  0x10   : > { %p1154_p9 = pnand %p1153_p8, %p1152_p7 }
  0x12   : > { %p1155_p10 = pneg %p1154_p9 }
  0x14   : > { %p1160_p12 = pnand %p1158_p11, %p1155_p10 }
  0x16   : > { %1163 = shalt.err (!%p1160_p12)
}
  0x17   : > { %s1164_s4 = scalar_lea.vmem %s166_s20, 256  ;;  %p1172_p2 = scmp.lt.s32.totalorder %s166_s20, %s166_s20 }
  0x18   : > { %p1165_p13 = scmp.ne.s32.totalorder %s166_s20, %s1164_s4  ;;  %p1173_p5 = scmp.lt.s32.totalorder %s1164_s4, %s1164_s4 }
  0x1a   : > { %p1167_p0 = pnand %p1165_p13, %p1153_p8  ;;  %p1174_p4 = por %p1173_p5, %p1172_p2 }
  0x1c   : > { %p1168_p1 = pneg %p1167_p0 }
  0x1e   : > { %p1175_p3 = pnand %p1174_p4, %p1168_p1 }
  0x20   : > { %1178 = shalt.err (!%p1175_p3)
}
  0x21   : > { %s1241_s5 = smov 64   ;;  %s1242_s6 = smov 4  }
  0x22   : > { %1096 = dma.hbm_to_vmem [thread:$0]  (!%p1297_p6), %s1519_s1, 256, %s166_s20, [#allocation3], %s1241_s5, %s1241_s5, %s1242_s6  }
  0x23   : > { %s1179_s11 = scalar_lea.hbm %s1520_s2, 16 }
  0x24   : > { %p1180_p7 = scmp.ne.s32.totalorder %s1520_s2, %s1179_s11  ;;  %p1186_p9 = scmp.lt.u32.totalorder %s1179_s11, %s1520_s2 }
  0x26   : > { %p1182_p3 = pnand %p1180_p7, %p1153_p8 }
  0x28   : > { %p1183_p4 = pneg %p1182_p3 }
  0x2a   : > { %p1188_p10 = pnand %p1186_p9, %p1183_p4 }
  0x2c   : > { %1191 = shalt.err (!%p1188_p10)
}
  0x2d   : > { %s1192_s20 = scalar_lea.vmem %s1301_s23, 16  ;;  %s1199_s25 = scalar_lea.vmem %s1301_s23, 32 }
  0x2e   : > { %p1193_p11 = scmp.ne.s32.totalorder %s1301_s23, %s1192_s20  ;;  %p1200_p0 = scmp.lt.s32.totalorder %s1301_s23, %s1301_s23 }
  0x2f   : > { %p1201_p1 = scmp.lt.s32.totalorder %s1199_s25, %s1192_s20 }
  0x30   : > { %p1195_p12 = pnand %p1193_p11, %p1153_p8 }
  0x31   : > { %p1202_p2 = por %p1201_p1, %p1200_p0 }
  0x32   : > { %p1196_p13 = pneg %p1195_p12 }
  0x34   : > { %p1203_p5 = pnand %p1202_p2, %p1196_p13 }
  0x36   : > { %1206 = shalt.err (!%p1203_p5)
}
  0x37   : > { %1099 = dma.hbm_to_vmem [thread:$0]  (!%p1297_p6), %s1520_s2, 16, %s1301_s23, [#allocation5]  }
  0x38   : > { %p1528_p7 = scmp.ne.s32.totalorder %s1525_s17, 0 }
  0x39   : > { %p1529_p8 = scmp.ne.s32.totalorder (!%p1528_p7), %s1526_s18, 0 }
  0x3a   : > { %206 = sbr.rel (%p1528_p7) target bundleno = 325 (0x145), region = 32 }
  0x41   : > { %1220 = dma.done.wait (%p1529_p8), [#allocation3], 256  }
  0x42   : > { %1222 = vsyncadd (%p1529_p8), [#allocation3], 4294967040 }
  0x43   : > { %1224 = dma.done.wait (%p1529_p8), [#allocation5], 16  }
  0x44   : > { %1226 = vsyncadd (%p1529_p8), [#allocation5], 4294967280  ;;  %s922_s21 = sshll.u32 %s1229_s12, 5  ;;  %vm443_vm0 = vcmask 1044480   ;;  %vm444_vm1 = vcmask 1045504   ;;  %v1243_v0 = vmov 65535  }
  0x45   : > { %p241_p3 = scmp.lt.s32.totalorder %s922_s21, 63  ;;  %v445_v1 = vsel %vm443_vm0, 4294967295, %v1243_v0  ;;  %vm394_vm2 = vcmask 220160   ;;  %v1133_v2 = vld [vmem:[#allocation2] sm:$0xff]   ;;  %v1134_v4 = vld [vmem:[#allocation2 + $0x8] sm:$0x3f]  }
  0x46   : > { %v446_v3 = vsel %vm444_vm1, %v445_v1, 0  ;;  %1045 = vmatprep.subr.bf16.mxu0 %v1133_v2  ;;  %1081 = vmatprep.subr.bf16.mxu1 %v1133_v2  ;;  %v1404_v22 = vld [vmem:[#allocation4] ss:$0 sm:$0xff]  ;;  %vm771_vm3 = vcmask 519168  }
  0x47   : > { %s1535_s21 = smov (!%p241_p3, %s922_s21), 63  ;;  %1046 = vmatpush3.bf16.msra.mxu0 %v1133_v2  ;;  %1083 = vmatpush3.bf16.msra.mxu1 %v1133_v2  ;;  %v448_v6 = vand.u32 %v1134_v4, %v446_v3 }
  0x48   : > { %s923_s17 = sshll.u32 %s1535_s21, 2 }
  0x49   : > { %s1370_s29 = scalar_lea.vmem %s1518_s0, %s923_s17  ;;  %1047 = vmatprep.subr.bf16.mxu0 %v448_v6  ;;  %1082 = vmatprep.subr.bf16.mxu1 %v448_v6  ;;  %s1417_s30 = scalar_lea.vmem %s1521_s3, %s923_s17 }
  0x4a   : > { %v1135_v5 = vld [vmem:[%s1370_s29] sm:$0xff]   ;;  %v1137_v8 = vld [vmem:[%s1370_s29 + $0x8] sm:$0xff]   ;;  %v1139_v10 = vld [vmem:[%s1370_s29 + $0x10] sm:$0xff]  }
  0x4b   : > { %v1136_v7 = vld [vmem:[%s1370_s29 + $0x40] sm:$0xff]   ;;  %1049 = vmatprep.mubr.msk.bf16.mxu0 %vm394_vm2, %v1135_v5  ;;  %v1138_v9 = vld [vmem:[%s1370_s29 + $0x48] sm:$0xff]   ;;  %1048 = vmatpush3.bf16.msra.mxu0 %v448_v6  ;;  %v1140_v11 = vld [vmem:[%s1370_s29 + $0x50] sm:$0xff]  }
  0x4c   : > { %1065 = vmatprep.mubr.msk.bf16.mxu1 %vm394_vm2, %v1136_v7  ;;  %1084 = vmatpush3.bf16.msra.mxu1 %v448_v6  ;;  %v1141_v12 = vld [vmem:[%s1370_s29 + $0x18] sm:$0xff]   ;;  %v1143_v14 = vld [vmem:[%s1370_s29 + $0x20] sm:$0xff]   ;;  %v1145_v16 = vld [vmem:[%s1370_s29 + $0x28] sm:$0xff]  }
  0x4d   : > { %v1142_v13 = vld [vmem:[%s1370_s29 + $0x58] sm:$0xff]   ;;  %v1144_v15 = vld [vmem:[%s1370_s29 + $0x60] sm:$0xff]   ;;  %v1146_v17 = vld [vmem:[%s1370_s29 + $0x68] sm:$0xff]  }
  0x4e   : > { %1050 = vmatmul.mubr.msk.bf16.vlgmr.msra.gmra.mrb[0].mxu0 %vm394_vm2, %v1137_v8  ;;  %v1147_v18 = vld [vmem:[%s1370_s29 + $0x30] sm:$0xff]   ;;  %v1149_v20 = vld [vmem:[%s1370_s29 + $0x38] sm:$0xff]  }
  0x4f   : > { %1066 = vmatmul.mubr.msk.bf16.vlgmr.msra.gmra.mrb[0].mxu1 %vm394_vm2, %v1138_v9  ;;  %1053 = vmatprep.mubr.msk.bf16.mxu0 %vm394_vm2, %v1139_v10  ;;  %v1148_v19 = vld [vmem:[%s1370_s29 + $0x70] sm:$0xff]   ;;  %v1150_v21 = vld [vmem:[%s1370_s29 + $0x78] sm:$0xff]  }
  0x50   : > { %1069 = vmatprep.mubr.msk.bf16.mxu1 %vm394_vm2, %v1140_v11 }
  0x56   : > { %1054 = vmatmul.mubr.msk.bf16.gmra.mrb[4].mxu0 %vm394_vm2, %v1141_v12 }
  0x57   : > { %1070 = vmatmul.mubr.msk.bf16.gmra.mrb[4].mxu1 %vm394_vm2, %v1142_v13  ;;  %1057 = vmatprep.mubr.msk.bf16.mxu0 %vm394_vm2, %v1143_v14 }
  0x58   : > { %1073 = vmatprep.mubr.msk.bf16.mxu1 %vm394_vm2, %v1144_v15 }
  0x5e   : > { %1058 = vmatmul.mubr.msk.bf16.gmra.mrb[8].mxu0 %vm394_vm2, %v1145_v16 }
  0x5f   : > { %1074 = vmatmul.mubr.msk.bf16.gmra.mrb[8].mxu1 %vm394_vm2, %v1146_v17  ;;  %1061 = vmatprep.mubr.msk.bf16.mxu0 %vm394_vm2, %v1147_v18 }
  0x60   : > { %1077 = vmatprep.mubr.msk.bf16.mxu1 %vm394_vm2, %v1148_v19 }
  0x66   : > { %1062 = vmatmul.mubr.msk.bf16.gmra.mrb[12].mxu0 %vm394_vm2, %v1149_v20 }
  0x67   : > { %1078 = vmatmul.mubr.msk.bf16.gmra.mrb[12].mxu1 %vm394_vm2, %v1150_v21 }
 0x121   : > { %v1051_v23 = vpop.f32.mrb[0].mxu0 }
 0x122   : > { %v1067_v24 = vpop.f32.mrb[0].mxu1  ;;  %v493_v25 = vadd.f32 %v1051_v23, %v1404_v22  ;;  %v484_v27 = vpop.f32.mrb[1].mxu0 }
 0x123   : > { %v557_v26 = vadd.f32 %v1067_v24, %v1404_v22  ;;  %v548_v28 = vpop.f32.mrb[1].mxu1  ;;  %v485_v29 = vadd.f32 %v1404_v22, %v484_v27  ;;  %v1052_v31 = vpop.f32.mrb[2].mxu0 }
 0x124   : > { %v549_v30 = vadd.f32 %v1404_v22, %v548_v28  ;;  %v1068_v32 = vpop.f32.mrb[2].mxu1  ;;  %v613_v33 = vmax.f32 %v493_v25, 0.0  ;;  %v496_v35 = vadd.f32 %v1052_v31, %v1404_v22  ;;  %v487_v37 = vpop.f32.mrb[3].mxu0 }
 0x125   : > { %v629_v34 = vmax.f32 %v557_v26, 0.0  ;;  %v560_v36 = vadd.f32 %v1068_v32, %v1404_v22  ;;  %v551_v38 = vpop.f32.mrb[3].mxu1  ;;  %v611_v39 = vmax.f32 %v485_v29, 0.0  ;;  %v488_v41 = vadd.f32 %v1404_v22, %v487_v37 }
 0x126   : > { %v627_v40 = vmax.f32 %v549_v30, 0.0  ;;  %v552_v42 = vadd.f32 %v1404_v22, %v551_v38  ;;  %v997_v43 = vpack.c.bf16 %v613_v33, %v613_v33  ;;  %v614_v45 = vmax.f32 %v496_v35, 0.0 }
 0x127   : > { %v1013_v44 = vpack.c.bf16 %v629_v34, %v629_v34  ;;  %v630_v46 = vmax.f32 %v560_v36, 0.0  ;;  %v995_v47 = vpack.c.bf16 %v611_v39, %v611_v39  ;;  %v612_v49 = vmax.f32 %v488_v41, 0.0 }
 0x128   : > { %v1011_v48 = vpack.c.bf16 %v627_v40, %v627_v40  ;;  %v628_v50 = vmax.f32 %v552_v42, 0.0  ;;  %774 = vst.msk [vmem:[%s1417_s30 + $0x8] sm:$0xf] %vm771_vm3, %v997_v43  ;;  %v998_v51 = vpack.c.bf16 %v614_v45, %v614_v45 }
 0x129   : > { %790 = vst.msk [vmem:[%s1417_s30 + $0x48] sm:$0xf] %vm771_vm3, %v1013_v44  ;;  %v1014_v52 = vpack.c.bf16 %v630_v46, %v630_v46  ;;  %772 = vst.msk [vmem:[%s1417_s30] sm:$0xf] %vm771_vm3, %v995_v47  ;;  %v996_v53 = vpack.c.bf16 %v612_v49, %v612_v49  ;;  %v1055_v55 = vpop.f32.mrb[4].mxu0 }
 0x12a   : > { %788 = vst.msk [vmem:[%s1417_s30 + $0x40] sm:$0xf] %vm771_vm3, %v1011_v48  ;;  %v1012_v54 = vpack.c.bf16 %v628_v50, %v628_v50  ;;  %v1071_v56 = vpop.f32.mrb[4].mxu1  ;;  %775 = vst.msk [vmem:[%s1417_s30 + $0xc] sm:$0xf] %vm771_vm3, %v998_v51  ;;  %v509_v57 = vadd.f32 %v1055_v55, %v1404_v22  ;;  %v500_v59 = vpop.f32.mrb[5].mxu0 }
 0x12b   : > { %791 = vst.msk [vmem:[%s1417_s30 + $0x4c] sm:$0xf] %vm771_vm3, %v1014_v52  ;;  %v573_v58 = vadd.f32 %v1071_v56, %v1404_v22  ;;  %v564_v60 = vpop.f32.mrb[5].mxu1  ;;  %773 = vst.msk [vmem:[%s1417_s30 + $0x4] sm:$0xf] %vm771_vm3, %v996_v53  ;;  %v501_v61 = vadd.f32 %v1404_v22, %v500_v59  ;;  %v1056_v63 = vpop.f32.mrb[6].mxu0 }
 0x12c   : > { %789 = vst.msk [vmem:[%s1417_s30 + $0x44] sm:$0xf] %vm771_vm3, %v1012_v54  ;;  %v565_v62 = vadd.f32 %v1404_v22, %v564_v60  ;;  %v1072_v0 = vpop.f32.mrb[6].mxu1  ;;  %v617_v1 = vmax.f32 %v509_v57, 0.0  ;;  %v512_v3 = vadd.f32 %v1056_v63, %v1404_v22  ;;  %v503_v5 = vpop.f32.mrb[7].mxu0 }
 0x12d   : > { %v633_v2 = vmax.f32 %v573_v58, 0.0  ;;  %v576_v4 = vadd.f32 %v1072_v0, %v1404_v22  ;;  %v567_v6 = vpop.f32.mrb[7].mxu1  ;;  %v615_v7 = vmax.f32 %v501_v61, 0.0  ;;  %v504_v9 = vadd.f32 %v1404_v22, %v503_v5 }
 0x12e   : > { %v631_v8 = vmax.f32 %v565_v62, 0.0  ;;  %v568_v10 = vadd.f32 %v1404_v22, %v567_v6  ;;  %v1001_v11 = vpack.c.bf16 %v617_v1, %v617_v1  ;;  %v618_v13 = vmax.f32 %v512_v3, 0.0 }
 0x12f   : > { %v1017_v12 = vpack.c.bf16 %v633_v2, %v633_v2  ;;  %v634_v14 = vmax.f32 %v576_v4, 0.0  ;;  %v999_v15 = vpack.c.bf16 %v615_v7, %v615_v7  ;;  %v616_v17 = vmax.f32 %v504_v9, 0.0 }
 0x130   : > { %v1015_v16 = vpack.c.bf16 %v631_v8, %v631_v8  ;;  %v632_v18 = vmax.f32 %v568_v10, 0.0  ;;  %778 = vst.msk [vmem:[%s1417_s30 + $0x18] sm:$0xf] %vm771_vm3, %v1001_v11  ;;  %v1002_v19 = vpack.c.bf16 %v618_v13, %v618_v13 }
 0x131   : > { %794 = vst.msk [vmem:[%s1417_s30 + $0x58] sm:$0xf] %vm771_vm3, %v1017_v12  ;;  %v1018_v20 = vpack.c.bf16 %v634_v14, %v634_v14  ;;  %776 = vst.msk [vmem:[%s1417_s30 + $0x10] sm:$0xf] %vm771_vm3, %v999_v15  ;;  %v1000_v21 = vpack.c.bf16 %v616_v17, %v616_v17  ;;  %v1059_v24 = vpop.f32.mrb[8].mxu0 }
 0x132   : > { %792 = vst.msk [vmem:[%s1417_s30 + $0x50] sm:$0xf] %vm771_vm3, %v1015_v16  ;;  %v1016_v23 = vpack.c.bf16 %v632_v18, %v632_v18  ;;  %v1075_v25 = vpop.f32.mrb[8].mxu1  ;;  %779 = vst.msk [vmem:[%s1417_s30 + $0x1c] sm:$0xf] %vm771_vm3, %v1002_v19  ;;  %v525_v26 = vadd.f32 %v1059_v24, %v1404_v22  ;;  %v516_v28 = vpop.f32.mrb[9].mxu0 }
 0x133   : > { %795 = vst.msk [vmem:[%s1417_s30 + $0x5c] sm:$0xf] %vm771_vm3, %v1018_v20  ;;  %v589_v27 = vadd.f32 %v1075_v25, %v1404_v22  ;;  %v580_v29 = vpop.f32.mrb[9].mxu1  ;;  %777 = vst.msk [vmem:[%s1417_s30 + $0x14] sm:$0xf] %vm771_vm3, %v1000_v21  ;;  %v517_v30 = vadd.f32 %v1404_v22, %v516_v28  ;;  %v1060_v32 = vpop.f32.mrb[10].mxu0 }
 0x134   : > { %793 = vst.msk [vmem:[%s1417_s30 + $0x54] sm:$0xf] %vm771_vm3, %v1016_v23  ;;  %v581_v31 = vadd.f32 %v1404_v22, %v580_v29  ;;  %v1076_v33 = vpop.f32.mrb[10].mxu1  ;;  %v621_v34 = vmax.f32 %v525_v26, 0.0  ;;  %v528_v36 = vadd.f32 %v1060_v32, %v1404_v22  ;;  %v519_v38 = vpop.f32.mrb[11].mxu0 }
 0x135   : > { %v637_v35 = vmax.f32 %v589_v27, 0.0  ;;  %v592_v37 = vadd.f32 %v1076_v33, %v1404_v22  ;;  %v583_v39 = vpop.f32.mrb[11].mxu1  ;;  %v619_v40 = vmax.f32 %v517_v30, 0.0  ;;  %v520_v42 = vadd.f32 %v1404_v22, %v519_v38 }
 0x136   : > { %v635_v41 = vmax.f32 %v581_v31, 0.0  ;;  %v584_v43 = vadd.f32 %v1404_v22, %v583_v39  ;;  %v1005_v44 = vpack.c.bf16 %v621_v34, %v621_v34  ;;  %v622_v46 = vmax.f32 %v528_v36, 0.0 }
 0x137   : > { %v1021_v45 = vpack.c.bf16 %v637_v35, %v637_v35  ;;  %v638_v47 = vmax.f32 %v592_v37, 0.0  ;;  %v1003_v48 = vpack.c.bf16 %v619_v40, %v619_v40  ;;  %v620_v50 = vmax.f32 %v520_v42, 0.0 }
 0x138   : > { %v1019_v49 = vpack.c.bf16 %v635_v41, %v635_v41  ;;  %v636_v51 = vmax.f32 %v584_v43, 0.0  ;;  %782 = vst.msk [vmem:[%s1417_s30 + $0x28] sm:$0xf] %vm771_vm3, %v1005_v44  ;;  %v1006_v52 = vpack.c.bf16 %v622_v46, %v622_v46 }
 0x139   : > { %798 = vst.msk [vmem:[%s1417_s30 + $0x68] sm:$0xf] %vm771_vm3, %v1021_v45  ;;  %v1022_v53 = vpack.c.bf16 %v638_v47, %v638_v47  ;;  %780 = vst.msk [vmem:[%s1417_s30 + $0x20] sm:$0xf] %vm771_vm3, %v1003_v48  ;;  %v1004_v54 = vpack.c.bf16 %v620_v50, %v620_v50  ;;  %v1063_v56 = vpop.f32.mrb[12].mxu0 }
 0x13a   : > { %796 = vst.msk [vmem:[%s1417_s30 + $0x60] sm:$0xf] %vm771_vm3, %v1019_v49  ;;  %v1020_v55 = vpack.c.bf16 %v636_v51, %v636_v51  ;;  %v1079_v57 = vpop.f32.mrb[12].mxu1  ;;  %783 = vst.msk [vmem:[%s1417_s30 + $0x2c] sm:$0xf] %vm771_vm3, %v1006_v52  ;;  %v541_v58 = vadd.f32 %v1063_v56, %v1404_v22  ;;  %v532_v60 = vpop.f32.mrb[13].mxu0 }
 0x13b   : > { %799 = vst.msk [vmem:[%s1417_s30 + $0x6c] sm:$0xf] %vm771_vm3, %v1022_v53  ;;  %v605_v59 = vadd.f32 %v1079_v57, %v1404_v22  ;;  %v596_v61 = vpop.f32.mrb[13].mxu1  ;;  %781 = vst.msk [vmem:[%s1417_s30 + $0x24] sm:$0xf] %vm771_vm3, %v1004_v54  ;;  %v533_v62 = vadd.f32 %v1404_v22, %v532_v60  ;;  %v1064_v0 = vpop.f32.mrb[14].mxu0 }
 0x13c   : > { %797 = vst.msk [vmem:[%s1417_s30 + $0x64] sm:$0xf] %vm771_vm3, %v1020_v55  ;;  %v597_v63 = vadd.f32 %v1404_v22, %v596_v61  ;;  %v1080_v1 = vpop.f32.mrb[14].mxu1  ;;  %v625_v2 = vmax.f32 %v541_v58, 0.0  ;;  %v544_v4 = vadd.f32 %v1064_v0, %v1404_v22  ;;  %v535_v6 = vpop.f32.mrb[15].mxu0 }
 0x13d   : > { %v641_v3 = vmax.f32 %v605_v59, 0.0  ;;  %v608_v5 = vadd.f32 %v1080_v1, %v1404_v22  ;;  %v599_v7 = vpop.f32.mrb[15].mxu1  ;;  %v623_v8 = vmax.f32 %v533_v62, 0.0  ;;  %v536_v10 = vadd.f32 %v1404_v22, %v535_v6 }
 0x13e   : > { %v639_v9 = vmax.f32 %v597_v63, 0.0  ;;  %v600_v11 = vadd.f32 %v1404_v22, %v599_v7  ;;  %v1009_v12 = vpack.c.bf16 %v625_v2, %v625_v2  ;;  %v626_v14 = vmax.f32 %v544_v4, 0.0 }
 0x13f   : > { %v1025_v13 = vpack.c.bf16 %v641_v3, %v641_v3  ;;  %v642_v15 = vmax.f32 %v608_v5, 0.0  ;;  %v1007_v16 = vpack.c.bf16 %v623_v8, %v623_v8  ;;  %v624_v18 = vmax.f32 %v536_v10, 0.0 }
 0x140   : > { %v1023_v17 = vpack.c.bf16 %v639_v9, %v639_v9  ;;  %v640_v19 = vmax.f32 %v600_v11, 0.0  ;;  %786 = vst.msk [vmem:[%s1417_s30 + $0x38] sm:$0xf] %vm771_vm3, %v1009_v12  ;;  %v1010_v20 = vpack.c.bf16 %v626_v14, %v626_v14 }
 0x141   : > { %802 = vst.msk [vmem:[%s1417_s30 + $0x78] sm:$0xf] %vm771_vm3, %v1025_v13  ;;  %v1026_v21 = vpack.c.bf16 %v642_v15, %v642_v15  ;;  %784 = vst.msk [vmem:[%s1417_s30 + $0x30] sm:$0xf] %vm771_vm3, %v1007_v16  ;;  %v1008_v22 = vpack.c.bf16 %v624_v18, %v624_v18 }
 0x142   : > { %800 = vst.msk [vmem:[%s1417_s30 + $0x70] sm:$0xf] %vm771_vm3, %v1023_v17  ;;  %v1024_v23 = vpack.c.bf16 %v640_v19, %v640_v19  ;;  %787 = vst.msk [vmem:[%s1417_s30 + $0x3c] sm:$0xf] %vm771_vm3, %v1010_v20 }
 0x143   : > { %803 = vst.msk [vmem:[%s1417_s30 + $0x7c] sm:$0xf] %vm771_vm3, %v1026_v21  ;;  %785 = vst.msk [vmem:[%s1417_s30 + $0x34] sm:$0xf] %vm771_vm3, %v1008_v22 }
 0x144   : > { %801 = vst.msk [vmem:[%s1417_s30 + $0x74] sm:$0xf] %vm771_vm3, %v1024_v23 }
 0x145 PF: > { %s15_s14 = sadd.s32 1, %s1237_s14   ;;  %s1530_s12 = smov %s1233_s13 }
 0x146   : > { %p12_p6 = scmp.ge.s32.totalorder %s15_s14, 4   ;;  %s1531_s13 = smov %s1533_s16 }
 0x148   :  { %14 = sbr.rel (!%p12_p6) target bundleno = 3 (0x3), region = 73 }
 0x14f   :  { %832 = vsyncpa [#allocation3], 1 }
 0x150   :  { %834 = vsyncpa [#allocation3 + $0x1], 1 }
 0x151   :  { %835 = vsyncpa [#allocation5], 1 }

// kernel: vggnet_forward.17
= control target key start
LH: loop header
LB: loop body
LE: loop exit
PB: predicated region body
PF: predicated region fallthrough
CT: control target
= control target key end

     0   :  { %8 = vsyncpa [#allocation3], 0  ;;  %s2678_s12 = smov 0   ;;  %s2680_s13 = smov 0   ;;  %s3174_s0 = inlined_call_operand.vmem [shape: bf16[512,576], index: 0, kind: input, shape index: {}]   ;;  %s3175_s1 = inlined_call_operand.vmem [shape: bf16[576,64], index: 1, kind: input, shape index: {}]   ;;  %s3176_s2 = inlined_call_operand.hbm [shape: f32[1,64], index: 2, kind: input, shape index: {}]   ;;  %s3177_s3 = inlined_call_operand.vmem [shape: bf16[512,64], index: 3, kind: output, shape index: {}]  }
   0x1   :  { %s2682_s14 = smov 0  }
   0x2 LB: > { %s1906_s15 = sadd.s32 4294967295, %s2655_s14   ;;  %s33_s16 = sadd.s32 1, %s2651_s13  ;;  %s2655_s14 = sphi %s2682_s14, %s14_s14   ;;  %s2651_s13 = sphi %s2680_s13, %s3187_s13   ;;  %s2647_s12 = sphi %s2678_s12, %s3186_s12  }
   0x3   : > { %p35_p0 = scmp.ge.s32.totalorder %s33_s16, 2  ;;  %p1908_p1 = scmp.ge.s32.totalorder %s2655_s14, 1 }
   0x4   : > { %p148_p2 = scmp.lt.s32.totalorder %s2655_s14, 3  ;;  %p2703_p4 = scmp.eq.s32.totalorder %s1906_s15, 0 }
   0x5   : > { %s3189_s16 = smov (%p35_p0, %s33_s16), 0  ;;  %s2657_s19 = smov [#allocation2]  }
   0x6   : > { %p2699_p3 = pnand %p1908_p1, %p148_p2  ;;  %s175_s20 = sshll.u32 %s2657_s19, 4  ;;  %s176_s20 = int_to_ptr.vmem [resolvable:$true] %s175_s20 }
   0x7   : > { %s3182_s18 = scalar_select %p2703_p4, 1, 0 }
   0x8   : > { %s3181_s17 = scalar_select %p2699_p3, 1, 0 }
   0x9   : > { %p2422_p5 = pneg %p2699_p3  ;;  %s2601_s24 = scalar_lea.hbm %s3176_s2, 16 }
   0xa   : > { %p2602_p7 = scmp.ne.s32.totalorder %s3176_s2, %s2601_s24  ;;  %p2608_p11 = scmp.lt.u32.totalorder %s2601_s24, %s3176_s2 }
   0xb   : > { %p2711_p6 = pnand %p2703_p4, %p2422_p5 }
   0xd   : > { %p2603_p8 = pneg %p2711_p6 }
   0xf   : > { %p2604_p9 = pnand %p2603_p8, %p2602_p7 }
  0x11   : > { %p2605_p10 = pneg %p2604_p9 }
  0x13   : > { %p2610_p12 = pnand %p2608_p11, %p2605_p10 }
  0x15   : > { %2613 = shalt.err (!%p2610_p12)
}
  0x16   : > { %s2614_s29 = scalar_lea.vmem %s176_s20, 16  ;;  %s2621_s30 = scalar_lea.vmem %s176_s20, 32 }
  0x17   : > { %p2615_p13 = scmp.ne.s32.totalorder %s176_s20, %s2614_s29  ;;  %p2622_p2 = scmp.lt.s32.totalorder %s176_s20, %s176_s20 }
  0x18   : > { %p2623_p5 = scmp.lt.s32.totalorder %s2621_s30, %s2614_s29 }
  0x19   : > { %p2617_p0 = pnand %p2615_p13, %p2603_p8 }
  0x1a   : > { %p2624_p4 = por %p2623_p5, %p2622_p2 }
  0x1b   : > { %p2618_p1 = pneg %p2617_p0 }
  0x1d   : > { %p2625_p3 = pnand %p2624_p4, %p2618_p1 }
  0x1f   : > { %2628 = shalt.err (!%p2625_p3)
}
  0x20   : > { %2425 = dma.hbm_to_vmem [thread:$0]  (!%p2711_p6), %s3176_s2, 16, %s176_s20, [#allocation3]  }
  0x21   : > { %p3184_p7 = scmp.ne.s32.totalorder %s3181_s17, 0 }
  0x22   : > { %p3185_p9 = scmp.ne.s32.totalorder (!%p3184_p7), %s3182_s18, 0 }
  0x23   : > { %203 = sbr.rel (%p3184_p7) target bundleno = 454 (0x1c6), region = 32 }
  0x2a   : > { %2642 = dma.done.wait (%p3185_p9), [#allocation3], 16  }
  0x2b   : > { %2644 = vsyncadd (%p3185_p9), [#allocation3], 4294967280  ;;  %s1914_s6 = sshll.u32 %s2647_s12, 5  ;;  %v2453_v0 = vld [vmem:[%s3175_s1 + $0x40] sm:$0xff]   ;;  %v2455_v2 = vld [vmem:[%s3175_s1 + $0x48] sm:$0xff]   ;;  %vm1065_vm0 = vcmask 523264  }
  0x2c   : > { %v2454_v1 = vld [vmem:[%s3175_s1] sm:$0xff]   ;;  %2117 = vmatprep.subr.bf16.mxu0 %v2453_v0  ;;  %2401 = vmatprep.subr.bf16.mxu1 %v2453_v0  ;;  %p245_p3 = scmp.lt.s32.totalorder %s1914_s6, 63  ;;  %v2456_v3 = vld [vmem:[%s3175_s1 + $0x8] sm:$0xff]   ;;  %v2457_v4 = vld [vmem:[%s3175_s1 + $0x50] sm:$0xff]   ;;  %vm1757_vm1 = vcmask 519168  }
  0x2d   : > { %2118 = vmatpush3.bf16.msra.mxu0 %v2454_v1  ;;  %2409 = vmatpush3.bf16.msra.mxu1 %v2454_v1  ;;  %v2458_v5 = vld [vmem:[%s3175_s1 + $0x10] sm:$0xff]   ;;  %v2459_v6 = vld [vmem:[%s3175_s1 + $0x58] sm:$0xff]   ;;  %v2461_v8 = vld [vmem:[%s3175_s1 + $0x60] sm:$0xff]  }
  0x2e   : > { %2119 = vmatprep.subr.bf16.mxu0 %v2455_v2  ;;  %2402 = vmatprep.subr.bf16.mxu1 %v2455_v2  ;;  %s3191_s6 = smov (!%p245_p3, %s1914_s6), 63  ;;  %v2460_v7 = vld [vmem:[%s3175_s1 + $0x18] sm:$0xff]   ;;  %v2462_v9 = vld [vmem:[%s3175_s1 + $0x20] sm:$0xff]   ;;  %v2463_v10 = vld [vmem:[%s3175_s1 + $0x68] sm:$0xff]  }
  0x2f   : > { %s2417_s24 = smul.u32 20, %s3191_s6  ;;  %v2464_v13 = vld [vmem:[%s3175_s1 + $0x28] sm:$0xff]   ;;  %v2465_v14 = vld [vmem:[%s3175_s1 + $0x70] sm:$0xff]   ;;  %v2467_v16 = vld [vmem:[%s3175_s1 + $0x78] sm:$0xff]  }
  0x30   : > { %v2466_v15 = vld [vmem:[%s3175_s1 + $0x30] sm:$0xff]   ;;  %v2468_v17 = vld [vmem:[%s3175_s1 + $0x38] sm:$0xff]   ;;  %v2475_v18 = vld [vmem:[%s3175_s1 + $0xc0] sm:$0xff]  }
  0x31   : > { %2120 = vmatpush3.bf16.msra.mxu0 %v2456_v3  ;;  %2410 = vmatpush3.bf16.msra.mxu1 %v2456_v3  ;;  %s2771_s4 = scalar_lea.vmem %s3174_s0, %s2417_s24  ;;  %v2478_v19 = vld [vmem:[%s3175_s1 + $0x100] sm:$0xff]   ;;  %v2477_v23 = vld [vmem:[%s3175_s1 + $0xc8] sm:$0xff]   ;;  %v2486_v28 = vld [vmem:[%s3175_s1 + $0xd0] sm:$0xff]  }
  0x32   : > { %2121 = vmatprep.subr.bf16.mxu0 %v2457_v4  ;;  %2403 = vmatprep.subr.bf16.mxu1 %v2457_v4  ;;  %v2471_v11 = vld [vmem:[%s2771_s4 + $0x4] ss:$20 sps:$4 sm:$0xff]   ;;  %v2469_v20 = vld [vmem:[%s2771_s4] ss:$20 sps:$4 sm:$0xff]   ;;  %v2479_v26 = vld [vmem:[%s3175_s1 + $0x88] sm:$0xff]  }
  0x33   : > { %v2474_v12 = vld [vmem:[%s2771_s4 + $0x1e4] ss:$20 sps:$4 sm:$0xff]   ;;  %1146 = vmatprep.mubr.bf16.mxu0 %v2471_v11  ;;  %v2472_v21 = vld [vmem:[%s2771_s4 + $0x1e0] ss:$20 sps:$4 sm:$0xff]   ;;  %v2484_v27 = vld [vmem:[%s2771_s4 + $0x28] ss:$20 sps:$4 sm:$0xff]  }
  0x34   : > { %1242 = vmatprep.mubr.bf16.mxu1 %v2474_v12  ;;  %v2476_v22 = vld [vmem:[%s3175_s1 + $0x80] sm:$0xff]   ;;  %v2485_v29 = vld [vmem:[%s2771_s4 + $0x208] ss:$20 sps:$4 sm:$0xff]   ;;  %v2487_v30 = vld [vmem:[%s3175_s1 + $0x90] sm:$0xff]  }
  0x35   : > { %2122 = vmatpush3.bf16.msra.mxu0 %v2458_v5  ;;  %2411 = vmatpush3.bf16.msra.mxu1 %v2458_v5  ;;  %v2480_v24 = vld [vmem:[%s2771_s4 + $0x2c] ss:$20 sps:$4 sm:$0xff]   ;;  %v2488_v31 = vld [vmem:[%s3175_s1 + $0xd8] sm:$0xff]   ;;  %v2490_v32 = vld [vmem:[%s2771_s4 + $0x54] ss:$20 sps:$4 sm:$0xff]  }
  0x36   : > { %2123 = vmatprep.subr.bf16.mxu0 %v2459_v6  ;;  %2404 = vmatprep.subr.bf16.mxu1 %v2459_v6  ;;  %v2482_v25 = vld [vmem:[%s2771_s4 + $0x20c] ss:$20 sps:$4 sm:$0xff]   ;;  %v2492_v33 = vld [vmem:[%s2771_s4 + $0x234] ss:$20 sps:$4 sm:$0xff]   ;;  %v2489_v34 = vld [vmem:[%s3175_s1 + $0x98] sm:$0xff]  }
  0x37   : > { %v2509_v35 = vld [vmem:[%s3175_s1 + $0x108] sm:$0xff]   ;;  %v2494_v36 = vld [vmem:[%s2771_s4 + $0x50] ss:$20 sps:$4 sm:$0xff]   ;;  %v2508_v49 = vld [vmem:[%s3175_s1 + $0xf8] sm:$0xff]  }
  0x38   : > { %v2496_v37 = vld [vmem:[%s3175_s1 + $0xe0] sm:$0xff]   ;;  %v2498_v40 = vld [vmem:[%s3175_s1 + $0xe8] sm:$0xff]   ;;  %v2500_v41 = vld [vmem:[%s2771_s4 + $0x7c] ss:$20 sps:$4 sm:$0xff]  }
  0x39   : > { %2124 = vmatpush3.bf16.msra.mxu0 %v2460_v7  ;;  %2412 = vmatpush3.bf16.msra.mxu1 %v2460_v7  ;;  %v2495_v38 = vld [vmem:[%s2771_s4 + $0x230] ss:$20 sps:$4 sm:$0xff]   ;;  %v2499_v43 = vld [vmem:[%s3175_s1 + $0xa8] sm:$0xff]   ;;  %v2510_v52 = vld [vmem:[%s3175_s1 + $0xb8] sm:$0xff]  }
  0x3a   : > { %2125 = vmatprep.subr.bf16.mxu0 %v2461_v8  ;;  %2405 = vmatprep.subr.bf16.mxu1 %v2461_v8  ;;  %v2497_v39 = vld [vmem:[%s3175_s1 + $0xa0] sm:$0xff]   ;;  %v2502_v42 = vld [vmem:[%s2771_s4 + $0x25c] ss:$20 sps:$4 sm:$0xff]   ;;  %v2504_v44 = vld [vmem:[%s2771_s4 + $0x78] ss:$20 sps:$4 sm:$0xff]  }
  0x3b   : > { %v2505_v45 = vld [vmem:[%s2771_s4 + $0x258] ss:$20 sps:$4 sm:$0xff]   ;;  %v2506_v46 = vld [vmem:[%s3175_s1 + $0xf0] sm:$0xff]   ;;  %v2513_v53 = vld [vmem:[%s2771_s4 + $0x8] ss:$20 sps:$4 sm:$0xff]  }
  0x3c   : > { %v2529_v47 = vld [vmem:[%s3175_s1 + $0x110] sm:$0xff]   ;;  %v2511_v50 = vld [vmem:[%s2771_s4 + $0xa4] ss:$20 sps:$4 sm:$0xff]   ;;  %v2515_v51 = vld [vmem:[%s2771_s4 + $0xc] ss:$20 sps:$4 sm:$0xff]  }
  0x3d   : > { %2126 = vmatpush3.bf16.msra.mxu0 %v2462_v9  ;;  %2413 = vmatpush3.bf16.msra.mxu1 %v2462_v9  ;;  %v2507_v48 = vld [vmem:[%s3175_s1 + $0xb0] sm:$0xff]   ;;  %v2517_v55 = vld [vmem:[%s2771_s4 + $0xcc] ss:$20 sps:$4 sm:$0xff]   ;;  %v2548_v56 = vld [vmem:[%s3175_s1 + $0x118] sm:$0xff]  }
  0x3e   : > { %2127 = vmatprep.subr.bf16.mxu0 %v2463_v10  ;;  %2406 = vmatprep.subr.bf16.mxu1 %v2463_v10  ;;  %v2516_v54 = vld [vmem:[%s2771_s4 + $0xa0] ss:$20 sps:$4 sm:$0xff]   ;;  %v2521_v58 = vld [vmem:[%s2771_s4 + $0xc8] ss:$20 sps:$4 sm:$0xff]   ;;  %v2522_v59 = vld [vmem:[%s2771_s4 + $0x30] ss:$20 sps:$4 sm:$0xff]  }
  0x3f   : > { %v2519_v57 = vld [vmem:[%s2771_s4 + $0x34] ss:$20 sps:$4 sm:$0xff]   ;;  %v2525_v61 = vld [vmem:[%s2771_s4 + $0x5c] ss:$20 sps:$4 sm:$0xff]   ;;  %v2528_v63 = vld [vmem:[%s2771_s4 + $0x58] ss:$20 sps:$4 sm:$0xff]  }
  0x40   : > { %v2523_v60 = vld [vmem:[%s2771_s4 + $0xf4] ss:$20 sps:$4 sm:$0xff]   ;;  %v2527_v62 = vld [vmem:[%s2771_s4 + $0xf0] ss:$20 sps:$4 sm:$0xff]   ;;  %v2534_v2 = vld [vmem:[%s2771_s4 + $0x118] ss:$20 sps:$4 sm:$0xff]  }
  0x41   : > { %2128 = vmatpush3.bf16.msra.mxu0 %v2464_v13  ;;  %2414 = vmatpush3.bf16.msra.mxu1 %v2464_v13  ;;  %v2530_v0 = vld [vmem:[%s2771_s4 + $0x11c] ss:$20 sps:$4 sm:$0xff]   ;;  %v2532_v1 = vld [vmem:[%s2771_s4 + $0x84] ss:$20 sps:$4 sm:$0xff]   ;;  %v2535_v3 = vld [vmem:[%s2771_s4 + $0x80] ss:$20 sps:$4 sm:$0xff]  }
  0x42   : > { %2129 = vmatprep.subr.bf16.mxu0 %v2465_v14  ;;  %2407 = vmatprep.subr.bf16.mxu1 %v2465_v14  ;;  %v2536_v4 = vld [vmem:[%s2771_s4 + $0x144] ss:$20 sps:$4 sm:$0xff]   ;;  %v2538_v5 = vld [vmem:[%s2771_s4 + $0xac] ss:$20 sps:$4 sm:$0xff]   ;;  %v2541_v7 = vld [vmem:[%s2771_s4 + $0xa8] ss:$20 sps:$4 sm:$0xff]  }
  0x43   : > { %v2540_v6 = vld [vmem:[%s2771_s4 + $0x140] ss:$20 sps:$4 sm:$0xff]   ;;  %v2546_v10 = vld [vmem:[%s2771_s4 + $0x168] ss:$20 sps:$4 sm:$0xff]   ;;  %v2547_v11 = vld [vmem:[%s2771_s4 + $0xd0] ss:$20 sps:$4 sm:$0xff]  }
  0x44   : > { %v2542_v8 = vld [vmem:[%s2771_s4 + $0x16c] ss:$20 sps:$4 sm:$0xff]   ;;  %v2544_v9 = vld [vmem:[%s2771_s4 + $0xd4] ss:$20 sps:$4 sm:$0xff]   ;;  %v2551_v13 = vld [vmem:[%s2771_s4 + $0xfc] ss:$20 sps:$4 sm:$0xff]  }
  0x45   : > { %2130 = vmatpush3.bf16.msra.mxu0 %v2466_v15  ;;  %2415 = vmatpush3.bf16.msra.mxu1 %v2466_v15  ;;  %v2549_v12 = vld [vmem:[%s2771_s4 + $0x194] ss:$20 sps:$4 sm:$0xff]   ;;  %v2553_v14 = vld [vmem:[%s2771_s4 + $0x190] ss:$20 sps:$4 sm:$0xff]   ;;  %v2554_v15 = vld [vmem:[%s2771_s4 + $0xf8] ss:$20 sps:$4 sm:$0xff]  }
  0x46   : > { %2131 = vmatprep.subr.bf16.mxu0 %v2467_v16  ;;  %2408 = vmatprep.subr.bf16.mxu1 %v2467_v16  ;;  %v2555_v16 = vld [vmem:[%s2771_s4 + $0x1bc] ss:$20 sps:$4 sm:$0xff]  }
  0x49   : > { %2132 = vmatpush3.bf16.msra.mxu0 %v2468_v17  ;;  %2416 = vmatpush3.bf16.msra.mxu1 %v2468_v17  ;;  %v2557_v17 = vld [vmem:[%s2771_s4 + $0x124] ss:$20 sps:$4 sm:$0xff]  }
  0x4a   : > { %2229 = vmatprep.subr.bf16.mxu1 %v2475_v18  ;;  %2361 = vmatprep.subr.bf16.mxu0 %v2478_v19  ;;  %v2559_v18 = vld [vmem:[%s2771_s4 + $0x1b8] ss:$20 sps:$4 sm:$0xff]  }
  0x4c   : > { %1147 = vmatmul.mubr.bf16.vlgmr.msra.gmra.mrb[0].mxu0 %v2469_v20  ;;  %1243 = vmatmul.mubr.bf16.vlgmr.msra.gmra.mrb[0].mxu1 %v2472_v21  ;;  %v2561_v20 = vld [vmem:[%s2771_s4 + $0x14c] ss:$20 sps:$4 sm:$0xff]   ;;  %v2563_v21 = vld [vmem:[%s2771_s4 + $0x10] ss:$20 sps:$4 sm:$0xff]  }
  0x4d   : > { %2230 = vmatpush3.bf16.msra.mxu1 %v2476_v22  ;;  %2362 = vmatpush3.bf16.msra.mxu0 %v2478_v19  ;;  %v2560_v19 = vld [vmem:[%s2771_s4 + $0x120] ss:$20 sps:$4 sm:$0xff]   ;;  %v2564_v22 = vld [vmem:[%s2771_s4 + $0x148] ss:$20 sps:$4 sm:$0xff]  }
  0x4e   : > { %2231 = vmatprep.subr.bf16.mxu1 %v2477_v23  ;;  %1154 = vmatprep.mubr.bf16.mxu0 %v2480_v24  ;;  %v2565_v23 = vld [vmem:[%s2771_s4 + $0x38] ss:$20 sps:$4 sm:$0xff]   ;;  %v2566_v24 = vld [vmem:[%s2771_s4 + $0x174] ss:$20 sps:$4 sm:$0xff]  }
  0x4f   : > { %1250 = vmatprep.mubr.bf16.mxu1 %v2482_v25  ;;  %2363 = vmatprep.subr.bf16.mxu0 %v2509_v35  ;;  %v2568_v25 = vld [vmem:[%s2771_s4 + $0x60] ss:$20 sps:$4 sm:$0xff]  }
  0x51   : > { %2232 = vmatpush3.bf16.msra.mxu1 %v2479_v26  ;;  %2364 = vmatpush3.bf16.msra.mxu0 %v2509_v35  ;;  %v2569_v26 = vld [vmem:[%s2771_s4 + $0x170] ss:$20 sps:$4 sm:$0xff]   ;;  %v2580_v35 = vld [vmem:[%s2771_s4 + $0x128] ss:$20 sps:$4 sm:$0xff]  }
  0x52   : > { %2233 = vmatprep.subr.bf16.mxu1 %v2486_v28  ;;  %2365 = vmatprep.subr.bf16.mxu0 %v2529_v47  ;;  %v2571_v28 = vld [vmem:[%s2771_s4 + $0x19c] ss:$20 sps:$4 sm:$0xff]  }
  0x54   : > { %1155 = vmatmul.mubr.bf16.gmra.mrb[4].mxu0 %v2484_v27  ;;  %1251 = vmatmul.mubr.bf16.gmra.mrb[4].mxu1 %v2485_v29  ;;  %v2570_v27 = vld [vmem:[%s2771_s4 + $0x88] ss:$20 sps:$4 sm:$0xff]   ;;  %v2573_v29 = vld [vmem:[%s2771_s4 + $0xb0] ss:$20 sps:$4 sm:$0xff]  }
  0x55   : > { %2234 = vmatpush3.bf16.msra.mxu1 %v2487_v30  ;;  %1162 = vmatprep.mubr.bf16.mxu0 %v2490_v32  ;;  %v2574_v30 = vld [vmem:[%s2771_s4 + $0x198] ss:$20 sps:$4 sm:$0xff]  }
  0x56   : > { %2235 = vmatprep.subr.bf16.mxu1 %v2488_v31  ;;  %1258 = vmatprep.mubr.bf16.mxu1 %v2492_v33  ;;  %v2575_v31 = vld [vmem:[%s2771_s4 + $0xd8] ss:$20 sps:$4 sm:$0xff]   ;;  %v2578_v33 = vld [vmem:[%s2771_s4 + $0x100] ss:$20 sps:$4 sm:$0xff]  }
  0x57   : > { %2366 = vmatpush3.bf16.msra.mxu0 %v2529_v47  ;;  %v2576_v32 = vld [vmem:[%s2771_s4 + $0x1c4] ss:$20 sps:$4 sm:$0xff]  }
  0x58   : > { %2367 = vmatprep.subr.bf16.mxu0 %v2548_v56  ;;  %v2595_v47 = vld [vmem:[%s2771_s4 + $0x218] ss:$20 sps:$4 sm:$0xff]  }
  0x59   : > { %2236 = vmatpush3.bf16.msra.mxu1 %v2489_v34  ;;  %v2579_v34 = vld [vmem:[%s2771_s4 + $0x1c0] ss:$20 sps:$4 sm:$0xff]  }
  0x5a   : > { %2237 = vmatprep.subr.bf16.mxu1 %v2496_v37  ;;  %v2583_v37 = vld [vmem:[%s2771_s4 + $0x150] ss:$20 sps:$4 sm:$0xff]  }
  0x5b   : > { %2368 = vmatpush3.bf16.msra.mxu0 %v2548_v56 }
  0x5c   : > { %1163 = vmatmul.mubr.bf16.gmra.mrb[8].mxu0 %v2494_v36  ;;  %1259 = vmatmul.mubr.bf16.gmra.mrb[8].mxu1 %v2495_v38  ;;  %v2581_v36 = vld [vmem:[%s2771_s4 + $0x1ec] ss:$20 sps:$4 sm:$0xff]   ;;  %v2584_v38 = vld [vmem:[%s2771_s4 + $0x1e8] ss:$20 sps:$4 sm:$0xff]  }
  0x5d   : > { %2238 = vmatpush3.bf16.msra.mxu1 %v2497_v39  ;;  %1170 = vmatprep.mubr.bf16.mxu0 %v2500_v41  ;;  %v2585_v39 = vld [vmem:[%s2771_s4 + $0x178] ss:$20 sps:$4 sm:$0xff]   ;;  %v2588_v41 = vld [vmem:[%s2771_s4 + $0x1a0] ss:$20 sps:$4 sm:$0xff]  }
  0x5e   : > { %2239 = vmatprep.subr.bf16.mxu1 %v2498_v40  ;;  %1266 = vmatprep.mubr.bf16.mxu1 %v2502_v42  ;;  %v2586_v40 = vld [vmem:[%s2771_s4 + $0x214] ss:$20 sps:$4 sm:$0xff]   ;;  %v2589_v42 = vld [vmem:[%s2771_s4 + $0x210] ss:$20 sps:$4 sm:$0xff]  }
  0x61   : > { %2240 = vmatpush3.bf16.msra.mxu1 %v2499_v43  ;;  %v2590_v43 = vld [vmem:[%s2771_s4 + $0x1c8] ss:$20 sps:$4 sm:$0xff]  }
  0x62   : > { %2241 = vmatprep.subr.bf16.mxu1 %v2506_v46  ;;  %v2594_v46 = vld [vmem:[%s2771_s4 + $0x238] ss:$20 sps:$4 sm:$0xff]  }
  0x64   : > { %1171 = vmatmul.mubr.bf16.gmra.mrb[12].mxu0 %v2504_v44  ;;  %1267 = vmatmul.mubr.bf16.gmra.mrb[12].mxu1 %v2505_v45  ;;  %v2591_v44 = vld [vmem:[%s2771_s4 + $0x23c] ss:$20 sps:$4 sm:$0xff]  }
  0x65   : > { %2242 = vmatpush3.bf16.msra.mxu1 %v2507_v48  ;;  %1178 = vmatprep.mubr.bf16.mxu0 %v2511_v50  ;;  %v2593_v45 = vld [vmem:[%s2771_s4 + $0x1f0] ss:$20 sps:$4 sm:$0xff]   ;;  %v2599_v50 = vld [vmem:[%s2771_s4 + $0x260] ss:$20 sps:$4 sm:$0xff]  }
  0x66   : > { %2243 = vmatprep.subr.bf16.mxu1 %v2508_v49  ;;  %1307 = vmatprep.mubr.bf16.mxu1 %v2515_v51  ;;  %v2596_v48 = vld [vmem:[%s2771_s4 + $0x264] ss:$20 sps:$4 sm:$0xff]   ;;  %v2598_v49 = vld [vmem:[%s2771_s4 + $0x240] ss:$20 sps:$4 sm:$0xff]   ;;  %v2600_v51 = vld [vmem:[%s2771_s4 + $0x268] ss:$20 sps:$4 sm:$0xff]  }
  0x67   : > { %s1917_s4 = sshll.u32 %s3191_s6, 2 }
  0x68   : > { %s3040_s20 = scalar_lea.vmem %s3177_s3, %s1917_s4 }
  0x69   : > { %2244 = vmatpush3.bf16.msra.mxu1 %v2510_v52 }
  0x6c   : > { %1179 = vmatmul.mubr.bf16.gmra.mrb[16].mxu0 %v2516_v54  ;;  %1308 = vmatmul.mubr.bf16.vlgmr.msra.gmra.mrb[16].mxu1 %v2513_v53 }
  0x6d   : > { %1186 = vmatprep.mubr.bf16.mxu0 %v2517_v55  ;;  %1315 = vmatprep.mubr.bf16.mxu1 %v2519_v57 }
  0x74   : > { %1187 = vmatmul.mubr.bf16.gmra.mrb[20].mxu0 %v2521_v58  ;;  %1316 = vmatmul.mubr.bf16.gmra.mrb[20].mxu1 %v2522_v59 }
  0x75   : > { %1194 = vmatprep.mubr.bf16.mxu0 %v2523_v60  ;;  %1323 = vmatprep.mubr.bf16.mxu1 %v2525_v61 }
  0x7c   : > { %1195 = vmatmul.mubr.bf16.gmra.mrb[24].mxu0 %v2527_v62  ;;  %1324 = vmatmul.mubr.bf16.gmra.mrb[24].mxu1 %v2528_v63 }
  0x7d   : > { %1202 = vmatprep.mubr.bf16.mxu0 %v2530_v0  ;;  %1331 = vmatprep.mubr.bf16.mxu1 %v2532_v1 }
  0x84   : > { %1203 = vmatmul.mubr.bf16.gmra.mrb[28].mxu0 %v2534_v2  ;;  %1332 = vmatmul.mubr.bf16.gmra.mrb[28].mxu1 %v2535_v3 }
  0x85   : > { %1210 = vmatprep.mubr.bf16.mxu0 %v2536_v4  ;;  %1339 = vmatprep.mubr.bf16.mxu1 %v2538_v5 }
  0x8c   : > { %1211 = vmatmul.mubr.bf16.gmra.mrb[32].mxu0 %v2540_v6  ;;  %1340 = vmatmul.mubr.bf16.gmra.mrb[32].mxu1 %v2541_v7 }
  0x8d   : > { %1218 = vmatprep.mubr.bf16.mxu0 %v2542_v8  ;;  %1347 = vmatprep.mubr.bf16.mxu1 %v2544_v9 }
  0x94   : > { %1219 = vmatmul.mubr.bf16.gmra.mrb[36].mxu0 %v2546_v10  ;;  %1348 = vmatmul.mubr.bf16.gmra.mrb[36].mxu1 %v2547_v11 }
  0x95   : > { %1226 = vmatprep.mubr.bf16.mxu0 %v2549_v12  ;;  %1355 = vmatprep.mubr.bf16.mxu1 %v2551_v13 }
  0x9c   : > { %1227 = vmatmul.mubr.bf16.gmra.mrb[40].mxu0 %v2553_v14  ;;  %1356 = vmatmul.mubr.bf16.gmra.mrb[40].mxu1 %v2554_v15 }
  0x9d   : > { %1234 = vmatprep.mubr.bf16.mxu0 %v2555_v16  ;;  %1363 = vmatprep.mubr.bf16.mxu1 %v2557_v17 }
  0xa4   : > { %1235 = vmatmul.mubr.bf16.gmra.mrb[44].mxu0 %v2559_v18  ;;  %1364 = vmatmul.mubr.bf16.gmra.mrb[44].mxu1 %v2560_v19 }
  0xa5   : > { %1371 = vmatprep.mubr.bf16.mxu1 %v2561_v20  ;;  %2369 = vmatprep.mubr.msk.bf16.mxu0 %vm1065_vm0, %v2563_v21 }
  0xac   : > { %1372 = vmatmul.mubr.bf16.gmra.mrb[48].mxu1 %v2564_v22  ;;  %2370 = vmatmul.mubr.msk.bf16.vlgmr.msra.gmra.mrb[48].mxu0 %vm1065_vm0, %v2565_v23 }
  0xad   : > { %1379 = vmatprep.mubr.bf16.mxu1 %v2566_v24  ;;  %2373 = vmatprep.mubr.msk.bf16.mxu0 %vm1065_vm0, %v2568_v25 }
  0xb4   : > { %1380 = vmatmul.mubr.bf16.gmra.mrb[52].mxu1 %v2569_v26  ;;  %2374 = vmatmul.mubr.msk.bf16.gmra.mrb[52].mxu0 %vm1065_vm0, %v2570_v27 }
  0xb5   : > { %1387 = vmatprep.mubr.bf16.mxu1 %v2571_v28  ;;  %2377 = vmatprep.mubr.msk.bf16.mxu0 %vm1065_vm0, %v2573_v29 }
  0xbc   : > { %1388 = vmatmul.mubr.bf16.gmra.mrb[56].mxu1 %v2574_v30  ;;  %2378 = vmatmul.mubr.msk.bf16.gmra.mrb[56].mxu0 %vm1065_vm0, %v2575_v31 }
  0xbd   : > { %1395 = vmatprep.mubr.bf16.mxu1 %v2576_v32  ;;  %2381 = vmatprep.mubr.msk.bf16.mxu0 %vm1065_vm0, %v2578_v33 }
  0xc4   : > { %1396 = vmatmul.mubr.bf16.gmra.mrb[60].mxu1 %v2579_v34  ;;  %2382 = vmatmul.mubr.msk.bf16.gmra.mrb[60].mxu0 %vm1065_vm0, %v2580_v35 }
  0xc5   : > { %1403 = vmatprep.mubr.bf16.mxu1 %v2581_v36  ;;  %2385 = vmatprep.mubr.msk.bf16.mxu0 %vm1065_vm0, %v2583_v37 }
  0xcc   : > { %1404 = vmatmul.mubr.bf16.gmra.mrb[64].mxu1 %v2584_v38  ;;  %2386 = vmatmul.mubr.msk.bf16.gmra.mrb[64].mxu0 %vm1065_vm0, %v2585_v39  ;;  %v2966_v38 = vld [vmem:[#allocation2] ss:$0 sm:$0xff] }
  0xcd   : > { %1411 = vmatprep.mubr.bf16.mxu1 %v2586_v40  ;;  %2389 = vmatprep.mubr.msk.bf16.mxu0 %vm1065_vm0, %v2588_v41 }
  0xd4   : > { %1412 = vmatmul.mubr.bf16.gmra.mrb[68].mxu1 %v2589_v42  ;;  %2390 = vmatmul.mubr.msk.bf16.gmra.mrb[68].mxu0 %vm1065_vm0, %v2590_v43 }
  0xd5   : > { %1419 = vmatprep.mubr.bf16.mxu1 %v2591_v44  ;;  %2393 = vmatprep.mubr.msk.bf16.mxu0 %vm1065_vm0, %v2593_v45 }
  0xdc   : > { %1420 = vmatmul.mubr.bf16.gmra.mrb[72].mxu1 %v2594_v46  ;;  %2394 = vmatmul.mubr.msk.bf16.gmra.mrb[72].mxu0 %vm1065_vm0, %v2595_v47 }
  0xdd   : > { %1427 = vmatprep.mubr.bf16.mxu1 %v2596_v48  ;;  %2397 = vmatprep.mubr.msk.bf16.mxu0 %vm1065_vm0, %v2598_v49 }
  0xe4   : > { %1428 = vmatmul.mubr.bf16.gmra.mrb[76].mxu1 %v2599_v50  ;;  %2398 = vmatmul.mubr.msk.bf16.gmra.mrb[76].mxu0 %vm1065_vm0, %v2600_v51 }
 0x11f   : > { %v2205_v52 = vpop.f32.mrb[0].mxu1  ;;  %v2133_v53 = vpop.f32.mrb[0].mxu0 }
 0x120   : > { %v2206_v54 = vpop.f32.mrb[1].mxu1  ;;  %v2134_v55 = vpop.f32.mrb[1].mxu0 }
 0x121   : > { %v2950_v56 = vadd.f32 %v2206_v54, %v2205_v52  ;;  %v2208_v57 = vpop.f32.mrb[2].mxu1  ;;  %v2135_v58 = vadd.f32 %v2134_v55, %v2133_v53  ;;  %v2136_v59 = vpop.f32.mrb[2].mxu0 }
 0x122   : > { %v2209_v60 = vpop.f32.mrb[3].mxu1  ;;  %v2137_v61 = vpop.f32.mrb[3].mxu0 }
 0x123   : > { %v2952_v62 = vadd.f32 %v2209_v60, %v2208_v57  ;;  %v2138_v63 = vadd.f32 %v2137_v61, %v2136_v59  ;;  %v1149_v41 = vadd.f32 %v2135_v58, %v2966_v38 }
 0x125   : > { %v1152_v48 = vadd.f32 %v2138_v63, %v2966_v38 }
 0x127   : > { %v2211_v0 = vpop.f32.mrb[4].mxu1  ;;  %v2139_v1 = vpop.f32.mrb[4].mxu0 }
 0x128   : > { %v2212_v2 = vpop.f32.mrb[5].mxu1  ;;  %v2140_v3 = vpop.f32.mrb[5].mxu0 }
 0x129   : > { %v2954_v4 = vadd.f32 %v2212_v2, %v2211_v0  ;;  %v2214_v5 = vpop.f32.mrb[6].mxu1  ;;  %v2141_v6 = vadd.f32 %v2140_v3, %v2139_v1  ;;  %v2142_v7 = vpop.f32.mrb[6].mxu0 }
 0x12a   : > { %v2215_v8 = vpop.f32.mrb[7].mxu1  ;;  %v2143_v9 = vpop.f32.mrb[7].mxu0 }
 0x12b   : > { %v2956_v10 = vadd.f32 %v2215_v8, %v2214_v5  ;;  %v2144_v11 = vadd.f32 %v2143_v9, %v2142_v7  ;;  %v1157_v58 = vadd.f32 %v2141_v6, %v2966_v38 }
 0x12d   : > { %v1160_v63 = vadd.f32 %v2144_v11, %v2966_v38 }
 0x12f   : > { %v2217_v12 = vpop.f32.mrb[8].mxu1  ;;  %v2145_v13 = vpop.f32.mrb[8].mxu0 }
 0x130   : > { %v2218_v14 = vpop.f32.mrb[9].mxu1  ;;  %v2146_v15 = vpop.f32.mrb[9].mxu0 }
 0x131   : > { %v2958_v16 = vadd.f32 %v2218_v14, %v2217_v12  ;;  %v2220_v17 = vpop.f32.mrb[10].mxu1  ;;  %v2147_v18 = vadd.f32 %v2146_v15, %v2145_v13  ;;  %v2148_v19 = vpop.f32.mrb[10].mxu0 }
 0x132   : > { %v2221_v20 = vpop.f32.mrb[11].mxu1  ;;  %v2149_v21 = vpop.f32.mrb[11].mxu0 }
 0x133   : > { %v2960_v22 = vadd.f32 %v2221_v20, %v2220_v17  ;;  %v2150_v23 = vadd.f32 %v2149_v21, %v2148_v19  ;;  %v1165_v6 = vadd.f32 %v2147_v18, %v2966_v38 }
 0x135   : > { %v1168_v11 = vadd.f32 %v2150_v23, %v2966_v38 }
 0x137   : > { %v2223_v24 = vpop.f32.mrb[12].mxu1  ;;  %v2151_v25 = vpop.f32.mrb[12].mxu0 }
 0x138   : > { %v2224_v26 = vpop.f32.mrb[13].mxu1  ;;  %v2152_v27 = vpop.f32.mrb[13].mxu0 }
 0x139   : > { %v2962_v28 = vadd.f32 %v2224_v26, %v2223_v24  ;;  %v2226_v29 = vpop.f32.mrb[14].mxu1  ;;  %v2153_v30 = vadd.f32 %v2152_v27, %v2151_v25  ;;  %v2154_v31 = vpop.f32.mrb[14].mxu0 }
 0x13a   : > { %v2227_v32 = vpop.f32.mrb[15].mxu1  ;;  %v2155_v33 = vpop.f32.mrb[15].mxu0 }
 0x13b   : > { %v2964_v34 = vadd.f32 %v2227_v32, %v2226_v29  ;;  %v2156_v35 = vadd.f32 %v2155_v33, %v2154_v31  ;;  %v1173_v18 = vadd.f32 %v2153_v30, %v2966_v38 }
 0x13d   : > { %v1176_v23 = vadd.f32 %v2156_v35, %v2966_v38 }
 0x13f   : > { %v2245_v36 = vpop.f32.mrb[16].mxu1  ;;  %v2157_v37 = vpop.f32.mrb[16].mxu0 }
 0x140   : > { %v2246_v39 = vpop.f32.mrb[17].mxu1  ;;  %v2158_v40 = vpop.f32.mrb[17].mxu0 }
 0x141   : > { %v2247_v42 = vadd.f32 %v2246_v39, %v2245_v36  ;;  %v2248_v43 = vpop.f32.mrb[18].mxu1  ;;  %v2159_v44 = vadd.f32 %v2158_v40, %v2157_v37  ;;  %v2160_v45 = vpop.f32.mrb[18].mxu0 }
 0x142   : > { %v2249_v46 = vpop.f32.mrb[19].mxu1  ;;  %v2161_v47 = vpop.f32.mrb[19].mxu0 }
 0x143   : > { %v2250_v49 = vadd.f32 %v2249_v46, %v2248_v43  ;;  %v2162_v50 = vadd.f32 %v2161_v47, %v2160_v45  ;;  %v2970_v51 = vadd.f32 %v2247_v42, %v1149_v41  ;;  %v1181_v30 = vadd.f32 %v2159_v44, %v2966_v38 }
 0x145   : > { %v2972_v52 = vadd.f32 %v2250_v49, %v1152_v48  ;;  %v1184_v35 = vadd.f32 %v2162_v50, %v2966_v38 }
 0x147   : > { %v2251_v53 = vpop.f32.mrb[20].mxu1  ;;  %v2163_v54 = vpop.f32.mrb[20].mxu0 }
 0x148   : > { %v2252_v55 = vpop.f32.mrb[21].mxu1  ;;  %v2164_v57 = vpop.f32.mrb[21].mxu0 }
 0x149   : > { %v2253_v59 = vadd.f32 %v2252_v55, %v2251_v53  ;;  %v2254_v60 = vpop.f32.mrb[22].mxu1  ;;  %v2165_v61 = vadd.f32 %v2164_v57, %v2163_v54  ;;  %v2166_v0 = vpop.f32.mrb[22].mxu0 }
 0x14a   : > { %v2255_v1 = vpop.f32.mrb[23].mxu1  ;;  %v2167_v2 = vpop.f32.mrb[23].mxu0 }
 0x14b   : > { %v2256_v3 = vadd.f32 %v2255_v1, %v2254_v60  ;;  %v2168_v5 = vadd.f32 %v2167_v2, %v2166_v0  ;;  %v2976_v7 = vadd.f32 %v2253_v59, %v1157_v58  ;;  %v1189_v44 = vadd.f32 %v2165_v61, %v2966_v38 }
 0x14d   : > { %v2978_v8 = vadd.f32 %v2256_v3, %v1160_v63  ;;  %v1192_v50 = vadd.f32 %v2168_v5, %v2966_v38 }
 0x14f   : > { %v2257_v9 = vpop.f32.mrb[24].mxu1  ;;  %v2169_v12 = vpop.f32.mrb[24].mxu0 }
 0x150   : > { %v2258_v13 = vpop.f32.mrb[25].mxu1  ;;  %v2170_v14 = vpop.f32.mrb[25].mxu0 }
 0x151   : > { %v2259_v15 = vadd.f32 %v2258_v13, %v2257_v9  ;;  %v2260_v17 = vpop.f32.mrb[26].mxu1  ;;  %v2171_v19 = vadd.f32 %v2170_v14, %v2169_v12  ;;  %v2172_v20 = vpop.f32.mrb[26].mxu0 }
 0x152   : > { %v2261_v21 = vpop.f32.mrb[27].mxu1  ;;  %v2173_v24 = vpop.f32.mrb[27].mxu0 }
 0x153   : > { %v2262_v25 = vadd.f32 %v2261_v21, %v2260_v17  ;;  %v2174_v26 = vadd.f32 %v2173_v24, %v2172_v20  ;;  %v2982_v27 = vadd.f32 %v2259_v15, %v1165_v6 }
 0x155   : > { %v2984_v29 = vadd.f32 %v2262_v25, %v1168_v11 }
 0x157   : > { %v2263_v31 = vpop.f32.mrb[28].mxu1  ;;  %v2175_v32 = vpop.f32.mrb[28].mxu0 }
 0x158   : > { %v2264_v33 = vpop.f32.mrb[29].mxu1  ;;  %v2176_v36 = vpop.f32.mrb[29].mxu0 }
 0x159   : > { %v2265_v37 = vadd.f32 %v2264_v33, %v2263_v31  ;;  %v2266_v39 = vpop.f32.mrb[30].mxu1  ;;  %v2177_v40 = vadd.f32 %v2176_v36, %v2175_v32  ;;  %v2178_v41 = vpop.f32.mrb[30].mxu0 }
 0x15a   : > { %v2267_v42 = vpop.f32.mrb[31].mxu1  ;;  %v2179_v43 = vpop.f32.mrb[31].mxu0 }
 0x15b   : > { %v2268_v45 = vadd.f32 %v2267_v42, %v2266_v39  ;;  %v2180_v46 = vadd.f32 %v2179_v43, %v2178_v41  ;;  %v2988_v47 = vadd.f32 %v2265_v37, %v1173_v18  ;;  %v1197_v39 = vadd.f32 %v2171_v19, %v2966_v38 }
 0x15d   : > { %v2990_v48 = vadd.f32 %v2268_v45, %v1176_v23 }
 0x15f   : > { %v2269_v49 = vpop.f32.mrb[32].mxu1  ;;  %v2181_v53 = vpop.f32.mrb[32].mxu0 }
 0x160   : > { %v2270_v54 = vpop.f32.mrb[33].mxu1  ;;  %v2182_v55 = vpop.f32.mrb[33].mxu0 }
 0x161   : > { %v2271_v57 = vadd.f32 %v2270_v54, %v2269_v49  ;;  %v2272_v58 = vpop.f32.mrb[34].mxu1  ;;  %v2993_v59 = vadd.f32 %v2182_v55, %v2181_v53  ;;  %v2184_v60 = vpop.f32.mrb[34].mxu0  ;;  %v1200_v49 = vadd.f32 %v2174_v26, %v2966_v38 }
 0x162   : > { %v2273_v0 = vpop.f32.mrb[35].mxu1  ;;  %v2185_v1 = vpop.f32.mrb[35].mxu0 }
 0x163   : > { %v2274_v2 = vadd.f32 %v2273_v0, %v2272_v58  ;;  %v2186_v63 = vadd.f32 %v2185_v1, %v2184_v60  ;;  %v2996_v3 = vadd.f32 %v2271_v57, %v1181_v30  ;;  %v1205_v0 = vadd.f32 %v2177_v40, %v2966_v38 }
 0x165   : > { %v2998_v9 = vadd.f32 %v2274_v2, %v1184_v35 }
 0x167   : > { %v2275_v12 = vpop.f32.mrb[36].mxu1  ;;  %v2187_v13 = vpop.f32.mrb[36].mxu0 }
 0x168   : > { %v2276_v14 = vpop.f32.mrb[37].mxu1  ;;  %v2188_v6 = vpop.f32.mrb[37].mxu0 }
 0x169   : > { %v2277_v15 = vadd.f32 %v2276_v14, %v2275_v12  ;;  %v2278_v17 = vpop.f32.mrb[38].mxu1  ;;  %v3001_v20 = vadd.f32 %v2188_v6, %v2187_v13  ;;  %v2190_v21 = vpop.f32.mrb[38].mxu0  ;;  %v1208_v14 = vadd.f32 %v2180_v46, %v2966_v38 }
 0x16a   : > { %v2279_v24 = vpop.f32.mrb[39].mxu1  ;;  %v2191_v11 = vpop.f32.mrb[39].mxu0 }
 0x16b   : > { %v2280_v25 = vadd.f32 %v2279_v24, %v2278_v17  ;;  %v3004_v31 = vadd.f32 %v2191_v11, %v2190_v21  ;;  %v3006_v32 = vadd.f32 %v2277_v15, %v1189_v44 }
 0x16d   : > { %v3008_v33 = vadd.f32 %v2280_v25, %v1192_v50  ;;  %v1213_v25 = vadd.f32 %v2993_v59, %v2966_v38 }
 0x16f   : > { %v2281_v36 = vpop.f32.mrb[40].mxu1  ;;  %v2193_v18 = vpop.f32.mrb[40].mxu0 }
 0x170   : > { %v2282_v37 = vpop.f32.mrb[41].mxu1  ;;  %v2194_v61 = vpop.f32.mrb[41].mxu0 }
 0x171   : > { %v2283_v41 = vadd.f32 %v2282_v37, %v2281_v36  ;;  %v2284_v42 = vpop.f32.mrb[42].mxu1  ;;  %v3011_v43 = vadd.f32 %v2194_v61, %v2193_v18  ;;  %v2196_v23 = vpop.f32.mrb[42].mxu0  ;;  %v1216_v61 = vadd.f32 %v2186_v63, %v2966_v38 }
 0x172   : > { %v2285_v45 = vpop.f32.mrb[43].mxu1  ;;  %v2197_v5 = vpop.f32.mrb[43].mxu0 }
 0x173   : > { %v2286_v53 = vadd.f32 %v2285_v45, %v2284_v42  ;;  %v3014_v54 = vadd.f32 %v2197_v5, %v2196_v23  ;;  %v3016_v55 = vadd.f32 %v2283_v41, %v1197_v39 }
 0x175   : > { %v3018_v30 = vadd.f32 %v2286_v53, %v1200_v49 }
 0x177   : > { %v2287_v57 = vpop.f32.mrb[44].mxu1  ;;  %v2199_v58 = vpop.f32.mrb[44].mxu0 }
 0x178   : > { %v2288_v60 = vpop.f32.mrb[45].mxu1  ;;  %v2200_v19 = vpop.f32.mrb[45].mxu0 }
 0x179   : > { %v2289_v1 = vadd.f32 %v2288_v60, %v2287_v57  ;;  %v2290_v35 = vpop.f32.mrb[46].mxu1  ;;  %v3021_v2 = vadd.f32 %v2200_v19, %v2199_v58  ;;  %v2202_v12 = vpop.f32.mrb[46].mxu0 }
 0x17a   : > { %v2291_v26 = vpop.f32.mrb[47].mxu1  ;;  %v2203_v13 = vpop.f32.mrb[47].mxu0 }
 0x17b   : > { %v2292_v6 = vadd.f32 %v2291_v26, %v2290_v35  ;;  %v3024_v44 = vadd.f32 %v2203_v13, %v2202_v12  ;;  %v3026_v15 = vadd.f32 %v2289_v1, %v1205_v0  ;;  %v1221_v35 = vadd.f32 %v3001_v20, %v2966_v38 }
 0x17d   : > { %v3028_v17 = vadd.f32 %v2292_v6, %v1208_v14  ;;  %v1224_v6 = vadd.f32 %v3004_v31, %v2966_v38 }
 0x17f   : > { %v2293_v21 = vpop.f32.mrb[48].mxu1  ;;  %v2371_v24 = vpop.f32.mrb[48].mxu0 }
 0x180   : > { %v1479_v40 = vadd.f32 %v2371_v24, %v2976_v7  ;;  %v2294_v11 = vpop.f32.mrb[49].mxu1  ;;  %v1470_v50 = vpop.f32.mrb[49].mxu0 }
 0x181   : > { %v2295_v36 = vadd.f32 %v2294_v11, %v2293_v21  ;;  %v1471_v46 = vadd.f32 %v1470_v50, %v2970_v51  ;;  %v2296_v18 = vpop.f32.mrb[50].mxu1  ;;  %v2372_v37 = vpop.f32.mrb[50].mxu0 }
 0x182   : > { %v1599_v39 = vmax.f32 %v1479_v40, 0.0  ;;  %v1482_v41 = vadd.f32 %v2372_v37, %v2978_v8  ;;  %v2297_v42 = vpop.f32.mrb[51].mxu1  ;;  %v1473_v23 = vpop.f32.mrb[51].mxu0 }
 0x183   : > { %v1597_v7 = vmax.f32 %v1471_v46, 0.0  ;;  %v2298_v51 = vadd.f32 %v2297_v42, %v2296_v18  ;;  %v1474_v59 = vadd.f32 %v1473_v23, %v2972_v52  ;;  %v3043_v45 = vadd.f32 %v2295_v36, %v1213_v25 }
 0x184   : > { %v2087_v63 = vpack.c.bf16 %v1599_v39, %v1599_v39  ;;  %v1600_v5 = vmax.f32 %v1482_v41, 0.0  ;;  %v1229_v23 = vadd.f32 %v3011_v43, %v2966_v38 }
 0x185   : > { %v2085_v8 = vpack.c.bf16 %v1597_v7, %v1597_v7  ;;  %v1598_v49 = vmax.f32 %v1474_v59, 0.0  ;;  %v3045_v53 = vadd.f32 %v2298_v51, %v1216_v61 }
 0x186   : > { %1760 = vst.msk [vmem:[%s3040_s20 + $0x8] sm:$0xf] %vm1757_vm1, %v2087_v63  ;;  %v2088_v57 = vpack.c.bf16 %v1600_v5, %v1600_v5  ;;  %v1232_v5 = vadd.f32 %v3014_v54, %v2966_v38 }
 0x187   : > { %1758 = vst.msk [vmem:[%s3040_s20] sm:$0xf] %vm1757_vm1, %v2085_v8  ;;  %v2086_v58 = vpack.c.bf16 %v1598_v49, %v1598_v49  ;;  %v2299_v60 = vpop.f32.mrb[52].mxu1  ;;  %v2375_v19 = vpop.f32.mrb[52].mxu0 }
 0x188   : > { %1761 = vst.msk [vmem:[%s3040_s20 + $0xc] sm:$0xf] %vm1757_vm1, %v2088_v57  ;;  %v1495_v52 = vadd.f32 %v2375_v19, %v2988_v47  ;;  %v2300_v0 = vpop.f32.mrb[53].mxu1  ;;  %v1486_v1 = vpop.f32.mrb[53].mxu0 }
 0x189   : > { %1759 = vst.msk [vmem:[%s3040_s20 + $0x4] sm:$0xf] %vm1757_vm1, %v2086_v58  ;;  %v2301_v12 = vadd.f32 %v2300_v0, %v2299_v60  ;;  %v1487_v26 = vadd.f32 %v1486_v1, %v2982_v27  ;;  %v2302_v13 = vpop.f32.mrb[54].mxu1  ;;  %v2376_v14 = vpop.f32.mrb[54].mxu0 }
 0x18a   : > { %v1603_v21 = vmax.f32 %v1495_v52, 0.0  ;;  %v1498_v47 = vadd.f32 %v2376_v14, %v2990_v48  ;;  %v2303_v24 = vpop.f32.mrb[55].mxu1  ;;  %v1489_v40 = vpop.f32.mrb[55].mxu0 }
 0x18b   : > { %v1601_v11 = vmax.f32 %v1487_v26, 0.0  ;;  %v2304_v20 = vadd.f32 %v2303_v24, %v2302_v13  ;;  %v1490_v50 = vadd.f32 %v1489_v40, %v2984_v29  ;;  %v3063_v25 = vadd.f32 %v2301_v12, %v1221_v35 }
 0x18c   : > { %v2091_v27 = vpack.c.bf16 %v1603_v21, %v1603_v21  ;;  %v1604_v36 = vmax.f32 %v1498_v47, 0.0 }
 0x18d   : > { %v2089_v46 = vpack.c.bf16 %v1601_v11, %v1601_v11  ;;  %v1602_v18 = vmax.f32 %v1490_v50, 0.0  ;;  %v3065_v37 = vadd.f32 %v2304_v20, %v1224_v6  ;;  %v1237_v6 = vadd.f32 %v3021_v2, %v2966_v38 }
 0x18e   : > { %1764 = vst.msk [vmem:[%s3040_s20 + $0x18] sm:$0xf] %vm1757_vm1, %v2091_v27  ;;  %v2092_v31 = vpack.c.bf16 %v1604_v36, %v1604_v36  ;;  %v1240_v11 = vadd.f32 %v3024_v44, %v2966_v38 }
 0x18f   : > { %1762 = vst.msk [vmem:[%s3040_s20 + $0x10] sm:$0xf] %vm1757_vm1, %v2089_v46  ;;  %v2090_v48 = vpack.c.bf16 %v1602_v18, %v1602_v18  ;;  %v2305_v61 = vpop.f32.mrb[56].mxu1  ;;  %v2379_v39 = vpop.f32.mrb[56].mxu0 }
 0x190   : > { %1765 = vst.msk [vmem:[%s3040_s20 + $0x1c] sm:$0xf] %vm1757_vm1, %v2092_v31  ;;  %v1511_v29 = vadd.f32 %v2379_v39, %v3006_v32  ;;  %v2306_v41 = vpop.f32.mrb[57].mxu1  ;;  %v1502_v42 = vpop.f32.mrb[57].mxu0 }
 0x191   : > { %1763 = vst.msk [vmem:[%s3040_s20 + $0x14] sm:$0xf] %vm1757_vm1, %v2090_v48  ;;  %v2307_v7 = vadd.f32 %v2306_v41, %v2305_v61  ;;  %v1503_v51 = vadd.f32 %v1502_v42, %v2996_v3  ;;  %v2308_v59 = vpop.f32.mrb[58].mxu1  ;;  %v2380_v63 = vpop.f32.mrb[58].mxu0 }
 0x192   : > { %v1607_v8 = vmax.f32 %v1511_v29, 0.0  ;;  %v1514_v32 = vadd.f32 %v2380_v63, %v3008_v33  ;;  %v2309_v49 = vpop.f32.mrb[59].mxu1  ;;  %v1505_v57 = vpop.f32.mrb[59].mxu0 }
 0x193   : > { %v1605_v58 = vmax.f32 %v1503_v51, 0.0  ;;  %v2310_v43 = vadd.f32 %v2309_v49, %v2308_v59  ;;  %v1506_v60 = vadd.f32 %v1505_v57, %v2998_v9  ;;  %v3083_v19 = vadd.f32 %v2307_v7, %v1229_v23 }
 0x194   : > { %v2095_v3 = vpack.c.bf16 %v1607_v8, %v1607_v8  ;;  %v1608_v52 = vmax.f32 %v1514_v32, 0.0  ;;  %v1245_v7 = vadd.f32 %v2950_v56, %v2966_v38  ;;  %v1248_v8 = vadd.f32 %v2952_v62, %v2966_v38 }
 0x195   : > { %v2093_v0 = vpack.c.bf16 %v1605_v58, %v1605_v58  ;;  %v1606_v1 = vmax.f32 %v1506_v60, 0.0  ;;  %v3085_v35 = vadd.f32 %v2310_v43, %v1232_v5 }
 0x196   : > { %1768 = vst.msk [vmem:[%s3040_s20 + $0x28] sm:$0xf] %vm1757_vm1, %v2095_v3  ;;  %v2096_v54 = vpack.c.bf16 %v1608_v52, %v1608_v52 }
 0x197   : > { %1766 = vst.msk [vmem:[%s3040_s20 + $0x20] sm:$0xf] %vm1757_vm1, %v2093_v0  ;;  %v2094_v33 = vpack.c.bf16 %v1606_v1, %v1606_v1  ;;  %v2311_v12 = vpop.f32.mrb[60].mxu1  ;;  %v2383_v26 = vpop.f32.mrb[60].mxu0 }
 0x198   : > { %1769 = vst.msk [vmem:[%s3040_s20 + $0x2c] sm:$0xf] %vm1757_vm1, %v2096_v54  ;;  %v1527_v9 = vadd.f32 %v2383_v26, %v3026_v15  ;;  %v2312_v13 = vpop.f32.mrb[61].mxu1  ;;  %v1518_v14 = vpop.f32.mrb[61].mxu0 }
 0x199   : > { %1767 = vst.msk [vmem:[%s3040_s20 + $0x24] sm:$0xf] %vm1757_vm1, %v2094_v33  ;;  %v2313_v21 = vadd.f32 %v2312_v13, %v2311_v12  ;;  %v1519_v47 = vadd.f32 %v1518_v14, %v3016_v55  ;;  %v2314_v24 = vpop.f32.mrb[62].mxu1  ;;  %v2384_v40 = vpop.f32.mrb[62].mxu0 }
 0x19a   : > { %v1611_v20 = vmax.f32 %v1527_v9, 0.0  ;;  %v1530_v15 = vadd.f32 %v2384_v40, %v3028_v17  ;;  %v2315_v50 = vpop.f32.mrb[63].mxu1  ;;  %v1521_v27 = vpop.f32.mrb[63].mxu0  ;;  %v1253_v9 = vadd.f32 %v2954_v4, %v2966_v38 }
 0x19b   : > { %v1609_v36 = vmax.f32 %v1519_v47, 0.0  ;;  %v2316_v2 = vadd.f32 %v2315_v50, %v2314_v24  ;;  %v1522_v46 = vadd.f32 %v1521_v27, %v3018_v30  ;;  %v1398_v18 = vadd.f32 %v2313_v21, %v1237_v6 }
 0x19c   : > { %v2099_v31 = vpack.c.bf16 %v1611_v20, %v1611_v20  ;;  %v1612_v55 = vmax.f32 %v1530_v15, 0.0  ;;  %v1256_v47 = vadd.f32 %v2956_v10, %v2966_v38 }
 0x19d   : > { %v2097_v48 = vpack.c.bf16 %v1609_v36, %v1609_v36  ;;  %v1610_v61 = vmax.f32 %v1522_v46, 0.0  ;;  %v1401_v39 = vadd.f32 %v2316_v2, %v1240_v11 }
 0x19e   : > { %1772 = vst.msk [vmem:[%s3040_s20 + $0x38] sm:$0xf] %vm1757_vm1, %v2099_v31  ;;  %v2100_v44 = vpack.c.bf16 %v1612_v55, %v1612_v55 }
 0x19f   : > { %1770 = vst.msk [vmem:[%s3040_s20 + $0x30] sm:$0xf] %vm1757_vm1, %v2097_v48  ;;  %v2098_v17 = vpack.c.bf16 %v1610_v61, %v1610_v61  ;;  %v2317_v29 = vpop.f32.mrb[64].mxu1  ;;  %v2387_v41 = vpop.f32.mrb[64].mxu0 }
 0x1a0   : > { %1773 = vst.msk [vmem:[%s3040_s20 + $0x3c] sm:$0xf] %vm1757_vm1, %v2100_v44  ;;  %v1543_v42 = vadd.f32 %v2387_v41, %v3063_v25  ;;  %v2318_v30 = vpop.f32.mrb[65].mxu1  ;;  %v1534_v23 = vpop.f32.mrb[65].mxu0  ;;  %v1261_v44 = vadd.f32 %v2958_v16, %v2966_v38 }
 0x1a1   : > { %1771 = vst.msk [vmem:[%s3040_s20 + $0x34] sm:$0xf] %vm1757_vm1, %v2098_v17  ;;  %v2319_v51 = vadd.f32 %v2318_v30, %v2317_v29  ;;  %v1535_v59 = vadd.f32 %v1534_v23, %v3043_v45  ;;  %v2320_v63 = vpop.f32.mrb[66].mxu1  ;;  %v2388_v5 = vpop.f32.mrb[66].mxu0  ;;  %v1264_v30 = vadd.f32 %v2960_v22, %v2966_v38 }
 0x1a2   : > { %v1615_v32 = vmax.f32 %v1543_v42, 0.0  ;;  %v1546_v25 = vadd.f32 %v2388_v5, %v3065_v37  ;;  %v2321_v49 = vpop.f32.mrb[67].mxu1  ;;  %v1537_v57 = vpop.f32.mrb[67].mxu0 }
 0x1a3   : > { %v1613_v58 = vmax.f32 %v1535_v59, 0.0  ;;  %v2322_v56 = vadd.f32 %v2321_v49, %v2320_v63  ;;  %v1538_v43 = vadd.f32 %v1537_v57, %v3045_v53  ;;  %v1406_v60 = vadd.f32 %v2319_v51, %v1245_v7 }
 0x1a4   : > { %v2103_v3 = vpack.c.bf16 %v1615_v32, %v1615_v32  ;;  %v1616_v45 = vmax.f32 %v1546_v25, 0.0 }
 0x1a5   : > { %v2101_v52 = vpack.c.bf16 %v1613_v58, %v1613_v58  ;;  %v1614_v0 = vmax.f32 %v1538_v43, 0.0  ;;  %v1409_v1 = vadd.f32 %v2322_v56, %v1248_v8 }
 0x1a6   : > { %1776 = vst.msk [vmem:[%s3040_s20 + $0x48] sm:$0xf] %vm1757_vm1, %v2103_v3  ;;  %v2104_v62 = vpack.c.bf16 %v1616_v45, %v1616_v45 }
 0x1a7   : > { %1774 = vst.msk [vmem:[%s3040_s20 + $0x40] sm:$0xf] %vm1757_vm1, %v2101_v52  ;;  %v2102_v37 = vpack.c.bf16 %v1614_v0, %v1614_v0  ;;  %v2323_v54 = vpop.f32.mrb[68].mxu1  ;;  %v2391_v33 = vpop.f32.mrb[68].mxu0  ;;  %v1269_v52 = vadd.f32 %v2962_v28, %v2966_v38 }
 0x1a8   : > { %1777 = vst.msk [vmem:[%s3040_s20 + $0x4c] sm:$0xf] %vm1757_vm1, %v2104_v62  ;;  %v1559_v12 = vadd.f32 %v2391_v33, %v1398_v18  ;;  %v2324_v26 = vpop.f32.mrb[69].mxu1  ;;  %v1550_v53 = vpop.f32.mrb[69].mxu0 }
 0x1a9   : > { %1775 = vst.msk [vmem:[%s3040_s20 + $0x44] sm:$0xf] %vm1757_vm1, %v2102_v37  ;;  %v2325_v13 = vadd.f32 %v2324_v26, %v2323_v54  ;;  %v1551_v14 = vadd.f32 %v1550_v53, %v3083_v19  ;;  %v2326_v6 = vpop.f32.mrb[70].mxu1  ;;  %v2392_v21 = vpop.f32.mrb[70].mxu0  ;;  %v1272_v54 = vadd.f32 %v2964_v34, %v2966_v38 }
 0x1aa   : > { %v1619_v24 = vmax.f32 %v1559_v12, 0.0  ;;  %v1562_v40 = vadd.f32 %v2392_v21, %v1401_v39  ;;  %v2327_v11 = vpop.f32.mrb[71].mxu1  ;;  %v1553_v20 = vpop.f32.mrb[71].mxu0 }
 0x1ab   : > { %v1617_v15 = vmax.f32 %v1551_v14, 0.0  ;;  %v2328_v50 = vadd.f32 %v2327_v11, %v2326_v6  ;;  %v1554_v4 = vadd.f32 %v1553_v20, %v3085_v35  ;;  %v1414_v27 = vadd.f32 %v2325_v13, %v1253_v9 }
 0x1ac   : > { %v2107_v36 = vpack.c.bf16 %v1619_v24, %v1619_v24  ;;  %v1620_v19 = vmax.f32 %v1562_v40, 0.0 }
 0x1ad   : > { %v2105_v2 = vpack.c.bf16 %v1617_v15, %v1617_v15  ;;  %v1618_v46 = vmax.f32 %v1554_v4, 0.0  ;;  %v1417_v18 = vadd.f32 %v2328_v50, %v1256_v47 }
 0x1ae   : > { %1780 = vst.msk [vmem:[%s3040_s20 + $0x58] sm:$0xf] %vm1757_vm1, %v2107_v36  ;;  %v2108_v10 = vpack.c.bf16 %v1620_v19, %v1620_v19 }
 0x1af   : > { %1778 = vst.msk [vmem:[%s3040_s20 + $0x50] sm:$0xf] %vm1757_vm1, %v2105_v2  ;;  %v2106_v31 = vpack.c.bf16 %v1618_v46, %v1618_v46  ;;  %v2329_v55 = vpop.f32.mrb[72].mxu1  ;;  %v2395_v48 = vpop.f32.mrb[72].mxu0 }
 0x1b0   : > { %1781 = vst.msk [vmem:[%s3040_s20 + $0x5c] sm:$0xf] %vm1757_vm1, %v2108_v10  ;;  %v1575_v61 = vadd.f32 %v2395_v48, %v1414_v27  ;;  %v2330_v39 = vpop.f32.mrb[73].mxu1  ;;  %v1566_v35 = vpop.f32.mrb[73].mxu0 }
 0x1b1   : > { %1779 = vst.msk [vmem:[%s3040_s20 + $0x54] sm:$0xf] %vm1757_vm1, %v2106_v31  ;;  %v2331_v17 = vadd.f32 %v2330_v39, %v2329_v55  ;;  %v1567_v29 = vadd.f32 %v1566_v35, %v1406_v60  ;;  %v2332_v41 = vpop.f32.mrb[74].mxu1  ;;  %v2396_v42 = vpop.f32.mrb[74].mxu0 }
 0x1b2   : > { %v1623_v23 = vmax.f32 %v1575_v61, 0.0  ;;  %v1578_v7 = vadd.f32 %v2396_v42, %v1417_v18  ;;  %v2333_v51 = vpop.f32.mrb[75].mxu1  ;;  %v1569_v59 = vpop.f32.mrb[75].mxu0 }
 0x1b3   : > { %v1621_v63 = vmax.f32 %v1567_v29, 0.0  ;;  %v2334_v5 = vadd.f32 %v2333_v51, %v2332_v41  ;;  %v1570_v8 = vadd.f32 %v1569_v59, %v1409_v1  ;;  %v1422_v16 = vadd.f32 %v2331_v17, %v1261_v44 }
 0x1b4   : > { %v2111_v32 = vpack.c.bf16 %v1623_v23, %v1623_v23  ;;  %v1624_v25 = vmax.f32 %v1578_v7, 0.0 }
 0x1b5   : > { %v2109_v49 = vpack.c.bf16 %v1621_v63, %v1621_v63  ;;  %v1622_v57 = vmax.f32 %v1570_v8, 0.0  ;;  %v1425_v58 = vadd.f32 %v2334_v5, %v1264_v30 }
 0x1b6   : > { %1784 = vst.msk [vmem:[%s3040_s20 + $0x68] sm:$0xf] %vm1757_vm1, %v2111_v32  ;;  %v2112_v56 = vpack.c.bf16 %v1624_v25, %v1624_v25 }
 0x1b7   : > { %1782 = vst.msk [vmem:[%s3040_s20 + $0x60] sm:$0xf] %vm1757_vm1, %v2109_v49  ;;  %v2110_v22 = vpack.c.bf16 %v1622_v57, %v1622_v57  ;;  %v2335_v43 = vpop.f32.mrb[76].mxu1  ;;  %v2399_v60 = vpop.f32.mrb[76].mxu0 }
 0x1b8   : > { %1785 = vst.msk [vmem:[%s3040_s20 + $0x6c] sm:$0xf] %vm1757_vm1, %v2112_v56  ;;  %v2336_v3 = vpop.f32.mrb[77].mxu1  ;;  %v1582_v45 = vpop.f32.mrb[77].mxu0 }
 0x1b9   : > { %1783 = vst.msk [vmem:[%s3040_s20 + $0x64] sm:$0xf] %vm1757_vm1, %v2110_v22  ;;  %v2337_v0 = vadd.f32 %v2336_v3, %v2335_v43  ;;  %v1583_v1 = vadd.f32 %v1582_v45, %v1422_v16  ;;  %v2338_v62 = vpop.f32.mrb[78].mxu1  ;;  %v2400_v37 = vpop.f32.mrb[78].mxu0 }
 0x1ba   : > { %v2339_v33 = vpop.f32.mrb[79].mxu1  ;;  %v1585_v12 = vpop.f32.mrb[79].mxu0 }
 0x1bb   : > { %v1430_v26 = vadd.f32 %v2337_v0, %v1269_v52  ;;  %v1625_v53 = vmax.f32 %v1583_v1, 0.0  ;;  %v2340_v9 = vadd.f32 %v2339_v33, %v2338_v62  ;;  %v1586_v13 = vadd.f32 %v1585_v12, %v1425_v58 }
 0x1bd   : > { %v1591_v28 = vadd.f32 %v2399_v60, %v1430_v26  ;;  %v2113_v14 = vpack.c.bf16 %v1625_v53, %v1625_v53  ;;  %v1433_v6 = vadd.f32 %v2340_v9, %v1272_v54  ;;  %v1626_v21 = vmax.f32 %v1586_v13, 0.0 }
 0x1bf   : > { %v1627_v47 = vmax.f32 %v1591_v28, 0.0  ;;  %1786 = vst.msk [vmem:[%s3040_s20 + $0x70] sm:$0xf] %vm1757_vm1, %v2113_v14  ;;  %v1594_v24 = vadd.f32 %v2400_v37, %v1433_v6  ;;  %v2114_v40 = vpack.c.bf16 %v1626_v21, %v1626_v21 }
 0x1c1   : > { %v2115_v11 = vpack.c.bf16 %v1627_v47, %v1627_v47  ;;  %v1628_v34 = vmax.f32 %v1594_v24, 0.0  ;;  %1787 = vst.msk [vmem:[%s3040_s20 + $0x74] sm:$0xf] %vm1757_vm1, %v2114_v40 }
 0x1c3   : > { %1788 = vst.msk [vmem:[%s3040_s20 + $0x78] sm:$0xf] %vm1757_vm1, %v2115_v11  ;;  %v2116_v38 = vpack.c.bf16 %v1628_v34, %v1628_v34 }
 0x1c5   : > { %1789 = vst.msk [vmem:[%s3040_s20 + $0x7c] sm:$0xf] %vm1757_vm1, %v2116_v38 }
 0x1c6 PF: > { %s14_s14 = sadd.s32 1, %s2655_s14   ;;  %s3186_s12 = smov %s2651_s13 }
 0x1c7   : > { %p11_p4 = scmp.ge.s32.totalorder %s14_s14, 4   ;;  %s3187_s13 = smov %s3189_s16 }
 0x1c9   :  { %13 = sbr.rel (!%p11_p4) target bundleno = 2 (0x2), region = 71 }
 0x1d0   :  { %1818 = vsyncpa [#allocation3], 1 }
 0x1d1   :  { %1820 = vsyncpa [#allocation3 + $0x1], 1 }

// kernel: vggnet_forward.18
= control target key start
LH: loop header
LB: loop body
LE: loop exit
PB: predicated region body
PF: predicated region fallthrough
CT: control target
= control target key end

     0   :  { %v1729_v24 = vmov 0.0   ;;  %vm1730_vm0 = vmmov 0   ;;  %vm640_vm1 = vcmask 523264   ;;  %s2177_s1 = inlined_call_operand.vmem [shape: bf16[576,128], index: 1, kind: input, shape index: {}]   ;;  %s2178_s0 = inlined_call_operand.vmem [shape: bf16[162,576], index: 0, kind: input, shape index: {}]   ;;  %s2179_s2 = inlined_call_operand.vmem [shape: f32[1,128], index: 2, kind: input, shape index: {}]   ;;  %s2180_s3 = inlined_call_operand.vmem [shape: bf16[162,128], index: 3, kind: output, shape index: {}]  }
   0x1   :  { %v1618_v0 = vld [vmem:[%s2177_s1 + $0x40] sm:$0xff]   ;;  %v1620_v2 = vld [vmem:[%s2177_s1 + $0x48] sm:$0xff]   ;;  %v1622_v4 = vld [vmem:[%s2177_s1 + $0x50] sm:$0xff]  }
   0x2   :  { %v1619_v1 = vld [vmem:[%s2177_s1] sm:$0xff]   ;;  %1369 = vmatprep.subr.bf16.mxu0 %v1618_v0  ;;  %1600 = vmatprep.subr.bf16.mxu1 %v1618_v0  ;;  %v1621_v3 = vld [vmem:[%s2177_s1 + $0x8] sm:$0xff]   ;;  %v1623_v5 = vld [vmem:[%s2177_s1 + $0x10] sm:$0xff]  }
   0x3   :  { %1370 = vmatpush3.bf16.msra.mxu0 %v1619_v1  ;;  %1608 = vmatpush3.bf16.msra.mxu1 %v1619_v1  ;;  %v1624_v6 = vld [vmem:[%s2177_s1 + $0x58] sm:$0xff]   ;;  %v1626_v8 = vld [vmem:[%s2177_s1 + $0x60] sm:$0xff]   ;;  %v1628_v10 = vld [vmem:[%s2177_s1 + $0x68] sm:$0xff]  }
   0x4   :  { %1371 = vmatprep.subr.bf16.mxu0 %v1620_v2  ;;  %1601 = vmatprep.subr.bf16.mxu1 %v1620_v2  ;;  %v1625_v7 = vld [vmem:[%s2177_s1 + $0x18] sm:$0xff]   ;;  %v1627_v9 = vld [vmem:[%s2177_s1 + $0x20] sm:$0xff]   ;;  %v1639_v12 = vld [vmem:[%s2178_s0 + $0xf4] ss:$20 sps:$4 sm:$0xff]  }
   0x5   :  { %v1636_v11 = vld [vmem:[%s2178_s0 + $0x4] ss:$20 sps:$4 sm:$0xff]   ;;  %v1629_v13 = vld [vmem:[%s2177_s1 + $0x28] sm:$0xff]   ;;  %v1630_v14 = vld [vmem:[%s2177_s1 + $0x70] sm:$0xff]   ;;  %754 = vmatprep.mubr.bf16.mxu1 %v1639_v12 }
   0x6   :  { %706 = vmatprep.mubr.bf16.mxu0 %v1636_v11  ;;  %v1631_v15 = vld [vmem:[%s2177_s1 + $0x30] sm:$0xff]   ;;  %v1632_v16 = vld [vmem:[%s2177_s1 + $0x78] sm:$0xff]   ;;  %v1641_v18 = vld [vmem:[%s2177_s1 + $0xc0] sm:$0xff]  }
   0x7   :  { %1372 = vmatpush3.bf16.msra.mxu0 %v1621_v3  ;;  %1609 = vmatpush3.bf16.msra.mxu1 %v1621_v3  ;;  %v1633_v17 = vld [vmem:[%s2177_s1 + $0x38] sm:$0xff]   ;;  %v1634_v19 = vld [vmem:[%s2178_s0] ss:$20 sps:$4 sm:$0xff]   ;;  %v1637_v20 = vld [vmem:[%s2178_s0 + $0xf0] ss:$20 sps:$4 sm:$0xff]  }
   0x8   :  { %1373 = vmatprep.subr.bf16.mxu0 %v1622_v4  ;;  %1602 = vmatprep.subr.bf16.mxu1 %v1622_v4  ;;  %v1640_v21 = vld [vmem:[%s2177_s1 + $0x100] sm:$0xff]   ;;  %v1645_v25 = vld [vmem:[%s2178_s0 + $0x11c] ss:$20 sps:$4 sm:$0xff]   ;;  %v1649_v26 = vld [vmem:[%s2177_s1 + $0xc8] sm:$0xff]  }
   0x9   :  { %v1642_v22 = vld [vmem:[%s2177_s1 + $0x80] sm:$0xff]   ;;  %v1650_v27 = vld [vmem:[%s2177_s1 + $0x88] sm:$0xff]   ;;  %v1651_v30 = vld [vmem:[%s2177_s1 + $0xd0] sm:$0xff]  }
   0xa   :  { %v1643_v23 = vld [vmem:[%s2178_s0 + $0x2c] ss:$20 sps:$4 sm:$0xff]   ;;  %v1647_v29 = vld [vmem:[%s2178_s0 + $0x28] ss:$20 sps:$4 sm:$0xff]   ;;  %v1653_v32 = vld [vmem:[%s2177_s1 + $0x90] sm:$0xff]  }
   0xb   :  { %1374 = vmatpush3.bf16.msra.mxu0 %v1623_v5  ;;  %1610 = vmatpush3.bf16.msra.mxu1 %v1623_v5  ;;  %v1652_v28 = vld [vmem:[%s2177_s1 + $0x108] sm:$0xff]   ;;  %v1656_v34 = vld [vmem:[%s2178_s0 + $0x144] ss:$20 sps:$4 sm:$0xff]   ;;  %v1670_v36 = vld [vmem:[%s2177_s1 + $0x110] sm:$0xff]  }
   0xc   :  { %1375 = vmatprep.subr.bf16.mxu0 %v1624_v6  ;;  %1603 = vmatprep.subr.bf16.mxu1 %v1624_v6  ;;  %v1648_v31 = vld [vmem:[%s2178_s0 + $0x118] ss:$20 sps:$4 sm:$0xff]   ;;  %v1654_v33 = vld [vmem:[%s2178_s0 + $0x54] ss:$20 sps:$4 sm:$0xff]   ;;  %v1658_v38 = vld [vmem:[%s2178_s0 + $0x50] ss:$20 sps:$4 sm:$0xff]  }
   0xd   :  { %v1660_v35 = vld [vmem:[%s2177_s1 + $0xd8] sm:$0xff]   ;;  %v1659_v39 = vld [vmem:[%s2178_s0 + $0x140] ss:$20 sps:$4 sm:$0xff]   ;;  %v1671_v45 = vld [vmem:[%s2177_s1 + $0xe8] sm:$0xff]  }
   0xe   :  { %v1661_v37 = vld [vmem:[%s2177_s1 + $0x98] sm:$0xff]   ;;  %v1666_v40 = vld [vmem:[%s2177_s1 + $0xe0] sm:$0xff]   ;;  %v1672_v46 = vld [vmem:[%s2177_s1 + $0xa8] sm:$0xff]  }
   0xf   :  { %1376 = vmatpush3.bf16.msra.mxu0 %v1625_v7  ;;  %1611 = vmatpush3.bf16.msra.mxu1 %v1625_v7  ;;  %v1662_v41 = vld [vmem:[%s2178_s0 + $0x7c] ss:$20 sps:$4 sm:$0xff]   ;;  %v1664_v42 = vld [vmem:[%s2178_s0 + $0x16c] ss:$20 sps:$4 sm:$0xff]   ;;  %v1673_v51 = vld [vmem:[%s2178_s0 + $0xa4] ss:$20 sps:$4 sm:$0xff]  }
  0x10   :  { %1377 = vmatprep.subr.bf16.mxu0 %v1626_v8  ;;  %1604 = vmatprep.subr.bf16.mxu1 %v1626_v8  ;;  %v1669_v43 = vld [vmem:[%s2177_s1 + $0xa0] sm:$0xff]   ;;  %v1682_v44 = vld [vmem:[%s2177_s1 + $0x118] sm:$0xff]   ;;  %v75_v47 = vld [vmem:[%s2178_s0 + $0x190] sm:$0x11] }
  0x11   :  { %v1678_v48 = vld [vmem:[%s2177_s1 + $0xf0] sm:$0xff]   ;;  %v1667_v49 = vld [vmem:[%s2178_s0 + $0x78] ss:$20 sps:$4 sm:$0xff]   ;;  %v1668_v50 = vld [vmem:[%s2178_s0 + $0x168] ss:$20 sps:$4 sm:$0xff]   ;;  %v1217_v52 = vcombine.high %v75_v47, %v75_v47  ;;  %v1216_v57 = vcombine.low %v75_v47, %v75_v47 }
  0x12   :  { %v1679_v53 = vld [vmem:[%s2177_s1 + $0xb0] sm:$0xff]   ;;  %v1680_v54 = vld [vmem:[%s2177_s1 + $0xf8] sm:$0xff]   ;;  %v1683_v58 = vld [vmem:[%s2178_s0 + $0xcc] ss:$20 sps:$4 sm:$0xff]  }
  0x13   :  { %1378 = vmatpush3.bf16.msra.mxu0 %v1627_v9  ;;  %1612 = vmatpush3.bf16.msra.mxu1 %v1627_v9  ;;  %v1681_v55 = vld [vmem:[%s2177_s1 + $0xb8] sm:$0xff]   ;;  %v1676_v56 = vld [vmem:[%s2178_s0 + $0xa0] ss:$20 sps:$4 sm:$0xff]   ;;  %v1691_v63 = vld [vmem:[%s2178_s0 + $0x30] ss:$20 sps:$4 sm:$0xff]  }
  0x14   :  { %1379 = vmatprep.subr.bf16.mxu0 %v1628_v10  ;;  %1605 = vmatprep.subr.bf16.mxu1 %v1628_v10  ;;  %v1687_v59 = vld [vmem:[%s2178_s0 + $0xc] ss:$20 sps:$4 sm:$0xff]   ;;  %v1685_v60 = vld [vmem:[%s2178_s0 + $0x8] ss:$20 sps:$4 sm:$0xff]   ;;  %v1692_v0 = vld [vmem:[%s2178_s0 + $0x10] ss:$20 sps:$4 sm:$0xff]  }
  0x15   :  { %v1688_v61 = vld [vmem:[%s2178_s0 + $0xc8] ss:$20 sps:$4 sm:$0xff]   ;;  %v1695_v2 = vld [vmem:[%s2178_s0 + $0x58] ss:$20 sps:$4 sm:$0xff]   ;;  %v1699_v5 = vld [vmem:[%s2178_s0 + $0x80] ss:$20 sps:$4 sm:$0xff]  }
  0x16   :  { %v1689_v62 = vld [vmem:[%s2178_s0 + $0x34] ss:$20 sps:$4 sm:$0xff]   ;;  %v1693_v1 = vld [vmem:[%s2178_s0 + $0x5c] ss:$20 sps:$4 sm:$0xff]   ;;  %v1696_v3 = vld [vmem:[%s2178_s0 + $0x38] ss:$20 sps:$4 sm:$0xff]  }
  0x17   :  { %1380 = vmatpush3.bf16.msra.mxu0 %v1629_v13  ;;  %1613 = vmatpush3.bf16.msra.mxu1 %v1629_v13  ;;  %v1697_v4 = vld [vmem:[%s2178_s0 + $0x84] ss:$20 sps:$4 sm:$0xff]   ;;  %v1700_v6 = vld [vmem:[%s2178_s0 + $0x60] ss:$20 sps:$4 sm:$0xff]   ;;  %v1703_v8 = vld [vmem:[%s2178_s0 + $0xa8] ss:$20 sps:$4 sm:$0xff]  }
  0x18   :  { %1381 = vmatprep.subr.bf16.mxu0 %v1630_v14  ;;  %1606 = vmatprep.subr.bf16.mxu1 %v1630_v14  ;;  %v1701_v7 = vld [vmem:[%s2178_s0 + $0xac] ss:$20 sps:$4 sm:$0xff]   ;;  %v1704_v9 = vld [vmem:[%s2178_s0 + $0x88] ss:$20 sps:$4 sm:$0xff]   ;;  %v1707_v11 = vld [vmem:[%s2178_s0 + $0xd0] ss:$20 sps:$4 sm:$0xff]  }
  0x19   :  { %v1705_v10 = vld [vmem:[%s2178_s0 + $0xd4] ss:$20 sps:$4 sm:$0xff]   ;;  %v1708_v12 = vld [vmem:[%s2178_s0 + $0xb0] ss:$20 sps:$4 sm:$0xff]   ;;  %v1711_v14 = vld [vmem:[%s2178_s0 + $0xf8] ss:$20 sps:$4 sm:$0xff]  }
  0x1a   :  { %v1709_v13 = vld [vmem:[%s2178_s0 + $0xfc] ss:$20 sps:$4 sm:$0xff]  }
  0x1b   :  { %1382 = vmatpush3.bf16.msra.mxu0 %v1631_v15  ;;  %1614 = vmatpush3.bf16.msra.mxu1 %v1631_v15  ;;  %v1712_v15 = vld [vmem:[%s2178_s0 + $0xd8] ss:$20 sps:$4 sm:$0xff]  }
  0x1c   :  { %1383 = vmatprep.subr.bf16.mxu0 %v1632_v16  ;;  %1607 = vmatprep.subr.bf16.mxu1 %v1632_v16  ;;  %v1713_v16 = vld [vmem:[%s2178_s0 + $0x124] ss:$20 sps:$4 sm:$0xff]  }
  0x1f   :  { %1384 = vmatpush3.bf16.msra.mxu0 %v1633_v17  ;;  %1615 = vmatpush3.bf16.msra.mxu1 %v1633_v17  ;;  %v1715_v17 = vld [vmem:[%s2178_s0 + $0x120] ss:$20 sps:$4 sm:$0xff]  }
  0x20   :  { %1548 = vmatprep.subr.bf16.mxu0 %v1729_v24  ;;  %1451 = vmatprep.subr.bf16.mxu1 %v1641_v18  ;;  %v1716_v18 = vld [vmem:[%s2178_s0 + $0x100] ss:$20 sps:$4 sm:$0xff]  }
  0x22   :  { %707 = vmatmul.mubr.bf16.vlgmr.msra.gmra.mrb[0].mxu0 %v1634_v19  ;;  %755 = vmatmul.mubr.bf16.vlgmr.msra.gmra.mrb[0].mxu1 %v1637_v20  ;;  %v1717_v19 = vld [vmem:[%s2178_s0 + $0x14c] ss:$20 sps:$4 sm:$0xff]   ;;  %v1719_v20 = vld [vmem:[%s2178_s0 + $0x148] ss:$20 sps:$4 sm:$0xff]  }
  0x23   :  { %1549 = vmatpush3.bf16.msra.mxu0 %v1640_v21  ;;  %1452 = vmatpush3.bf16.msra.mxu1 %v1642_v22  ;;  %v1720_v21 = vld [vmem:[%s2178_s0 + $0x128] ss:$20 sps:$4 sm:$0xff]  }
  0x24   :  { %714 = vmatprep.mubr.bf16.mxu0 %v1643_v23  ;;  %762 = vmatprep.mubr.bf16.mxu1 %v1645_v25  ;;  %v1721_v22 = vld [vmem:[%s2178_s0 + $0x174] ss:$20 sps:$4 sm:$0xff]   ;;  %v76_v23 = vld [vmem:[%s2178_s0 + $0x198] sm:$0x11]  ;;  %v1723_v25 = vld [vmem:[%s2178_s0 + $0x170] ss:$20 sps:$4 sm:$0xff]  }
  0x25   :  { %1453 = vmatprep.subr.bf16.mxu1 %v1649_v26  ;;  %1550 = vmatprep.subr.bf16.mxu0 %v1729_v24  ;;  %v1724_v26 = vld [vmem:[%s2178_s0 + $0x150] ss:$20 sps:$4 sm:$0xff]  }
  0x27   :  { %1454 = vmatpush3.bf16.msra.mxu1 %v1650_v27  ;;  %1551 = vmatpush3.bf16.msra.mxu0 %v1652_v28  ;;  %v1219_v27 = vcombine.high %v76_v23, %v76_v23  ;;  %v1218_v28 = vcombine.low %v76_v23, %v76_v23 }
  0x28   :  { %1455 = vmatprep.subr.bf16.mxu1 %v1651_v30  ;;  %1552 = vmatprep.subr.bf16.mxu0 %v1729_v24  ;;  %v1728_v30 = vld [vmem:[%s2178_s0 + $0x1a0] ss:$0 sps:$4 sm:$0x11]  }
  0x2a   :  { %715 = vmatmul.mubr.bf16.gmra.mrb[4].mxu0 %v1647_v29  ;;  %763 = vmatmul.mubr.bf16.gmra.mrb[4].mxu1 %v1648_v31  ;;  %v1727_v29 = vld [vmem:[%s2178_s0 + $0x178] ss:$20 sps:$4 sm:$0xff]  }
  0x2b   :  { %1456 = vmatpush3.bf16.msra.mxu1 %v1653_v32  ;;  %722 = vmatprep.mubr.bf16.mxu0 %v1654_v33 }
  0x2c   :  { %770 = vmatprep.mubr.bf16.mxu1 %v1656_v34  ;;  %1457 = vmatprep.subr.bf16.mxu1 %v1660_v35 }
  0x2d   :  { %1553 = vmatpush3.bf16.msra.mxu0 %v1670_v36 }
  0x2e   :  { %1554 = vmatprep.subr.bf16.mxu0 %v1729_v24 }
  0x2f   :  { %1458 = vmatpush3.bf16.msra.mxu1 %v1661_v37 }
  0x30   :  { %1459 = vmatprep.subr.bf16.mxu1 %v1666_v40 }
  0x31   :  { %1555 = vmatpush3.bf16.msra.mxu0 %v1682_v44 }
  0x32   :  { %723 = vmatmul.mubr.bf16.gmra.mrb[8].mxu0 %v1658_v38  ;;  %771 = vmatmul.mubr.bf16.gmra.mrb[8].mxu1 %v1659_v39 }
  0x33   :  { %730 = vmatprep.mubr.bf16.mxu0 %v1662_v41  ;;  %778 = vmatprep.mubr.bf16.mxu1 %v1664_v42 }
  0x34   :  { %1460 = vmatpush3.bf16.msra.mxu1 %v1669_v43 }
  0x35   :  { %1461 = vmatprep.subr.bf16.mxu1 %v1671_v45 }
  0x38   :  { %1462 = vmatpush3.bf16.msra.mxu1 %v1672_v46 }
  0x39   :  { %1463 = vmatprep.subr.bf16.mxu1 %v1678_v48 }
  0x3a   :  { %731 = vmatmul.mubr.bf16.gmra.mrb[12].mxu0 %v1667_v49  ;;  %779 = vmatmul.mubr.bf16.gmra.mrb[12].mxu1 %v1668_v50 }
  0x3b   :  { %738 = vmatprep.mubr.bf16.mxu0 %v1673_v51  ;;  %786 = vmatprep.mubr.bf16.mxu1 %v1217_v52 }
  0x3c   :  { %1464 = vmatpush3.bf16.msra.mxu1 %v1679_v53 }
  0x3d   :  { %1465 = vmatprep.subr.bf16.mxu1 %v1680_v54 }
  0x40   :  { %1466 = vmatpush3.bf16.msra.mxu1 %v1681_v55 }
  0x42   :  { %739 = vmatmul.mubr.bf16.gmra.mrb[16].mxu0 %v1676_v56  ;;  %787 = vmatmul.mubr.bf16.gmra.mrb[16].mxu1 %v1216_v57 }
  0x43   :  { %746 = vmatprep.mubr.bf16.mxu0 %v1683_v58  ;;  %826 = vmatprep.mubr.bf16.mxu1 %v1687_v59 }
  0x4a   :  { %747 = vmatmul.mubr.bf16.gmra.mrb[20].mxu0 %v1688_v61  ;;  %827 = vmatmul.mubr.bf16.vlgmr.msra.gmra.mrb[20].mxu1 %v1685_v60 }
  0x4b   :  { %834 = vmatprep.mubr.bf16.mxu1 %v1689_v62  ;;  %1556 = vmatprep.mubr.msk.bf16.mxu0 %vm1730_vm0, %v1729_v24  ;;  %v2076_v62 = vld [vmem:[%s2179_s2] ss:$0 sm:$0xff] }
  0x52   :  { %835 = vmatmul.mubr.bf16.gmra.mrb[24].mxu1 %v1691_v63  ;;  %1557 = vmatmul.mubr.msk.bf16.vlgmr.msra.gmra.mrb[24].mxu0 %vm640_vm1, %v1692_v0 }
  0x53   :  { %842 = vmatprep.mubr.bf16.mxu1 %v1693_v1  ;;  %1560 = vmatprep.mubr.msk.bf16.mxu0 %vm1730_vm0, %v1729_v24 }
  0x5a   :  { %843 = vmatmul.mubr.bf16.gmra.mrb[28].mxu1 %v1695_v2  ;;  %1561 = vmatmul.mubr.msk.bf16.gmra.mrb[28].mxu0 %vm640_vm1, %v1696_v3 }
  0x5b   :  { %850 = vmatprep.mubr.bf16.mxu1 %v1697_v4  ;;  %1564 = vmatprep.mubr.msk.bf16.mxu0 %vm1730_vm0, %v1729_v24 }
  0x62   :  { %851 = vmatmul.mubr.bf16.gmra.mrb[32].mxu1 %v1699_v5  ;;  %1565 = vmatmul.mubr.msk.bf16.gmra.mrb[32].mxu0 %vm640_vm1, %v1700_v6 }
  0x63   :  { %858 = vmatprep.mubr.bf16.mxu1 %v1701_v7  ;;  %1568 = vmatprep.mubr.msk.bf16.mxu0 %vm1730_vm0, %v1729_v24 }
  0x6a   :  { %859 = vmatmul.mubr.bf16.gmra.mrb[36].mxu1 %v1703_v8  ;;  %1569 = vmatmul.mubr.msk.bf16.gmra.mrb[36].mxu0 %vm640_vm1, %v1704_v9 }
  0x6b   :  { %866 = vmatprep.mubr.bf16.mxu1 %v1705_v10  ;;  %1572 = vmatprep.mubr.msk.bf16.mxu0 %vm1730_vm0, %v1729_v24 }
  0x72   :  { %867 = vmatmul.mubr.bf16.gmra.mrb[40].mxu1 %v1707_v11  ;;  %1573 = vmatmul.mubr.msk.bf16.gmra.mrb[40].mxu0 %vm640_vm1, %v1708_v12 }
  0x73   :  { %874 = vmatprep.mubr.bf16.mxu1 %v1709_v13  ;;  %1576 = vmatprep.mubr.msk.bf16.mxu0 %vm1730_vm0, %v1729_v24 }
  0x7a   :  { %875 = vmatmul.mubr.bf16.gmra.mrb[44].mxu1 %v1711_v14  ;;  %1577 = vmatmul.mubr.msk.bf16.gmra.mrb[44].mxu0 %vm640_vm1, %v1712_v15 }
  0x7b   :  { %882 = vmatprep.mubr.bf16.mxu1 %v1713_v16  ;;  %1580 = vmatprep.mubr.msk.bf16.mxu0 %vm1730_vm0, %v1729_v24 }
  0x82   :  { %883 = vmatmul.mubr.bf16.gmra.mrb[48].mxu1 %v1715_v17  ;;  %1581 = vmatmul.mubr.msk.bf16.gmra.mrb[48].mxu0 %vm640_vm1, %v1716_v18 }
  0x83   :  { %890 = vmatprep.mubr.bf16.mxu1 %v1717_v19  ;;  %1584 = vmatprep.mubr.msk.bf16.mxu0 %vm1730_vm0, %v1729_v24 }
  0x8a   :  { %891 = vmatmul.mubr.bf16.gmra.mrb[52].mxu1 %v1719_v20  ;;  %1585 = vmatmul.mubr.msk.bf16.gmra.mrb[52].mxu0 %vm640_vm1, %v1720_v21 }
  0x8b   :  { %898 = vmatprep.mubr.bf16.mxu1 %v1721_v22  ;;  %1588 = vmatprep.mubr.msk.bf16.mxu0 %vm1730_vm0, %v1729_v24 }
  0x92   :  { %899 = vmatmul.mubr.bf16.gmra.mrb[56].mxu1 %v1723_v25  ;;  %1589 = vmatmul.mubr.msk.bf16.gmra.mrb[56].mxu0 %vm640_vm1, %v1724_v26 }
  0x93   :  { %906 = vmatprep.mubr.bf16.mxu1 %v1219_v27  ;;  %1592 = vmatprep.mubr.msk.bf16.mxu0 %vm1730_vm0, %v1729_v24 }
  0x9a   :  { %907 = vmatmul.mubr.bf16.gmra.mrb[60].mxu1 %v1218_v28  ;;  %1593 = vmatmul.mubr.msk.bf16.gmra.mrb[60].mxu0 %vm640_vm1, %v1727_v29 }
  0x9b   :  { %1596 = vmatprep.mubr.msk.bf16.mxu0 %vm1730_vm0, %v1729_v24 }
  0xa2   :  { %1597 = vmatmul.mubr.msk.bf16.gmra.mrb[64].mxu0 %vm640_vm1, %v1728_v30 }
  0xf5   :  { %v1385_v31 = vpop.f32.mrb[0].mxu0  ;;  %v1421_v32 = vpop.f32.mrb[0].mxu1 }
  0xf6   :  { %v1386_v33 = vpop.f32.mrb[1].mxu0  ;;  %v1422_v34 = vpop.f32.mrb[1].mxu1 }
  0xf7   :  { %v2055_v35 = vadd.f32 %v1386_v33, %v1385_v31  ;;  %v1388_v36 = vpop.f32.mrb[2].mxu0  ;;  %v2057_v37 = vadd.f32 %v1422_v34, %v1421_v32  ;;  %v1424_v38 = vpop.f32.mrb[2].mxu1 }
  0xf8   :  { %v1389_v39 = vpop.f32.mrb[3].mxu0  ;;  %v1425_v40 = vpop.f32.mrb[3].mxu1 }
  0xf9   :  { %v2059_v41 = vadd.f32 %v1389_v39, %v1388_v36  ;;  %v2061_v24 = vadd.f32 %v1425_v40, %v1424_v38  ;;  %v709_v38 = vadd.f32 %v2055_v35, %v2076_v62 }
  0xfd   :  { %v1391_v42 = vpop.f32.mrb[4].mxu0  ;;  %v1427_v43 = vpop.f32.mrb[4].mxu1 }
  0xfe   :  { %v1392_v44 = vpop.f32.mrb[5].mxu0  ;;  %v1428_v45 = vpop.f32.mrb[5].mxu1 }
  0xff   :  { %v2063_v46 = vadd.f32 %v1392_v44, %v1391_v42  ;;  %v1394_v47 = vpop.f32.mrb[6].mxu0  ;;  %v2065_v48 = vadd.f32 %v1428_v45, %v1427_v43  ;;  %v1430_v49 = vpop.f32.mrb[6].mxu1 }
 0x100   :  { %v1395_v50 = vpop.f32.mrb[7].mxu0  ;;  %v1431_v51 = vpop.f32.mrb[7].mxu1 }
 0x101   :  { %v2067_v52 = vadd.f32 %v1395_v50, %v1394_v47  ;;  %v2069_v53 = vadd.f32 %v1431_v51, %v1430_v49  ;;  %v712_v47 = vadd.f32 %v2059_v41, %v2076_v62 }
 0x103   :  { %v720_v41 = vadd.f32 %v2067_v52, %v2076_v62 }
 0x105   :  { %v1397_v54 = vpop.f32.mrb[8].mxu0  ;;  %v1433_v55 = vpop.f32.mrb[8].mxu1 }
 0x106   :  { %v1398_v56 = vpop.f32.mrb[9].mxu0  ;;  %v1434_v57 = vpop.f32.mrb[9].mxu1 }
 0x107   :  { %v2071_v58 = vadd.f32 %v1398_v56, %v1397_v54  ;;  %v1400_v59 = vpop.f32.mrb[10].mxu0  ;;  %v1435_v60 = vadd.f32 %v1434_v57, %v1433_v55  ;;  %v1436_v61 = vpop.f32.mrb[10].mxu1 }
 0x108   :  { %v1401_v63 = vpop.f32.mrb[11].mxu0  ;;  %v1437_v0 = vpop.f32.mrb[11].mxu1 }
 0x109   :  { %v2079_v1 = vadd.f32 %v1435_v60, %v2076_v62  ;;  %v2081_v2 = vadd.f32 %v1401_v63, %v1400_v59  ;;  %v1438_v3 = vadd.f32 %v1437_v0, %v1436_v61  ;;  %v717_v60 = vadd.f32 %v2063_v46, %v2076_v62 }
 0x10b   :  { %v2084_v4 = vadd.f32 %v1438_v3, %v2076_v62 }
 0x10d   :  { %v1403_v5 = vpop.f32.mrb[12].mxu0  ;;  %v1439_v6 = vpop.f32.mrb[12].mxu1 }
 0x10e   :  { %v1404_v7 = vpop.f32.mrb[13].mxu0  ;;  %v1440_v8 = vpop.f32.mrb[13].mxu1 }
 0x10f   :  { %v2086_v9 = vadd.f32 %v1404_v7, %v1403_v5  ;;  %v1406_v10 = vpop.f32.mrb[14].mxu0  ;;  %v1441_v11 = vadd.f32 %v1440_v8, %v1439_v6  ;;  %v1442_v12 = vpop.f32.mrb[14].mxu1 }
 0x110   :  { %v1407_v13 = vpop.f32.mrb[15].mxu0  ;;  %v1443_v14 = vpop.f32.mrb[15].mxu1 }
 0x111   :  { %v2089_v15 = vadd.f32 %v1441_v11, %v2076_v62  ;;  %v2091_v16 = vadd.f32 %v1407_v13, %v1406_v10  ;;  %v1444_v17 = vadd.f32 %v1443_v14, %v1442_v12 }
 0x113   :  { %v2094_v18 = vadd.f32 %v1444_v17, %v2076_v62 }
 0x115   :  { %v1409_v19 = vpop.f32.mrb[16].mxu0  ;;  %v1445_v20 = vpop.f32.mrb[16].mxu1 }
 0x116   :  { %v1410_v21 = vpop.f32.mrb[17].mxu0  ;;  %v1446_v22 = vpop.f32.mrb[17].mxu1 }
 0x117   :  { %v2096_v23 = vadd.f32 %v1410_v21, %v1409_v19  ;;  %v1412_v25 = vpop.f32.mrb[18].mxu0  ;;  %v1447_v26 = vadd.f32 %v1446_v22, %v1445_v20  ;;  %v1448_v27 = vpop.f32.mrb[18].mxu1  ;;  %v725_v21 = vadd.f32 %v2071_v58, %v2076_v62 }
 0x118   :  { %v1413_v28 = vpop.f32.mrb[19].mxu0  ;;  %v1449_v29 = vpop.f32.mrb[19].mxu1 }
 0x119   :  { %v2099_v30 = vadd.f32 %v1447_v26, %v2076_v62  ;;  %v2101_v31 = vadd.f32 %v1413_v28, %v1412_v25  ;;  %v728_v29 = vadd.f32 %v2081_v2, %v2076_v62 }
 0x11d   :  { %v1415_v32 = vpop.f32.mrb[20].mxu0  ;;  %v1467_v33 = vpop.f32.mrb[20].mxu1 }
 0x11e   :  { %v1416_v34 = vpop.f32.mrb[21].mxu0  ;;  %v1468_v36 = vpop.f32.mrb[21].mxu1 }
 0x11f   :  { %v2105_v39 = vadd.f32 %v1416_v34, %v1415_v32  ;;  %v1469_v40 = vadd.f32 %v1468_v36, %v1467_v33  ;;  %v1418_v42 = vpop.f32.mrb[22].mxu0  ;;  %v1470_v43 = vpop.f32.mrb[22].mxu1 }
 0x120   :  { %v1419_v44 = vpop.f32.mrb[23].mxu0  ;;  %v1471_v45 = vpop.f32.mrb[23].mxu1 }
 0x121   :  { %v2109_v49 = vadd.f32 %v1419_v44, %v1418_v42  ;;  %v1472_v50 = vadd.f32 %v1471_v45, %v1470_v43  ;;  %v829_v51 = vadd.f32 %v1469_v40, %v709_v38 }
 0x123   :  { %v832_v54 = vadd.f32 %v1472_v50, %v712_v47  ;;  %v733_v47 = vadd.f32 %v2086_v9, %v2076_v62 }
 0x125   :  { %v1473_v55 = vpop.f32.mrb[24].mxu1  ;;  %v948_v56 = vpop.f32.mrb[24].mxu0 }
 0x126   :  { %v949_v57 = vadd.f32 %v948_v56, %v829_v51  ;;  %v1474_v59 = vpop.f32.mrb[25].mxu1  ;;  %v1558_v35 = vpop.f32.mrb[25].mxu0 }
 0x127   :  { %v1475_v61 = vadd.f32 %v1474_v59, %v1473_v55  ;;  %v1476_v63 = vpop.f32.mrb[26].mxu1  ;;  %v951_v0 = vpop.f32.mrb[26].mxu0 }
 0x128   :  { %v952_v3 = vadd.f32 %v951_v0, %v832_v54  ;;  %v1477_v5 = vpop.f32.mrb[27].mxu1  ;;  %v1559_v6 = vpop.f32.mrb[27].mxu0  ;;  %v1034_v10 = vmax.f32 %v949_v57, 0.0  ;;  %v736_v57 = vadd.f32 %v2091_v16, %v2076_v62 }
 0x129   :  { %v1478_v7 = vadd.f32 %v1477_v5, %v1476_v63  ;;  %v837_v8 = vadd.f32 %v1475_v61, %v717_v60 }
 0x12a   :  { %v1035_v11 = vmax.f32 %v952_v3, 0.0 }
 0x12b   :  { %v840_v12 = vadd.f32 %v1478_v7, %v720_v41  ;;  %v741_v7 = vadd.f32 %v2096_v23, %v2076_v62 }
 0x12c   :  { %v1313_v13 = vpack.c.bf16 %v1035_v11, %v1034_v10 }
 0x12d   :  { %v1479_v14 = vpop.f32.mrb[28].mxu1  ;;  %v956_v17 = vpop.f32.mrb[28].mxu0 }
 0x12e   :  { %1314 = vst [vmem:[%s2180_s3] sm:$0xff] %v1313_v13   ;;  %v957_v46 = vadd.f32 %v956_v17, %v837_v8  ;;  %v1480_v19 = vpop.f32.mrb[29].mxu1  ;;  %v1562_v20 = vpop.f32.mrb[29].mxu0 }
 0x12f   :  { %v1481_v22 = vadd.f32 %v1480_v19, %v1479_v14  ;;  %v1482_v52 = vpop.f32.mrb[30].mxu1  ;;  %v959_v25 = vpop.f32.mrb[30].mxu0  ;;  %v744_v14 = vadd.f32 %v2101_v31, %v2076_v62 }
 0x130   :  { %v960_v26 = vadd.f32 %v959_v25, %v840_v12  ;;  %v1483_v27 = vpop.f32.mrb[31].mxu1  ;;  %v1563_v28 = vpop.f32.mrb[31].mxu0  ;;  %v1036_v34 = vmax.f32 %v957_v46, 0.0 }
 0x131   :  { %v1484_v32 = vadd.f32 %v1483_v27, %v1482_v52  ;;  %v845_v33 = vadd.f32 %v1481_v22, %v725_v21  ;;  %v749_v28 = vadd.f32 %v2105_v39, %v2076_v62 }
 0x132   :  { %v1037_v36 = vmax.f32 %v960_v26, 0.0 }
 0x133   :  { %v848_v38 = vadd.f32 %v1484_v32, %v728_v29 }
 0x134   :  { %v1318_v40 = vpack.c.bf16 %v1037_v36, %v1036_v34 }
 0x135   :  { %v1485_v42 = vpop.f32.mrb[32].mxu1  ;;  %v964_v43 = vpop.f32.mrb[32].mxu0 }
 0x136   :  { %1360 = vst [vmem:[%s2180_s3 + $0x8] sm:$0xff] %v1318_v40   ;;  %v965_v58 = vadd.f32 %v964_v43, %v845_v33  ;;  %v1486_v44 = vpop.f32.mrb[33].mxu1  ;;  %v1566_v45 = vpop.f32.mrb[33].mxu0 }
 0x137   :  { %v1487_v50 = vadd.f32 %v1486_v44, %v1485_v42  ;;  %v1488_v2 = vpop.f32.mrb[34].mxu1  ;;  %v967_v51 = vpop.f32.mrb[34].mxu0 }
 0x138   :  { %v968_v54 = vadd.f32 %v967_v51, %v848_v38  ;;  %v1489_v55 = vpop.f32.mrb[35].mxu1  ;;  %v1567_v56 = vpop.f32.mrb[35].mxu0  ;;  %v1038_v60 = vmax.f32 %v965_v58, 0.0  ;;  %v752_v38 = vadd.f32 %v2109_v49, %v2076_v62 }
 0x139   :  { %v1490_v59 = vadd.f32 %v1489_v55, %v1488_v2  ;;  %v853_v35 = vadd.f32 %v1487_v50, %v733_v47 }
 0x13a   :  { %v1039_v61 = vmax.f32 %v968_v54, 0.0  ;;  %v757_v54 = vadd.f32 %v2057_v37, %v2076_v62 }
 0x13b   :  { %v856_v63 = vadd.f32 %v1490_v59, %v736_v57 }
 0x13c   :  { %v1323_v0 = vpack.c.bf16 %v1039_v61, %v1038_v60  ;;  %v760_v60 = vadd.f32 %v2061_v24, %v2076_v62 }
 0x13d   :  { %v1491_v3 = vpop.f32.mrb[36].mxu1  ;;  %v972_v5 = vpop.f32.mrb[36].mxu0 }
 0x13e   :  { %1361 = vst [vmem:[%s2180_s3 + $0x10] sm:$0xff] %v1323_v0   ;;  %v973_v9 = vadd.f32 %v972_v5, %v853_v35  ;;  %v1492_v6 = vpop.f32.mrb[37].mxu1  ;;  %v1570_v41 = vpop.f32.mrb[37].mxu0 }
 0x13f   :  { %v1493_v8 = vadd.f32 %v1492_v6, %v1491_v3  ;;  %v1494_v16 = vpop.f32.mrb[38].mxu1  ;;  %v975_v10 = vpop.f32.mrb[38].mxu0 }
 0x140   :  { %v976_v11 = vadd.f32 %v975_v10, %v856_v63  ;;  %v1495_v12 = vpop.f32.mrb[39].mxu1  ;;  %v1571_v13 = vpop.f32.mrb[39].mxu0  ;;  %v1040_v19 = vmax.f32 %v973_v9, 0.0 }
 0x141   :  { %v1496_v17 = vadd.f32 %v1495_v12, %v1494_v16  ;;  %v861_v46 = vadd.f32 %v1493_v8, %v741_v7  ;;  %v765_v16 = vadd.f32 %v2065_v48, %v2076_v62 }
 0x142   :  { %v1041_v20 = vmax.f32 %v976_v11, 0.0 }
 0x143   :  { %v864_v21 = vadd.f32 %v1496_v17, %v744_v14  ;;  %v768_v17 = vadd.f32 %v2069_v53, %v2076_v62 }
 0x144   :  { %v1328_v22 = vpack.c.bf16 %v1041_v20, %v1040_v19 }
 0x145   :  { %v1497_v52 = vpop.f32.mrb[40].mxu1  ;;  %v980_v25 = vpop.f32.mrb[40].mxu0 }
 0x146   :  { %1362 = vst [vmem:[%s2180_s3 + $0x18] sm:$0xff] %v1328_v22   ;;  %v981_v23 = vadd.f32 %v980_v25, %v861_v46  ;;  %v1498_v26 = vpop.f32.mrb[41].mxu1  ;;  %v1574_v27 = vpop.f32.mrb[41].mxu0 }
 0x147   :  { %v1499_v29 = vadd.f32 %v1498_v26, %v1497_v52  ;;  %v1500_v31 = vpop.f32.mrb[42].mxu1  ;;  %v983_v32 = vpop.f32.mrb[42].mxu0 }
 0x148   :  { %v984_v33 = vadd.f32 %v983_v32, %v864_v21  ;;  %v1501_v34 = vpop.f32.mrb[43].mxu1  ;;  %v1575_v36 = vpop.f32.mrb[43].mxu0  ;;  %v1042_v43 = vmax.f32 %v981_v23, 0.0 }
 0x149   :  { %v1502_v40 = vadd.f32 %v1501_v34, %v1500_v31  ;;  %v869_v42 = vadd.f32 %v1499_v29, %v749_v28 }
 0x14a   :  { %v1043_v58 = vmax.f32 %v984_v33, 0.0 }
 0x14b   :  { %v872_v44 = vadd.f32 %v1502_v40, %v752_v38 }
 0x14c   :  { %v1333_v45 = vpack.c.bf16 %v1043_v58, %v1042_v43 }
 0x14d   :  { %v1503_v47 = vpop.f32.mrb[44].mxu1  ;;  %v988_v50 = vpop.f32.mrb[44].mxu0 }
 0x14e   :  { %1363 = vst [vmem:[%s2180_s3 + $0x20] sm:$0xff] %v1333_v45   ;;  %v989_v39 = vadd.f32 %v988_v50, %v869_v42  ;;  %v1504_v2 = vpop.f32.mrb[45].mxu1  ;;  %v1578_v51 = vpop.f32.mrb[45].mxu0 }
 0x14f   :  { %v1505_v55 = vadd.f32 %v1504_v2, %v1503_v47  ;;  %v1506_v49 = vpop.f32.mrb[46].mxu1  ;;  %v991_v56 = vpop.f32.mrb[46].mxu0 }
 0x150   :  { %v992_v57 = vadd.f32 %v991_v56, %v872_v44  ;;  %v1507_v59 = vpop.f32.mrb[47].mxu1  ;;  %v1579_v35 = vpop.f32.mrb[47].mxu0  ;;  %v1044_v0 = vmax.f32 %v989_v39, 0.0 }
 0x151   :  { %v1508_v61 = vadd.f32 %v1507_v59, %v1506_v49  ;;  %v877_v63 = vadd.f32 %v1505_v55, %v757_v54 }
 0x152   :  { %v1045_v3 = vmax.f32 %v992_v57, 0.0 }
 0x153   :  { %v880_v5 = vadd.f32 %v1508_v61, %v760_v60 }
 0x154   :  { %v1338_v9 = vpack.c.bf16 %v1045_v3, %v1044_v0 }
 0x155   :  { %v1509_v6 = vpop.f32.mrb[48].mxu1  ;;  %v996_v41 = vpop.f32.mrb[48].mxu0 }
 0x156   :  { %1364 = vst [vmem:[%s2180_s3 + $0x28] sm:$0xff] %v1338_v9   ;;  %v997_v37 = vadd.f32 %v996_v41, %v877_v63  ;;  %v1510_v7 = vpop.f32.mrb[49].mxu1  ;;  %v1582_v8 = vpop.f32.mrb[49].mxu0 }
 0x157   :  { %v1511_v10 = vadd.f32 %v1510_v7, %v1509_v6  ;;  %v1512_v24 = vpop.f32.mrb[50].mxu1  ;;  %v999_v11 = vpop.f32.mrb[50].mxu0 }
 0x158   :  { %v1000_v12 = vadd.f32 %v999_v11, %v880_v5  ;;  %v1513_v13 = vpop.f32.mrb[51].mxu1  ;;  %v1583_v14 = vpop.f32.mrb[51].mxu0  ;;  %v1046_v20 = vmax.f32 %v997_v37, 0.0 }
 0x159   :  { %v1514_v46 = vadd.f32 %v1513_v13, %v1512_v24  ;;  %v885_v19 = vadd.f32 %v1511_v10, %v765_v16 }
 0x15a   :  { %v1047_v21 = vmax.f32 %v1000_v12, 0.0 }
 0x15b   :  { %v888_v22 = vadd.f32 %v1514_v46, %v768_v17 }
 0x15c   :  { %v1343_v52 = vpack.c.bf16 %v1047_v21, %v1046_v20 }
 0x15d   :  { %v1515_v25 = vpop.f32.mrb[52].mxu1  ;;  %v1004_v23 = vpop.f32.mrb[52].mxu0 }
 0x15e   :  { %1365 = vst [vmem:[%s2180_s3 + $0x30] sm:$0xff] %v1343_v52   ;;  %v1005_v48 = vadd.f32 %v1004_v23, %v885_v19  ;;  %v1516_v26 = vpop.f32.mrb[53].mxu1  ;;  %v1586_v27 = vpop.f32.mrb[53].mxu0 }
 0x15f   :  { %v1517_v28 = vadd.f32 %v1516_v26, %v1515_v25  ;;  %v1518_v29 = vpop.f32.mrb[54].mxu1  ;;  %v1007_v31 = vpop.f32.mrb[54].mxu0 }
 0x160   :  { %v1008_v32 = vadd.f32 %v1007_v31, %v888_v22  ;;  %v1519_v53 = vpop.f32.mrb[55].mxu1  ;;  %v1587_v62 = vpop.f32.mrb[55].mxu0  ;;  %v1048_v36 = vmax.f32 %v1005_v48, 0.0 }
 0x161   :  { %v1520_v33 = vadd.f32 %v1519_v53, %v1518_v29  ;;  %v893_v34 = vadd.f32 %v1517_v28, %v2079_v1 }
 0x162   :  { %v1049_v38 = vmax.f32 %v1008_v32, 0.0 }
 0x163   :  { %v896_v40 = vadd.f32 %v1520_v33, %v2084_v4 }
 0x164   :  { %v1348_v42 = vpack.c.bf16 %v1049_v38, %v1048_v36 }
 0x165   :  { %v1521_v43 = vpop.f32.mrb[56].mxu1  ;;  %v1012_v58 = vpop.f32.mrb[56].mxu0 }
 0x166   :  { %1366 = vst [vmem:[%s2180_s3 + $0x38] sm:$0xff] %v1348_v42   ;;  %v1013_v44 = vadd.f32 %v1012_v58, %v893_v34  ;;  %v1522_v45 = vpop.f32.mrb[57].mxu1  ;;  %v1590_v47 = vpop.f32.mrb[57].mxu0 }
 0x167   :  { %v1523_v50 = vadd.f32 %v1522_v45, %v1521_v43  ;;  %v1524_v39 = vpop.f32.mrb[58].mxu1  ;;  %v1015_v2 = vpop.f32.mrb[58].mxu0 }
 0x168   :  { %v1016_v51 = vadd.f32 %v1015_v2, %v896_v40  ;;  %v1525_v54 = vpop.f32.mrb[59].mxu1  ;;  %v1591_v1 = vpop.f32.mrb[59].mxu0  ;;  %v1050_v4 = vmax.f32 %v1013_v44, 0.0 }
 0x169   :  { %v1526_v55 = vadd.f32 %v1525_v54, %v1524_v39  ;;  %v901_v49 = vadd.f32 %v1523_v50, %v2089_v15 }
 0x16a   :  { %v1051_v56 = vmax.f32 %v1016_v51, 0.0 }
 0x16b   :  { %v904_v57 = vadd.f32 %v1526_v55, %v2094_v18 }
 0x16c   :  { %v1353_v59 = vpack.c.bf16 %v1051_v56, %v1050_v4 }
 0x16d   :  { %v1527_v35 = vpop.f32.mrb[60].mxu1  ;;  %v1020_v60 = vpop.f32.mrb[60].mxu0 }
 0x16e   :  { %1367 = vst [vmem:[%s2180_s3 + $0x40] sm:$0xff] %v1353_v59   ;;  %v1021_v61 = vadd.f32 %v1020_v60, %v901_v49  ;;  %v1528_v63 = vpop.f32.mrb[61].mxu1  ;;  %v1594_v0 = vpop.f32.mrb[61].mxu0 }
 0x16f   :  { %v1529_v3 = vadd.f32 %v1528_v63, %v1527_v35  ;;  %v1023_v5 = vpop.f32.mrb[62].mxu0  ;;  %v1530_v9 = vpop.f32.mrb[62].mxu1 }
 0x170   :  { %v1024_v6 = vadd.f32 %v1023_v5, %v904_v57  ;;  %v1595_v41 = vpop.f32.mrb[63].mxu0  ;;  %v1531_v15 = vpop.f32.mrb[63].mxu1  ;;  %v1052_v7 = vmax.f32 %v1021_v61, 0.0 }
 0x171   :  { %v909_v37 = vadd.f32 %v1529_v3, %v2099_v30 }
 0x172   :  { %v1053_v18 = vmax.f32 %v1024_v6, 0.0 }
 0x174   :  { %v1358_v8 = vpack.c.bf16 %v1053_v18, %v1052_v7 }
 0x175   :  { %v1028_v16 = vpop.f32.mrb[64].mxu0 }
 0x176   :  { %1368 = vst [vmem:[%s2180_s3 + $0x48] sm:$0xff] %v1358_v8   ;;  %v1029_v10 = vadd.f32 %v1028_v16, %v909_v37  ;;  %v1598_v24 = vpop.f32.mrb[65].mxu0 }
 0x177   :  { %v1031_v11 = vpop.f32.mrb[66].mxu0 }
 0x178   :  { %v1054_v12 = vmax.f32 %v1029_v10, 0.0  ;;  %v1599_v13 = vpop.f32.mrb[67].mxu0 }
 0x17a   :  { %v1309_v14 = vpack.c.bf16 %v1054_v12, %v1054_v12 }
 0x17c   :  { %1160 = vst [vmem:[%s2180_s3 + $0x50] sm:$0x1] %v1309_v14 }

// kernel: vggnet_forward.19
= control target key start
LH: loop header
LB: loop body
LE: loop exit
PB: predicated region body
PF: predicated region fallthrough
CT: control target
= control target key end

     0   :  { %s1944_s12 = smov 0   ;;  %s1946_s13 = smov 0   ;;  %s2248_s0 = inlined_call_operand.vmem [shape: bf16[162,1152], index: 0, kind: input, shape index: {}]   ;;  %s2249_s1 = inlined_call_operand.vmem [shape: bf16[1152,128], index: 1, kind: input, shape index: {}]   ;;  %s2250_s2 = inlined_call_operand.vmem [shape: f32[1,128], index: 2, kind: input, shape index: {}]   ;;  %s2251_s3 = inlined_call_operand.vmem [shape: bf16[162,128], index: 3, kind: output, shape index: {}]  }
   0x1   :  { %s1948_s14 = smov 0   ;;  %s1950_s15 = smov 0  }
   0x2   :  { %s1952_s16 = smov 0  }
   0x3 LB: > { %s25_s17 = sadd.s32 1, %s1915_s15  ;;  %p48_p1 = scmp.ne.s32.totalorder %s1907_s13, %s1903_s12  ;;  %s1919_s16 = sphi %s1952_s16, %s13_s16   ;;  %s1915_s15 = sphi %s1950_s15, %s2255_s15   ;;  %s1911_s14 = sphi %s1948_s14, %s2254_s14   ;;  %s1907_s13 = sphi %s1946_s13, %s2253_s13   ;;  %s1903_s12 = sphi %s1944_s12, %s2252_s12  }
   0x4   : > { %p26_p0 = scmp.ge.s32.totalorder %s25_s17, 3  ;;  %p49_p2 = scmp.eq.s32.totalorder %s1919_s16, 0 }
   0x5   : > { %s41_s19 = sadd.s32 1, %s1907_s13  ;;  %p1396_p5 = scmp.ge.s32.totalorder %s1919_s16, 3 }
   0x6   : > { %s2257_s17 = smov (%p26_p0, %s25_s17), 0  ;;  %p50_p3 = por %p49_p2, %p48_p1 }
   0x7   : > { %s37_s18 = ssub.s32 %s1915_s15, %s2257_s17  ;;  %162 = sbr.rel (%p1396_p5) target bundleno = 43 (0x2b), region = 20 }
   0x8   : > { %p39_p4 = scmp.eq.s32.totalorder %s37_s18, 0 }
   0xa   : > { %s1979_s20 = scalar_select %p39_p4, %s1907_s13, %s41_s19  }
   0xe   : > { %165 = sbr.rel (!%p50_p3) target bundleno = 43 (0x2b), region = 24  ;;  %s167_s21 = sand.u32 (%p50_p3), 1, %s1907_s13  }
   0xf   : > { %s1527_s22 = smul.u32 (%p50_p3), 12, %s1915_s15 }
  0x10   : > { %s1769_s23 = smul.u32 (%p50_p3), 252, %s167_s21 }
  0x11   : > { %s1987_s26 = scalar_lea.vmem (%p50_p3), %s2248_s0, %s1527_s22 }
  0x12   : > { %v190_v0 = vld [vmem:[%s1987_s26] sm:$0xff] (%p50_p3)  ;;  %v194_v2 = vld [vmem:[%s1987_s26 + $0x48] sm:$0xff] (%p50_p3)  ;;  %s1992_s27 = scalar_lea.vmem (%p50_p3), [#allocation3], %s1769_s23  ;;  %v198_v4 = vld [vmem:[%s1987_s26 + $0x90] sm:$0xff] (%p50_p3) }
  0x13   : > { %v192_v1 = vld [vmem:[%s1987_s26 + $0x24] sm:$0xff] (%p50_p3)  ;;  %191 = vst [vmem:[%s1992_s27] sm:$0xff] (%p50_p3), %v190_v0  ;;  %195 = vst [vmem:[%s1992_s27 + $0x18] sm:$0xff] (%p50_p3), %v194_v2  ;;  %v196_v3 = vld [vmem:[%s1987_s26 + $0x6c] sm:$0xff] (%p50_p3) }
  0x14   : > { %193 = vst [vmem:[%s1992_s27 + $0xc] sm:$0xff] (%p50_p3), %v192_v1  ;;  %v200_v5 = vld [vmem:[%s1987_s26 + $0xb4] sm:$0xff] (%p50_p3)  ;;  %197 = vst [vmem:[%s1992_s27 + $0x24] sm:$0xff] (%p50_p3), %v196_v3  ;;  %v204_v7 = vld [vmem:[%s1987_s26 + $0xfc] sm:$0xff] (%p50_p3) }
  0x15   : > { %199 = vst [vmem:[%s1992_s27 + $0x30] sm:$0xff] %v198_v4  ;;  %201 = vst [vmem:[%s1992_s27 + $0x3c] sm:$0xff] %v200_v5  ;;  %v202_v6 = vld [vmem:[%s1987_s26 + $0xd8] sm:$0xff]  ;;  %v206_v8 = vld [vmem:[%s1987_s26 + $0x120] sm:$0xff] }
  0x16   : > { %203 = vst [vmem:[%s1992_s27 + $0x48] sm:$0xff] %v202_v6  ;;  %205 = vst [vmem:[%s1992_s27 + $0x54] sm:$0xff] %v204_v7  ;;  %v208_v9 = vld [vmem:[%s1987_s26 + $0x144] sm:$0xff]  ;;  %v212_v11 = vld [vmem:[%s1987_s26 + $0x18c] sm:$0xff] }
  0x17   : > { %207 = vst [vmem:[%s1992_s27 + $0x60] sm:$0xff] %v206_v8  ;;  %v210_v10 = vld [vmem:[%s1987_s26 + $0x168] sm:$0xff]  ;;  %209 = vst [vmem:[%s1992_s27 + $0x6c] sm:$0xff] %v208_v9  ;;  %v214_v12 = vld [vmem:[%s1987_s26 + $0x1b0] sm:$0xff] }
  0x18   : > { %211 = vst [vmem:[%s1992_s27 + $0x78] sm:$0xff] %v210_v10  ;;  %213 = vst [vmem:[%s1992_s27 + $0x84] sm:$0xff] %v212_v11  ;;  %v216_v13 = vld [vmem:[%s1987_s26 + $0x1d4] sm:$0xff]  ;;  %v220_v15 = vld [vmem:[%s1987_s26 + $0x21c] sm:$0xff] }
  0x19   : > { %v218_v14 = vld [vmem:[%s1987_s26 + $0x1f8] sm:$0xff]  ;;  %215 = vst [vmem:[%s1992_s27 + $0x90] sm:$0xff] %v214_v12  ;;  %217 = vst [vmem:[%s1992_s27 + $0x9c] sm:$0xff] %v216_v13  ;;  %v222_v16 = vld [vmem:[%s1987_s26 + $0x240] sm:$0xff] }
  0x1a   : > { %219 = vst [vmem:[%s1992_s27 + $0xa8] sm:$0xff] %v218_v14  ;;  %v224_v17 = vld [vmem:[%s1987_s26 + $0x264] sm:$0xff]  ;;  %221 = vst [vmem:[%s1992_s27 + $0xb4] sm:$0xff] %v220_v15  ;;  %v228_v19 = vld [vmem:[%s1987_s26 + $0x2ac] sm:$0xff] }
  0x1b   : > { %223 = vst [vmem:[%s1992_s27 + $0xc0] sm:$0xff] %v222_v16  ;;  %225 = vst [vmem:[%s1992_s27 + $0xcc] sm:$0xff] %v224_v17  ;;  %v226_v18 = vld [vmem:[%s1987_s26 + $0x288] sm:$0xff]  ;;  %v230_v20 = vld [vmem:[%s1987_s26 + $0x2d0] sm:$0xff] }
  0x1c   : > { %227 = vst [vmem:[%s1992_s27 + $0xd8] sm:$0xff] %v226_v18  ;;  %229 = vst [vmem:[%s1992_s27 + $0xe4] sm:$0xff] %v228_v19  ;;  %v1398_v21 = vld [vmem:[%s1987_s26 + $0x8] sm:$0xf]  ;;  %v1400_v22 = vld [vmem:[%s1987_s26 + $0x2c] sm:$0xf] }
  0x1d   : > { %231 = vst [vmem:[%s1992_s27 + $0xf0] sm:$0xff] %v230_v20  ;;  %v1402_v23 = vld [vmem:[%s1987_s26 + $0x50] sm:$0xf]  ;;  %1399 = vst [vmem:[%s1992_s27 + $0x8] sm:$0xf] %v1398_v21 }
  0x1e   : > { %1401 = vst [vmem:[%s1992_s27 + $0x14] sm:$0xf] %v1400_v22  ;;  %1403 = vst [vmem:[%s1992_s27 + $0x20] sm:$0xf] %v1402_v23  ;;  %v1404_v24 = vld [vmem:[%s1987_s26 + $0x74] sm:$0xf] }
  0x1f   : > { %v1406_v25 = vld [vmem:[%s1987_s26 + $0x98] sm:$0xf]  ;;  %v1408_v26 = vld [vmem:[%s1987_s26 + $0xbc] sm:$0xf]  ;;  %1405 = vst [vmem:[%s1992_s27 + $0x2c] sm:$0xf] %v1404_v24 }
  0x20   : > { %1407 = vst [vmem:[%s1992_s27 + $0x38] sm:$0xf] %v1406_v25  ;;  %1409 = vst [vmem:[%s1992_s27 + $0x44] sm:$0xf] %v1408_v26  ;;  %v1410_v27 = vld [vmem:[%s1987_s26 + $0xe0] sm:$0xf] }
  0x21   : > { %v1412_v28 = vld [vmem:[%s1987_s26 + $0x104] sm:$0xf]  ;;  %v1414_v29 = vld [vmem:[%s1987_s26 + $0x128] sm:$0xf]  ;;  %1411 = vst [vmem:[%s1992_s27 + $0x50] sm:$0xf] %v1410_v27 }
  0x22   : > { %1413 = vst [vmem:[%s1992_s27 + $0x5c] sm:$0xf] %v1412_v28  ;;  %1415 = vst [vmem:[%s1992_s27 + $0x68] sm:$0xf] %v1414_v29  ;;  %v1416_v30 = vld [vmem:[%s1987_s26 + $0x14c] sm:$0xf] }
  0x23   : > { %v1418_v31 = vld [vmem:[%s1987_s26 + $0x170] sm:$0xf]  ;;  %v1420_v32 = vld [vmem:[%s1987_s26 + $0x194] sm:$0xf]  ;;  %1417 = vst [vmem:[%s1992_s27 + $0x74] sm:$0xf] %v1416_v30 }
  0x24   : > { %1419 = vst [vmem:[%s1992_s27 + $0x80] sm:$0xf] %v1418_v31  ;;  %1421 = vst [vmem:[%s1992_s27 + $0x8c] sm:$0xf] %v1420_v32  ;;  %v1422_v33 = vld [vmem:[%s1987_s26 + $0x1b8] sm:$0xf] }
  0x25   : > { %v1424_v34 = vld [vmem:[%s1987_s26 + $0x1dc] sm:$0xf]  ;;  %v1426_v35 = vld [vmem:[%s1987_s26 + $0x200] sm:$0xf]  ;;  %1423 = vst [vmem:[%s1992_s27 + $0x98] sm:$0xf] %v1422_v33 }
  0x26   : > { %1425 = vst [vmem:[%s1992_s27 + $0xa4] sm:$0xf] %v1424_v34  ;;  %1427 = vst [vmem:[%s1992_s27 + $0xb0] sm:$0xf] %v1426_v35  ;;  %v1428_v36 = vld [vmem:[%s1987_s26 + $0x224] sm:$0xf] }
  0x27   : > { %v1430_v37 = vld [vmem:[%s1987_s26 + $0x248] sm:$0xf]  ;;  %v1432_v38 = vld [vmem:[%s1987_s26 + $0x26c] sm:$0xf]  ;;  %1429 = vst [vmem:[%s1992_s27 + $0xbc] sm:$0xf] %v1428_v36 }
  0x28   : > { %1431 = vst [vmem:[%s1992_s27 + $0xc8] sm:$0xf] %v1430_v37  ;;  %1433 = vst [vmem:[%s1992_s27 + $0xd4] sm:$0xf] %v1432_v38  ;;  %v1434_v39 = vld [vmem:[%s1987_s26 + $0x290] sm:$0xf] }
  0x29   : > { %v1436_v40 = vld [vmem:[%s1987_s26 + $0x2b4] sm:$0xf]  ;;  %v1438_v41 = vld [vmem:[%s1987_s26 + $0x2d8] sm:$0xf]  ;;  %1435 = vst [vmem:[%s1992_s27 + $0xe0] sm:$0xf] %v1434_v39 }
  0x2a   : > { %1437 = vst [vmem:[%s1992_s27 + $0xec] sm:$0xf] %v1436_v40  ;;  %1439 = vst [vmem:[%s1992_s27 + $0xf8] sm:$0xf] %v1438_v41 }
  0x2b PF: > { %p1440_p6 = scmp.ge.s32.totalorder %s1919_s16, 1  ;;  %p297_p7 = scmp.lt.s32.totalorder %s1919_s16, 4 }
  0x2d   : > { %p298_p8 = pnand %p1440_p6, %p297_p7 }
  0x2e   : > { %s304_s28 = sand.u32 (!%p298_p8), 1, %s1903_s12   ;;  %s343_s29 = smul.u32 (!%p298_p8), 48, %s1911_s14 }
  0x2f   : > { %301 = sbr.rel (%p298_p8) target bundleno = 414 (0x19e), region = 54  ;;  %p1442_p10 = scmp.ne.s32.totalorder (!%p298_p8), %s1911_s14, 0 }
  0x30   : > { %s1770_s30 = smul.u32 (!%p298_p8), 252, %s304_s28  ;;  %p344_p9 = scmp.lt.s32.totalorder (!%p298_p8), %s343_s29, 143 }
  0x32   : > { %s2084_s8 = scalar_lea.vmem (!%p298_p8), [#allocation3], %s1770_s30 }
  0x36   : > { %s2259_s29 = smov (!%p344_p9, %s343_s29), 143  ;;  %368 = sbr.rel (%p1442_p10) target bundleno = 67 (0x43), region = 62 }
  0x37   : > { %s1441_s4 = sshll.u32 %s2259_s29, 2  ;;  %v1921_v42 = vmov (!%p1442_p10), 0.0  }
  0x38   : > { %s2082_s7 = scalar_lea.vmem %s2249_s1, %s1441_s4  ;;  %369 = vst [vmem:[#allocation2] sm:$0xff] (!%p1442_p10), %v1921_v42  ;;  %370 = vst [vmem:[#allocation2 + $0x8] sm:$0xff] (!%p1442_p10), %v1921_v42 }
  0x39   : > { %371 = vst [vmem:[#allocation2 + $0x10] sm:$0xff] (!%p1442_p10), %v1921_v42  ;;  %372 = vst [vmem:[#allocation2 + $0x18] sm:$0xff] (!%p1442_p10), %v1921_v42 }
  0x3a   : > { %373 = vst [vmem:[#allocation2 + $0x20] sm:$0xff] (!%p1442_p10), %v1921_v42  ;;  %374 = vst [vmem:[#allocation2 + $0x28] sm:$0xff] (!%p1442_p10), %v1921_v42 }
  0x3b   : > { %375 = vst [vmem:[#allocation2 + $0x30] sm:$0xff] (!%p1442_p10), %v1921_v42  ;;  %376 = vst [vmem:[#allocation2 + $0x38] sm:$0xff] (!%p1442_p10), %v1921_v42 }
  0x3c   : > { %377 = vst [vmem:[#allocation2 + $0x40] sm:$0xff] (!%p1442_p10), %v1921_v42  ;;  %378 = vst [vmem:[#allocation2 + $0x48] sm:$0xff] (!%p1442_p10), %v1921_v42 }
  0x3d   : > { %379 = vst [vmem:[#allocation2 + $0x50] sm:$0xff] %v1921_v42  ;;  %380 = vst [vmem:[#allocation2 + $0x58] sm:$0xff] %v1921_v42 }
  0x3e   : > { %381 = vst [vmem:[#allocation2 + $0x60] sm:$0xff] %v1921_v42  ;;  %382 = vst [vmem:[#allocation2 + $0x68] sm:$0xff] %v1921_v42 }
  0x3f   : > { %383 = vst [vmem:[#allocation2 + $0x70] sm:$0xff] %v1921_v42  ;;  %384 = vst [vmem:[#allocation2 + $0x78] sm:$0xff] %v1921_v42 }
  0x40   : > { %385 = vst [vmem:[#allocation2 + $0x80] sm:$0xff] %v1921_v42  ;;  %386 = vst [vmem:[#allocation2 + $0x88] sm:$0xff] %v1921_v42 }
  0x41   : > { %387 = vst [vmem:[#allocation2 + $0x90] sm:$0xff] %v1921_v42  ;;  %388 = vst [vmem:[#allocation2 + $0x98] sm:$0xff] %v1921_v42 }
  0x42   : > { %389 = vst [vmem:[#allocation2 + $0xa0] sm:$0x3] %v1921_v42 }
  0x43 PF: > { %v1814_v43 = vld [vmem:[%s2082_s7 + $0x40] sm:$0xff]   ;;  %v1922_v44 = vmov 0.0   ;;  %vm1923_vm0 = vmmov 0   ;;  %v1817_v47 = vld [vmem:[%s2082_s7 + $0x48] sm:$0xff]   ;;  %v1820_v50 = vld [vmem:[%s2082_s7 + $0x50] sm:$0xff]   ;;  %p1500_p11 = scmp.ne.s32.totalorder %s1911_s14, 2 }
  0x44   : > { %1709 = vmatprep.subr.bf16.mxu1 %v1922_v44  ;;  %v1815_v45 = vld [vmem:[%s2082_s7] sm:$0xff]   ;;  %1608 = vmatprep.subr.bf16.mxu0 %v1814_v43  ;;  %v1818_v48 = vld [vmem:[%s2082_s7 + $0x8] sm:$0xff]   ;;  %v1821_v51 = vld [vmem:[%s2082_s7 + $0x10] sm:$0xff]  }
  0x45   : > { %v1816_v46 = vld [vmem:[%s2082_s7 + $0x80] sm:$0xff]   ;;  %1725 = vmatprep.mubr.msk.bf16.mxu1 %vm1923_vm0, %v1922_v44  ;;  %1609 = vmatpush3.bf16.msra.mxu0 %v1815_v45  ;;  %v1819_v49 = vld [vmem:[%s2082_s7 + $0x88] sm:$0xff]   ;;  %v1822_v52 = vld [vmem:[%s2082_s7 + $0x90] sm:$0xff]  }
  0x46   : > { %1710 = vmatpush3.bf16.msra.mxu1 %v1816_v46  ;;  %1610 = vmatprep.subr.bf16.mxu0 %v1817_v47  ;;  %v1823_v53 = vld [vmem:[%s2082_s7 + $0x58] sm:$0xff]   ;;  %v1826_v56 = vld [vmem:[%s2082_s7 + $0x60] sm:$0xff]   ;;  %v1829_v59 = vld [vmem:[%s2082_s7 + $0x68] sm:$0xff]  }
  0x47   : > { %1711 = vmatprep.subr.bf16.mxu1 %v1922_v44  ;;  %v1824_v54 = vld [vmem:[%s2082_s7 + $0x18] sm:$0xff]   ;;  %v1827_v57 = vld [vmem:[%s2082_s7 + $0x20] sm:$0xff]   ;;  %v1830_v60 = vld [vmem:[%s2082_s7 + $0x28] sm:$0xff]  }
  0x48   : > { %v1825_v55 = vld [vmem:[%s2082_s7 + $0x98] sm:$0xff]   ;;  %v1828_v58 = vld [vmem:[%s2082_s7 + $0xa0] sm:$0xff]   ;;  %v1831_v61 = vld [vmem:[%s2082_s7 + $0xa8] sm:$0xff]  }
  0x49   : > { %1611 = vmatpush3.bf16.msra.mxu0 %v1818_v48  ;;  %v1832_v62 = vld [vmem:[%s2082_s7 + $0x70] sm:$0xff]   ;;  %v1835_v1 = vld [vmem:[%s2082_s7 + $0x78] sm:$0xff]   ;;  %v390_v45 = vld [vmem:[#allocation2] sm:$0xff] }
  0x4a   : > { %1712 = vmatpush3.bf16.msra.mxu1 %v1819_v49  ;;  %1612 = vmatprep.subr.bf16.mxu0 %v1820_v50  ;;  %v1833_v63 = vld [vmem:[%s2082_s7 + $0x30] sm:$0xff]   ;;  %v1836_v3 = vld [vmem:[%s2082_s7 + $0x38] sm:$0xff]  }
  0x4b   : > { %1713 = vmatprep.subr.bf16.mxu1 %v1922_v44  ;;  %v1834_v0 = vld [vmem:[%s2082_s7 + $0xb0] sm:$0xff]   ;;  %v1837_v4 = vld [vmem:[%s2082_s7 + $0xb8] sm:$0xff]  }
  0x4c   : > { %v1840_v2 = vld [vmem:[%s2084_s8 + $0x4] ss:$12 sps:$4 sm:$0xff]   ;;  %v1838_v5 = vld [vmem:[%s2084_s8] ss:$12 sps:$4 sm:$0xff]   ;;  %v1841_v6 = vld [vmem:[%s2084_s8 + $0x8] ss:$12 sps:$4 sm:$0xff]  }
  0x4d   : > { %1613 = vmatpush3.bf16.msra.mxu0 %v1821_v51  ;;  %848 = vmatprep.mubr.bf16.mxu0 %v1840_v2  ;;  %v1842_v7 = vld [vmem:[%s2084_s8 + $0x1c] ss:$12 sps:$4 sm:$0xff]   ;;  %v1844_v8 = vld [vmem:[%s2084_s8 + $0x18] ss:$12 sps:$4 sm:$0xff]   ;;  %v1845_v9 = vld [vmem:[%s2084_s8 + $0x20] ss:$12 sps:$4 sm:$0xff]  }
  0x4e   : > { %1714 = vmatpush3.bf16.msra.mxu1 %v1822_v52  ;;  %1614 = vmatprep.subr.bf16.mxu0 %v1823_v53  ;;  %v1846_v10 = vld [vmem:[%s2084_s8 + $0x34] ss:$12 sps:$4 sm:$0xff]   ;;  %v1848_v11 = vld [vmem:[%s2084_s8 + $0x30] ss:$12 sps:$4 sm:$0xff]   ;;  %v1849_v12 = vld [vmem:[%s2084_s8 + $0x38] ss:$12 sps:$4 sm:$0xff]  }
  0x4f   : > { %1715 = vmatprep.subr.bf16.mxu1 %v1922_v44  ;;  %v1850_v13 = vld [vmem:[%s2084_s8 + $0x4c] ss:$12 sps:$4 sm:$0xff]   ;;  %v1852_v14 = vld [vmem:[%s2084_s8 + $0x48] ss:$12 sps:$4 sm:$0xff]   ;;  %v1853_v15 = vld [vmem:[%s2084_s8 + $0x50] ss:$12 sps:$4 sm:$0xff]  }
  0x50   : > { %v1854_v16 = vld [vmem:[%s2084_s8 + $0x64] ss:$12 sps:$4 sm:$0xff]   ;;  %v1856_v17 = vld [vmem:[%s2084_s8 + $0x60] ss:$12 sps:$4 sm:$0xff]   ;;  %v1857_v18 = vld [vmem:[%s2084_s8 + $0x68] ss:$12 sps:$4 sm:$0xff]  }
  0x51   : > { %1615 = vmatpush3.bf16.msra.mxu0 %v1824_v54  ;;  %v1858_v19 = vld [vmem:[%s2084_s8 + $0x7c] ss:$12 sps:$4 sm:$0xff]   ;;  %v1860_v20 = vld [vmem:[%s2084_s8 + $0x78] ss:$12 sps:$4 sm:$0xff]   ;;  %v1861_v21 = vld [vmem:[%s2084_s8 + $0x80] ss:$12 sps:$4 sm:$0xff]  }
  0x52   : > { %1716 = vmatpush3.bf16.msra.mxu1 %v1825_v55  ;;  %1616 = vmatprep.subr.bf16.mxu0 %v1826_v56  ;;  %v1862_v22 = vld [vmem:[%s2084_s8 + $0x94] ss:$12 sps:$4 sm:$0xff]   ;;  %v1864_v23 = vld [vmem:[%s2084_s8 + $0x90] ss:$12 sps:$4 sm:$0xff]   ;;  %v1865_v24 = vld [vmem:[%s2084_s8 + $0x98] ss:$12 sps:$4 sm:$0xff]  }
  0x53   : > { %1717 = vmatprep.subr.bf16.mxu1 %v1922_v44  ;;  %v1866_v25 = vld [vmem:[%s2084_s8 + $0xac] ss:$12 sps:$4 sm:$0xff]   ;;  %v1868_v26 = vld [vmem:[%s2084_s8 + $0xa8] ss:$12 sps:$4 sm:$0xff]   ;;  %v1869_v27 = vld [vmem:[%s2084_s8 + $0xb0] ss:$12 sps:$4 sm:$0xff]  }
  0x54   : > { %v1870_v28 = vld [vmem:[%s2084_s8 + $0xc4] ss:$12 sps:$4 sm:$0xff]   ;;  %v1872_v29 = vld [vmem:[%s2084_s8 + $0xc0] ss:$12 sps:$4 sm:$0xff]   ;;  %v1873_v30 = vld [vmem:[%s2084_s8 + $0xc8] ss:$12 sps:$4 sm:$0xff]  }
  0x55   : > { %1617 = vmatpush3.bf16.msra.mxu0 %v1827_v57  ;;  %v1874_v31 = vld [vmem:[%s2084_s8 + $0xdc] ss:$12 sps:$4 sm:$0xff]   ;;  %v451_v32 = vld [vmem:[%s2084_s8 + $0xf0] sm:$0x11]  ;;  %v1876_v33 = vld [vmem:[%s2084_s8 + $0xd8] ss:$12 sps:$4 sm:$0xff]  }
  0x56   : > { %1718 = vmatpush3.bf16.msra.mxu1 %v1828_v58  ;;  %1618 = vmatprep.subr.bf16.mxu0 %v1829_v59  ;;  %v1877_v34 = vld [vmem:[%s2084_s8 + $0xe0] ss:$12 sps:$4 sm:$0xff]   ;;  %v1474_v35 = vcombine.high %v451_v32, %v451_v32  ;;  %v1473_v36 = vcombine.low %v451_v32, %v451_v32  ;;  %v1880_v37 = vld [vmem:[%s2084_s8 + $0xf8] ss:$0 sps:$4 sm:$0x11]  }
  0x57   : > { %1719 = vmatprep.subr.bf16.mxu1 %v1922_v44  ;;  %v391_v51 = vld [vmem:[#allocation2 + $0x8] sm:$0xff]  ;;  %v393_v2 = vld [vmem:[#allocation2 + $0x18] sm:$0xff] }
  0x59   : > { %1619 = vmatpush3.bf16.msra.mxu0 %v1830_v60  ;;  %v392_v60 = vld [vmem:[#allocation2 + $0x10] sm:$0xff] }
  0x5a   : > { %1720 = vmatpush3.bf16.msra.mxu1 %v1831_v61  ;;  %1620 = vmatprep.subr.bf16.mxu0 %v1832_v62 }
  0x5b   : > { %1721 = vmatprep.subr.bf16.mxu1 %v1922_v44 }
  0x5d   : > { %1621 = vmatpush3.bf16.msra.mxu0 %v1833_v63 }
  0x5e   : > { %1722 = vmatpush3.bf16.msra.mxu1 %v1834_v0  ;;  %1622 = vmatprep.subr.bf16.mxu0 %v1835_v1 }
  0x5f   : > { %1723 = vmatprep.subr.bf16.mxu1 %v1922_v44 }
  0x61   : > { %1623 = vmatpush3.bf16.msra.mxu0 %v1836_v3 }
  0x62   : > { %1724 = vmatpush3.bf16.msra.mxu1 %v1837_v4 }
  0x64   : > { %849 = vmatmul.mubr.bf16.vlgmr.msra.gmra.mrb[0].mxu0 %v1838_v5 }
  0x65   : > { %1726 = vmatmul.mubr.bf16.vlgmr.msra.gmra.mrb[0].mxu1 %v1841_v6  ;;  %856 = vmatprep.mubr.bf16.mxu0 %v1842_v7 }
  0x66   : > { %1729 = vmatprep.mubr.msk.bf16.mxu1 %vm1923_vm0, %v1922_v44 }
  0x6c   : > { %857 = vmatmul.mubr.bf16.gmra.mrb[4].mxu0 %v1844_v8 }
  0x6d   : > { %1730 = vmatmul.mubr.bf16.gmra.mrb[4].mxu1 %v1845_v9  ;;  %864 = vmatprep.mubr.bf16.mxu0 %v1846_v10 }
  0x6e   : > { %1733 = vmatprep.mubr.msk.bf16.mxu1 %vm1923_vm0, %v1922_v44 }
  0x74   : > { %865 = vmatmul.mubr.bf16.gmra.mrb[8].mxu0 %v1848_v11 }
  0x75   : > { %1734 = vmatmul.mubr.bf16.gmra.mrb[8].mxu1 %v1849_v12  ;;  %872 = vmatprep.mubr.bf16.mxu0 %v1850_v13  ;;  %v394_v12 = vld [vmem:[#allocation2 + $0x20] sm:$0xff] }
  0x76   : > { %1737 = vmatprep.mubr.msk.bf16.mxu1 %vm1923_vm0, %v1922_v44 }
  0x7c   : > { %873 = vmatmul.mubr.bf16.gmra.mrb[12].mxu0 %v1852_v14 }
  0x7d   : > { %1738 = vmatmul.mubr.bf16.gmra.mrb[12].mxu1 %v1853_v15  ;;  %880 = vmatprep.mubr.bf16.mxu0 %v1854_v16 }
  0x7e   : > { %1741 = vmatprep.mubr.msk.bf16.mxu1 %vm1923_vm0, %v1922_v44 }
  0x84   : > { %881 = vmatmul.mubr.bf16.gmra.mrb[16].mxu0 %v1856_v17 }
  0x85   : > { %1742 = vmatmul.mubr.bf16.gmra.mrb[16].mxu1 %v1857_v18  ;;  %888 = vmatprep.mubr.bf16.mxu0 %v1858_v19  ;;  %v395_v18 = vld [vmem:[#allocation2 + $0x28] sm:$0xff] }
  0x86   : > { %1745 = vmatprep.mubr.msk.bf16.mxu1 %vm1923_vm0, %v1922_v44 }
  0x8c   : > { %889 = vmatmul.mubr.bf16.gmra.mrb[20].mxu0 %v1860_v20 }
  0x8d   : > { %1746 = vmatmul.mubr.bf16.gmra.mrb[20].mxu1 %v1861_v21  ;;  %896 = vmatprep.mubr.bf16.mxu0 %v1862_v22 }
  0x8e   : > { %1749 = vmatprep.mubr.msk.bf16.mxu1 %vm1923_vm0, %v1922_v44 }
  0x94   : > { %897 = vmatmul.mubr.bf16.gmra.mrb[24].mxu0 %v1864_v23 }
  0x95   : > { %1750 = vmatmul.mubr.bf16.gmra.mrb[24].mxu1 %v1865_v24  ;;  %904 = vmatprep.mubr.bf16.mxu0 %v1866_v25 }
  0x96   : > { %1753 = vmatprep.mubr.msk.bf16.mxu1 %vm1923_vm0, %v1922_v44 }
  0x9c   : > { %905 = vmatmul.mubr.bf16.gmra.mrb[28].mxu0 %v1868_v26 }
  0x9d   : > { %1754 = vmatmul.mubr.bf16.gmra.mrb[28].mxu1 %v1869_v27  ;;  %912 = vmatprep.mubr.bf16.mxu0 %v1870_v28  ;;  %v396_v28 = vld [vmem:[#allocation2 + $0x30] sm:$0xff] }
  0x9e   : > { %1757 = vmatprep.mubr.msk.bf16.mxu1 %vm1923_vm0, %v1922_v44 }
  0xa4   : > { %913 = vmatmul.mubr.bf16.gmra.mrb[32].mxu0 %v1872_v29 }
  0xa5   : > { %1758 = vmatmul.mubr.bf16.gmra.mrb[32].mxu1 %v1873_v30  ;;  %920 = vmatprep.mubr.bf16.mxu0 %v1874_v31 }
  0xa6   : > { %1761 = vmatprep.mubr.msk.bf16.mxu1 %vm1923_vm0, %v1922_v44 }
  0xac   : > { %921 = vmatmul.mubr.bf16.gmra.mrb[36].mxu0 %v1876_v33 }
  0xad   : > { %1762 = vmatmul.mubr.bf16.gmra.mrb[36].mxu1 %v1877_v34  ;;  %928 = vmatprep.mubr.bf16.mxu0 %v1474_v35  ;;  %v397_v34 = vld [vmem:[#allocation2 + $0x38] sm:$0xff] }
  0xae   : > { %1765 = vmatprep.mubr.msk.bf16.mxu1 %vm1923_vm0, %v1922_v44 }
  0xb4   : > { %929 = vmatmul.mubr.bf16.gmra.mrb[40].mxu0 %v1473_v36 }
  0xb5   : > { %1766 = vmatmul.mubr.bf16.gmra.mrb[40].mxu1 %v1880_v37 }
 0x137   : > { %v1624_v38 = vpop.f32.mrb[0].mxu0 }
 0x138   : > { %v970_v39 = vpop.f32.mrb[0].mxu1  ;;  %v1625_v40 = vpop.f32.mrb[1].mxu0 }
 0x139   : > { %v1626_v41 = vadd.f32 %v1625_v40, %v1624_v38  ;;  %v1727_v42 = vpop.f32.mrb[1].mxu1  ;;  %v1627_v43 = vpop.f32.mrb[2].mxu0 }
 0x13a   : > { %v973_v46 = vpop.f32.mrb[2].mxu1  ;;  %v1628_v47 = vpop.f32.mrb[3].mxu0 }
 0x13b   : > { %v971_v48 = vadd.f32 %v1626_v41, %v970_v39  ;;  %v1629_v49 = vadd.f32 %v1628_v47, %v1627_v43  ;;  %v1728_v50 = vpop.f32.mrb[3].mxu1 }
 0x13d   : > { %v1056_v52 = vadd.f32 %v971_v48, %v390_v45  ;;  %v974_v53 = vadd.f32 %v1629_v49, %v973_v46  ;;  %v398_v45 = vld [vmem:[#allocation2 + $0x40] sm:$0xff] }
 0x13f   : > { %1077 = vst [vmem:[#allocation2] sm:$0xff] %v1056_v52  ;;  %v1057_v44 = vadd.f32 %v974_v53, %v391_v51  ;;  %v1630_v54 = vpop.f32.mrb[4].mxu0  ;;  %v399_v51 = vld [vmem:[#allocation2 + $0x48] sm:$0xff] }
 0x140   : > { %v978_v55 = vpop.f32.mrb[4].mxu1  ;;  %v1631_v56 = vpop.f32.mrb[5].mxu0 }
 0x141   : > { %1078 = vst [vmem:[#allocation2 + $0x8] sm:$0xff] %v1057_v44  ;;  %v1632_v57 = vadd.f32 %v1631_v56, %v1630_v54  ;;  %v1731_v58 = vpop.f32.mrb[5].mxu1  ;;  %v1633_v59 = vpop.f32.mrb[6].mxu0 }
 0x142   : > { %v981_v61 = vpop.f32.mrb[6].mxu1  ;;  %v1634_v62 = vpop.f32.mrb[7].mxu0 }
 0x143   : > { %v979_v63 = vadd.f32 %v1632_v57, %v978_v55  ;;  %v1635_v0 = vadd.f32 %v1634_v62, %v1633_v59  ;;  %v1732_v1 = vpop.f32.mrb[7].mxu1 }
 0x145   : > { %v1058_v3 = vadd.f32 %v979_v63, %v392_v60  ;;  %v982_v4 = vadd.f32 %v1635_v0, %v981_v61  ;;  %v400_v60 = vld [vmem:[#allocation2 + $0x50] sm:$0xff] }
 0x147   : > { %1079 = vst [vmem:[#allocation2 + $0x10] sm:$0xff] %v1058_v3  ;;  %v1059_v5 = vadd.f32 %v982_v4, %v393_v2  ;;  %v1636_v6 = vpop.f32.mrb[8].mxu0  ;;  %v401_v2 = vld [vmem:[#allocation2 + $0x58] sm:$0xff] }
 0x148   : > { %v986_v7 = vpop.f32.mrb[8].mxu1  ;;  %v1637_v8 = vpop.f32.mrb[9].mxu0 }
 0x149   : > { %1080 = vst [vmem:[#allocation2 + $0x18] sm:$0xff] %v1059_v5  ;;  %v1638_v9 = vadd.f32 %v1637_v8, %v1636_v6  ;;  %v1735_v10 = vpop.f32.mrb[9].mxu1  ;;  %v1639_v11 = vpop.f32.mrb[10].mxu0 }
 0x14a   : > { %v989_v13 = vpop.f32.mrb[10].mxu1  ;;  %v1640_v14 = vpop.f32.mrb[11].mxu0 }
 0x14b   : > { %v987_v15 = vadd.f32 %v1638_v9, %v986_v7  ;;  %v1641_v16 = vadd.f32 %v1640_v14, %v1639_v11  ;;  %v1736_v17 = vpop.f32.mrb[11].mxu1 }
 0x14d   : > { %v1060_v19 = vadd.f32 %v987_v15, %v394_v12  ;;  %v990_v20 = vadd.f32 %v1641_v16, %v989_v13  ;;  %v402_v12 = vld [vmem:[#allocation2 + $0x60] sm:$0xff] }
 0x14f   : > { %1081 = vst [vmem:[#allocation2 + $0x20] sm:$0xff] %v1060_v19  ;;  %v1061_v21 = vadd.f32 %v990_v20, %v395_v18  ;;  %v1642_v22 = vpop.f32.mrb[12].mxu0  ;;  %v403_v18 = vld [vmem:[#allocation2 + $0x68] sm:$0xff] }
 0x150   : > { %v994_v23 = vpop.f32.mrb[12].mxu1  ;;  %v1643_v24 = vpop.f32.mrb[13].mxu0 }
 0x151   : > { %1082 = vst [vmem:[#allocation2 + $0x28] sm:$0xff] %v1061_v21  ;;  %v1644_v25 = vadd.f32 %v1643_v24, %v1642_v22  ;;  %v1739_v26 = vpop.f32.mrb[13].mxu1  ;;  %v1645_v27 = vpop.f32.mrb[14].mxu0 }
 0x152   : > { %v997_v29 = vpop.f32.mrb[14].mxu1  ;;  %v1646_v30 = vpop.f32.mrb[15].mxu0 }
 0x153   : > { %v995_v31 = vadd.f32 %v1644_v25, %v994_v23  ;;  %v1647_v32 = vadd.f32 %v1646_v30, %v1645_v27  ;;  %v1740_v33 = vpop.f32.mrb[15].mxu1 }
 0x155   : > { %v1062_v35 = vadd.f32 %v995_v31, %v396_v28  ;;  %v998_v36 = vadd.f32 %v1647_v32, %v997_v29  ;;  %v404_v28 = vld [vmem:[#allocation2 + $0x70] sm:$0xff] }
 0x157   : > { %1083 = vst [vmem:[#allocation2 + $0x30] sm:$0xff] %v1062_v35  ;;  %v1063_v37 = vadd.f32 %v998_v36, %v397_v34  ;;  %v1648_v38 = vpop.f32.mrb[16].mxu0  ;;  %v405_v34 = vld [vmem:[#allocation2 + $0x78] sm:$0xff] }
 0x158   : > { %v1002_v39 = vpop.f32.mrb[16].mxu1  ;;  %v1649_v40 = vpop.f32.mrb[17].mxu0 }
 0x159   : > { %1084 = vst [vmem:[#allocation2 + $0x38] sm:$0xff] %v1063_v37  ;;  %v1650_v41 = vadd.f32 %v1649_v40, %v1648_v38  ;;  %v1743_v42 = vpop.f32.mrb[17].mxu1  ;;  %v1651_v43 = vpop.f32.mrb[18].mxu0 }
 0x15a   : > { %v1005_v46 = vpop.f32.mrb[18].mxu1  ;;  %v1652_v47 = vpop.f32.mrb[19].mxu0 }
 0x15b   : > { %v1003_v48 = vadd.f32 %v1650_v41, %v1002_v39  ;;  %v1653_v49 = vadd.f32 %v1652_v47, %v1651_v43  ;;  %v1744_v50 = vpop.f32.mrb[19].mxu1 }
 0x15d   : > { %v1064_v52 = vadd.f32 %v1003_v48, %v398_v45  ;;  %v1006_v53 = vadd.f32 %v1653_v49, %v1005_v46  ;;  %v406_v45 = vld [vmem:[#allocation2 + $0x80] sm:$0xff] }
 0x15f   : > { %1085 = vst [vmem:[#allocation2 + $0x40] sm:$0xff] %v1064_v52  ;;  %v1065_v44 = vadd.f32 %v1006_v53, %v399_v51  ;;  %v1654_v54 = vpop.f32.mrb[20].mxu0  ;;  %v407_v51 = vld [vmem:[#allocation2 + $0x88] sm:$0xff] }
 0x160   : > { %v1010_v55 = vpop.f32.mrb[20].mxu1  ;;  %v1655_v56 = vpop.f32.mrb[21].mxu0 }
 0x161   : > { %1086 = vst [vmem:[#allocation2 + $0x48] sm:$0xff] %v1065_v44  ;;  %v1656_v57 = vadd.f32 %v1655_v56, %v1654_v54  ;;  %v1747_v58 = vpop.f32.mrb[21].mxu1  ;;  %v1657_v59 = vpop.f32.mrb[22].mxu0 }
 0x162   : > { %v1013_v61 = vpop.f32.mrb[22].mxu1  ;;  %v1658_v62 = vpop.f32.mrb[23].mxu0 }
 0x163   : > { %v1011_v63 = vadd.f32 %v1656_v57, %v1010_v55  ;;  %v1659_v0 = vadd.f32 %v1658_v62, %v1657_v59  ;;  %v1748_v1 = vpop.f32.mrb[23].mxu1 }
 0x165   : > { %v1066_v3 = vadd.f32 %v1011_v63, %v400_v60  ;;  %v1014_v4 = vadd.f32 %v1659_v0, %v1013_v61  ;;  %v408_v60 = vld [vmem:[#allocation2 + $0x90] sm:$0xff] }
 0x167   : > { %1087 = vst [vmem:[#allocation2 + $0x50] sm:$0xff] %v1066_v3  ;;  %v1067_v5 = vadd.f32 %v1014_v4, %v401_v2  ;;  %v1660_v6 = vpop.f32.mrb[24].mxu0  ;;  %v409_v2 = vld [vmem:[#allocation2 + $0x98] sm:$0xff] }
 0x168   : > { %v1018_v7 = vpop.f32.mrb[24].mxu1  ;;  %v1661_v8 = vpop.f32.mrb[25].mxu0 }
 0x169   : > { %1088 = vst [vmem:[#allocation2 + $0x58] sm:$0xff] %v1067_v5  ;;  %v1662_v9 = vadd.f32 %v1661_v8, %v1660_v6  ;;  %v1751_v10 = vpop.f32.mrb[25].mxu1  ;;  %v1663_v11 = vpop.f32.mrb[26].mxu0 }
 0x16a   : > { %v1021_v13 = vpop.f32.mrb[26].mxu1  ;;  %v1664_v14 = vpop.f32.mrb[27].mxu0 }
 0x16b   : > { %v1019_v15 = vadd.f32 %v1662_v9, %v1018_v7  ;;  %v1665_v16 = vadd.f32 %v1664_v14, %v1663_v11  ;;  %v1752_v17 = vpop.f32.mrb[27].mxu1 }
 0x16d   : > { %v1068_v19 = vadd.f32 %v1019_v15, %v402_v12  ;;  %v1022_v20 = vadd.f32 %v1665_v16, %v1021_v13  ;;  %v410_v12 = vld [vmem:[#allocation2 + $0xa0] sm:$0x3] }
 0x16f   : > { %1089 = vst [vmem:[#allocation2 + $0x60] sm:$0xff] %v1068_v19  ;;  %v1069_v21 = vadd.f32 %v1022_v20, %v403_v18  ;;  %v1666_v22 = vpop.f32.mrb[28].mxu0  ;;  %v1102_v18 = vld [vmem:[#allocation2] sm:$0xff] (!%p1500_p11)  ;;  %v1103_v19 = vld [vmem:[#allocation2 + $0x8] sm:$0xff] (!%p1500_p11) }
 0x170   : > { %v1026_v23 = vpop.f32.mrb[28].mxu1  ;;  %v1667_v24 = vpop.f32.mrb[29].mxu0  ;;  %v2177_v20 = vld [vmem:[%s2250_s2] ss:$0 sm:$0xff] (!%p1500_p11) }
 0x171   : > { %1090 = vst [vmem:[#allocation2 + $0x68] sm:$0xff] %v1069_v21  ;;  %v1668_v25 = vadd.f32 %v1667_v24, %v1666_v22  ;;  %v1755_v26 = vpop.f32.mrb[29].mxu1  ;;  %v1669_v27 = vpop.f32.mrb[30].mxu0  ;;  %v1130_v21 = vadd.f32 (!%p1500_p11), %v2177_v20, %v1102_v18  ;;  %v1131_v22 = vadd.f32 (!%p1500_p11), %v2177_v20, %v1103_v19  ;;  %v1105_v24 = vld [vmem:[#allocation2 + $0x18] sm:$0xff] (!%p1500_p11) }
 0x172   : > { %v1029_v29 = vpop.f32.mrb[30].mxu1  ;;  %v1670_v30 = vpop.f32.mrb[31].mxu0 }
 0x173   : > { %v1027_v31 = vadd.f32 %v1668_v25, %v1026_v23  ;;  %v1671_v32 = vadd.f32 %v1670_v30, %v1669_v27  ;;  %v1756_v33 = vpop.f32.mrb[31].mxu1  ;;  %v1104_v23 = vld [vmem:[#allocation2 + $0x10] sm:$0xff] (!%p1500_p11)  ;;  %v1106_v25 = vld [vmem:[#allocation2 + $0x20] sm:$0xff] (!%p1500_p11)  ;;  %v1133_v27 = vadd.f32 (!%p1500_p11), %v2177_v20, %v1105_v24 }
 0x174   : > { %v1132_v26 = vadd.f32 (!%p1500_p11), %v2177_v20, %v1104_v23  ;;  %v1108_v30 = vld [vmem:[#allocation2 + $0x30] sm:$0xff] (!%p1500_p11)  ;;  %v1152_v33 = vmax.f32 (!%p1500_p11), %v1131_v22, 0.0 }
 0x175   : > { %v1070_v35 = vadd.f32 %v1027_v31, %v404_v28  ;;  %v1030_v36 = vadd.f32 %v1671_v32, %v1029_v29  ;;  %v1107_v28 = vld [vmem:[#allocation2 + $0x28] sm:$0xff] (!%p1500_p11)  ;;  %v1134_v29 = vadd.f32 (!%p1500_p11), %v2177_v20, %v1106_v25  ;;  %v1109_v31 = vld [vmem:[#allocation2 + $0x38] sm:$0xff] (!%p1500_p11)  ;;  %v1151_v32 = vmax.f32 (!%p1500_p11), %v1130_v21, 0.0 }
 0x177   : > { %1091 = vst [vmem:[#allocation2 + $0x70] sm:$0xff] %v1070_v35  ;;  %v1071_v37 = vadd.f32 %v1030_v36, %v405_v34  ;;  %v1672_v38 = vpop.f32.mrb[32].mxu0  ;;  %v1135_v34 = vadd.f32 (!%p1500_p11), %v2177_v20, %v1107_v28  ;;  %v1136_v35 = vadd.f32 (!%p1500_p11), %v2177_v20, %v1108_v30  ;;  %v1110_v36 = vld [vmem:[#allocation2 + $0x40] sm:$0xff] (!%p1500_p11) }
 0x178   : > { %v1034_v39 = vpop.f32.mrb[32].mxu1  ;;  %v1673_v40 = vpop.f32.mrb[33].mxu0 }
 0x179   : > { %1092 = vst [vmem:[#allocation2 + $0x78] sm:$0xff] %v1071_v37  ;;  %v1674_v41 = vadd.f32 %v1673_v40, %v1672_v38  ;;  %v1759_v42 = vpop.f32.mrb[33].mxu1  ;;  %v1675_v43 = vpop.f32.mrb[34].mxu0  ;;  %v1111_v37 = vld [vmem:[#allocation2 + $0x48] sm:$0xff] (!%p1500_p11)  ;;  %v1112_v38 = vld [vmem:[#allocation2 + $0x50] sm:$0xff] (!%p1500_p11)  ;;  %v1154_v40 = vmax.f32 (!%p1500_p11), %v1133_v27, 0.0 }
 0x17a   : > { %v1037_v46 = vpop.f32.mrb[34].mxu1  ;;  %v1676_v47 = vpop.f32.mrb[35].mxu0  ;;  %v1137_v42 = vadd.f32 (!%p1500_p11), %v2177_v20, %v1109_v31 }
 0x17b   : > { %v1035_v48 = vadd.f32 %v1674_v41, %v1034_v39  ;;  %v1677_v49 = vadd.f32 %v1676_v47, %v1675_v43  ;;  %v1760_v50 = vpop.f32.mrb[35].mxu1  ;;  %v1153_v39 = vmax.f32 (!%p1500_p11), %v1132_v26, 0.0  ;;  %v1155_v41 = vmax.f32 (!%p1500_p11), %v1134_v29, 0.0  ;;  %v1113_v43 = vld [vmem:[#allocation2 + $0x58] sm:$0xff] (!%p1500_p11) }
 0x17c   : > { %v1156_v47 = vmax.f32 (!%p1500_p11), %v1135_v34, 0.0  ;;  %v1115_v50 = vld [vmem:[#allocation2 + $0x68] sm:$0xff] (!%p1500_p11) }
 0x17d   : > { %v1072_v52 = vadd.f32 %v1035_v48, %v406_v45  ;;  %v1038_v53 = vadd.f32 %v1677_v49, %v1037_v46  ;;  %v1114_v45 = vld [vmem:[#allocation2 + $0x60] sm:$0xff] (!%p1500_p11)  ;;  %v1552_v46 = vpack.c.bf16 (!%p1500_p11), %v1152_v33, %v1151_v32  ;;  %v1157_v48 = vmax.f32 (!%p1500_p11), %v1136_v35, 0.0 }
 0x17e   : > { %v1138_v49 = vadd.f32 (!%p1500_p11), %v2177_v20, %v1110_v36 }
 0x17f   : > { %1093 = vst [vmem:[#allocation2 + $0x80] sm:$0xff] %v1072_v52  ;;  %v1073_v44 = vadd.f32 %v1038_v53, %v407_v51  ;;  %v1678_v54 = vpop.f32.mrb[36].mxu0  ;;  %v1557_v51 = vpack.c.bf16 (!%p1500_p11), %v1154_v40, %v1153_v39  ;;  %v1158_v52 = vmax.f32 (!%p1500_p11), %v1137_v42, 0.0  ;;  %v1139_v53 = vadd.f32 (!%p1500_p11), %v2177_v20, %v1111_v37  ;;  %1553 = vst [vmem:[%s2251_s3] sm:$0xff] (!%p1500_p11), %v1552_v46  }
 0x180   : > { %v1042_v55 = vpop.f32.mrb[36].mxu1  ;;  %v1679_v56 = vpop.f32.mrb[37].mxu0 }
 0x181   : > { %1094 = vst [vmem:[#allocation2 + $0x88] sm:$0xff] %v1073_v44  ;;  %v1680_v57 = vadd.f32 %v1679_v56, %v1678_v54  ;;  %v1763_v58 = vpop.f32.mrb[37].mxu1  ;;  %v1681_v59 = vpop.f32.mrb[38].mxu0  ;;  %v1140_v44 = vadd.f32 (!%p1500_p11), %v2177_v20, %v1112_v38  ;;  %v1116_v54 = vld [vmem:[#allocation2 + $0x70] sm:$0xff] (!%p1500_p11)  ;;  %v1562_v56 = vpack.c.bf16 (!%p1500_p11), %v1156_v47, %v1155_v41  ;;  %1599 = vst [vmem:[%s2251_s3 + $0x8] sm:$0xff] (!%p1500_p11), %v1557_v51  }
 0x182   : > { %v1045_v61 = vpop.f32.mrb[38].mxu1  ;;  %v1682_v62 = vpop.f32.mrb[39].mxu0  ;;  %v1141_v58 = vadd.f32 (!%p1500_p11), %v2177_v20, %v1113_v43 }
 0x183   : > { %v1043_v63 = vadd.f32 %v1680_v57, %v1042_v55  ;;  %v1683_v0 = vadd.f32 %v1682_v62, %v1681_v59  ;;  %v1764_v1 = vpop.f32.mrb[39].mxu1  ;;  %v1117_v55 = vld [vmem:[#allocation2 + $0x78] sm:$0xff] (!%p1500_p11)  ;;  %v1159_v57 = vmax.f32 (!%p1500_p11), %v1138_v49, 0.0  ;;  %v1142_v59 = vadd.f32 (!%p1500_p11), %v2177_v20, %v1114_v45  ;;  %1600 = vst [vmem:[%s2251_s3 + $0x10] sm:$0xff] (!%p1500_p11), %v1562_v56  }
 0x184   : > { %v1567_v62 = vpack.c.bf16 (!%p1500_p11), %v1158_v52, %v1157_v48  ;;  %v1143_v1 = vadd.f32 (!%p1500_p11), %v2177_v20, %v1115_v50 }
 0x185   : > { %v1074_v3 = vadd.f32 %v1043_v63, %v408_v60  ;;  %v1046_v4 = vadd.f32 %v1683_v0, %v1045_v61  ;;  %v1160_v63 = vmax.f32 (!%p1500_p11), %v1139_v53, 0.0  ;;  %v1161_v0 = vmax.f32 (!%p1500_p11), %v1140_v44, 0.0 }
 0x186   : > { %v1118_v60 = vld [vmem:[#allocation2 + $0x80] sm:$0xff] (!%p1500_p11)  ;;  %1601 = vst [vmem:[%s2251_s3 + $0x18] sm:$0xff] (!%p1500_p11), %v1567_v62  }
 0x187   : > { %1095 = vst [vmem:[#allocation2 + $0x90] sm:$0xff] %v1074_v3  ;;  %v1075_v5 = vadd.f32 %v1046_v4, %v409_v2  ;;  %v1684_v6 = vpop.f32.mrb[40].mxu0  ;;  %v1162_v3 = vmax.f32 (!%p1500_p11), %v1141_v58, 0.0  ;;  %v1163_v4 = vmax.f32 (!%p1500_p11), %v1142_v59, 0.0 }
 0x188   : > { %v1050_v7 = vpop.f32.mrb[40].mxu1  ;;  %v1685_v8 = vpop.f32.mrb[41].mxu0  ;;  %v1119_v61 = vld [vmem:[#allocation2 + $0x88] sm:$0xff] (!%p1500_p11) }
 0x189   : > { %1096 = vst [vmem:[#allocation2 + $0x98] sm:$0xff] %v1075_v5  ;;  %v1686_v9 = vadd.f32 %v1685_v8, %v1684_v6  ;;  %v1767_v10 = vpop.f32.mrb[41].mxu1  ;;  %v1687_v11 = vpop.f32.mrb[42].mxu0  ;;  %1101 = sbr.rel (%p1500_p11) target bundleno = 414 (0x19e), region = 66  ;;  %v1144_v5 = vadd.f32 (!%p1500_p11), %v2177_v20, %v1116_v54  ;;  %v1145_v6 = vadd.f32 (!%p1500_p11), %v2177_v20, %v1117_v55  ;;  %v1572_v8 = vpack.c.bf16 (!%p1500_p11), %v1160_v63, %v1159_v57 }
 0x18a   : > { %v1053_v13 = vpop.f32.mrb[42].mxu1  ;;  %v1688_v14 = vpop.f32.mrb[43].mxu0  ;;  %v1146_v10 = vadd.f32 (!%p1500_p11), %v2177_v20, %v1118_v60  ;;  %v1147_v11 = vadd.f32 (!%p1500_p11), %v2177_v20, %v1119_v61 }
 0x18b   : > { %v1051_v15 = vadd.f32 %v1686_v9, %v1050_v7  ;;  %v1768_v16 = vpop.f32.mrb[43].mxu1  ;;  %v1164_v9 = vmax.f32 (!%p1500_p11), %v1143_v1, 0.0  ;;  %v1577_v13 = vpack.c.bf16 (!%p1500_p11), %v1162_v3, %v1161_v0  ;;  %v1165_v14 = vmax.f32 (!%p1500_p11), %v1144_v5, 0.0  ;;  %1602 = vst [vmem:[%s2251_s3 + $0x20] sm:$0xff] (!%p1500_p11), %v1572_v8  }
 0x18c   : > { %v1167_v18 = vmax.f32 (!%p1500_p11), %v1146_v10, 0.0  ;;  %v1168_v19 = vmax.f32 (!%p1500_p11), %v1147_v11, 0.0 }
 0x18d   : > { %v1076_v17 = vadd.f32 %v1051_v15, %v410_v12  ;;  %v1166_v15 = vmax.f32 (!%p1500_p11), %v1145_v6, 0.0  ;;  %1603 = vst [vmem:[%s2251_s3 + $0x28] sm:$0xff] (!%p1500_p11), %v1577_v13  }
 0x18e   : > { %v1120_v2 = vld [vmem:[#allocation2 + $0x90] sm:$0xff] (!%p1500_p11)  ;;  %v1592_v25 = vpack.c.bf16 (!%p1500_p11), %v1168_v19, %v1167_v18 }
 0x18f   : > { %1097 = vst [vmem:[#allocation2 + $0xa0] sm:$0x3] %v1076_v17  ;;  %v1148_v16 = vadd.f32 (!%p1500_p11), %v2177_v20, %v1120_v2  ;;  %v1582_v17 = vpack.c.bf16 (!%p1500_p11), %v1164_v9, %v1163_v4  ;;  %v1587_v22 = vpack.c.bf16 (!%p1500_p11), %v1166_v15, %v1165_v14 }
 0x190   : > { %v1121_v7 = vld [vmem:[#allocation2 + $0x98] sm:$0xff]  ;;  %1606 = vst [vmem:[%s2251_s3 + $0x40] sm:$0xff] %v1592_v25  }
 0x191   : > { %v1149_v21 = vadd.f32 %v2177_v20, %v1121_v7  ;;  %v1169_v23 = vmax.f32 %v1148_v16, 0.0  ;;  %1604 = vst [vmem:[%s2251_s3 + $0x30] sm:$0xff] %v1582_v17   ;;  %1605 = vst [vmem:[%s2251_s3 + $0x38] sm:$0xff] %v1587_v22  }
 0x193   : > { %v1170_v26 = vmax.f32 %v1149_v21, 0.0 }
 0x195   : > { %v1597_v28 = vpack.c.bf16 %v1170_v26, %v1169_v23 }
 0x196   : > { %v1122_v12 = vld [vmem:[#allocation2 + $0xa0] sm:$0x3] }
 0x197   : > { %v1150_v24 = vadd.f32 %v2177_v20, %v1122_v12  ;;  %1607 = vst [vmem:[%s2251_s3 + $0x48] sm:$0xff] %v1597_v28  }
 0x199   : > { %v1171_v27 = vmax.f32 %v1150_v24, 0.0 }
 0x19b   : > { %v1548_v29 = vpack.c.bf16 %v1171_v27, %v1171_v27 }
 0x19d   : > { %1277 = vst [vmem:[%s2251_s3 + $0x50] sm:$0x1] %v1548_v29 }
 0x19e PF: > { %s13_s16 = sadd.s32 1, %s1919_s16   ;;  %s2252_s12 = smov %s1907_s13 }
 0x19f   : > { %p10_p12 = scmp.ge.s32.totalorder %s13_s16, 5   ;;  %s2253_s13 = smov %s1979_s20 }
 0x1a0   : > { %s2254_s14 = smov %s1915_s15  ;;  %s2255_s15 = smov %s2257_s17 }
 0x1a1   :  { %12 = sbr.rel (!%p10_p12) target bundleno = 3 (0x3), region = 113 }

// kernel: vggnet_forward.20
= control target key start
LH: loop header
LB: loop body
LE: loop exit
PB: predicated region body
PF: predicated region fallthrough
CT: control target
= control target key end

     0   :  { %s1435_s12 = smov 0   ;;  %s1437_s13 = smov 0   ;;  %s1593_s0 = inlined_call_operand.vmem [shape: bf16[50,1152], index: 0, kind: input, shape index: {}]   ;;  %s1594_s1 = inlined_call_operand.vmem [shape: bf16[1152,256], index: 1, kind: input, shape index: {}]   ;;  %s1595_s2 = inlined_call_operand.vmem [shape: f32[1,256], index: 2, kind: input, shape index: {}]   ;;  %s1596_s3 = inlined_call_operand.vmem [shape: bf16[50,256], index: 3, kind: output, shape index: {}]  }
   0x1   :  { %s1439_s14 = smov 0   ;;  %s1441_s15 = smov 0  }
   0x2   :  { %s1443_s16 = smov 0  }
   0x3 LB: > { %s25_s17 = sadd.s32 1, %s1407_s15  ;;  %p48_p1 = scmp.ne.s32.totalorder %s1399_s13, %s1395_s12  ;;  %s1411_s16 = sphi %s1443_s16, %s13_s16   ;;  %s1407_s15 = sphi %s1441_s15, %s1600_s15   ;;  %s1403_s14 = sphi %s1439_s14, %s1599_s14   ;;  %s1399_s13 = sphi %s1437_s13, %s1598_s13   ;;  %s1395_s12 = sphi %s1435_s12, %s1597_s12  }
   0x4   : > { %p26_p0 = scmp.ge.s32.totalorder %s25_s17, 3  ;;  %p49_p2 = scmp.eq.s32.totalorder %s1411_s16, 0 }
   0x5   : > { %s41_s19 = sadd.s32 1, %s1399_s13  ;;  %p1129_p5 = scmp.ge.s32.totalorder %s1411_s16, 3 }
   0x6   : > { %s1602_s17 = smov (%p26_p0, %s25_s17), 0  ;;  %p50_p3 = por %p49_p2, %p48_p1 }
   0x7   : > { %s37_s18 = ssub.s32 %s1407_s15, %s1602_s17  ;;  %164 = sbr.rel (%p1129_p5) target bundleno = 27 (0x1b), region = 20 }
   0x8   : > { %p39_p4 = scmp.eq.s32.totalorder %s37_s18, 0 }
   0xa   : > { %s1470_s20 = scalar_select %p39_p4, %s1399_s13, %s41_s19  }
   0xe   : > { %167 = sbr.rel (!%p50_p3) target bundleno = 27 (0x1b), region = 24  ;;  %s169_s21 = sand.u32 (%p50_p3), 1, %s1399_s13  }
   0xf   : > { %s1221_s22 = smul.u32 (%p50_p3), 12, %s1407_s15 }
  0x10   : > { %s1242_s23 = smul.u32 (%p50_p3), 84, %s169_s21 }
  0x11   : > { %s177_s26 = scalar_lea.vmem (%p50_p3), %s1593_s0, %s1221_s22 }
  0x12   : > { %v192_v0 = vld [vmem:[%s177_s26] sm:$0xff] (%p50_p3)  ;;  %v196_v2 = vld [vmem:[%s177_s26 + $0x48] sm:$0xff] (%p50_p3)  ;;  %s171_s27 = scalar_lea.vmem (%p50_p3), [#allocation3], %s1242_s23  ;;  %v200_v4 = vld [vmem:[%s177_s26 + $0x90] sm:$0xff] (%p50_p3) }
  0x13   : > { %v194_v1 = vld [vmem:[%s177_s26 + $0x24] sm:$0xff] (%p50_p3)  ;;  %193 = vst [vmem:[%s171_s27] sm:$0xff] (%p50_p3), %v192_v0  ;;  %197 = vst [vmem:[%s171_s27 + $0x18] sm:$0xff] (%p50_p3), %v196_v2  ;;  %v198_v3 = vld [vmem:[%s177_s26 + $0x6c] sm:$0xff] (%p50_p3) }
  0x14   : > { %195 = vst [vmem:[%s171_s27 + $0xc] sm:$0xff] (%p50_p3), %v194_v1  ;;  %v202_v5 = vld [vmem:[%s177_s26 + $0xb4] sm:$0xff] (%p50_p3)  ;;  %199 = vst [vmem:[%s171_s27 + $0x24] sm:$0xff] (%p50_p3), %v198_v3  ;;  %v1131_v7 = vld [vmem:[%s177_s26 + $0x8] sm:$0xf] (%p50_p3) }
  0x15   : > { %201 = vst [vmem:[%s171_s27 + $0x30] sm:$0xff] %v200_v4  ;;  %203 = vst [vmem:[%s171_s27 + $0x3c] sm:$0xff] %v202_v5  ;;  %v204_v6 = vld [vmem:[%s177_s26 + $0xd8] sm:$0xff]  ;;  %v1133_v8 = vld [vmem:[%s177_s26 + $0x2c] sm:$0xf] }
  0x16   : > { %205 = vst [vmem:[%s171_s27 + $0x48] sm:$0xff] %v204_v6  ;;  %1132 = vst [vmem:[%s171_s27 + $0x8] sm:$0xf] %v1131_v7  ;;  %v1135_v9 = vld [vmem:[%s177_s26 + $0x50] sm:$0xf] }
  0x17   : > { %1134 = vst [vmem:[%s171_s27 + $0x14] sm:$0xf] %v1133_v8  ;;  %v1137_v10 = vld [vmem:[%s177_s26 + $0x74] sm:$0xf]  ;;  %v1139_v11 = vld [vmem:[%s177_s26 + $0x98] sm:$0xf] }
  0x18   : > { %1136 = vst [vmem:[%s171_s27 + $0x20] sm:$0xf] %v1135_v9  ;;  %1138 = vst [vmem:[%s171_s27 + $0x2c] sm:$0xf] %v1137_v10  ;;  %v1141_v12 = vld [vmem:[%s177_s26 + $0xbc] sm:$0xf] }
  0x19   : > { %1140 = vst [vmem:[%s171_s27 + $0x38] sm:$0xf] %v1139_v11  ;;  %v1143_v13 = vld [vmem:[%s177_s26 + $0xe0] sm:$0xf]  ;;  %1142 = vst [vmem:[%s171_s27 + $0x44] sm:$0xf] %v1141_v12 }
  0x1a   : > { %1144 = vst [vmem:[%s171_s27 + $0x50] sm:$0xf] %v1143_v13 }
  0x1b PF: > { %p1145_p6 = scmp.ge.s32.totalorder %s1411_s16, 1  ;;  %p246_p7 = scmp.lt.s32.totalorder %s1411_s16, 4 }
  0x1d   : > { %p247_p8 = pnand %p1145_p6, %p246_p7 }
  0x1e   : > { %s253_s28 = sand.u32 (!%p247_p8), 1, %s1395_s12   ;;  %s297_s29 = smul.u32 (!%p247_p8), 48, %s1403_s14 }
  0x1f   : > { %250 = sbr.rel (%p247_p8) target bundleno = 368 (0x170), region = 54  ;;  %p1148_p10 = scmp.ne.s32.totalorder (!%p247_p8), %s1403_s14, 0 }
  0x20   : > { %s1243_s30 = smul.u32 (!%p247_p8), 84, %s253_s28  ;;  %p299_p9 = scmp.lt.s32.totalorder (!%p247_p8), %s297_s29, 143 }
  0x22   : > { %s1487_s8 = scalar_lea.vmem (!%p247_p8), [#allocation3], %s1243_s30 }
  0x26   : > { %s1604_s29 = smov (!%p299_p9, %s297_s29), 143  ;;  %330 = sbr.rel (%p1148_p10) target bundleno = 47 (0x2f), region = 62 }
  0x27   : > { %s1222_s4 = sshll.u32 %s1604_s29, 3  ;;  %v1413_v14 = vmov (!%p1148_p10), 0.0  }
  0x28   : > { %s1485_s7 = scalar_lea.vmem %s1594_s1, %s1222_s4  ;;  %331 = vst [vmem:[#allocation2] sm:$0xff] (!%p1148_p10), %v1413_v14  ;;  %332 = vst [vmem:[#allocation2 + $0x8] sm:$0xff] (!%p1148_p10), %v1413_v14 }
  0x29   : > { %333 = vst [vmem:[#allocation2 + $0x10] sm:$0xff] (!%p1148_p10), %v1413_v14  ;;  %334 = vst [vmem:[#allocation2 + $0x18] sm:$0xff] (!%p1148_p10), %v1413_v14 }
  0x2a   : > { %335 = vst [vmem:[#allocation2 + $0x20] sm:$0xff] (!%p1148_p10), %v1413_v14  ;;  %336 = vst [vmem:[#allocation2 + $0x28] sm:$0xff] (!%p1148_p10), %v1413_v14 }
  0x2b   : > { %337 = vst [vmem:[#allocation2 + $0x30] sm:$0xff] (!%p1148_p10), %v1413_v14  ;;  %338 = vst [vmem:[#allocation2 + $0x38] sm:$0xff] (!%p1148_p10), %v1413_v14 }
  0x2c   : > { %339 = vst [vmem:[#allocation2 + $0x40] sm:$0xff] (!%p1148_p10), %v1413_v14  ;;  %340 = vst [vmem:[#allocation2 + $0x48] sm:$0xff] (!%p1148_p10), %v1413_v14 }
  0x2d   : > { %341 = vst [vmem:[#allocation2 + $0x50] sm:$0xff] %v1413_v14  ;;  %342 = vst [vmem:[#allocation2 + $0x58] sm:$0xff] %v1413_v14 }
  0x2e   : > { %343 = vst [vmem:[#allocation2 + $0x60] sm:$0x3] %v1413_v14  ;;  %344 = vst [vmem:[#allocation2 + $0x68] sm:$0x3] %v1413_v14 }
  0x2f PF: > { %v1286_v15 = vld [vmem:[%s1485_s7 + $0x4] ss:$8 sps:$4 sm:$0xff]   ;;  %v1288_v16 = vld [vmem:[%s1485_s7] ss:$8 sps:$4 sm:$0xff]   ;;  %v1414_v17 = vmov 0   ;;  %p1209_p11 = scmp.ne.s32.totalorder %s1403_s14, 2 }
  0x30   : > { %823 = vmatprep.mubr.bf16.mxu0 %v1414_v17  ;;  %720 = vmatprep.subr.bf16.mxu1 %v1286_v15  ;;  %v1289_v18 = vld [vmem:[%s1485_s7 + $0x14] ss:$8 sps:$4 sm:$0xff]   ;;  %v1291_v19 = vld [vmem:[%s1485_s7 + $0x10] ss:$8 sps:$4 sm:$0xff]   ;;  %v1292_v20 = vld [vmem:[%s1485_s7 + $0x24] ss:$8 sps:$4 sm:$0xff]  }
  0x31   : > { %721 = vmatpush1.bf16.msra.mxu1 %v1288_v16  ;;  %v1294_v21 = vld [vmem:[%s1485_s7 + $0x20] ss:$8 sps:$4 sm:$0xff]   ;;  %v1295_v22 = vld [vmem:[%s1485_s7 + $0x34] ss:$8 sps:$4 sm:$0xff]   ;;  %v1297_v23 = vld [vmem:[%s1485_s7 + $0x30] ss:$8 sps:$4 sm:$0xff]  }
  0x32   : > { %722 = vmatprep.subr.bf16.mxu1 %v1289_v18  ;;  %v1310_v24 = vld [vmem:[%s1485_s7 + $0x104] ss:$8 sps:$4 sm:$0xff]   ;;  %v1312_v25 = vld [vmem:[%s1485_s7 + $0x100] ss:$8 sps:$4 sm:$0xff]   ;;  %v1316_v27 = vld [vmem:[%s1485_s7 + $0x114] ss:$8 sps:$4 sm:$0xff]  }
  0x33   : > { %v1298_v26 = vld [vmem:[%s1485_s7 + $0x44] ss:$8 sps:$4 sm:$0xff]   ;;  %791 = vmatprep.subr.bf16.mxu0 %v1310_v24  ;;  %v1318_v28 = vld [vmem:[%s1485_s7 + $0x110] ss:$8 sps:$4 sm:$0xff]   ;;  %v1300_v29 = vld [vmem:[%s1485_s7 + $0x40] ss:$8 sps:$4 sm:$0xff]  }
  0x34   : > { %792 = vmatpush1.bf16.msra.mxu0 %v1312_v25  ;;  %v1301_v30 = vld [vmem:[%s1485_s7 + $0x54] ss:$8 sps:$4 sm:$0xff]   ;;  %v1322_v31 = vld [vmem:[%s1485_s7 + $0x124] ss:$8 sps:$4 sm:$0xff]   ;;  %v1324_v32 = vld [vmem:[%s1485_s7 + $0x120] ss:$8 sps:$4 sm:$0xff]  }
  0x35   : > { %723 = vmatpush1.bf16.msra.mxu1 %v1291_v19  ;;  %793 = vmatprep.subr.bf16.mxu0 %v1316_v27  ;;  %v1303_v33 = vld [vmem:[%s1485_s7 + $0x50] ss:$8 sps:$4 sm:$0xff]   ;;  %v1328_v34 = vld [vmem:[%s1485_s7 + $0x134] ss:$8 sps:$4 sm:$0xff]   ;;  %v1304_v35 = vld [vmem:[%s1485_s7 + $0x64] ss:$8 sps:$4 sm:$0xff]  }
  0x36   : > { %724 = vmatprep.subr.bf16.mxu1 %v1292_v20  ;;  %v1330_v36 = vld [vmem:[%s1485_s7 + $0x130] ss:$8 sps:$4 sm:$0xff]   ;;  %v1306_v37 = vld [vmem:[%s1485_s7 + $0x60] ss:$8 sps:$4 sm:$0xff]   ;;  %v1334_v38 = vld [vmem:[%s1485_s7 + $0x144] ss:$8 sps:$4 sm:$0xff]  }
  0x37   : > { %v1307_v39 = vld [vmem:[%s1485_s7 + $0x74] ss:$8 sps:$4 sm:$0xff]   ;;  %v1336_v40 = vld [vmem:[%s1485_s7 + $0x140] ss:$8 sps:$4 sm:$0xff]   ;;  %v1309_v41 = vld [vmem:[%s1485_s7 + $0x70] ss:$8 sps:$4 sm:$0xff]  }
  0x38   : > { %794 = vmatpush1.bf16.msra.mxu0 %v1318_v28  ;;  %v1340_v42 = vld [vmem:[%s1485_s7 + $0x154] ss:$8 sps:$4 sm:$0xff]   ;;  %v1313_v43 = vld [vmem:[%s1485_s7 + $0x84] ss:$8 sps:$4 sm:$0xff]   ;;  %v1342_v44 = vld [vmem:[%s1485_s7 + $0x150] ss:$8 sps:$4 sm:$0xff]  }
  0x39   : > { %725 = vmatpush1.bf16.msra.mxu1 %v1294_v21  ;;  %795 = vmatprep.subr.bf16.mxu0 %v1322_v31  ;;  %v1315_v45 = vld [vmem:[%s1485_s7 + $0x80] ss:$8 sps:$4 sm:$0xff]   ;;  %v1346_v46 = vld [vmem:[%s1485_s7 + $0x164] ss:$8 sps:$4 sm:$0xff]   ;;  %v1319_v47 = vld [vmem:[%s1485_s7 + $0x94] ss:$8 sps:$4 sm:$0xff]  }
  0x3a   : > { %726 = vmatprep.subr.bf16.mxu1 %v1295_v22  ;;  %v1321_v48 = vld [vmem:[%s1485_s7 + $0x90] ss:$8 sps:$4 sm:$0xff]   ;;  %v1348_v49 = vld [vmem:[%s1485_s7 + $0x160] ss:$8 sps:$4 sm:$0xff]   ;;  %v1352_v51 = vld [vmem:[%s1485_s7 + $0x174] ss:$8 sps:$4 sm:$0xff]  }
  0x3b   : > { %v1361_v50 = vld [vmem:[%s1487_s8 + $0x4] ss:$12 sps:$4 sm:$0xff]   ;;  %v1325_v52 = vld [vmem:[%s1485_s7 + $0xa4] ss:$8 sps:$4 sm:$0xff]   ;;  %v1354_v53 = vld [vmem:[%s1485_s7 + $0x170] ss:$8 sps:$4 sm:$0xff]  }
  0x3c   : > { %796 = vmatpush1.bf16.msra.mxu0 %v1324_v32  ;;  %752 = vmatprep.mubr.bf16.mxu1 %v1361_v50  ;;  %v1327_v54 = vld [vmem:[%s1485_s7 + $0xa0] ss:$8 sps:$4 sm:$0xff]   ;;  %v1331_v55 = vld [vmem:[%s1485_s7 + $0xb4] ss:$8 sps:$4 sm:$0xff]   ;;  %v1358_v56 = vld [vmem:[%s1487_s8 + $0x8] ss:$12 sps:$4 sm:$0xff]  }
  0x3d   : > { %727 = vmatpush1.bf16.msra.mxu1 %v1297_v23  ;;  %797 = vmatprep.subr.bf16.mxu0 %v1328_v34  ;;  %v1333_v57 = vld [vmem:[%s1485_s7 + $0xb0] ss:$8 sps:$4 sm:$0xff]   ;;  %v1337_v58 = vld [vmem:[%s1485_s7 + $0xc4] ss:$8 sps:$4 sm:$0xff]   ;;  %v1339_v59 = vld [vmem:[%s1485_s7 + $0xc0] ss:$8 sps:$4 sm:$0xff]  }
  0x3e   : > { %728 = vmatprep.subr.bf16.mxu1 %v1298_v26  ;;  %v1343_v60 = vld [vmem:[%s1485_s7 + $0xd4] ss:$8 sps:$4 sm:$0xff]   ;;  %v1345_v62 = vld [vmem:[%s1485_s7 + $0xd0] ss:$8 sps:$4 sm:$0xff]   ;;  %v1349_v63 = vld [vmem:[%s1485_s7 + $0xe4] ss:$8 sps:$4 sm:$0xff]  }
  0x3f   : > { %v1362_v61 = vld [vmem:[%s1487_s8 + $0x20] ss:$12 sps:$4 sm:$0xff]   ;;  %v1351_v0 = vld [vmem:[%s1485_s7 + $0xe0] ss:$8 sps:$4 sm:$0xff]  }
  0x40   : > { %798 = vmatpush1.bf16.msra.mxu0 %v1330_v36  ;;  %v1355_v1 = vld [vmem:[%s1485_s7 + $0xf4] ss:$8 sps:$4 sm:$0xff]   ;;  %v1357_v3 = vld [vmem:[%s1485_s7 + $0xf0] ss:$8 sps:$4 sm:$0xff]   ;;  %v345_v25 = vld [vmem:[#allocation2] sm:$0xff] }
  0x41   : > { %729 = vmatpush1.bf16.msra.mxu1 %v1300_v29  ;;  %799 = vmatprep.subr.bf16.mxu0 %v1334_v38  ;;  %v1366_v2 = vld [vmem:[%s1487_s8 + $0x38] ss:$12 sps:$4 sm:$0xff]   ;;  %v1359_v4 = vld [vmem:[%s1487_s8] ss:$12 sps:$4 sm:$0xff]   ;;  %v1363_v5 = vld [vmem:[%s1487_s8 + $0x1c] ss:$12 sps:$4 sm:$0xff]  }
  0x42   : > { %730 = vmatprep.subr.bf16.mxu1 %v1301_v30  ;;  %v1370_v6 = vld [vmem:[%s1487_s8 + $0x50] ss:$0 sps:$4 sm:$0x11]   ;;  %v1365_v7 = vld [vmem:[%s1487_s8 + $0x18] ss:$12 sps:$4 sm:$0xff]  }
  0x43   : > { %v1367_v8 = vld [vmem:[%s1487_s8 + $0x34] ss:$12 sps:$4 sm:$0xff]   ;;  %v371_v9 = vld [vmem:[%s1487_s8 + $0x48] sm:$0x11]  ;;  %v1369_v10 = vld [vmem:[%s1487_s8 + $0x30] ss:$12 sps:$4 sm:$0xff]  }
  0x44   : > { %800 = vmatpush1.bf16.msra.mxu0 %v1336_v40  ;;  %v1159_v11 = vcombine.high %v371_v9, %v371_v9  ;;  %v1158_v12 = vcombine.low %v371_v9, %v371_v9  ;;  %v346_v28 = vld [vmem:[#allocation2 + $0x8] sm:$0xff]  ;;  %v347_v31 = vld [vmem:[#allocation2 + $0x10] sm:$0xff] }
  0x45   : > { %731 = vmatpush1.bf16.msra.mxu1 %v1303_v33  ;;  %801 = vmatprep.subr.bf16.mxu0 %v1340_v42 }
  0x46   : > { %732 = vmatprep.subr.bf16.mxu1 %v1304_v35  ;;  %v348_v35 = vld [vmem:[#allocation2 + $0x18] sm:$0xff] }
  0x48   : > { %802 = vmatpush1.bf16.msra.mxu0 %v1342_v44 }
  0x49   : > { %733 = vmatpush1.bf16.msra.mxu1 %v1306_v37  ;;  %803 = vmatprep.subr.bf16.mxu0 %v1346_v46 }
  0x4a   : > { %734 = vmatprep.subr.bf16.mxu1 %v1307_v39 }
  0x4c   : > { %804 = vmatpush1.bf16.msra.mxu0 %v1348_v49 }
  0x4d   : > { %735 = vmatpush1.bf16.msra.mxu1 %v1309_v41  ;;  %805 = vmatprep.subr.bf16.mxu0 %v1352_v51  ;;  %v351_v51 = vld [vmem:[#allocation2 + $0x30] sm:$0xff] }
  0x4e   : > { %736 = vmatprep.subr.bf16.mxu1 %v1313_v43 }
  0x50   : > { %806 = vmatpush1.bf16.msra.mxu0 %v1354_v53 }
  0x51   : > { %737 = vmatpush1.bf16.msra.mxu1 %v1315_v45  ;;  %v349_v45 = vld [vmem:[#allocation2 + $0x20] sm:$0xff] }
  0x52   : > { %738 = vmatprep.subr.bf16.mxu1 %v1319_v47 }
  0x53   : > { %824 = vmatmul.mubr.bf16.vlgmr.msra.gmra.mrb[0].mxu0 %v1358_v56 }
  0x54   : > { %833 = vmatprep.mubr.bf16.mxu0 %v1414_v17 }
  0x55   : > { %739 = vmatpush1.bf16.msra.mxu1 %v1321_v48  ;;  %v350_v48 = vld [vmem:[#allocation2 + $0x28] sm:$0xff] }
  0x56   : > { %740 = vmatprep.subr.bf16.mxu1 %v1325_v52 }
  0x59   : > { %741 = vmatpush1.bf16.msra.mxu1 %v1327_v54 }
  0x5a   : > { %742 = vmatprep.subr.bf16.mxu1 %v1331_v55  ;;  %v352_v55 = vld [vmem:[#allocation2 + $0x38] sm:$0xff] }
  0x5b   : > { %834 = vmatmul.mubr.bf16.gmra.mrb[4].mxu0 %v1362_v61  ;;  %v353_v61 = vld [vmem:[#allocation2 + $0x40] sm:$0xff] }
  0x5c   : > { %843 = vmatprep.mubr.bf16.mxu0 %v1414_v17 }
  0x5d   : > { %743 = vmatpush1.bf16.msra.mxu1 %v1333_v57 }
  0x5e   : > { %744 = vmatprep.subr.bf16.mxu1 %v1337_v58 }
  0x61   : > { %745 = vmatpush1.bf16.msra.mxu1 %v1339_v59 }
  0x62   : > { %746 = vmatprep.subr.bf16.mxu1 %v1343_v60 }
  0x63   : > { %844 = vmatmul.mubr.bf16.gmra.mrb[8].mxu0 %v1366_v2 }
  0x64   : > { %853 = vmatprep.mubr.bf16.mxu0 %v1414_v17 }
  0x65   : > { %747 = vmatpush1.bf16.msra.mxu1 %v1345_v62 }
  0x66   : > { %748 = vmatprep.subr.bf16.mxu1 %v1349_v63 }
  0x69   : > { %749 = vmatpush1.bf16.msra.mxu1 %v1351_v0  ;;  %v354_v0 = vld [vmem:[#allocation2 + $0x48] sm:$0xff] }
  0x6a   : > { %750 = vmatprep.subr.bf16.mxu1 %v1355_v1 }
  0x6b   : > { %854 = vmatmul.mubr.bf16.gmra.mrb[12].mxu0 %v1370_v6 }
  0x6d   : > { %751 = vmatpush1.bf16.msra.mxu1 %v1357_v3  ;;  %v355_v3 = vld [vmem:[#allocation2 + $0x50] sm:$0xff] }
  0x70   : > { %753 = vmatmul.mubr.bf16.vlgmr.msra.gmra.mrb[0].mxu1 %v1359_v4 }
  0x71   : > { %762 = vmatprep.mubr.bf16.mxu1 %v1363_v5 }
  0x78   : > { %763 = vmatmul.mubr.bf16.gmra.mrb[4].mxu1 %v1365_v7  ;;  %v356_v7 = vld [vmem:[#allocation2 + $0x58] sm:$0xff] }
  0x79   : > { %772 = vmatprep.mubr.bf16.mxu1 %v1367_v8 }
  0x80   : > { %773 = vmatmul.mubr.bf16.gmra.mrb[8].mxu1 %v1369_v10 }
  0x81   : > { %782 = vmatprep.mubr.bf16.mxu1 %v1159_v11 }
  0x88   : > { %783 = vmatmul.mubr.bf16.gmra.mrb[12].mxu1 %v1158_v12 }
 0x126   : > { %v825_v13 = vpop.f32.mrb[0].mxu0 }
 0x127   : > { %v827_v14 = vpop.f32.mrb[1].mxu0 }
 0x128   : > { %v829_v15 = vpop.f32.mrb[2].mxu0 }
 0x129   : > { %v831_v16 = vpop.f32.mrb[3].mxu0 }
 0x12e   : > { %v835_v17 = vpop.f32.mrb[4].mxu0 }
 0x12f   : > { %v837_v18 = vpop.f32.mrb[5].mxu0 }
 0x130   : > { %v839_v19 = vpop.f32.mrb[6].mxu0 }
 0x131   : > { %v841_v20 = vpop.f32.mrb[7].mxu0 }
 0x136   : > { %v845_v21 = vpop.f32.mrb[8].mxu0 }
 0x137   : > { %v847_v22 = vpop.f32.mrb[9].mxu0 }
 0x138   : > { %v849_v23 = vpop.f32.mrb[10].mxu0 }
 0x139   : > { %v851_v24 = vpop.f32.mrb[11].mxu0 }
 0x13e   : > { %v855_v37 = vpop.f32.mrb[12].mxu0 }
 0x13f   : > { %v857_v40 = vpop.f32.mrb[13].mxu0 }
 0x140   : > { %v859_v42 = vpop.f32.mrb[14].mxu0 }
 0x141   : > { %v860_v44 = vpop.f32.mrb[15].mxu0 }
 0x143   : > { %v754_v26 = vpop.f32.mrb[0].mxu1 }
 0x144   : > { %v826_v27 = vadd.f32 %v825_v13, %v754_v26  ;;  %v756_v29 = vpop.f32.mrb[1].mxu1  ;;  %v357_v13 = vld [vmem:[#allocation2 + $0x60] sm:$0x3] }
 0x145   : > { %v828_v30 = vadd.f32 %v827_v14, %v756_v29  ;;  %v758_v32 = vpop.f32.mrb[2].mxu1 }
 0x146   : > { %v862_v33 = vadd.f32 %v826_v27, %v345_v25  ;;  %v830_v34 = vadd.f32 %v829_v15, %v758_v32  ;;  %v760_v36 = vpop.f32.mrb[3].mxu1  ;;  %v908_v25 = vld [vmem:[%s1595_s2] sm:$0x3] (!%p1209_p11) }
 0x147   : > { %v863_v38 = vadd.f32 %v828_v30, %v346_v28  ;;  %v832_v39 = vadd.f32 %v831_v16, %v760_v36  ;;  %v358_v16 = vld [vmem:[#allocation2 + $0x68] sm:$0x3] }
 0x148   : > { %876 = vst [vmem:[#allocation2] sm:$0xff] %v862_v33  ;;  %v864_v41 = vadd.f32 %v830_v34, %v347_v31 }
 0x149   : > { %877 = vst [vmem:[#allocation2 + $0x8] sm:$0xff] %v863_v38  ;;  %v865_v43 = vadd.f32 %v832_v39, %v348_v35 }
 0x14a   : > { %878 = vst [vmem:[#allocation2 + $0x10] sm:$0xff] %v864_v41 }
 0x14b   : > { %879 = vst [vmem:[#allocation2 + $0x18] sm:$0xff] %v865_v43  ;;  %v764_v46 = vpop.f32.mrb[4].mxu1 }
 0x14c   : > { %v836_v47 = vadd.f32 %v835_v17, %v764_v46  ;;  %v766_v49 = vpop.f32.mrb[5].mxu1 }
 0x14d   : > { %v838_v50 = vadd.f32 %v837_v18, %v766_v49  ;;  %v768_v52 = vpop.f32.mrb[6].mxu1 }
 0x14e   : > { %v866_v53 = vadd.f32 %v836_v47, %v349_v45  ;;  %v840_v54 = vadd.f32 %v839_v19, %v768_v52  ;;  %v770_v56 = vpop.f32.mrb[7].mxu1 }
 0x14f   : > { %v867_v57 = vadd.f32 %v838_v50, %v350_v48  ;;  %v842_v58 = vadd.f32 %v841_v20, %v770_v56  ;;  %v894_v26 = vld [vmem:[#allocation2] sm:$0xff] (!%p1209_p11) }
 0x150   : > { %880 = vst [vmem:[#allocation2 + $0x20] sm:$0xff] %v866_v53  ;;  %v868_v59 = vadd.f32 %v840_v54, %v351_v51  ;;  %v895_v27 = vld [vmem:[#allocation2 + $0x8] sm:$0xff] (!%p1209_p11) }
 0x151   : > { %881 = vst [vmem:[#allocation2 + $0x28] sm:$0xff] %v867_v57  ;;  %v869_v60 = vadd.f32 %v842_v58, %v352_v55  ;;  %v896_v30 = vld [vmem:[#allocation2 + $0x10] sm:$0xff] (!%p1209_p11) }
 0x152   : > { %882 = vst [vmem:[#allocation2 + $0x30] sm:$0xff] %v868_v59  ;;  %v897_v31 = vld [vmem:[#allocation2 + $0x18] sm:$0xff] (!%p1209_p11) }
 0x153   : > { %883 = vst [vmem:[#allocation2 + $0x38] sm:$0xff] %v869_v60  ;;  %v774_v62 = vpop.f32.mrb[8].mxu1 }
 0x154   : > { %v846_v63 = vadd.f32 %v845_v21, %v774_v62  ;;  %v776_v1 = vpop.f32.mrb[9].mxu1 }
 0x155   : > { %v848_v2 = vadd.f32 %v847_v22, %v776_v1  ;;  %v778_v4 = vpop.f32.mrb[10].mxu1 }
 0x156   : > { %v870_v5 = vadd.f32 %v846_v63, %v353_v61  ;;  %v850_v6 = vadd.f32 %v849_v23, %v778_v4  ;;  %v780_v8 = vpop.f32.mrb[11].mxu1  ;;  %v910_v23 = vlaneseq (!%p1209_p11) }
 0x157   : > { %v871_v9 = vadd.f32 %v848_v2, %v354_v0  ;;  %v852_v10 = vadd.f32 %v851_v24, %v780_v8  ;;  %v898_v32 = vld [vmem:[#allocation2 + $0x20] sm:$0xff] (!%p1209_p11) }
 0x158   : > { %884 = vst [vmem:[#allocation2 + $0x40] sm:$0xff] %v870_v5  ;;  %v872_v11 = vadd.f32 %v850_v6, %v355_v3  ;;  %v911_v24 = vshrl.u32 (!%p1209_p11), %v910_v23, 7  ;;  %v899_v35 = vld [vmem:[#allocation2 + $0x28] sm:$0xff] (!%p1209_p11) }
 0x159   : > { %885 = vst [vmem:[#allocation2 + $0x48] sm:$0xff] %v871_v9  ;;  %v873_v12 = vadd.f32 %v852_v10, %v356_v7  ;;  %v900_v36 = vld [vmem:[#allocation2 + $0x30] sm:$0xff] (!%p1209_p11) }
 0x15a   : > { %886 = vst [vmem:[#allocation2 + $0x50] sm:$0xff] %v872_v11  ;;  %v912_v28 = vsub.s32 (!%p1209_p11), 0, %v911_v24  ;;  %v916_v29 = vsub.s32 (!%p1209_p11), 1, %v911_v24 }
 0x15b   : > { %887 = vst [vmem:[#allocation2 + $0x58] sm:$0xff] %v873_v12  ;;  %v784_v14 = vpop.f32.mrb[12].mxu1  ;;  %893 = sbr.rel (%p1209_p11) target bundleno = 368 (0x170), region = 66 }
 0x15c   : > { %v856_v15 = vadd.f32 %v855_v37, %v784_v14  ;;  %v786_v17 = vpop.f32.mrb[13].mxu1  ;;  %v913_v33 = vrot.slane (!%p1209_p11), %v908_v25, %v912_v28  ;;  %v917_v34 = vrot.slane (!%p1209_p11), %v908_v25, %v916_v29  ;;  %v901_v37 = vld [vmem:[#allocation2 + $0x38] sm:$0xff] (!%p1209_p11) }
 0x15d   : > { %v858_v18 = vadd.f32 %v857_v40, %v786_v17  ;;  %v788_v19 = vpop.f32.mrb[14].mxu1 }
 0x15e   : > { %v874_v20 = vadd.f32 %v856_v15, %v357_v13  ;;  %v789_v21 = vpop.f32.mrb[15].mxu1  ;;  %v920_v38 = vadd.f32 (!%p1209_p11), %v913_v33, %v894_v26  ;;  %v921_v39 = vadd.f32 (!%p1209_p11), %v917_v34, %v895_v27  ;;  %v922_v40 = vadd.f32 (!%p1209_p11), %v913_v33, %v896_v30 }
 0x15f   : > { %v875_v22 = vadd.f32 %v858_v18, %v358_v16  ;;  %v923_v41 = vadd.f32 (!%p1209_p11), %v917_v34, %v897_v31  ;;  %v902_v42 = vld [vmem:[#allocation2 + $0x40] sm:$0xff] (!%p1209_p11)  ;;  %v924_v43 = vadd.f32 (!%p1209_p11), %v913_v33, %v898_v32  ;;  %v925_v44 = vadd.f32 (!%p1209_p11), %v917_v34, %v899_v35 }
 0x160   : > { %888 = vst [vmem:[#allocation2 + $0x60] sm:$0x3] %v874_v20  ;;  %v926_v45 = vadd.f32 (!%p1209_p11), %v913_v33, %v900_v36  ;;  %v927_v46 = vadd.f32 (!%p1209_p11), %v917_v34, %v901_v37  ;;  %v903_v47 = vld [vmem:[#allocation2 + $0x48] sm:$0xff] (!%p1209_p11)  ;;  %v934_v50 = vmax.f32 (!%p1209_p11), %v920_v38, 0.0  ;;  %v935_v51 = vmax.f32 (!%p1209_p11), %v921_v39, 0.0 }
 0x161   : > { %889 = vst [vmem:[#allocation2 + $0x68] sm:$0x3] %v875_v22  ;;  %v904_v48 = vld [vmem:[#allocation2 + $0x50] sm:$0xff] (!%p1209_p11)  ;;  %v936_v52 = vmax.f32 (!%p1209_p11), %v922_v40, 0.0  ;;  %v937_v53 = vmax.f32 (!%p1209_p11), %v923_v41, 0.0  ;;  %v938_v55 = vmax.f32 (!%p1209_p11), %v924_v43, 0.0  ;;  %v928_v62 = vadd.f32 (!%p1209_p11), %v913_v33, %v902_v42 }
 0x162   : > { %v905_v49 = vld [vmem:[#allocation2 + $0x58] sm:$0xff]  ;;  %v939_v56 = vmax.f32 %v925_v44, 0.0  ;;  %v940_v57 = vmax.f32 %v926_v45, 0.0  ;;  %v941_v58 = vmax.f32 %v927_v46, 0.0  ;;  %v1223_v60 = vpack.c.bf16 %v935_v51, %v934_v50 }
 0x163   : > { %v1224_v61 = vpack.c.bf16 %v937_v53, %v936_v52  ;;  %v929_v63 = vadd.f32 %v917_v34, %v903_v47  ;;  %v930_v2 = vadd.f32 %v913_v33, %v904_v48  ;;  %v931_v3 = vadd.f32 %v917_v34, %v905_v49 }
 0x164   : > { %v1225_v0 = vpack.c.bf16 %v939_v56, %v938_v55  ;;  %v1226_v1 = vpack.c.bf16 %v941_v58, %v940_v57  ;;  %992 = vst [vmem:[%s1596_s3] sm:$0xff] %v1223_v60  ;;  %v942_v4 = vmax.f32 %v928_v62, 0.0 }
 0x165   : > { %993 = vst [vmem:[%s1596_s3 + $0x8] sm:$0xff] %v1224_v61  ;;  %v943_v5 = vmax.f32 %v929_v63, 0.0  ;;  %v944_v8 = vmax.f32 %v930_v2, 0.0  ;;  %v945_v9 = vmax.f32 %v931_v3, 0.0 }
 0x166   : > { %994 = vst [vmem:[%s1596_s3 + $0x10] sm:$0xff] %v1225_v0  ;;  %995 = vst [vmem:[%s1596_s3 + $0x18] sm:$0xff] %v1226_v1 }
 0x167   : > { %v906_v54 = vld [vmem:[#allocation2 + $0x60] sm:$0x3]  ;;  %v1227_v10 = vpack.c.bf16 %v943_v5, %v942_v4  ;;  %v1228_v13 = vpack.c.bf16 %v945_v9, %v944_v8 }
 0x168   : > { %v907_v59 = vld [vmem:[#allocation2 + $0x68] sm:$0x3]  ;;  %v932_v6 = vadd.f32 %v913_v33, %v906_v54 }
 0x169   : > { %v933_v7 = vadd.f32 %v917_v34, %v907_v59  ;;  %996 = vst [vmem:[%s1596_s3 + $0x20] sm:$0xff] %v1227_v10  ;;  %997 = vst [vmem:[%s1596_s3 + $0x28] sm:$0xff] %v1228_v13 }
 0x16a   : > { %v946_v11 = vmax.f32 %v932_v6, 0.0 }
 0x16b   : > { %v947_v12 = vmax.f32 %v933_v7, 0.0 }
 0x16d   : > { %v1229_v14 = vpack.c.bf16 %v947_v12, %v946_v11 }
 0x16f   : > { %998 = vst [vmem:[%s1596_s3 + $0x30] sm:$0x11] %v1229_v14 }
 0x170 PF: > { %s13_s16 = sadd.s32 1, %s1411_s16   ;;  %s1597_s12 = smov %s1399_s13 }
 0x171   : > { %p10_p12 = scmp.ge.s32.totalorder %s13_s16, 5   ;;  %s1598_s13 = smov %s1470_s20 }
 0x172   : > { %s1599_s14 = smov %s1407_s15  ;;  %s1600_s15 = smov %s1602_s17 }
 0x173   :  { %12 = sbr.rel (!%p10_p12) target bundleno = 3 (0x3), region = 113 }

// kernel: vggnet_forward.21
= control target key start
LH: loop header
LB: loop body
LE: loop exit
PB: predicated region body
PF: predicated region fallthrough
CT: control target
= control target key end

     0   :  { %s1435_s12 = smov 0   ;;  %s1437_s13 = smov 0   ;;  %s1593_s0 = inlined_call_operand.vmem [shape: bf16[50,2304], index: 0, kind: input, shape index: {}]   ;;  %s1594_s1 = inlined_call_operand.vmem [shape: bf16[2304,256], index: 1, kind: input, shape index: {}]   ;;  %s1595_s2 = inlined_call_operand.vmem [shape: f32[1,256], index: 2, kind: input, shape index: {}]   ;;  %s1596_s3 = inlined_call_operand.vmem [shape: bf16[50,256], index: 3, kind: output, shape index: {}]  }
   0x1   :  { %s1439_s14 = smov 0   ;;  %s1441_s15 = smov 0  }
   0x2   :  { %s1443_s16 = smov 0  }
   0x3 LB: > { %s25_s17 = sadd.s32 1, %s1407_s15  ;;  %p48_p1 = scmp.ne.s32.totalorder %s1399_s13, %s1395_s12  ;;  %s1411_s16 = sphi %s1443_s16, %s13_s16   ;;  %s1407_s15 = sphi %s1441_s15, %s1600_s15   ;;  %s1403_s14 = sphi %s1439_s14, %s1599_s14   ;;  %s1399_s13 = sphi %s1437_s13, %s1598_s13   ;;  %s1395_s12 = sphi %s1435_s12, %s1597_s12  }
   0x4   : > { %p26_p0 = scmp.ge.s32.totalorder %s25_s17, 6  ;;  %p49_p2 = scmp.eq.s32.totalorder %s1411_s16, 0 }
   0x5   : > { %s41_s19 = sadd.s32 1, %s1399_s13  ;;  %p1129_p5 = scmp.ge.s32.totalorder %s1411_s16, 6 }
   0x6   : > { %s1602_s17 = smov (%p26_p0, %s25_s17), 0  ;;  %p50_p3 = por %p49_p2, %p48_p1 }
   0x7   : > { %s37_s18 = ssub.s32 %s1407_s15, %s1602_s17  ;;  %164 = sbr.rel (%p1129_p5) target bundleno = 27 (0x1b), region = 20 }
   0x8   : > { %p39_p4 = scmp.eq.s32.totalorder %s37_s18, 0 }
   0xa   : > { %s1470_s20 = scalar_select %p39_p4, %s1399_s13, %s41_s19  }
   0xe   : > { %167 = sbr.rel (!%p50_p3) target bundleno = 27 (0x1b), region = 24  ;;  %s169_s21 = sand.u32 (%p50_p3), 1, %s1399_s13  }
   0xf   : > { %s1221_s22 = smul.u32 (%p50_p3), 12, %s1407_s15 }
  0x10   : > { %s1242_s23 = smul.u32 (%p50_p3), 84, %s169_s21 }
  0x11   : > { %s177_s26 = scalar_lea.vmem (%p50_p3), %s1593_s0, %s1221_s22 }
  0x12   : > { %v192_v0 = vld [vmem:[%s177_s26] sm:$0xff] (%p50_p3)  ;;  %v194_v1 = vld [vmem:[%s177_s26 + $0x48] sm:$0xff] (%p50_p3)  ;;  %v196_v2 = vld [vmem:[%s177_s26 + $0x90] sm:$0xff] (%p50_p3)  ;;  %s171_s27 = scalar_lea.vmem (%p50_p3), [#allocation3], %s1242_s23 }
  0x13   : > { %193 = vst [vmem:[%s171_s27] sm:$0xff] (%p50_p3), %v192_v0  ;;  %195 = vst [vmem:[%s171_s27 + $0xc] sm:$0xff] (%p50_p3), %v194_v1  ;;  %v198_v3 = vld [vmem:[%s177_s26 + $0xd8] sm:$0xff] (%p50_p3)  ;;  %v200_v4 = vld [vmem:[%s177_s26 + $0x120] sm:$0xff] (%p50_p3) }
  0x14   : > { %197 = vst [vmem:[%s171_s27 + $0x18] sm:$0xff] (%p50_p3), %v196_v2  ;;  %v202_v5 = vld [vmem:[%s177_s26 + $0x168] sm:$0xff] (%p50_p3)  ;;  %199 = vst [vmem:[%s171_s27 + $0x24] sm:$0xff] (%p50_p3), %v198_v3  ;;  %v204_v6 = vld [vmem:[%s177_s26 + $0x1b0] sm:$0xff] (%p50_p3) }
  0x15   : > { %201 = vst [vmem:[%s171_s27 + $0x30] sm:$0xff] %v200_v4  ;;  %203 = vst [vmem:[%s171_s27 + $0x3c] sm:$0xff] %v202_v5  ;;  %v1131_v7 = vld [vmem:[%s177_s26 + $0x8] sm:$0xf]  ;;  %v1133_v8 = vld [vmem:[%s177_s26 + $0x50] sm:$0xf] }
  0x16   : > { %205 = vst [vmem:[%s171_s27 + $0x48] sm:$0xff] %v204_v6  ;;  %1132 = vst [vmem:[%s171_s27 + $0x8] sm:$0xf] %v1131_v7  ;;  %v1135_v9 = vld [vmem:[%s177_s26 + $0x98] sm:$0xf] }
  0x17   : > { %1134 = vst [vmem:[%s171_s27 + $0x14] sm:$0xf] %v1133_v8  ;;  %v1137_v10 = vld [vmem:[%s177_s26 + $0xe0] sm:$0xf]  ;;  %v1139_v11 = vld [vmem:[%s177_s26 + $0x128] sm:$0xf] }
  0x18   : > { %1136 = vst [vmem:[%s171_s27 + $0x20] sm:$0xf] %v1135_v9  ;;  %1138 = vst [vmem:[%s171_s27 + $0x2c] sm:$0xf] %v1137_v10  ;;  %v1141_v12 = vld [vmem:[%s177_s26 + $0x170] sm:$0xf] }
  0x19   : > { %1140 = vst [vmem:[%s171_s27 + $0x38] sm:$0xf] %v1139_v11  ;;  %v1143_v13 = vld [vmem:[%s177_s26 + $0x1b8] sm:$0xf]  ;;  %1142 = vst [vmem:[%s171_s27 + $0x44] sm:$0xf] %v1141_v12 }
  0x1a   : > { %1144 = vst [vmem:[%s171_s27 + $0x50] sm:$0xf] %v1143_v13 }
  0x1b PF: > { %p1145_p6 = scmp.ge.s32.totalorder %s1411_s16, 1  ;;  %p246_p7 = scmp.lt.s32.totalorder %s1411_s16, 7 }
  0x1d   : > { %p247_p8 = pnand %p1145_p6, %p246_p7 }
  0x1e   : > { %s253_s28 = sand.u32 (!%p247_p8), 1, %s1395_s12   ;;  %s297_s29 = smul.u32 (!%p247_p8), 48, %s1403_s14 }
  0x1f   : > { %250 = sbr.rel (%p247_p8) target bundleno = 368 (0x170), region = 54  ;;  %p1148_p10 = scmp.ne.s32.totalorder (!%p247_p8), %s1403_s14, 0 }
  0x20   : > { %s1243_s30 = smul.u32 (!%p247_p8), 84, %s253_s28  ;;  %p299_p9 = scmp.lt.s32.totalorder (!%p247_p8), %s297_s29, 287 }
  0x22   : > { %s1487_s8 = scalar_lea.vmem (!%p247_p8), [#allocation3], %s1243_s30 }
  0x26   : > { %s1604_s29 = smov (!%p299_p9, %s297_s29), 287  ;;  %330 = sbr.rel (%p1148_p10) target bundleno = 47 (0x2f), region = 62 }
  0x27   : > { %s1222_s4 = sshll.u32 %s1604_s29, 3  ;;  %v1413_v14 = vmov (!%p1148_p10), 0.0  }
  0x28   : > { %s1485_s7 = scalar_lea.vmem %s1594_s1, %s1222_s4  ;;  %331 = vst [vmem:[#allocation2] sm:$0xff] (!%p1148_p10), %v1413_v14  ;;  %332 = vst [vmem:[#allocation2 + $0x8] sm:$0xff] (!%p1148_p10), %v1413_v14 }
  0x29   : > { %333 = vst [vmem:[#allocation2 + $0x10] sm:$0xff] (!%p1148_p10), %v1413_v14  ;;  %334 = vst [vmem:[#allocation2 + $0x18] sm:$0xff] (!%p1148_p10), %v1413_v14 }
  0x2a   : > { %335 = vst [vmem:[#allocation2 + $0x20] sm:$0xff] (!%p1148_p10), %v1413_v14  ;;  %336 = vst [vmem:[#allocation2 + $0x28] sm:$0xff] (!%p1148_p10), %v1413_v14 }
  0x2b   : > { %337 = vst [vmem:[#allocation2 + $0x30] sm:$0xff] (!%p1148_p10), %v1413_v14  ;;  %338 = vst [vmem:[#allocation2 + $0x38] sm:$0xff] (!%p1148_p10), %v1413_v14 }
  0x2c   : > { %339 = vst [vmem:[#allocation2 + $0x40] sm:$0xff] (!%p1148_p10), %v1413_v14  ;;  %340 = vst [vmem:[#allocation2 + $0x48] sm:$0xff] (!%p1148_p10), %v1413_v14 }
  0x2d   : > { %341 = vst [vmem:[#allocation2 + $0x50] sm:$0xff] %v1413_v14  ;;  %342 = vst [vmem:[#allocation2 + $0x58] sm:$0xff] %v1413_v14 }
  0x2e   : > { %343 = vst [vmem:[#allocation2 + $0x60] sm:$0x3] %v1413_v14  ;;  %344 = vst [vmem:[#allocation2 + $0x68] sm:$0x3] %v1413_v14 }
  0x2f PF: > { %v1286_v15 = vld [vmem:[%s1485_s7 + $0x4] ss:$8 sps:$4 sm:$0xff]   ;;  %v1288_v16 = vld [vmem:[%s1485_s7] ss:$8 sps:$4 sm:$0xff]   ;;  %v1414_v17 = vmov 0   ;;  %p1209_p11 = scmp.ne.s32.totalorder %s1403_s14, 5 }
  0x30   : > { %823 = vmatprep.mubr.bf16.mxu0 %v1414_v17  ;;  %720 = vmatprep.subr.bf16.mxu1 %v1286_v15  ;;  %v1289_v18 = vld [vmem:[%s1485_s7 + $0x14] ss:$8 sps:$4 sm:$0xff]   ;;  %v1291_v19 = vld [vmem:[%s1485_s7 + $0x10] ss:$8 sps:$4 sm:$0xff]   ;;  %v1292_v20 = vld [vmem:[%s1485_s7 + $0x24] ss:$8 sps:$4 sm:$0xff]  }
  0x31   : > { %721 = vmatpush1.bf16.msra.mxu1 %v1288_v16  ;;  %v1294_v21 = vld [vmem:[%s1485_s7 + $0x20] ss:$8 sps:$4 sm:$0xff]   ;;  %v1295_v22 = vld [vmem:[%s1485_s7 + $0x34] ss:$8 sps:$4 sm:$0xff]   ;;  %v1297_v23 = vld [vmem:[%s1485_s7 + $0x30] ss:$8 sps:$4 sm:$0xff]  }
  0x32   : > { %722 = vmatprep.subr.bf16.mxu1 %v1289_v18  ;;  %v1310_v24 = vld [vmem:[%s1485_s7 + $0x104] ss:$8 sps:$4 sm:$0xff]   ;;  %v1312_v25 = vld [vmem:[%s1485_s7 + $0x100] ss:$8 sps:$4 sm:$0xff]   ;;  %v1316_v27 = vld [vmem:[%s1485_s7 + $0x114] ss:$8 sps:$4 sm:$0xff]  }
  0x33   : > { %v1298_v26 = vld [vmem:[%s1485_s7 + $0x44] ss:$8 sps:$4 sm:$0xff]   ;;  %791 = vmatprep.subr.bf16.mxu0 %v1310_v24  ;;  %v1318_v28 = vld [vmem:[%s1485_s7 + $0x110] ss:$8 sps:$4 sm:$0xff]   ;;  %v1300_v29 = vld [vmem:[%s1485_s7 + $0x40] ss:$8 sps:$4 sm:$0xff]  }
  0x34   : > { %792 = vmatpush1.bf16.msra.mxu0 %v1312_v25  ;;  %v1301_v30 = vld [vmem:[%s1485_s7 + $0x54] ss:$8 sps:$4 sm:$0xff]   ;;  %v1322_v31 = vld [vmem:[%s1485_s7 + $0x124] ss:$8 sps:$4 sm:$0xff]   ;;  %v1324_v32 = vld [vmem:[%s1485_s7 + $0x120] ss:$8 sps:$4 sm:$0xff]  }
  0x35   : > { %723 = vmatpush1.bf16.msra.mxu1 %v1291_v19  ;;  %793 = vmatprep.subr.bf16.mxu0 %v1316_v27  ;;  %v1303_v33 = vld [vmem:[%s1485_s7 + $0x50] ss:$8 sps:$4 sm:$0xff]   ;;  %v1328_v34 = vld [vmem:[%s1485_s7 + $0x134] ss:$8 sps:$4 sm:$0xff]   ;;  %v1304_v35 = vld [vmem:[%s1485_s7 + $0x64] ss:$8 sps:$4 sm:$0xff]  }
  0x36   : > { %724 = vmatprep.subr.bf16.mxu1 %v1292_v20  ;;  %v1330_v36 = vld [vmem:[%s1485_s7 + $0x130] ss:$8 sps:$4 sm:$0xff]   ;;  %v1306_v37 = vld [vmem:[%s1485_s7 + $0x60] ss:$8 sps:$4 sm:$0xff]   ;;  %v1334_v38 = vld [vmem:[%s1485_s7 + $0x144] ss:$8 sps:$4 sm:$0xff]  }
  0x37   : > { %v1307_v39 = vld [vmem:[%s1485_s7 + $0x74] ss:$8 sps:$4 sm:$0xff]   ;;  %v1336_v40 = vld [vmem:[%s1485_s7 + $0x140] ss:$8 sps:$4 sm:$0xff]   ;;  %v1309_v41 = vld [vmem:[%s1485_s7 + $0x70] ss:$8 sps:$4 sm:$0xff]  }
  0x38   : > { %794 = vmatpush1.bf16.msra.mxu0 %v1318_v28  ;;  %v1340_v42 = vld [vmem:[%s1485_s7 + $0x154] ss:$8 sps:$4 sm:$0xff]   ;;  %v1313_v43 = vld [vmem:[%s1485_s7 + $0x84] ss:$8 sps:$4 sm:$0xff]   ;;  %v1342_v44 = vld [vmem:[%s1485_s7 + $0x150] ss:$8 sps:$4 sm:$0xff]  }
  0x39   : > { %725 = vmatpush1.bf16.msra.mxu1 %v1294_v21  ;;  %795 = vmatprep.subr.bf16.mxu0 %v1322_v31  ;;  %v1315_v45 = vld [vmem:[%s1485_s7 + $0x80] ss:$8 sps:$4 sm:$0xff]   ;;  %v1346_v46 = vld [vmem:[%s1485_s7 + $0x164] ss:$8 sps:$4 sm:$0xff]   ;;  %v1319_v47 = vld [vmem:[%s1485_s7 + $0x94] ss:$8 sps:$4 sm:$0xff]  }
  0x3a   : > { %726 = vmatprep.subr.bf16.mxu1 %v1295_v22  ;;  %v1321_v48 = vld [vmem:[%s1485_s7 + $0x90] ss:$8 sps:$4 sm:$0xff]   ;;  %v1348_v49 = vld [vmem:[%s1485_s7 + $0x160] ss:$8 sps:$4 sm:$0xff]   ;;  %v1352_v51 = vld [vmem:[%s1485_s7 + $0x174] ss:$8 sps:$4 sm:$0xff]  }
  0x3b   : > { %v1361_v50 = vld [vmem:[%s1487_s8 + $0x4] ss:$12 sps:$4 sm:$0xff]   ;;  %v1325_v52 = vld [vmem:[%s1485_s7 + $0xa4] ss:$8 sps:$4 sm:$0xff]   ;;  %v1354_v53 = vld [vmem:[%s1485_s7 + $0x170] ss:$8 sps:$4 sm:$0xff]  }
  0x3c   : > { %796 = vmatpush1.bf16.msra.mxu0 %v1324_v32  ;;  %752 = vmatprep.mubr.bf16.mxu1 %v1361_v50  ;;  %v1327_v54 = vld [vmem:[%s1485_s7 + $0xa0] ss:$8 sps:$4 sm:$0xff]   ;;  %v1331_v55 = vld [vmem:[%s1485_s7 + $0xb4] ss:$8 sps:$4 sm:$0xff]   ;;  %v1358_v56 = vld [vmem:[%s1487_s8 + $0x8] ss:$12 sps:$4 sm:$0xff]  }
  0x3d   : > { %727 = vmatpush1.bf16.msra.mxu1 %v1297_v23  ;;  %797 = vmatprep.subr.bf16.mxu0 %v1328_v34  ;;  %v1333_v57 = vld [vmem:[%s1485_s7 + $0xb0] ss:$8 sps:$4 sm:$0xff]   ;;  %v1337_v58 = vld [vmem:[%s1485_s7 + $0xc4] ss:$8 sps:$4 sm:$0xff]   ;;  %v1339_v59 = vld [vmem:[%s1485_s7 + $0xc0] ss:$8 sps:$4 sm:$0xff]  }
  0x3e   : > { %728 = vmatprep.subr.bf16.mxu1 %v1298_v26  ;;  %v1343_v60 = vld [vmem:[%s1485_s7 + $0xd4] ss:$8 sps:$4 sm:$0xff]   ;;  %v1345_v62 = vld [vmem:[%s1485_s7 + $0xd0] ss:$8 sps:$4 sm:$0xff]   ;;  %v1349_v63 = vld [vmem:[%s1485_s7 + $0xe4] ss:$8 sps:$4 sm:$0xff]  }
  0x3f   : > { %v1362_v61 = vld [vmem:[%s1487_s8 + $0x20] ss:$12 sps:$4 sm:$0xff]   ;;  %v1351_v0 = vld [vmem:[%s1485_s7 + $0xe0] ss:$8 sps:$4 sm:$0xff]  }
  0x40   : > { %798 = vmatpush1.bf16.msra.mxu0 %v1330_v36  ;;  %v1355_v1 = vld [vmem:[%s1485_s7 + $0xf4] ss:$8 sps:$4 sm:$0xff]   ;;  %v1357_v3 = vld [vmem:[%s1485_s7 + $0xf0] ss:$8 sps:$4 sm:$0xff]   ;;  %v345_v25 = vld [vmem:[#allocation2] sm:$0xff] }
  0x41   : > { %729 = vmatpush1.bf16.msra.mxu1 %v1300_v29  ;;  %799 = vmatprep.subr.bf16.mxu0 %v1334_v38  ;;  %v1366_v2 = vld [vmem:[%s1487_s8 + $0x38] ss:$12 sps:$4 sm:$0xff]   ;;  %v1359_v4 = vld [vmem:[%s1487_s8] ss:$12 sps:$4 sm:$0xff]   ;;  %v1363_v5 = vld [vmem:[%s1487_s8 + $0x1c] ss:$12 sps:$4 sm:$0xff]  }
  0x42   : > { %730 = vmatprep.subr.bf16.mxu1 %v1301_v30  ;;  %v1370_v6 = vld [vmem:[%s1487_s8 + $0x50] ss:$0 sps:$4 sm:$0x11]   ;;  %v1365_v7 = vld [vmem:[%s1487_s8 + $0x18] ss:$12 sps:$4 sm:$0xff]  }
  0x43   : > { %v1367_v8 = vld [vmem:[%s1487_s8 + $0x34] ss:$12 sps:$4 sm:$0xff]   ;;  %v371_v9 = vld [vmem:[%s1487_s8 + $0x48] sm:$0x11]  ;;  %v1369_v10 = vld [vmem:[%s1487_s8 + $0x30] ss:$12 sps:$4 sm:$0xff]  }
  0x44   : > { %800 = vmatpush1.bf16.msra.mxu0 %v1336_v40  ;;  %v1159_v11 = vcombine.high %v371_v9, %v371_v9  ;;  %v1158_v12 = vcombine.low %v371_v9, %v371_v9  ;;  %v346_v28 = vld [vmem:[#allocation2 + $0x8] sm:$0xff]  ;;  %v347_v31 = vld [vmem:[#allocation2 + $0x10] sm:$0xff] }
  0x45   : > { %731 = vmatpush1.bf16.msra.mxu1 %v1303_v33  ;;  %801 = vmatprep.subr.bf16.mxu0 %v1340_v42 }
  0x46   : > { %732 = vmatprep.subr.bf16.mxu1 %v1304_v35  ;;  %v348_v35 = vld [vmem:[#allocation2 + $0x18] sm:$0xff] }
  0x48   : > { %802 = vmatpush1.bf16.msra.mxu0 %v1342_v44 }
  0x49   : > { %733 = vmatpush1.bf16.msra.mxu1 %v1306_v37  ;;  %803 = vmatprep.subr.bf16.mxu0 %v1346_v46 }
  0x4a   : > { %734 = vmatprep.subr.bf16.mxu1 %v1307_v39 }
  0x4c   : > { %804 = vmatpush1.bf16.msra.mxu0 %v1348_v49 }
  0x4d   : > { %735 = vmatpush1.bf16.msra.mxu1 %v1309_v41  ;;  %805 = vmatprep.subr.bf16.mxu0 %v1352_v51  ;;  %v351_v51 = vld [vmem:[#allocation2 + $0x30] sm:$0xff] }
  0x4e   : > { %736 = vmatprep.subr.bf16.mxu1 %v1313_v43 }
  0x50   : > { %806 = vmatpush1.bf16.msra.mxu0 %v1354_v53 }
  0x51   : > { %737 = vmatpush1.bf16.msra.mxu1 %v1315_v45  ;;  %v349_v45 = vld [vmem:[#allocation2 + $0x20] sm:$0xff] }
  0x52   : > { %738 = vmatprep.subr.bf16.mxu1 %v1319_v47 }
  0x53   : > { %824 = vmatmul.mubr.bf16.vlgmr.msra.gmra.mrb[0].mxu0 %v1358_v56 }
  0x54   : > { %833 = vmatprep.mubr.bf16.mxu0 %v1414_v17 }
  0x55   : > { %739 = vmatpush1.bf16.msra.mxu1 %v1321_v48  ;;  %v350_v48 = vld [vmem:[#allocation2 + $0x28] sm:$0xff] }
  0x56   : > { %740 = vmatprep.subr.bf16.mxu1 %v1325_v52 }
  0x59   : > { %741 = vmatpush1.bf16.msra.mxu1 %v1327_v54 }
  0x5a   : > { %742 = vmatprep.subr.bf16.mxu1 %v1331_v55  ;;  %v352_v55 = vld [vmem:[#allocation2 + $0x38] sm:$0xff] }
  0x5b   : > { %834 = vmatmul.mubr.bf16.gmra.mrb[4].mxu0 %v1362_v61  ;;  %v353_v61 = vld [vmem:[#allocation2 + $0x40] sm:$0xff] }
  0x5c   : > { %843 = vmatprep.mubr.bf16.mxu0 %v1414_v17 }
  0x5d   : > { %743 = vmatpush1.bf16.msra.mxu1 %v1333_v57 }
  0x5e   : > { %744 = vmatprep.subr.bf16.mxu1 %v1337_v58 }
  0x61   : > { %745 = vmatpush1.bf16.msra.mxu1 %v1339_v59 }
  0x62   : > { %746 = vmatprep.subr.bf16.mxu1 %v1343_v60 }
  0x63   : > { %844 = vmatmul.mubr.bf16.gmra.mrb[8].mxu0 %v1366_v2 }
  0x64   : > { %853 = vmatprep.mubr.bf16.mxu0 %v1414_v17 }
  0x65   : > { %747 = vmatpush1.bf16.msra.mxu1 %v1345_v62 }
  0x66   : > { %748 = vmatprep.subr.bf16.mxu1 %v1349_v63 }
  0x69   : > { %749 = vmatpush1.bf16.msra.mxu1 %v1351_v0  ;;  %v354_v0 = vld [vmem:[#allocation2 + $0x48] sm:$0xff] }
  0x6a   : > { %750 = vmatprep.subr.bf16.mxu1 %v1355_v1 }
  0x6b   : > { %854 = vmatmul.mubr.bf16.gmra.mrb[12].mxu0 %v1370_v6 }
  0x6d   : > { %751 = vmatpush1.bf16.msra.mxu1 %v1357_v3  ;;  %v355_v3 = vld [vmem:[#allocation2 + $0x50] sm:$0xff] }
  0x70   : > { %753 = vmatmul.mubr.bf16.vlgmr.msra.gmra.mrb[0].mxu1 %v1359_v4 }
  0x71   : > { %762 = vmatprep.mubr.bf16.mxu1 %v1363_v5 }
  0x78   : > { %763 = vmatmul.mubr.bf16.gmra.mrb[4].mxu1 %v1365_v7  ;;  %v356_v7 = vld [vmem:[#allocation2 + $0x58] sm:$0xff] }
  0x79   : > { %772 = vmatprep.mubr.bf16.mxu1 %v1367_v8 }
  0x80   : > { %773 = vmatmul.mubr.bf16.gmra.mrb[8].mxu1 %v1369_v10 }
  0x81   : > { %782 = vmatprep.mubr.bf16.mxu1 %v1159_v11 }
  0x88   : > { %783 = vmatmul.mubr.bf16.gmra.mrb[12].mxu1 %v1158_v12 }
 0x126   : > { %v825_v13 = vpop.f32.mrb[0].mxu0 }
 0x127   : > { %v827_v14 = vpop.f32.mrb[1].mxu0 }
 0x128   : > { %v829_v15 = vpop.f32.mrb[2].mxu0 }
 0x129   : > { %v831_v16 = vpop.f32.mrb[3].mxu0 }
 0x12e   : > { %v835_v17 = vpop.f32.mrb[4].mxu0 }
 0x12f   : > { %v837_v18 = vpop.f32.mrb[5].mxu0 }
 0x130   : > { %v839_v19 = vpop.f32.mrb[6].mxu0 }
 0x131   : > { %v841_v20 = vpop.f32.mrb[7].mxu0 }
 0x136   : > { %v845_v21 = vpop.f32.mrb[8].mxu0 }
 0x137   : > { %v847_v22 = vpop.f32.mrb[9].mxu0 }
 0x138   : > { %v849_v23 = vpop.f32.mrb[10].mxu0 }
 0x139   : > { %v851_v24 = vpop.f32.mrb[11].mxu0 }
 0x13e   : > { %v855_v37 = vpop.f32.mrb[12].mxu0 }
 0x13f   : > { %v857_v40 = vpop.f32.mrb[13].mxu0 }
 0x140   : > { %v859_v42 = vpop.f32.mrb[14].mxu0 }
 0x141   : > { %v860_v44 = vpop.f32.mrb[15].mxu0 }
 0x143   : > { %v754_v26 = vpop.f32.mrb[0].mxu1 }
 0x144   : > { %v826_v27 = vadd.f32 %v825_v13, %v754_v26  ;;  %v756_v29 = vpop.f32.mrb[1].mxu1  ;;  %v357_v13 = vld [vmem:[#allocation2 + $0x60] sm:$0x3] }
 0x145   : > { %v828_v30 = vadd.f32 %v827_v14, %v756_v29  ;;  %v758_v32 = vpop.f32.mrb[2].mxu1 }
 0x146   : > { %v862_v33 = vadd.f32 %v826_v27, %v345_v25  ;;  %v830_v34 = vadd.f32 %v829_v15, %v758_v32  ;;  %v760_v36 = vpop.f32.mrb[3].mxu1  ;;  %v908_v25 = vld [vmem:[%s1595_s2] sm:$0x3] (!%p1209_p11) }
 0x147   : > { %v863_v38 = vadd.f32 %v828_v30, %v346_v28  ;;  %v832_v39 = vadd.f32 %v831_v16, %v760_v36  ;;  %v358_v16 = vld [vmem:[#allocation2 + $0x68] sm:$0x3] }
 0x148   : > { %876 = vst [vmem:[#allocation2] sm:$0xff] %v862_v33  ;;  %v864_v41 = vadd.f32 %v830_v34, %v347_v31 }
 0x149   : > { %877 = vst [vmem:[#allocation2 + $0x8] sm:$0xff] %v863_v38  ;;  %v865_v43 = vadd.f32 %v832_v39, %v348_v35 }
 0x14a   : > { %878 = vst [vmem:[#allocation2 + $0x10] sm:$0xff] %v864_v41 }
 0x14b   : > { %879 = vst [vmem:[#allocation2 + $0x18] sm:$0xff] %v865_v43  ;;  %v764_v46 = vpop.f32.mrb[4].mxu1 }
 0x14c   : > { %v836_v47 = vadd.f32 %v835_v17, %v764_v46  ;;  %v766_v49 = vpop.f32.mrb[5].mxu1 }
 0x14d   : > { %v838_v50 = vadd.f32 %v837_v18, %v766_v49  ;;  %v768_v52 = vpop.f32.mrb[6].mxu1 }
 0x14e   : > { %v866_v53 = vadd.f32 %v836_v47, %v349_v45  ;;  %v840_v54 = vadd.f32 %v839_v19, %v768_v52  ;;  %v770_v56 = vpop.f32.mrb[7].mxu1 }
 0x14f   : > { %v867_v57 = vadd.f32 %v838_v50, %v350_v48  ;;  %v842_v58 = vadd.f32 %v841_v20, %v770_v56  ;;  %v894_v26 = vld [vmem:[#allocation2] sm:$0xff] (!%p1209_p11) }
 0x150   : > { %880 = vst [vmem:[#allocation2 + $0x20] sm:$0xff] %v866_v53  ;;  %v868_v59 = vadd.f32 %v840_v54, %v351_v51  ;;  %v895_v27 = vld [vmem:[#allocation2 + $0x8] sm:$0xff] (!%p1209_p11) }
 0x151   : > { %881 = vst [vmem:[#allocation2 + $0x28] sm:$0xff] %v867_v57  ;;  %v869_v60 = vadd.f32 %v842_v58, %v352_v55  ;;  %v896_v30 = vld [vmem:[#allocation2 + $0x10] sm:$0xff] (!%p1209_p11) }
 0x152   : > { %882 = vst [vmem:[#allocation2 + $0x30] sm:$0xff] %v868_v59  ;;  %v897_v31 = vld [vmem:[#allocation2 + $0x18] sm:$0xff] (!%p1209_p11) }
 0x153   : > { %883 = vst [vmem:[#allocation2 + $0x38] sm:$0xff] %v869_v60  ;;  %v774_v62 = vpop.f32.mrb[8].mxu1 }
 0x154   : > { %v846_v63 = vadd.f32 %v845_v21, %v774_v62  ;;  %v776_v1 = vpop.f32.mrb[9].mxu1 }
 0x155   : > { %v848_v2 = vadd.f32 %v847_v22, %v776_v1  ;;  %v778_v4 = vpop.f32.mrb[10].mxu1 }
 0x156   : > { %v870_v5 = vadd.f32 %v846_v63, %v353_v61  ;;  %v850_v6 = vadd.f32 %v849_v23, %v778_v4  ;;  %v780_v8 = vpop.f32.mrb[11].mxu1  ;;  %v910_v23 = vlaneseq (!%p1209_p11) }
 0x157   : > { %v871_v9 = vadd.f32 %v848_v2, %v354_v0  ;;  %v852_v10 = vadd.f32 %v851_v24, %v780_v8  ;;  %v898_v32 = vld [vmem:[#allocation2 + $0x20] sm:$0xff] (!%p1209_p11) }
 0x158   : > { %884 = vst [vmem:[#allocation2 + $0x40] sm:$0xff] %v870_v5  ;;  %v872_v11 = vadd.f32 %v850_v6, %v355_v3  ;;  %v911_v24 = vshrl.u32 (!%p1209_p11), %v910_v23, 7  ;;  %v899_v35 = vld [vmem:[#allocation2 + $0x28] sm:$0xff] (!%p1209_p11) }
 0x159   : > { %885 = vst [vmem:[#allocation2 + $0x48] sm:$0xff] %v871_v9  ;;  %v873_v12 = vadd.f32 %v852_v10, %v356_v7  ;;  %v900_v36 = vld [vmem:[#allocation2 + $0x30] sm:$0xff] (!%p1209_p11) }
 0x15a   : > { %886 = vst [vmem:[#allocation2 + $0x50] sm:$0xff] %v872_v11  ;;  %v912_v28 = vsub.s32 (!%p1209_p11), 0, %v911_v24  ;;  %v916_v29 = vsub.s32 (!%p1209_p11), 1, %v911_v24 }
 0x15b   : > { %887 = vst [vmem:[#allocation2 + $0x58] sm:$0xff] %v873_v12  ;;  %v784_v14 = vpop.f32.mrb[12].mxu1  ;;  %893 = sbr.rel (%p1209_p11) target bundleno = 368 (0x170), region = 66 }
 0x15c   : > { %v856_v15 = vadd.f32 %v855_v37, %v784_v14  ;;  %v786_v17 = vpop.f32.mrb[13].mxu1  ;;  %v913_v33 = vrot.slane (!%p1209_p11), %v908_v25, %v912_v28  ;;  %v917_v34 = vrot.slane (!%p1209_p11), %v908_v25, %v916_v29  ;;  %v901_v37 = vld [vmem:[#allocation2 + $0x38] sm:$0xff] (!%p1209_p11) }
 0x15d   : > { %v858_v18 = vadd.f32 %v857_v40, %v786_v17  ;;  %v788_v19 = vpop.f32.mrb[14].mxu1 }
 0x15e   : > { %v874_v20 = vadd.f32 %v856_v15, %v357_v13  ;;  %v789_v21 = vpop.f32.mrb[15].mxu1  ;;  %v920_v38 = vadd.f32 (!%p1209_p11), %v913_v33, %v894_v26  ;;  %v921_v39 = vadd.f32 (!%p1209_p11), %v917_v34, %v895_v27  ;;  %v922_v40 = vadd.f32 (!%p1209_p11), %v913_v33, %v896_v30 }
 0x15f   : > { %v875_v22 = vadd.f32 %v858_v18, %v358_v16  ;;  %v923_v41 = vadd.f32 (!%p1209_p11), %v917_v34, %v897_v31  ;;  %v902_v42 = vld [vmem:[#allocation2 + $0x40] sm:$0xff] (!%p1209_p11)  ;;  %v924_v43 = vadd.f32 (!%p1209_p11), %v913_v33, %v898_v32  ;;  %v925_v44 = vadd.f32 (!%p1209_p11), %v917_v34, %v899_v35 }
 0x160   : > { %888 = vst [vmem:[#allocation2 + $0x60] sm:$0x3] %v874_v20  ;;  %v926_v45 = vadd.f32 (!%p1209_p11), %v913_v33, %v900_v36  ;;  %v927_v46 = vadd.f32 (!%p1209_p11), %v917_v34, %v901_v37  ;;  %v903_v47 = vld [vmem:[#allocation2 + $0x48] sm:$0xff] (!%p1209_p11)  ;;  %v934_v50 = vmax.f32 (!%p1209_p11), %v920_v38, 0.0  ;;  %v935_v51 = vmax.f32 (!%p1209_p11), %v921_v39, 0.0 }
 0x161   : > { %889 = vst [vmem:[#allocation2 + $0x68] sm:$0x3] %v875_v22  ;;  %v904_v48 = vld [vmem:[#allocation2 + $0x50] sm:$0xff] (!%p1209_p11)  ;;  %v936_v52 = vmax.f32 (!%p1209_p11), %v922_v40, 0.0  ;;  %v937_v53 = vmax.f32 (!%p1209_p11), %v923_v41, 0.0  ;;  %v938_v55 = vmax.f32 (!%p1209_p11), %v924_v43, 0.0  ;;  %v928_v62 = vadd.f32 (!%p1209_p11), %v913_v33, %v902_v42 }
 0x162   : > { %v905_v49 = vld [vmem:[#allocation2 + $0x58] sm:$0xff]  ;;  %v939_v56 = vmax.f32 %v925_v44, 0.0  ;;  %v940_v57 = vmax.f32 %v926_v45, 0.0  ;;  %v941_v58 = vmax.f32 %v927_v46, 0.0  ;;  %v1223_v60 = vpack.c.bf16 %v935_v51, %v934_v50 }
 0x163   : > { %v1224_v61 = vpack.c.bf16 %v937_v53, %v936_v52  ;;  %v929_v63 = vadd.f32 %v917_v34, %v903_v47  ;;  %v930_v2 = vadd.f32 %v913_v33, %v904_v48  ;;  %v931_v3 = vadd.f32 %v917_v34, %v905_v49 }
 0x164   : > { %v1225_v0 = vpack.c.bf16 %v939_v56, %v938_v55  ;;  %v1226_v1 = vpack.c.bf16 %v941_v58, %v940_v57  ;;  %992 = vst [vmem:[%s1596_s3] sm:$0xff] %v1223_v60  ;;  %v942_v4 = vmax.f32 %v928_v62, 0.0 }
 0x165   : > { %993 = vst [vmem:[%s1596_s3 + $0x8] sm:$0xff] %v1224_v61  ;;  %v943_v5 = vmax.f32 %v929_v63, 0.0  ;;  %v944_v8 = vmax.f32 %v930_v2, 0.0  ;;  %v945_v9 = vmax.f32 %v931_v3, 0.0 }
 0x166   : > { %994 = vst [vmem:[%s1596_s3 + $0x10] sm:$0xff] %v1225_v0  ;;  %995 = vst [vmem:[%s1596_s3 + $0x18] sm:$0xff] %v1226_v1 }
 0x167   : > { %v906_v54 = vld [vmem:[#allocation2 + $0x60] sm:$0x3]  ;;  %v1227_v10 = vpack.c.bf16 %v943_v5, %v942_v4  ;;  %v1228_v13 = vpack.c.bf16 %v945_v9, %v944_v8 }
 0x168   : > { %v907_v59 = vld [vmem:[#allocation2 + $0x68] sm:$0x3]  ;;  %v932_v6 = vadd.f32 %v913_v33, %v906_v54 }
 0x169   : > { %v933_v7 = vadd.f32 %v917_v34, %v907_v59  ;;  %996 = vst [vmem:[%s1596_s3 + $0x20] sm:$0xff] %v1227_v10  ;;  %997 = vst [vmem:[%s1596_s3 + $0x28] sm:$0xff] %v1228_v13 }
 0x16a   : > { %v946_v11 = vmax.f32 %v932_v6, 0.0 }
 0x16b   : > { %v947_v12 = vmax.f32 %v933_v7, 0.0 }
 0x16d   : > { %v1229_v14 = vpack.c.bf16 %v947_v12, %v946_v11 }
 0x16f   : > { %998 = vst [vmem:[%s1596_s3 + $0x30] sm:$0x11] %v1229_v14 }
 0x170 PF: > { %s13_s16 = sadd.s32 1, %s1411_s16   ;;  %s1597_s12 = smov %s1399_s13 }
 0x171   : > { %p10_p12 = scmp.ge.s32.totalorder %s13_s16, 8   ;;  %s1598_s13 = smov %s1470_s20 }
 0x172   : > { %s1599_s14 = smov %s1407_s15  ;;  %s1600_s15 = smov %s1602_s17 }
 0x173   :  { %12 = sbr.rel (!%p10_p12) target bundleno = 3 (0x3), region = 113 }

// kernel: vggnet_forward.23
= control target key start
LH: loop header
LB: loop body
LE: loop exit
PB: predicated region body
PF: predicated region fallthrough
CT: control target
= control target key end

     0   :  { %s1812_s12 = smov 0   ;;  %s1814_s13 = smov 0   ;;  %s2005_s0 = inlined_call_operand.vmem [shape: bf16[18,2304], index: 0, kind: input, shape index: {}]   ;;  %s2006_s1 = inlined_call_operand.vmem [shape: bf16[2304,512], index: 1, kind: input, shape index: {}]   ;;  %s2007_s2 = inlined_call_operand.vmem [shape: f32[1,512], index: 2, kind: input, shape index: {}]   ;;  %s2008_s3 = inlined_call_operand.vmem [shape: bf16[18,512], index: 3, kind: output, shape index: {}]  }
   0x1   :  { %s1816_s14 = smov 0   ;;  %s1818_s15 = smov 0  }
   0x2   :  { %s1820_s16 = smov 0  }
   0x3 LB: > { %s25_s17 = sadd.s32 1, %s1784_s15  ;;  %p48_p1 = scmp.ne.s32.totalorder %s1776_s13, %s1772_s12  ;;  %s1788_s16 = sphi %s1820_s16, %s13_s16   ;;  %s1784_s15 = sphi %s1818_s15, %s2012_s15   ;;  %s1780_s14 = sphi %s1816_s14, %s2011_s14   ;;  %s1776_s13 = sphi %s1814_s13, %s2010_s13   ;;  %s1772_s12 = sphi %s1812_s12, %s2009_s12  }
   0x4   : > { %p26_p0 = scmp.ge.s32.totalorder %s25_s17, 6  ;;  %p49_p2 = scmp.eq.s32.totalorder %s1788_s16, 0 }
   0x5   : > { %s41_s19 = sadd.s32 1, %s1776_s13  ;;  %p1414_p5 = scmp.ge.s32.totalorder %s1788_s16, 6 }
   0x6   : > { %s2014_s17 = smov (%p26_p0, %s25_s17), 0  ;;  %p50_p3 = por %p49_p2, %p48_p1 }
   0x7   : > { %s37_s18 = ssub.s32 %s1784_s15, %s2014_s17  ;;  %164 = sbr.rel (%p1414_p5) target bundleno = 22 (0x16), region = 20 }
   0x8   : > { %p39_p4 = scmp.eq.s32.totalorder %s37_s18, 0 }
   0xa   : > { %s1847_s20 = scalar_select %p39_p4, %s1776_s13, %s41_s19  }
   0xe   : > { %167 = sbr.rel (!%p50_p3) target bundleno = 22 (0x16), region = 24  ;;  %s169_s21 = sand.u32 (%p50_p3), 1, %s1776_s13  }
   0xf   : > { %s1539_s22 = smul.u32 (%p50_p3), 12, %s1784_s15 }
  0x10   : > { %s1555_s23 = smul.u32 (%p50_p3), 36, %s169_s21 }
  0x11   : > { %s177_s26 = scalar_lea.vmem (%p50_p3), %s2005_s0, %s1539_s22 }
  0x12   : > { %v192_v0 = vld [vmem:[%s177_s26] sm:$0xff] (%p50_p3)  ;;  %v194_v1 = vld [vmem:[%s177_s26 + $0x48] sm:$0xff] (%p50_p3)  ;;  %v196_v2 = vld [vmem:[%s177_s26 + $0x90] sm:$0xff] (%p50_p3)  ;;  %s171_s27 = scalar_lea.vmem (%p50_p3), [#allocation3], %s1555_s23 }
  0x13   : > { %193 = vst [vmem:[%s171_s27] sm:$0xff] (%p50_p3), %v192_v0  ;;  %195 = vst [vmem:[%s171_s27 + $0xc] sm:$0xff] (%p50_p3), %v194_v1  ;;  %v1416_v3 = vld [vmem:[%s177_s26 + $0x8] sm:$0xf] (%p50_p3)  ;;  %v1418_v4 = vld [vmem:[%s177_s26 + $0x50] sm:$0xf] (%p50_p3) }
  0x14   : > { %197 = vst [vmem:[%s171_s27 + $0x18] sm:$0xff] (%p50_p3), %v196_v2  ;;  %v1420_v5 = vld [vmem:[%s177_s26 + $0x98] sm:$0xf] (%p50_p3)  ;;  %1417 = vst [vmem:[%s171_s27 + $0x8] sm:$0xf] (%p50_p3), %v1416_v3 }
  0x15   : > { %1419 = vst [vmem:[%s171_s27 + $0x14] sm:$0xf] %v1418_v4  ;;  %1421 = vst [vmem:[%s171_s27 + $0x20] sm:$0xf] %v1420_v5 }
  0x16 PF: > { %p1422_p6 = scmp.ge.s32.totalorder %s1788_s16, 1  ;;  %p230_p7 = scmp.lt.s32.totalorder %s1788_s16, 7 }
  0x18   : > { %p231_p8 = pnand %p1422_p6, %p230_p7 }
  0x19   : > { %s237_s28 = sand.u32 (!%p231_p8), 1, %s1772_s12   ;;  %s281_s29 = smul.u32 (!%p231_p8), 48, %s1780_s14 }
  0x1a   : > { %234 = sbr.rel (%p231_p8) target bundleno = 378 (0x17a), region = 54  ;;  %p1425_p10 = scmp.ne.s32.totalorder (!%p231_p8), %s1780_s14, 0 }
  0x1b   : > { %s1556_s30 = smul.u32 (!%p231_p8), 36, %s237_s28  ;;  %p283_p9 = scmp.lt.s32.totalorder (!%p231_p8), %s281_s29, 287 }
  0x1d   : > { %s1864_s8 = scalar_lea.vmem (!%p231_p8), [#allocation3], %s1556_s30 }
  0x21   : > { %s2016_s29 = smov (!%p283_p9, %s281_s29), 287  ;;  %314 = sbr.rel (%p1425_p10) target bundleno = 41 (0x29), region = 62 }
  0x22   : > { %s1540_s4 = sshll.u32 %s2016_s29, 4  ;;  %v1790_v6 = vmov (!%p1425_p10), 0.0  }
  0x23   : > { %s1862_s7 = scalar_lea.vmem %s2006_s1, %s1540_s4  ;;  %315 = vst [vmem:[#allocation2] sm:$0xff] (!%p1425_p10), %v1790_v6  ;;  %316 = vst [vmem:[#allocation2 + $0x8] sm:$0xff] (!%p1425_p10), %v1790_v6 }
  0x24   : > { %317 = vst [vmem:[#allocation2 + $0x10] sm:$0xff] (!%p1425_p10), %v1790_v6  ;;  %318 = vst [vmem:[#allocation2 + $0x18] sm:$0xff] (!%p1425_p10), %v1790_v6 }
  0x25   : > { %319 = vst [vmem:[#allocation2 + $0x20] sm:$0xff] (!%p1425_p10), %v1790_v6  ;;  %320 = vst [vmem:[#allocation2 + $0x28] sm:$0xff] (!%p1425_p10), %v1790_v6 }
  0x26   : > { %321 = vst [vmem:[#allocation2 + $0x30] sm:$0xff] (!%p1425_p10), %v1790_v6  ;;  %322 = vst [vmem:[#allocation2 + $0x38] sm:$0xff] (!%p1425_p10), %v1790_v6 }
  0x27   : > { %323 = vst [vmem:[#allocation2 + $0x40] sm:$0x3] (!%p1425_p10), %v1790_v6  ;;  %324 = vst [vmem:[#allocation2 + $0x48] sm:$0x3] (!%p1425_p10), %v1790_v6 }
  0x28   : > { %325 = vst [vmem:[#allocation2 + $0x50] sm:$0x3] %v1790_v6  ;;  %326 = vst [vmem:[#allocation2 + $0x58] sm:$0x3] %v1790_v6 }
  0x29 PF: > { %v1599_v7 = vld [vmem:[%s1862_s7 + $0x4] ss:$16 sps:$4 sm:$0xff]   ;;  %v1601_v8 = vld [vmem:[%s1862_s7 + $0xc] ss:$16 sps:$4 sm:$0xff]   ;;  %v1603_v9 = vld [vmem:[%s1862_s7] ss:$16 sps:$4 sm:$0xff]  }
  0x2a   : > { %948 = vmatprep.subr.bf16.mxu0 %v1599_v7  ;;  %v1604_v10 = vld [vmem:[%s1862_s7 + $0x8] ss:$16 sps:$4 sm:$0xff]   ;;  %1050 = vmatprep.subr.bf16.mxu1 %v1601_v8  ;;  %v1605_v11 = vld [vmem:[%s1862_s7 + $0x24] ss:$16 sps:$4 sm:$0xff]   ;;  %v1607_v12 = vld [vmem:[%s1862_s7 + $0x2c] ss:$16 sps:$4 sm:$0xff]  }
  0x2b   : > { %949 = vmatpush1.bf16.msra.mxu0 %v1603_v9  ;;  %1051 = vmatpush1.bf16.msra.mxu1 %v1604_v10  ;;  %v1609_v13 = vld [vmem:[%s1862_s7 + $0x20] ss:$16 sps:$4 sm:$0xff]   ;;  %v1610_v14 = vld [vmem:[%s1862_s7 + $0x28] ss:$16 sps:$4 sm:$0xff]   ;;  %v1611_v15 = vld [vmem:[%s1862_s7 + $0x44] ss:$16 sps:$4 sm:$0xff]  }
  0x2c   : > { %950 = vmatprep.subr.bf16.mxu0 %v1605_v11  ;;  %1052 = vmatprep.subr.bf16.mxu1 %v1607_v12  ;;  %v1613_v16 = vld [vmem:[%s1862_s7 + $0x4c] ss:$16 sps:$4 sm:$0xff]   ;;  %v1615_v17 = vld [vmem:[%s1862_s7 + $0x40] ss:$16 sps:$4 sm:$0xff]   ;;  %v1616_v18 = vld [vmem:[%s1862_s7 + $0x48] ss:$16 sps:$4 sm:$0xff]  }
  0x2d   : > { %v1617_v19 = vld [vmem:[%s1862_s7 + $0x64] ss:$16 sps:$4 sm:$0xff]   ;;  %v1619_v20 = vld [vmem:[%s1862_s7 + $0x6c] ss:$16 sps:$4 sm:$0xff]   ;;  %v1621_v21 = vld [vmem:[%s1862_s7 + $0x60] ss:$16 sps:$4 sm:$0xff]  }
  0x2e   : > { %v1622_v22 = vld [vmem:[%s1862_s7 + $0x68] ss:$16 sps:$4 sm:$0xff]   ;;  %v1623_v23 = vld [vmem:[%s1862_s7 + $0x84] ss:$16 sps:$4 sm:$0xff]   ;;  %v1625_v24 = vld [vmem:[%s1862_s7 + $0x8c] ss:$16 sps:$4 sm:$0xff]  }
  0x2f   : > { %951 = vmatpush1.bf16.msra.mxu0 %v1609_v13  ;;  %1053 = vmatpush1.bf16.msra.mxu1 %v1610_v14  ;;  %v1627_v25 = vld [vmem:[%s1862_s7 + $0x80] ss:$16 sps:$4 sm:$0xff]   ;;  %v1628_v26 = vld [vmem:[%s1862_s7 + $0x88] ss:$16 sps:$4 sm:$0xff]   ;;  %v1629_v27 = vld [vmem:[%s1862_s7 + $0xa4] ss:$16 sps:$4 sm:$0xff]  }
  0x30   : > { %952 = vmatprep.subr.bf16.mxu0 %v1611_v15  ;;  %1054 = vmatprep.subr.bf16.mxu1 %v1613_v16  ;;  %v1631_v28 = vld [vmem:[%s1862_s7 + $0xac] ss:$16 sps:$4 sm:$0xff]   ;;  %v1633_v29 = vld [vmem:[%s1862_s7 + $0xa0] ss:$16 sps:$4 sm:$0xff]   ;;  %v1634_v30 = vld [vmem:[%s1862_s7 + $0xa8] ss:$16 sps:$4 sm:$0xff]  }
  0x31   : > { %v1635_v31 = vld [vmem:[%s1862_s7 + $0xc4] ss:$16 sps:$4 sm:$0xff]   ;;  %v1637_v32 = vld [vmem:[%s1862_s7 + $0xcc] ss:$16 sps:$4 sm:$0xff]   ;;  %v1639_v33 = vld [vmem:[%s1862_s7 + $0xc0] ss:$16 sps:$4 sm:$0xff]  }
  0x32   : > { %v1640_v34 = vld [vmem:[%s1862_s7 + $0xc8] ss:$16 sps:$4 sm:$0xff]   ;;  %v1641_v35 = vld [vmem:[%s1862_s7 + $0xe4] ss:$16 sps:$4 sm:$0xff]   ;;  %v1643_v36 = vld [vmem:[%s1862_s7 + $0xec] ss:$16 sps:$4 sm:$0xff]  }
  0x33   : > { %953 = vmatpush1.bf16.msra.mxu0 %v1615_v17  ;;  %1055 = vmatpush1.bf16.msra.mxu1 %v1616_v18  ;;  %v1645_v37 = vld [vmem:[%s1862_s7 + $0xe0] ss:$16 sps:$4 sm:$0xff]   ;;  %v1646_v38 = vld [vmem:[%s1862_s7 + $0xe8] ss:$16 sps:$4 sm:$0xff]   ;;  %v1647_v39 = vld [vmem:[%s1862_s7 + $0x104] ss:$16 sps:$4 sm:$0xff]  }
  0x34   : > { %954 = vmatprep.subr.bf16.mxu0 %v1617_v19  ;;  %1056 = vmatprep.subr.bf16.mxu1 %v1619_v20  ;;  %v1649_v40 = vld [vmem:[%s1862_s7 + $0x10c] ss:$16 sps:$4 sm:$0xff]   ;;  %v1651_v41 = vld [vmem:[%s1862_s7 + $0x100] ss:$16 sps:$4 sm:$0xff]   ;;  %v1652_v42 = vld [vmem:[%s1862_s7 + $0x108] ss:$16 sps:$4 sm:$0xff]  }
  0x35   : > { %v1653_v43 = vld [vmem:[%s1862_s7 + $0x124] ss:$16 sps:$4 sm:$0xff]   ;;  %v1655_v44 = vld [vmem:[%s1862_s7 + $0x12c] ss:$16 sps:$4 sm:$0xff]   ;;  %v1657_v45 = vld [vmem:[%s1862_s7 + $0x120] ss:$16 sps:$4 sm:$0xff]  }
  0x36   : > { %v1658_v46 = vld [vmem:[%s1862_s7 + $0x128] ss:$16 sps:$4 sm:$0xff]   ;;  %v1659_v47 = vld [vmem:[%s1862_s7 + $0x144] ss:$16 sps:$4 sm:$0xff]   ;;  %v1661_v48 = vld [vmem:[%s1862_s7 + $0x14c] ss:$16 sps:$4 sm:$0xff]  }
  0x37   : > { %955 = vmatpush1.bf16.msra.mxu0 %v1621_v21  ;;  %1057 = vmatpush1.bf16.msra.mxu1 %v1622_v22  ;;  %v1663_v49 = vld [vmem:[%s1862_s7 + $0x140] ss:$16 sps:$4 sm:$0xff]   ;;  %v1664_v50 = vld [vmem:[%s1862_s7 + $0x148] ss:$16 sps:$4 sm:$0xff]   ;;  %v1665_v51 = vld [vmem:[%s1862_s7 + $0x164] ss:$16 sps:$4 sm:$0xff]  }
  0x38   : > { %956 = vmatprep.subr.bf16.mxu0 %v1623_v23  ;;  %1058 = vmatprep.subr.bf16.mxu1 %v1625_v24  ;;  %v1667_v52 = vld [vmem:[%s1862_s7 + $0x16c] ss:$16 sps:$4 sm:$0xff]   ;;  %v1669_v53 = vld [vmem:[%s1862_s7 + $0x160] ss:$16 sps:$4 sm:$0xff]   ;;  %v1670_v54 = vld [vmem:[%s1862_s7 + $0x168] ss:$16 sps:$4 sm:$0xff]  }
  0x39   : > { %v1697_v55 = vld [vmem:[%s1864_s8 + $0x4] ss:$12 sps:$4 sm:$0xff]   ;;  %v1673_v57 = vld [vmem:[%s1862_s7 + $0x18c] ss:$16 sps:$4 sm:$0xff]   ;;  %p1528_p11 = scmp.ne.s32.totalorder %s1780_s14, 5 }
  0x3a   : > { %v1671_v56 = vld [vmem:[%s1862_s7 + $0x184] ss:$16 sps:$4 sm:$0xff]   ;;  %980 = vmatprep.mubr.bf16.mxu0 %v1697_v55  ;;  %1082 = vmatprep.mubr.bf16.mxu1 %v1697_v55  ;;  %v1675_v58 = vld [vmem:[%s1862_s7 + $0x180] ss:$16 sps:$4 sm:$0xff]   ;;  %v1676_v59 = vld [vmem:[%s1862_s7 + $0x188] ss:$16 sps:$4 sm:$0xff]  }
  0x3b   : > { %957 = vmatpush1.bf16.msra.mxu0 %v1627_v25  ;;  %1059 = vmatpush1.bf16.msra.mxu1 %v1628_v26  ;;  %v1677_v60 = vld [vmem:[%s1862_s7 + $0x1a4] ss:$16 sps:$4 sm:$0xff]   ;;  %v1679_v61 = vld [vmem:[%s1862_s7 + $0x1ac] ss:$16 sps:$4 sm:$0xff]   ;;  %v1681_v62 = vld [vmem:[%s1862_s7 + $0x1a0] ss:$16 sps:$4 sm:$0xff]  }
  0x3c   : > { %958 = vmatprep.subr.bf16.mxu0 %v1629_v27  ;;  %1060 = vmatprep.subr.bf16.mxu1 %v1631_v28  ;;  %v1682_v63 = vld [vmem:[%s1862_s7 + $0x1a8] ss:$16 sps:$4 sm:$0xff]   ;;  %v1683_v0 = vld [vmem:[%s1862_s7 + $0x1c4] ss:$16 sps:$4 sm:$0xff]   ;;  %v1685_v1 = vld [vmem:[%s1862_s7 + $0x1cc] ss:$16 sps:$4 sm:$0xff]  }
  0x3d   : > { %v1687_v2 = vld [vmem:[%s1862_s7 + $0x1c0] ss:$16 sps:$4 sm:$0xff]   ;;  %v1688_v3 = vld [vmem:[%s1862_s7 + $0x1c8] ss:$16 sps:$4 sm:$0xff]   ;;  %v1689_v4 = vld [vmem:[%s1862_s7 + $0x1e4] ss:$16 sps:$4 sm:$0xff]  }
  0x3e   : > { %v1691_v5 = vld [vmem:[%s1862_s7 + $0x1ec] ss:$16 sps:$4 sm:$0xff]   ;;  %v1693_v6 = vld [vmem:[%s1862_s7 + $0x1e0] ss:$16 sps:$4 sm:$0xff]   ;;  %v1694_v7 = vld [vmem:[%s1862_s7 + $0x1e8] ss:$16 sps:$4 sm:$0xff]  }
  0x3f   : > { %959 = vmatpush1.bf16.msra.mxu0 %v1633_v29  ;;  %1061 = vmatpush1.bf16.msra.mxu1 %v1634_v30  ;;  %v1700_v8 = vld [vmem:[%s1862_s7 + $0x204] ss:$16 sps:$4 sm:$0xff]   ;;  %v1703_v9 = vld [vmem:[%s1862_s7 + $0x20c] ss:$16 sps:$4 sm:$0xff]   ;;  %v1698_v11 = vld [vmem:[%s1862_s7 + $0x200] ss:$16 sps:$4 sm:$0xff]  }
  0x40   : > { %960 = vmatprep.subr.bf16.mxu0 %v1635_v31  ;;  %1062 = vmatprep.subr.bf16.mxu1 %v1637_v32  ;;  %v1695_v10 = vld [vmem:[%s1864_s8] ss:$12 sps:$4 sm:$0xff]   ;;  %v343_v12 = vld [vmem:[%s1864_s8 + $0x18] sm:$0x11]  ;;  %v1791_v30 = vmov 0  }
  0x41   : > { %v1701_v13 = vld [vmem:[%s1862_s7 + $0x208] ss:$16 sps:$4 sm:$0xff]   ;;  %v1706_v14 = vld [vmem:[%s1862_s7 + $0x224] ss:$16 sps:$4 sm:$0xff]   ;;  %v1709_v15 = vld [vmem:[%s1862_s7 + $0x22c] ss:$16 sps:$4 sm:$0xff]   ;;  %v1430_v16 = vcombine.high %v343_v12, %v343_v12  ;;  %v1429_v21 = vcombine.low %v343_v12, %v343_v12 }
  0x42   : > { %v1704_v17 = vld [vmem:[%s1862_s7 + $0x220] ss:$16 sps:$4 sm:$0xff]   ;;  %v1707_v18 = vld [vmem:[%s1862_s7 + $0x228] ss:$16 sps:$4 sm:$0xff]   ;;  %v1712_v19 = vld [vmem:[%s1862_s7 + $0x244] ss:$16 sps:$4 sm:$0xff]  }
  0x43   : > { %961 = vmatpush1.bf16.msra.mxu0 %v1639_v33  ;;  %1063 = vmatpush1.bf16.msra.mxu1 %v1640_v34  ;;  %v1715_v20 = vld [vmem:[%s1862_s7 + $0x24c] ss:$16 sps:$4 sm:$0xff]   ;;  %v1710_v22 = vld [vmem:[%s1862_s7 + $0x240] ss:$16 sps:$4 sm:$0xff]   ;;  %v1713_v23 = vld [vmem:[%s1862_s7 + $0x248] ss:$16 sps:$4 sm:$0xff]  }
  0x44   : > { %962 = vmatprep.subr.bf16.mxu0 %v1641_v35  ;;  %1064 = vmatprep.subr.bf16.mxu1 %v1643_v36  ;;  %v1718_v24 = vld [vmem:[%s1862_s7 + $0x264] ss:$16 sps:$4 sm:$0xff]   ;;  %v1721_v25 = vld [vmem:[%s1862_s7 + $0x26c] ss:$16 sps:$4 sm:$0xff]   ;;  %v1716_v26 = vld [vmem:[%s1862_s7 + $0x260] ss:$16 sps:$4 sm:$0xff]  }
  0x45   : > { %v1719_v27 = vld [vmem:[%s1862_s7 + $0x268] ss:$16 sps:$4 sm:$0xff]   ;;  %v1724_v28 = vld [vmem:[%s1862_s7 + $0x284] ss:$16 sps:$4 sm:$0xff]   ;;  %v1727_v29 = vld [vmem:[%s1862_s7 + $0x28c] ss:$16 sps:$4 sm:$0xff]  }
  0x46   : > { %v1722_v31 = vld [vmem:[%s1862_s7 + $0x280] ss:$16 sps:$4 sm:$0xff]   ;;  %v1725_v32 = vld [vmem:[%s1862_s7 + $0x288] ss:$16 sps:$4 sm:$0xff]   ;;  %v1731_v33 = vld [vmem:[%s1862_s7 + $0x2a4] ss:$16 sps:$4 sm:$0xff]  }
  0x47   : > { %963 = vmatpush1.bf16.msra.mxu0 %v1645_v37  ;;  %1065 = vmatpush1.bf16.msra.mxu1 %v1646_v38  ;;  %v1734_v34 = vld [vmem:[%s1862_s7 + $0x2ac] ss:$16 sps:$4 sm:$0xff]   ;;  %v1729_v35 = vld [vmem:[%s1862_s7 + $0x2a0] ss:$16 sps:$4 sm:$0xff]   ;;  %v1732_v36 = vld [vmem:[%s1862_s7 + $0x2a8] ss:$16 sps:$4 sm:$0xff]  }
  0x48   : > { %964 = vmatprep.subr.bf16.mxu0 %v1647_v39  ;;  %1066 = vmatprep.subr.bf16.mxu1 %v1649_v40  ;;  %v1738_v37 = vld [vmem:[%s1862_s7 + $0x2c4] ss:$16 sps:$4 sm:$0xff]   ;;  %v1741_v38 = vld [vmem:[%s1862_s7 + $0x2cc] ss:$16 sps:$4 sm:$0xff]   ;;  %v1736_v39 = vld [vmem:[%s1862_s7 + $0x2c0] ss:$16 sps:$4 sm:$0xff]  }
  0x49   : > { %v1739_v40 = vld [vmem:[%s1862_s7 + $0x2c8] ss:$16 sps:$4 sm:$0xff]   ;;  %v327_v55 = vld [vmem:[#allocation2] sm:$0xff] }
  0x4b   : > { %965 = vmatpush1.bf16.msra.mxu0 %v1651_v41  ;;  %1067 = vmatpush1.bf16.msra.mxu1 %v1652_v42  ;;  %v1744_v41 = vld [vmem:[%s1862_s7 + $0x2e4] ss:$16 sps:$4 sm:$0xff]   ;;  %v1747_v42 = vld [vmem:[%s1862_s7 + $0x2ec] ss:$16 sps:$4 sm:$0xff]  }
  0x4c   : > { %966 = vmatprep.subr.bf16.mxu0 %v1653_v43  ;;  %1068 = vmatprep.subr.bf16.mxu1 %v1655_v44  ;;  %v1742_v43 = vld [vmem:[%s1862_s7 + $0x2e0] ss:$16 sps:$4 sm:$0xff]   ;;  %v1745_v44 = vld [vmem:[%s1862_s7 + $0x2e8] ss:$16 sps:$4 sm:$0xff]  }
  0x4f   : > { %967 = vmatpush1.bf16.msra.mxu0 %v1657_v45  ;;  %1069 = vmatpush1.bf16.msra.mxu1 %v1658_v46  ;;  %v1748_v45 = vld [vmem:[%s1864_s8 + $0x8] ss:$12 sps:$4 sm:$0xff]   ;;  %v1749_v46 = vld [vmem:[%s1864_s8 + $0x20] ss:$0 sps:$4 sm:$0x11]  }
  0x50   : > { %968 = vmatprep.subr.bf16.mxu0 %v1659_v47  ;;  %1070 = vmatprep.subr.bf16.mxu1 %v1661_v48 }
  0x53   : > { %969 = vmatpush1.bf16.msra.mxu0 %v1663_v49  ;;  %1071 = vmatpush1.bf16.msra.mxu1 %v1664_v50 }
  0x54   : > { %970 = vmatprep.subr.bf16.mxu0 %v1665_v51  ;;  %1072 = vmatprep.subr.bf16.mxu1 %v1667_v52 }
  0x57   : > { %971 = vmatpush1.bf16.msra.mxu0 %v1669_v53  ;;  %1073 = vmatpush1.bf16.msra.mxu1 %v1670_v54 }
  0x58   : > { %972 = vmatprep.subr.bf16.mxu0 %v1671_v56  ;;  %1074 = vmatprep.subr.bf16.mxu1 %v1673_v57  ;;  %v329_v56 = vld [vmem:[#allocation2 + $0x10] sm:$0xff]  ;;  %v328_v57 = vld [vmem:[#allocation2 + $0x8] sm:$0xff] }
  0x5b   : > { %973 = vmatpush1.bf16.msra.mxu0 %v1675_v58  ;;  %1075 = vmatpush1.bf16.msra.mxu1 %v1676_v59  ;;  %v330_v58 = vld [vmem:[#allocation2 + $0x18] sm:$0xff] }
  0x5c   : > { %974 = vmatprep.subr.bf16.mxu0 %v1677_v60  ;;  %1076 = vmatprep.subr.bf16.mxu1 %v1679_v61  ;;  %v331_v61 = vld [vmem:[#allocation2 + $0x20] sm:$0xff] }
  0x5f   : > { %975 = vmatpush1.bf16.msra.mxu0 %v1681_v62  ;;  %1077 = vmatpush1.bf16.msra.mxu1 %v1682_v63  ;;  %v333_v62 = vld [vmem:[#allocation2 + $0x30] sm:$0xff] }
  0x60   : > { %976 = vmatprep.subr.bf16.mxu0 %v1683_v0  ;;  %1078 = vmatprep.subr.bf16.mxu1 %v1685_v1 }
  0x63   : > { %977 = vmatpush1.bf16.msra.mxu0 %v1687_v2  ;;  %1079 = vmatpush1.bf16.msra.mxu1 %v1688_v3  ;;  %v332_v3 = vld [vmem:[#allocation2 + $0x28] sm:$0xff] }
  0x64   : > { %978 = vmatprep.subr.bf16.mxu0 %v1689_v4  ;;  %1080 = vmatprep.subr.bf16.mxu1 %v1691_v5  ;;  %v334_v4 = vld [vmem:[#allocation2 + $0x38] sm:$0xff] }
  0x67   : > { %979 = vmatpush1.bf16.msra.mxu0 %v1693_v6  ;;  %1081 = vmatpush1.bf16.msra.mxu1 %v1694_v7 }
  0x68   : > { %999 = vmatprep.subr.bf16.mxu0 %v1700_v8  ;;  %1101 = vmatprep.subr.bf16.mxu1 %v1703_v9 }
  0x6a   : > { %981 = vmatmul.mubr.bf16.vlgmr.msra.gmra.mrb[0].mxu0 %v1695_v10  ;;  %1083 = vmatmul.mubr.bf16.vlgmr.msra.gmra.mrb[0].mxu1 %v1695_v10 }
  0x6b   : > { %1000 = vmatpush1.bf16.msra.mxu0 %v1698_v11  ;;  %1102 = vmatpush1.bf16.msra.mxu1 %v1701_v13 }
  0x6c   : > { %1001 = vmatprep.subr.bf16.mxu0 %v1706_v14  ;;  %1103 = vmatprep.subr.bf16.mxu1 %v1709_v15  ;;  %v335_v15 = vld [vmem:[#allocation2 + $0x40] sm:$0x3] }
  0x6d   : > { %990 = vmatprep.mubr.bf16.mxu0 %v1430_v16  ;;  %1092 = vmatprep.mubr.bf16.mxu1 %v1430_v16 }
  0x6f   : > { %1002 = vmatpush1.bf16.msra.mxu0 %v1704_v17  ;;  %1104 = vmatpush1.bf16.msra.mxu1 %v1707_v18  ;;  %v337_v17 = vld [vmem:[#allocation2 + $0x50] sm:$0x3] }
  0x70   : > { %1003 = vmatprep.subr.bf16.mxu0 %v1712_v19  ;;  %1105 = vmatprep.subr.bf16.mxu1 %v1715_v20 }
  0x72   : > { %991 = vmatmul.mubr.bf16.gmra.mrb[4].mxu0 %v1429_v21  ;;  %1093 = vmatmul.mubr.bf16.gmra.mrb[4].mxu1 %v1429_v21  ;;  %v336_v21 = vld [vmem:[#allocation2 + $0x48] sm:$0x3] }
  0x73   : > { %1004 = vmatpush1.bf16.msra.mxu0 %v1710_v22  ;;  %1106 = vmatpush1.bf16.msra.mxu1 %v1713_v23  ;;  %v338_v23 = vld [vmem:[#allocation2 + $0x58] sm:$0x3] }
  0x74   : > { %1005 = vmatprep.subr.bf16.mxu0 %v1718_v24  ;;  %1107 = vmatprep.subr.bf16.mxu1 %v1721_v25 }
  0x75   : > { %1031 = vmatprep.mubr.bf16.mxu0 %v1791_v30  ;;  %1133 = vmatprep.mubr.bf16.mxu1 %v1791_v30 }
  0x77   : > { %1006 = vmatpush1.bf16.msra.mxu0 %v1716_v26  ;;  %1108 = vmatpush1.bf16.msra.mxu1 %v1719_v27 }
  0x78   : > { %1007 = vmatprep.subr.bf16.mxu0 %v1724_v28  ;;  %1109 = vmatprep.subr.bf16.mxu1 %v1727_v29 }
  0x7b   : > { %1008 = vmatpush1.bf16.msra.mxu0 %v1722_v31  ;;  %1110 = vmatpush1.bf16.msra.mxu1 %v1725_v32 }
  0x7c   : > { %1009 = vmatprep.subr.bf16.mxu0 %v1731_v33  ;;  %1111 = vmatprep.subr.bf16.mxu1 %v1734_v34 }
  0x7f   : > { %1010 = vmatpush1.bf16.msra.mxu0 %v1729_v35  ;;  %1112 = vmatpush1.bf16.msra.mxu1 %v1732_v36  ;;  %v1194_v35 = vlaneseq (!%p1528_p11) }
  0x80   : > { %1011 = vmatprep.subr.bf16.mxu0 %v1738_v37  ;;  %1113 = vmatprep.subr.bf16.mxu1 %v1741_v38  ;;  %v1192_v37 = vld [vmem:[%s2007_s2] sm:$0xf] (!%p1528_p11) }
  0x81   : > { %v1195_v36 = vshrl.u32 (!%p1528_p11), %v1194_v35, 7 }
  0x83   : > { %1012 = vmatpush1.bf16.msra.mxu0 %v1736_v39  ;;  %1114 = vmatpush1.bf16.msra.mxu1 %v1739_v40  ;;  %v1196_v40 = vsub.s32 (!%p1528_p11), 0, %v1195_v36 }
  0x84   : > { %1013 = vmatprep.subr.bf16.mxu0 %v1744_v41  ;;  %1115 = vmatprep.subr.bf16.mxu1 %v1747_v42  ;;  %v1200_v41 = vsub.s32 (!%p1528_p11), 1, %v1195_v36  ;;  %v1204_v42 = vsub.s32 (!%p1528_p11), 2, %v1195_v36 }
  0x87   : > { %1014 = vmatpush1.bf16.msra.mxu0 %v1742_v43  ;;  %1116 = vmatpush1.bf16.msra.mxu1 %v1745_v44  ;;  %v1208_v43 = vsub.s32 (!%p1528_p11), 3, %v1195_v36 }
  0x8a   : > { %1032 = vmatmul.mubr.bf16.vlgmr.msra.gmra.mrb[0].mxu0 %v1748_v45  ;;  %1134 = vmatmul.mubr.bf16.vlgmr.msra.gmra.mrb[0].mxu1 %v1748_v45 }
  0x8b   : > { %1041 = vmatprep.mubr.bf16.mxu0 %v1791_v30  ;;  %1143 = vmatprep.mubr.bf16.mxu1 %v1791_v30 }
  0x92   : > { %1042 = vmatmul.mubr.bf16.gmra.mrb[8].mxu0 %v1749_v46  ;;  %1144 = vmatmul.mubr.bf16.gmra.mrb[8].mxu1 %v1749_v46 }
 0x145   : > { %v992_v47 = vpop.f32.mrb[4].mxu0  ;;  %v1094_v48 = vpop.f32.mrb[4].mxu1 }
 0x146   : > { %v994_v49 = vpop.f32.mrb[5].mxu0  ;;  %v1096_v50 = vpop.f32.mrb[5].mxu1 }
 0x147   : > { %v996_v51 = vpop.f32.mrb[6].mxu0  ;;  %v1098_v52 = vpop.f32.mrb[6].mxu1 }
 0x148   : > { %v997_v53 = vpop.f32.mrb[7].mxu0  ;;  %v1099_v54 = vpop.f32.mrb[7].mxu1 }
 0x15d   : > { %v1033_v59 = vpop.f32.mrb[0].mxu0  ;;  %v1135_v60 = vpop.f32.mrb[0].mxu1 }
 0x15e   : > { %v1152_v63 = vadd.f32 %v1033_v59, %v327_v55  ;;  %v1154_v0 = vadd.f32 %v1135_v60, %v329_v56  ;;  %v1035_v1 = vpop.f32.mrb[1].mxu0  ;;  %v1137_v2 = vpop.f32.mrb[1].mxu1 }
 0x15f   : > { %v1153_v5 = vadd.f32 %v1035_v1, %v328_v57  ;;  %v1155_v6 = vadd.f32 %v1137_v2, %v330_v58  ;;  %v1037_v7 = vpop.f32.mrb[2].mxu0  ;;  %v1139_v8 = vpop.f32.mrb[2].mxu1 }
 0x160   : > { %1164 = vst [vmem:[#allocation2] sm:$0xff] %v1152_v63  ;;  %1166 = vst [vmem:[#allocation2 + $0x10] sm:$0xff] %v1154_v0  ;;  %v1156_v9 = vadd.f32 %v1037_v7, %v331_v61  ;;  %v1158_v10 = vadd.f32 %v1139_v8, %v333_v62  ;;  %v1039_v11 = vpop.f32.mrb[3].mxu0  ;;  %v1141_v12 = vpop.f32.mrb[3].mxu1 }
 0x161   : > { %1165 = vst [vmem:[#allocation2 + $0x8] sm:$0xff] %v1153_v5  ;;  %1167 = vst [vmem:[#allocation2 + $0x18] sm:$0xff] %v1155_v6  ;;  %v1157_v13 = vadd.f32 %v1039_v11, %v332_v3  ;;  %v1159_v14 = vadd.f32 %v1141_v12, %v334_v4 }
 0x162   : > { %1168 = vst [vmem:[#allocation2 + $0x20] sm:$0xff] %v1156_v9  ;;  %1170 = vst [vmem:[#allocation2 + $0x30] sm:$0xff] %v1158_v10 }
 0x163   : > { %1169 = vst [vmem:[#allocation2 + $0x28] sm:$0xff] %v1157_v13  ;;  %1171 = vst [vmem:[#allocation2 + $0x38] sm:$0xff] %v1159_v14 }
 0x165   : > { %v1043_v16 = vpop.f32.mrb[8].mxu0  ;;  %v1145_v18 = vpop.f32.mrb[8].mxu1  ;;  %1179 = sbr.rel (%p1528_p11) target bundleno = 378 (0x17a), region = 66 }
 0x166   : > { %v1044_v19 = vadd.f32 %v1043_v16, %v992_v47  ;;  %v1146_v20 = vadd.f32 %v1145_v18, %v1094_v48  ;;  %v1045_v22 = vpop.f32.mrb[9].mxu0  ;;  %v1147_v24 = vpop.f32.mrb[9].mxu1  ;;  %v1197_v47 = vrot.slane (!%p1528_p11), %v1192_v37, %v1196_v40  ;;  %v1201_v48 = vrot.slane (!%p1528_p11), %v1192_v37, %v1200_v41 }
 0x167   : > { %v1046_v25 = vadd.f32 %v1045_v22, %v994_v49  ;;  %v1148_v26 = vadd.f32 %v1147_v24, %v1096_v50  ;;  %v1047_v27 = vpop.f32.mrb[10].mxu0  ;;  %v1149_v28 = vpop.f32.mrb[10].mxu1  ;;  %v1180_v38 = vld [vmem:[#allocation2] sm:$0xff] (!%p1528_p11)  ;;  %v1182_v44 = vld [vmem:[#allocation2 + $0x10] sm:$0xff] (!%p1528_p11)  ;;  %v1205_v49 = vrot.slane (!%p1528_p11), %v1192_v37, %v1204_v42  ;;  %v1209_v50 = vrot.slane (!%p1528_p11), %v1192_v37, %v1208_v43 }
 0x168   : > { %v1160_v29 = vadd.f32 %v1044_v19, %v335_v15  ;;  %v1162_v30 = vadd.f32 %v1146_v20, %v337_v17  ;;  %v1048_v31 = vpop.f32.mrb[11].mxu0  ;;  %v1150_v32 = vpop.f32.mrb[11].mxu1  ;;  %v1181_v39 = vld [vmem:[#allocation2 + $0x8] sm:$0xff] (!%p1528_p11)  ;;  %v1183_v45 = vld [vmem:[#allocation2 + $0x18] sm:$0xff] (!%p1528_p11)  ;;  %v1214_v54 = vadd.f32 (!%p1528_p11), %v1197_v47, %v1180_v38 }
 0x169   : > { %v1161_v33 = vadd.f32 %v1046_v25, %v336_v21  ;;  %v1163_v34 = vadd.f32 %v1148_v26, %v338_v23  ;;  %v1184_v46 = vld [vmem:[#allocation2 + $0x20] sm:$0xff] (!%p1528_p11)  ;;  %v1186_v52 = vld [vmem:[#allocation2 + $0x30] sm:$0xff] (!%p1528_p11)  ;;  %v1215_v55 = vadd.f32 (!%p1528_p11), %v1201_v48, %v1181_v39  ;;  %v1216_v56 = vadd.f32 (!%p1528_p11), %v1205_v49, %v1182_v44 }
 0x16a   : > { %1172 = vst [vmem:[#allocation2 + $0x40] sm:$0x3] %v1160_v29  ;;  %1174 = vst [vmem:[#allocation2 + $0x50] sm:$0x3] %v1162_v30  ;;  %v1185_v51 = vld [vmem:[#allocation2 + $0x28] sm:$0xff] (!%p1528_p11)  ;;  %v1187_v53 = vld [vmem:[#allocation2 + $0x38] sm:$0xff] (!%p1528_p11)  ;;  %v1217_v57 = vadd.f32 (!%p1528_p11), %v1209_v50, %v1183_v45  ;;  %v1218_v58 = vadd.f32 (!%p1528_p11), %v1197_v47, %v1184_v46  ;;  %v1220_v60 = vadd.f32 (!%p1528_p11), %v1205_v49, %v1186_v52 }
 0x16b   : > { %1173 = vst [vmem:[#allocation2 + $0x48] sm:$0x3] %v1161_v33  ;;  %1175 = vst [vmem:[#allocation2 + $0x58] sm:$0x3] %v1163_v34  ;;  %v1219_v59 = vadd.f32 (!%p1528_p11), %v1201_v48, %v1185_v51  ;;  %v1221_v61 = vadd.f32 (!%p1528_p11), %v1209_v50, %v1187_v53  ;;  %v1226_v1 = vmax.f32 (!%p1528_p11), %v1214_v54, 0.0  ;;  %v1227_v2 = vmax.f32 (!%p1528_p11), %v1215_v55, 0.0 }
 0x16c   : > { %v1228_v3 = vmax.f32 %v1216_v56, 0.0  ;;  %v1229_v4 = vmax.f32 %v1217_v57, 0.0  ;;  %v1230_v6 = vmax.f32 %v1218_v58, 0.0  ;;  %v1232_v8 = vmax.f32 %v1220_v60, 0.0 }
 0x16d   : > { %v1231_v7 = vmax.f32 %v1219_v59, 0.0  ;;  %v1233_v9 = vmax.f32 %v1221_v61, 0.0  ;;  %v1541_v10 = vpack.c.bf16 %v1227_v2, %v1226_v1 }
 0x16e   : > { %v1542_v11 = vpack.c.bf16 %v1229_v4, %v1228_v3 }
 0x16f   : > { %v1543_v14 = vpack.c.bf16 %v1231_v7, %v1230_v6  ;;  %v1544_v15 = vpack.c.bf16 %v1233_v9, %v1232_v8  ;;  %1278 = vst [vmem:[%s2008_s3] sm:$0xff] %v1541_v10 }
 0x170   : > { %1279 = vst [vmem:[%s2008_s3 + $0x8] sm:$0xff] %v1542_v11 }
 0x171   : > { %v1188_v62 = vld [vmem:[#allocation2 + $0x40] sm:$0x3]  ;;  %v1190_v0 = vld [vmem:[#allocation2 + $0x50] sm:$0x3]  ;;  %1280 = vst [vmem:[%s2008_s3 + $0x10] sm:$0xff] %v1543_v14  ;;  %1281 = vst [vmem:[%s2008_s3 + $0x18] sm:$0xff] %v1544_v15 }
 0x172   : > { %v1189_v63 = vld [vmem:[#allocation2 + $0x48] sm:$0x3]  ;;  %v1191_v5 = vld [vmem:[#allocation2 + $0x58] sm:$0x3]  ;;  %v1222_v12 = vadd.f32 %v1197_v47, %v1188_v62  ;;  %v1224_v16 = vadd.f32 %v1205_v49, %v1190_v0 }
 0x173   : > { %v1223_v13 = vadd.f32 %v1201_v48, %v1189_v63  ;;  %v1225_v17 = vadd.f32 %v1209_v50, %v1191_v5 }
 0x174   : > { %v1234_v18 = vmax.f32 %v1222_v12, 0.0  ;;  %v1236_v20 = vmax.f32 %v1224_v16, 0.0 }
 0x175   : > { %v1235_v19 = vmax.f32 %v1223_v13, 0.0  ;;  %v1237_v21 = vmax.f32 %v1225_v17, 0.0 }
 0x177   : > { %v1545_v22 = vpack.c.bf16 %v1235_v19, %v1234_v18  ;;  %v1546_v23 = vpack.c.bf16 %v1237_v21, %v1236_v20 }
 0x179   : > { %1282 = vst [vmem:[%s2008_s3 + $0x20] sm:$0x11] %v1545_v22  ;;  %1283 = vst [vmem:[%s2008_s3 + $0x28] sm:$0x11] %v1546_v23 }
 0x17a PF: > { %s13_s16 = sadd.s32 1, %s1788_s16   ;;  %s2009_s12 = smov %s1776_s13 }
 0x17b   : > { %p10_p12 = scmp.ge.s32.totalorder %s13_s16, 8   ;;  %s2010_s13 = smov %s1847_s20 }
 0x17c   : > { %s2011_s14 = smov %s1784_s15  ;;  %s2012_s15 = smov %s2014_s17 }
 0x17d   :  { %12 = sbr.rel (!%p10_p12) target bundleno = 3 (0x3), region = 113 }

// kernel: vggnet_forward.24
= control target key start
LH: loop header
LB: loop body
LE: loop exit
PB: predicated region body
PF: predicated region fallthrough
CT: control target
= control target key end

     0   :  { %s2076_s12 = smov 0   ;;  %s2078_s13 = smov 0   ;;  %s2302_s0 = inlined_call_operand.vmem [shape: bf16[18,4608], index: 0, kind: input, shape index: {}]   ;;  %s2303_s1 = inlined_call_operand.vmem [shape: bf16[4608,512], index: 1, kind: input, shape index: {}]   ;;  %s2304_s2 = inlined_call_operand.vmem [shape: f32[1,512], index: 2, kind: input, shape index: {}]   ;;  %s2305_s3 = inlined_call_operand.vmem [shape: bf16[18,512], index: 3, kind: output, shape index: {}]  }
   0x1   :  { %s2080_s14 = smov 0   ;;  %s2082_s15 = smov 0  }
   0x2   :  { %s2084_s16 = smov 0  }
   0x3 LB: > { %s25_s17 = sadd.s32 1, %s2049_s15  ;;  %p48_p1 = scmp.ne.s32.totalorder %s2041_s13, %s2037_s12  ;;  %s2053_s16 = sphi %s2084_s16, %s13_s16   ;;  %s2049_s15 = sphi %s2082_s15, %s2309_s15   ;;  %s2045_s14 = sphi %s2080_s14, %s2308_s14   ;;  %s2041_s13 = sphi %s2078_s13, %s2307_s13   ;;  %s2037_s12 = sphi %s2076_s12, %s2306_s12  }
   0x4   : > { %p26_p0 = scmp.ge.s32.totalorder %s25_s17, 9  ;;  %p49_p2 = scmp.eq.s32.totalorder %s2053_s16, 0 }
   0x5   : > { %s41_s19 = sadd.s32 1, %s2041_s13  ;;  %p1599_p5 = scmp.ge.s32.totalorder %s2053_s16, 9 }
   0x6   : > { %s2311_s17 = smov (%p26_p0, %s25_s17), 0  ;;  %p50_p3 = por %p49_p2, %p48_p1 }
   0x7   : > { %s37_s18 = ssub.s32 %s2049_s15, %s2311_s17  ;;  %164 = sbr.rel (%p1599_p5) target bundleno = 22 (0x16), region = 20 }
   0x8   : > { %p39_p4 = scmp.eq.s32.totalorder %s37_s18, 0 }
   0xa   : > { %s2111_s20 = scalar_select %p39_p4, %s2041_s13, %s41_s19  }
   0xe   : > { %167 = sbr.rel (!%p50_p3) target bundleno = 22 (0x16), region = 24  ;;  %s169_s21 = sand.u32 (%p50_p3), 1, %s2041_s13  }
   0xf   : > { %s1754_s22 = sshll.u32 (%p50_p3), %s2049_s15, 4  ;;  %s1770_s23 = smul.u32 (%p50_p3), 48, %s169_s21 }
  0x10   : > { %s177_s26 = scalar_lea.vmem (%p50_p3), %s2302_s0, %s1754_s22 }
  0x11   : > { %v190_v0 = vld [vmem:[%s177_s26] sm:$0xff] (%p50_p3)  ;;  %v192_v1 = vld [vmem:[%s177_s26 + $0x8] sm:$0xff] (%p50_p3)  ;;  %v194_v2 = vld [vmem:[%s177_s26 + $0x90] sm:$0xff] (%p50_p3)  ;;  %s171_s27 = scalar_lea.vmem (%p50_p3), [#allocation3], %s1770_s23 }
  0x12   : > { %v196_v3 = vld [vmem:[%s177_s26 + $0x98] sm:$0xff] (%p50_p3)  ;;  %v198_v4 = vld [vmem:[%s177_s26 + $0x120] sm:$0xff] (%p50_p3)  ;;  %v200_v5 = vld [vmem:[%s177_s26 + $0x128] sm:$0xff] (%p50_p3)  ;;  %191 = vst [vmem:[%s171_s27] sm:$0xff] (%p50_p3), %v190_v0 }
  0x13   : > { %193 = vst [vmem:[%s171_s27 + $0x8] sm:$0xff] (%p50_p3), %v192_v1  ;;  %195 = vst [vmem:[%s171_s27 + $0x10] sm:$0xff] (%p50_p3), %v194_v2 }
  0x14   : > { %197 = vst [vmem:[%s171_s27 + $0x18] sm:$0xff] (%p50_p3), %v196_v3  ;;  %199 = vst [vmem:[%s171_s27 + $0x20] sm:$0xff] (%p50_p3), %v198_v4 }
  0x15   : > { %201 = vst [vmem:[%s171_s27 + $0x28] sm:$0xff] %v200_v5 }
  0x16 PF: > { %p1602_p6 = scmp.ge.s32.totalorder %s2053_s16, 1  ;;  %p221_p7 = scmp.lt.s32.totalorder %s2053_s16, 10 }
  0x18   : > { %p222_p8 = pnand %p1602_p6, %p221_p7 }
  0x19   : > { %s228_s28 = sand.u32 (!%p222_p8), 1, %s2037_s12   ;;  %s1603_s29 = sshll.u32 (!%p222_p8), %s2045_s14, 6 }
  0x1a   : > { %225 = sbr.rel (%p222_p8) target bundleno = 410 (0x19a), region = 51  ;;  %p274_p9 = scmp.lt.s32.totalorder (!%p222_p8), %s1603_s29, 575 }
  0x1b   : > { %s1771_s30 = smul.u32 (!%p222_p8), 48, %s228_s28  ;;  %p1606_p10 = scmp.ne.s32.totalorder (!%p222_p8), %s2045_s14, 0 }
  0x1d   : > { %s2128_s8 = scalar_lea.vmem (!%p222_p8), [#allocation3], %s1771_s30 }
  0x21   : > { %s2313_s29 = smov (!%p274_p9, %s1603_s29), 575  ;;  %304 = sbr.rel (%p1606_p10) target bundleno = 41 (0x29), region = 59 }
  0x22   : > { %s1755_s4 = sshll.u32 %s2313_s29, 4  ;;  %v2055_v6 = vmov (!%p1606_p10), 0.0  }
  0x23   : > { %s2126_s7 = scalar_lea.vmem %s2303_s1, %s1755_s4  ;;  %305 = vst [vmem:[#allocation2] sm:$0xff] (!%p1606_p10), %v2055_v6  ;;  %306 = vst [vmem:[#allocation2 + $0x8] sm:$0xff] (!%p1606_p10), %v2055_v6 }
  0x24   : > { %307 = vst [vmem:[#allocation2 + $0x10] sm:$0xff] (!%p1606_p10), %v2055_v6  ;;  %308 = vst [vmem:[#allocation2 + $0x18] sm:$0xff] (!%p1606_p10), %v2055_v6 }
  0x25   : > { %309 = vst [vmem:[#allocation2 + $0x20] sm:$0xff] (!%p1606_p10), %v2055_v6  ;;  %310 = vst [vmem:[#allocation2 + $0x28] sm:$0xff] (!%p1606_p10), %v2055_v6 }
  0x26   : > { %311 = vst [vmem:[#allocation2 + $0x30] sm:$0xff] (!%p1606_p10), %v2055_v6  ;;  %312 = vst [vmem:[#allocation2 + $0x38] sm:$0xff] (!%p1606_p10), %v2055_v6 }
  0x27   : > { %313 = vst [vmem:[#allocation2 + $0x40] sm:$0x3] (!%p1606_p10), %v2055_v6  ;;  %314 = vst [vmem:[#allocation2 + $0x48] sm:$0x3] (!%p1606_p10), %v2055_v6 }
  0x28   : > { %315 = vst [vmem:[#allocation2 + $0x50] sm:$0x3] %v2055_v6  ;;  %316 = vst [vmem:[#allocation2 + $0x58] sm:$0x3] %v2055_v6 }
  0x29 PF: > { %v1813_v7 = vld [vmem:[%s2126_s7 + $0x4] ss:$16 sps:$4 sm:$0xff]   ;;  %v1815_v8 = vld [vmem:[%s2126_s7 + $0xc] ss:$16 sps:$4 sm:$0xff]   ;;  %v1817_v9 = vld [vmem:[%s2126_s7] ss:$16 sps:$4 sm:$0xff]  }
  0x2a   : > { %1137 = vmatprep.subr.bf16.mxu0 %v1813_v7  ;;  %v1818_v10 = vld [vmem:[%s2126_s7 + $0x8] ss:$16 sps:$4 sm:$0xff]   ;;  %1239 = vmatprep.subr.bf16.mxu1 %v1815_v8  ;;  %v1819_v11 = vld [vmem:[%s2126_s7 + $0x24] ss:$16 sps:$4 sm:$0xff]   ;;  %v1821_v12 = vld [vmem:[%s2126_s7 + $0x2c] ss:$16 sps:$4 sm:$0xff]  }
  0x2b   : > { %1138 = vmatpush1.bf16.msra.mxu0 %v1817_v9  ;;  %1240 = vmatpush1.bf16.msra.mxu1 %v1818_v10  ;;  %v1823_v13 = vld [vmem:[%s2126_s7 + $0x20] ss:$16 sps:$4 sm:$0xff]   ;;  %v1824_v14 = vld [vmem:[%s2126_s7 + $0x28] ss:$16 sps:$4 sm:$0xff]   ;;  %v1825_v15 = vld [vmem:[%s2126_s7 + $0x44] ss:$16 sps:$4 sm:$0xff]  }
  0x2c   : > { %1139 = vmatprep.subr.bf16.mxu0 %v1819_v11  ;;  %1241 = vmatprep.subr.bf16.mxu1 %v1821_v12  ;;  %v1827_v16 = vld [vmem:[%s2126_s7 + $0x4c] ss:$16 sps:$4 sm:$0xff]   ;;  %v1829_v17 = vld [vmem:[%s2126_s7 + $0x40] ss:$16 sps:$4 sm:$0xff]   ;;  %v1830_v18 = vld [vmem:[%s2126_s7 + $0x48] ss:$16 sps:$4 sm:$0xff]  }
  0x2d   : > { %v1831_v19 = vld [vmem:[%s2126_s7 + $0x64] ss:$16 sps:$4 sm:$0xff]   ;;  %v1833_v20 = vld [vmem:[%s2126_s7 + $0x6c] ss:$16 sps:$4 sm:$0xff]   ;;  %v1835_v21 = vld [vmem:[%s2126_s7 + $0x60] ss:$16 sps:$4 sm:$0xff]  }
  0x2e   : > { %v1836_v22 = vld [vmem:[%s2126_s7 + $0x68] ss:$16 sps:$4 sm:$0xff]   ;;  %v1837_v23 = vld [vmem:[%s2126_s7 + $0x84] ss:$16 sps:$4 sm:$0xff]   ;;  %v1839_v24 = vld [vmem:[%s2126_s7 + $0x8c] ss:$16 sps:$4 sm:$0xff]  }
  0x2f   : > { %1140 = vmatpush1.bf16.msra.mxu0 %v1823_v13  ;;  %1242 = vmatpush1.bf16.msra.mxu1 %v1824_v14  ;;  %v1841_v25 = vld [vmem:[%s2126_s7 + $0x80] ss:$16 sps:$4 sm:$0xff]   ;;  %v1842_v26 = vld [vmem:[%s2126_s7 + $0x88] ss:$16 sps:$4 sm:$0xff]   ;;  %v1843_v27 = vld [vmem:[%s2126_s7 + $0xa4] ss:$16 sps:$4 sm:$0xff]  }
  0x30   : > { %1141 = vmatprep.subr.bf16.mxu0 %v1825_v15  ;;  %1243 = vmatprep.subr.bf16.mxu1 %v1827_v16  ;;  %v1845_v28 = vld [vmem:[%s2126_s7 + $0xac] ss:$16 sps:$4 sm:$0xff]   ;;  %v1847_v29 = vld [vmem:[%s2126_s7 + $0xa0] ss:$16 sps:$4 sm:$0xff]   ;;  %v1848_v30 = vld [vmem:[%s2126_s7 + $0xa8] ss:$16 sps:$4 sm:$0xff]  }
  0x31   : > { %v1849_v31 = vld [vmem:[%s2126_s7 + $0xc4] ss:$16 sps:$4 sm:$0xff]   ;;  %v1851_v32 = vld [vmem:[%s2126_s7 + $0xcc] ss:$16 sps:$4 sm:$0xff]   ;;  %v1853_v33 = vld [vmem:[%s2126_s7 + $0xc0] ss:$16 sps:$4 sm:$0xff]  }
  0x32   : > { %v1854_v34 = vld [vmem:[%s2126_s7 + $0xc8] ss:$16 sps:$4 sm:$0xff]   ;;  %v1855_v35 = vld [vmem:[%s2126_s7 + $0xe4] ss:$16 sps:$4 sm:$0xff]   ;;  %v1857_v36 = vld [vmem:[%s2126_s7 + $0xec] ss:$16 sps:$4 sm:$0xff]  }
  0x33   : > { %1142 = vmatpush1.bf16.msra.mxu0 %v1829_v17  ;;  %1244 = vmatpush1.bf16.msra.mxu1 %v1830_v18  ;;  %v1859_v37 = vld [vmem:[%s2126_s7 + $0xe0] ss:$16 sps:$4 sm:$0xff]   ;;  %v1860_v38 = vld [vmem:[%s2126_s7 + $0xe8] ss:$16 sps:$4 sm:$0xff]   ;;  %v1861_v39 = vld [vmem:[%s2126_s7 + $0x104] ss:$16 sps:$4 sm:$0xff]  }
  0x34   : > { %1143 = vmatprep.subr.bf16.mxu0 %v1831_v19  ;;  %1245 = vmatprep.subr.bf16.mxu1 %v1833_v20  ;;  %v1863_v40 = vld [vmem:[%s2126_s7 + $0x10c] ss:$16 sps:$4 sm:$0xff]   ;;  %v1865_v41 = vld [vmem:[%s2126_s7 + $0x100] ss:$16 sps:$4 sm:$0xff]   ;;  %v1866_v42 = vld [vmem:[%s2126_s7 + $0x108] ss:$16 sps:$4 sm:$0xff]  }
  0x35   : > { %v1867_v43 = vld [vmem:[%s2126_s7 + $0x124] ss:$16 sps:$4 sm:$0xff]   ;;  %v1869_v44 = vld [vmem:[%s2126_s7 + $0x12c] ss:$16 sps:$4 sm:$0xff]   ;;  %v1871_v45 = vld [vmem:[%s2126_s7 + $0x120] ss:$16 sps:$4 sm:$0xff]  }
  0x36   : > { %v1872_v46 = vld [vmem:[%s2126_s7 + $0x128] ss:$16 sps:$4 sm:$0xff]   ;;  %v1873_v47 = vld [vmem:[%s2126_s7 + $0x144] ss:$16 sps:$4 sm:$0xff]   ;;  %v1875_v48 = vld [vmem:[%s2126_s7 + $0x14c] ss:$16 sps:$4 sm:$0xff]  }
  0x37   : > { %1144 = vmatpush1.bf16.msra.mxu0 %v1835_v21  ;;  %1246 = vmatpush1.bf16.msra.mxu1 %v1836_v22  ;;  %v1877_v49 = vld [vmem:[%s2126_s7 + $0x140] ss:$16 sps:$4 sm:$0xff]   ;;  %v1878_v50 = vld [vmem:[%s2126_s7 + $0x148] ss:$16 sps:$4 sm:$0xff]   ;;  %v1879_v51 = vld [vmem:[%s2126_s7 + $0x164] ss:$16 sps:$4 sm:$0xff]  }
  0x38   : > { %1145 = vmatprep.subr.bf16.mxu0 %v1837_v23  ;;  %1247 = vmatprep.subr.bf16.mxu1 %v1839_v24  ;;  %v1881_v52 = vld [vmem:[%s2126_s7 + $0x16c] ss:$16 sps:$4 sm:$0xff]   ;;  %v1883_v53 = vld [vmem:[%s2126_s7 + $0x160] ss:$16 sps:$4 sm:$0xff]   ;;  %v1884_v54 = vld [vmem:[%s2126_s7 + $0x168] ss:$16 sps:$4 sm:$0xff]  }
  0x39   : > { %v1911_v55 = vld [vmem:[%s2128_s8 + $0x4] ss:$16 sps:$4 sm:$0xff]   ;;  %v1887_v57 = vld [vmem:[%s2126_s7 + $0x18c] ss:$16 sps:$4 sm:$0xff]   ;;  %v1889_v58 = vld [vmem:[%s2126_s7 + $0x180] ss:$16 sps:$4 sm:$0xff]  }
  0x3a   : > { %v1885_v56 = vld [vmem:[%s2126_s7 + $0x184] ss:$16 sps:$4 sm:$0xff]   ;;  %1169 = vmatprep.mubr.bf16.mxu0 %v1911_v55  ;;  %1271 = vmatprep.mubr.bf16.mxu1 %v1911_v55  ;;  %v1890_v59 = vld [vmem:[%s2126_s7 + $0x188] ss:$16 sps:$4 sm:$0xff]   ;;  %v1893_v61 = vld [vmem:[%s2126_s7 + $0x1ac] ss:$16 sps:$4 sm:$0xff]  }
  0x3b   : > { %1146 = vmatpush1.bf16.msra.mxu0 %v1841_v25  ;;  %1248 = vmatpush1.bf16.msra.mxu1 %v1842_v26  ;;  %v1891_v60 = vld [vmem:[%s2126_s7 + $0x1a4] ss:$16 sps:$4 sm:$0xff]   ;;  %v1895_v62 = vld [vmem:[%s2126_s7 + $0x1a0] ss:$16 sps:$4 sm:$0xff]   ;;  %v1896_v63 = vld [vmem:[%s2126_s7 + $0x1a8] ss:$16 sps:$4 sm:$0xff]  }
  0x3c   : > { %1147 = vmatprep.subr.bf16.mxu0 %v1843_v27  ;;  %1249 = vmatprep.subr.bf16.mxu1 %v1845_v28  ;;  %v1897_v0 = vld [vmem:[%s2126_s7 + $0x1c4] ss:$16 sps:$4 sm:$0xff]   ;;  %v1899_v1 = vld [vmem:[%s2126_s7 + $0x1cc] ss:$16 sps:$4 sm:$0xff]   ;;  %v1901_v2 = vld [vmem:[%s2126_s7 + $0x1c0] ss:$16 sps:$4 sm:$0xff]  }
  0x3d   : > { %v1902_v3 = vld [vmem:[%s2126_s7 + $0x1c8] ss:$16 sps:$4 sm:$0xff]   ;;  %v1903_v4 = vld [vmem:[%s2126_s7 + $0x1e4] ss:$16 sps:$4 sm:$0xff]   ;;  %v1905_v5 = vld [vmem:[%s2126_s7 + $0x1ec] ss:$16 sps:$4 sm:$0xff]  }
  0x3e   : > { %v1907_v6 = vld [vmem:[%s2126_s7 + $0x1e0] ss:$16 sps:$4 sm:$0xff]   ;;  %v1908_v7 = vld [vmem:[%s2126_s7 + $0x1e8] ss:$16 sps:$4 sm:$0xff]   ;;  %v1914_v8 = vld [vmem:[%s2126_s7 + $0x204] ss:$16 sps:$4 sm:$0xff]  }
  0x3f   : > { %1148 = vmatpush1.bf16.msra.mxu0 %v1847_v29  ;;  %1250 = vmatpush1.bf16.msra.mxu1 %v1848_v30  ;;  %v1917_v9 = vld [vmem:[%s2126_s7 + $0x20c] ss:$16 sps:$4 sm:$0xff]   ;;  %v1909_v10 = vld [vmem:[%s2128_s8] ss:$16 sps:$4 sm:$0xff]   ;;  %v1915_v12 = vld [vmem:[%s2126_s7 + $0x208] ss:$16 sps:$4 sm:$0xff]  }
  0x40   : > { %1149 = vmatprep.subr.bf16.mxu0 %v1849_v31  ;;  %1251 = vmatprep.subr.bf16.mxu1 %v1851_v32  ;;  %v1912_v11 = vld [vmem:[%s2126_s7 + $0x200] ss:$16 sps:$4 sm:$0xff]   ;;  %v1920_v13 = vld [vmem:[%s2126_s7 + $0x224] ss:$16 sps:$4 sm:$0xff]   ;;  %v1923_v14 = vld [vmem:[%s2126_s7 + $0x22c] ss:$16 sps:$4 sm:$0xff]  }
  0x41   : > { %v1918_v15 = vld [vmem:[%s2126_s7 + $0x220] ss:$16 sps:$4 sm:$0xff]   ;;  %v1921_v16 = vld [vmem:[%s2126_s7 + $0x228] ss:$16 sps:$4 sm:$0xff]   ;;  %v1926_v17 = vld [vmem:[%s2126_s7 + $0x244] ss:$16 sps:$4 sm:$0xff]  }
  0x42   : > { %v1929_v18 = vld [vmem:[%s2126_s7 + $0x24c] ss:$16 sps:$4 sm:$0xff]   ;;  %v1924_v19 = vld [vmem:[%s2126_s7 + $0x240] ss:$16 sps:$4 sm:$0xff]   ;;  %v1927_v20 = vld [vmem:[%s2126_s7 + $0x248] ss:$16 sps:$4 sm:$0xff]  }
  0x43   : > { %1150 = vmatpush1.bf16.msra.mxu0 %v1853_v33  ;;  %1252 = vmatpush1.bf16.msra.mxu1 %v1854_v34  ;;  %v1932_v21 = vld [vmem:[%s2126_s7 + $0x264] ss:$16 sps:$4 sm:$0xff]   ;;  %v1935_v22 = vld [vmem:[%s2126_s7 + $0x26c] ss:$16 sps:$4 sm:$0xff]   ;;  %v1930_v23 = vld [vmem:[%s2126_s7 + $0x260] ss:$16 sps:$4 sm:$0xff]  }
  0x44   : > { %1151 = vmatprep.subr.bf16.mxu0 %v1855_v35  ;;  %1253 = vmatprep.subr.bf16.mxu1 %v1857_v36  ;;  %v1933_v24 = vld [vmem:[%s2126_s7 + $0x268] ss:$16 sps:$4 sm:$0xff]   ;;  %v1938_v25 = vld [vmem:[%s2126_s7 + $0x284] ss:$16 sps:$4 sm:$0xff]   ;;  %v1941_v26 = vld [vmem:[%s2126_s7 + $0x28c] ss:$16 sps:$4 sm:$0xff]  }
  0x45   : > { %v333_v27 = vld [vmem:[%s2128_s8 + $0x20] sm:$0x11]  ;;  %v1939_v31 = vld [vmem:[%s2126_s7 + $0x288] ss:$16 sps:$4 sm:$0xff]   ;;  %v1947_v33 = vld [vmem:[%s2126_s7 + $0x2ac] ss:$16 sps:$4 sm:$0xff]  }
  0x46   : > { %v1936_v28 = vld [vmem:[%s2126_s7 + $0x280] ss:$16 sps:$4 sm:$0xff]   ;;  %v1612_v29 = vcombine.high %v333_v27, %v333_v27  ;;  %v1611_v30 = vcombine.low %v333_v27, %v333_v27  ;;  %v1944_v32 = vld [vmem:[%s2126_s7 + $0x2a4] ss:$16 sps:$4 sm:$0xff]   ;;  %v1945_v35 = vld [vmem:[%s2126_s7 + $0x2a8] ss:$16 sps:$4 sm:$0xff]  }
  0x47   : > { %1152 = vmatpush1.bf16.msra.mxu0 %v1859_v37  ;;  %1254 = vmatpush1.bf16.msra.mxu1 %v1860_v38  ;;  %v1942_v34 = vld [vmem:[%s2126_s7 + $0x2a0] ss:$16 sps:$4 sm:$0xff]   ;;  %v1950_v36 = vld [vmem:[%s2126_s7 + $0x2c4] ss:$16 sps:$4 sm:$0xff]   ;;  %v1953_v37 = vld [vmem:[%s2126_s7 + $0x2cc] ss:$16 sps:$4 sm:$0xff]  }
  0x48   : > { %1153 = vmatprep.subr.bf16.mxu0 %v1861_v39  ;;  %1255 = vmatprep.subr.bf16.mxu1 %v1863_v40  ;;  %v1948_v38 = vld [vmem:[%s2126_s7 + $0x2c0] ss:$16 sps:$4 sm:$0xff]   ;;  %v1951_v39 = vld [vmem:[%s2126_s7 + $0x2c8] ss:$16 sps:$4 sm:$0xff]   ;;  %v2012_v40 = vld [vmem:[%s2128_s8 + $0xc] ss:$16 sps:$4 sm:$0xff]  }
  0x49   : > { %v1972_v55 = vld [vmem:[%s2126_s7 + $0x340] ss:$16 sps:$4 sm:$0xff]   ;;  %v318_v27 = vld [vmem:[#allocation2 + $0x8] sm:$0xff]  ;;  %p1743_p11 = scmp.ne.s32.totalorder %s2045_s14, 8 }
  0x4b   : > { %1154 = vmatpush1.bf16.msra.mxu0 %v1865_v41  ;;  %1256 = vmatpush1.bf16.msra.mxu1 %v1866_v42  ;;  %v1956_v41 = vld [vmem:[%s2126_s7 + $0x2e4] ss:$16 sps:$4 sm:$0xff]   ;;  %v1959_v42 = vld [vmem:[%s2126_s7 + $0x2ec] ss:$16 sps:$4 sm:$0xff]  }
  0x4c   : > { %1155 = vmatprep.subr.bf16.mxu0 %v1867_v43  ;;  %1257 = vmatprep.subr.bf16.mxu1 %v1869_v44  ;;  %v1954_v43 = vld [vmem:[%s2126_s7 + $0x2e0] ss:$16 sps:$4 sm:$0xff]   ;;  %v1957_v44 = vld [vmem:[%s2126_s7 + $0x2e8] ss:$16 sps:$4 sm:$0xff]  }
  0x4f   : > { %1156 = vmatpush1.bf16.msra.mxu0 %v1871_v45  ;;  %1258 = vmatpush1.bf16.msra.mxu1 %v1872_v46  ;;  %v1962_v45 = vld [vmem:[%s2126_s7 + $0x304] ss:$16 sps:$4 sm:$0xff]   ;;  %v1965_v46 = vld [vmem:[%s2126_s7 + $0x30c] ss:$16 sps:$4 sm:$0xff]  }
  0x50   : > { %1157 = vmatprep.subr.bf16.mxu0 %v1873_v47  ;;  %1259 = vmatprep.subr.bf16.mxu1 %v1875_v48  ;;  %v1960_v47 = vld [vmem:[%s2126_s7 + $0x300] ss:$16 sps:$4 sm:$0xff]   ;;  %v1963_v48 = vld [vmem:[%s2126_s7 + $0x308] ss:$16 sps:$4 sm:$0xff]  }
  0x53   : > { %1158 = vmatpush1.bf16.msra.mxu0 %v1877_v49  ;;  %1260 = vmatpush1.bf16.msra.mxu1 %v1878_v50  ;;  %v1968_v49 = vld [vmem:[%s2126_s7 + $0x324] ss:$16 sps:$4 sm:$0xff]   ;;  %v1971_v50 = vld [vmem:[%s2126_s7 + $0x32c] ss:$16 sps:$4 sm:$0xff]  }
  0x54   : > { %1159 = vmatprep.subr.bf16.mxu0 %v1879_v51  ;;  %1261 = vmatprep.subr.bf16.mxu1 %v1881_v52  ;;  %v1966_v51 = vld [vmem:[%s2126_s7 + $0x320] ss:$16 sps:$4 sm:$0xff]   ;;  %v1969_v52 = vld [vmem:[%s2126_s7 + $0x328] ss:$16 sps:$4 sm:$0xff]  }
  0x57   : > { %1160 = vmatpush1.bf16.msra.mxu0 %v1883_v53  ;;  %1262 = vmatpush1.bf16.msra.mxu1 %v1884_v54  ;;  %v1974_v53 = vld [vmem:[%s2126_s7 + $0x344] ss:$16 sps:$4 sm:$0xff]   ;;  %v1977_v54 = vld [vmem:[%s2126_s7 + $0x34c] ss:$16 sps:$4 sm:$0xff]  }
  0x58   : > { %1161 = vmatprep.subr.bf16.mxu0 %v1885_v56  ;;  %1263 = vmatprep.subr.bf16.mxu1 %v1887_v57  ;;  %v1975_v56 = vld [vmem:[%s2126_s7 + $0x348] ss:$16 sps:$4 sm:$0xff]   ;;  %v1980_v57 = vld [vmem:[%s2126_s7 + $0x364] ss:$16 sps:$4 sm:$0xff]  }
  0x5b   : > { %1162 = vmatpush1.bf16.msra.mxu0 %v1889_v58  ;;  %1264 = vmatpush1.bf16.msra.mxu1 %v1890_v59  ;;  %v1983_v58 = vld [vmem:[%s2126_s7 + $0x36c] ss:$16 sps:$4 sm:$0xff]   ;;  %v1978_v59 = vld [vmem:[%s2126_s7 + $0x360] ss:$16 sps:$4 sm:$0xff]  }
  0x5c   : > { %1163 = vmatprep.subr.bf16.mxu0 %v1891_v60  ;;  %1265 = vmatprep.subr.bf16.mxu1 %v1893_v61  ;;  %v1981_v60 = vld [vmem:[%s2126_s7 + $0x368] ss:$16 sps:$4 sm:$0xff]   ;;  %v1986_v61 = vld [vmem:[%s2126_s7 + $0x384] ss:$16 sps:$4 sm:$0xff]  }
  0x5f   : > { %1164 = vmatpush1.bf16.msra.mxu0 %v1895_v62  ;;  %1266 = vmatpush1.bf16.msra.mxu1 %v1896_v63  ;;  %v1989_v62 = vld [vmem:[%s2126_s7 + $0x38c] ss:$16 sps:$4 sm:$0xff]   ;;  %v1984_v63 = vld [vmem:[%s2126_s7 + $0x380] ss:$16 sps:$4 sm:$0xff]  }
  0x60   : > { %1165 = vmatprep.subr.bf16.mxu0 %v1897_v0  ;;  %1267 = vmatprep.subr.bf16.mxu1 %v1899_v1  ;;  %v1987_v0 = vld [vmem:[%s2126_s7 + $0x388] ss:$16 sps:$4 sm:$0xff]   ;;  %v1993_v1 = vld [vmem:[%s2126_s7 + $0x3a4] ss:$16 sps:$4 sm:$0xff]  }
  0x63   : > { %1166 = vmatpush1.bf16.msra.mxu0 %v1901_v2  ;;  %1268 = vmatpush1.bf16.msra.mxu1 %v1902_v3  ;;  %v1996_v2 = vld [vmem:[%s2126_s7 + $0x3ac] ss:$16 sps:$4 sm:$0xff]   ;;  %v1991_v3 = vld [vmem:[%s2126_s7 + $0x3a0] ss:$16 sps:$4 sm:$0xff]  }
  0x64   : > { %1167 = vmatprep.subr.bf16.mxu0 %v1903_v4  ;;  %1269 = vmatprep.subr.bf16.mxu1 %v1905_v5  ;;  %v1994_v4 = vld [vmem:[%s2126_s7 + $0x3a8] ss:$16 sps:$4 sm:$0xff]   ;;  %v2000_v5 = vld [vmem:[%s2126_s7 + $0x3c4] ss:$16 sps:$4 sm:$0xff]  }
  0x67   : > { %1168 = vmatpush1.bf16.msra.mxu0 %v1907_v6  ;;  %1270 = vmatpush1.bf16.msra.mxu1 %v1908_v7  ;;  %v2003_v6 = vld [vmem:[%s2126_s7 + $0x3cc] ss:$16 sps:$4 sm:$0xff]   ;;  %v1998_v7 = vld [vmem:[%s2126_s7 + $0x3c0] ss:$16 sps:$4 sm:$0xff]  }
  0x68   : > { %1188 = vmatprep.subr.bf16.mxu0 %v1914_v8  ;;  %1290 = vmatprep.subr.bf16.mxu1 %v1917_v9  ;;  %v2001_v8 = vld [vmem:[%s2126_s7 + $0x3c8] ss:$16 sps:$4 sm:$0xff]   ;;  %v2006_v9 = vld [vmem:[%s2126_s7 + $0x3e4] ss:$16 sps:$4 sm:$0xff]  }
  0x6a   : > { %1170 = vmatmul.mubr.bf16.vlgmr.msra.gmra.mrb[0].mxu0 %v1909_v10  ;;  %1272 = vmatmul.mubr.bf16.vlgmr.msra.gmra.mrb[0].mxu1 %v1909_v10  ;;  %v2009_v10 = vld [vmem:[%s2126_s7 + $0x3ec] ss:$16 sps:$4 sm:$0xff]  }
  0x6b   : > { %1189 = vmatpush1.bf16.msra.mxu0 %v1912_v11  ;;  %1291 = vmatpush1.bf16.msra.mxu1 %v1915_v12  ;;  %v2004_v11 = vld [vmem:[%s2126_s7 + $0x3e0] ss:$16 sps:$4 sm:$0xff]   ;;  %v2007_v12 = vld [vmem:[%s2126_s7 + $0x3e8] ss:$16 sps:$4 sm:$0xff]  }
  0x6c   : > { %1190 = vmatprep.subr.bf16.mxu0 %v1920_v13  ;;  %1292 = vmatprep.subr.bf16.mxu1 %v1923_v14  ;;  %v334_v13 = vld [vmem:[%s2128_s8 + $0x28] sm:$0x11] }
  0x6d   : > { %1179 = vmatprep.mubr.bf16.mxu0 %v1612_v29  ;;  %1281 = vmatprep.mubr.bf16.mxu1 %v1612_v29  ;;  %v2010_v14 = vld [vmem:[%s2128_s8 + $0x8] ss:$16 sps:$4 sm:$0xff]  }
  0x6f   : > { %1191 = vmatpush1.bf16.msra.mxu0 %v1918_v15  ;;  %1293 = vmatpush1.bf16.msra.mxu1 %v1921_v16  ;;  %v1614_v15 = vcombine.high %v334_v13, %v334_v13  ;;  %v1613_v16 = vcombine.low %v334_v13, %v334_v13 }
  0x70   : > { %1192 = vmatprep.subr.bf16.mxu0 %v1926_v17  ;;  %1294 = vmatprep.subr.bf16.mxu1 %v1929_v18 }
  0x72   : > { %1180 = vmatmul.mubr.bf16.gmra.mrb[4].mxu0 %v1611_v30  ;;  %1282 = vmatmul.mubr.bf16.gmra.mrb[4].mxu1 %v1611_v30 }
  0x73   : > { %1193 = vmatpush1.bf16.msra.mxu0 %v1924_v19  ;;  %1295 = vmatpush1.bf16.msra.mxu1 %v1927_v20 }
  0x74   : > { %1194 = vmatprep.subr.bf16.mxu0 %v1932_v21  ;;  %1296 = vmatprep.subr.bf16.mxu1 %v1935_v22 }
  0x75   : > { %1220 = vmatprep.mubr.bf16.mxu0 %v2012_v40  ;;  %1322 = vmatprep.mubr.bf16.mxu1 %v2012_v40 }
  0x77   : > { %1195 = vmatpush1.bf16.msra.mxu0 %v1930_v23  ;;  %1297 = vmatpush1.bf16.msra.mxu1 %v1933_v24 }
  0x78   : > { %1196 = vmatprep.subr.bf16.mxu0 %v1938_v25  ;;  %1298 = vmatprep.subr.bf16.mxu1 %v1941_v26  ;;  %v317_v25 = vld [vmem:[#allocation2] sm:$0xff]  ;;  %v319_v26 = vld [vmem:[#allocation2 + $0x10] sm:$0xff] }
  0x7b   : > { %1197 = vmatpush1.bf16.msra.mxu0 %v1936_v28  ;;  %1299 = vmatpush1.bf16.msra.mxu1 %v1939_v31  ;;  %v320_v28 = vld [vmem:[#allocation2 + $0x18] sm:$0xff]  ;;  %v321_v31 = vld [vmem:[#allocation2 + $0x20] sm:$0xff] }
  0x7c   : > { %1198 = vmatprep.subr.bf16.mxu0 %v1944_v32  ;;  %1300 = vmatprep.subr.bf16.mxu1 %v1947_v33  ;;  %v323_v32 = vld [vmem:[#allocation2 + $0x30] sm:$0xff] }
  0x7f   : > { %1199 = vmatpush1.bf16.msra.mxu0 %v1942_v34  ;;  %1301 = vmatpush1.bf16.msra.mxu1 %v1945_v35 }
  0x80   : > { %1200 = vmatprep.subr.bf16.mxu0 %v1950_v36  ;;  %1302 = vmatprep.subr.bf16.mxu1 %v1953_v37  ;;  %v322_v37 = vld [vmem:[#allocation2 + $0x28] sm:$0xff] }
  0x83   : > { %1201 = vmatpush1.bf16.msra.mxu0 %v1948_v38  ;;  %1303 = vmatpush1.bf16.msra.mxu1 %v1951_v39  ;;  %v324_v38 = vld [vmem:[#allocation2 + $0x38] sm:$0xff] }
  0x84   : > { %1202 = vmatprep.subr.bf16.mxu0 %v1956_v41  ;;  %1304 = vmatprep.subr.bf16.mxu1 %v1959_v42 }
  0x87   : > { %1203 = vmatpush1.bf16.msra.mxu0 %v1954_v43  ;;  %1305 = vmatpush1.bf16.msra.mxu1 %v1957_v44 }
  0x88   : > { %1204 = vmatprep.subr.bf16.mxu0 %v1962_v45  ;;  %1306 = vmatprep.subr.bf16.mxu1 %v1965_v46 }
  0x8b   : > { %1205 = vmatpush1.bf16.msra.mxu0 %v1960_v47  ;;  %1307 = vmatpush1.bf16.msra.mxu1 %v1963_v48 }
  0x8c   : > { %1206 = vmatprep.subr.bf16.mxu0 %v1968_v49  ;;  %1308 = vmatprep.subr.bf16.mxu1 %v1971_v50  ;;  %v325_v49 = vld [vmem:[#allocation2 + $0x40] sm:$0x3] }
  0x8f   : > { %1207 = vmatpush1.bf16.msra.mxu0 %v1966_v51  ;;  %1309 = vmatpush1.bf16.msra.mxu1 %v1969_v52  ;;  %v327_v51 = vld [vmem:[#allocation2 + $0x50] sm:$0x3] }
  0x90   : > { %1208 = vmatprep.subr.bf16.mxu0 %v1974_v53  ;;  %1310 = vmatprep.subr.bf16.mxu1 %v1977_v54 }
  0x93   : > { %1209 = vmatpush1.bf16.msra.mxu0 %v1972_v55  ;;  %1311 = vmatpush1.bf16.msra.mxu1 %v1975_v56  ;;  %v326_v55 = vld [vmem:[#allocation2 + $0x48] sm:$0x3] }
  0x94   : > { %1210 = vmatprep.subr.bf16.mxu0 %v1980_v57  ;;  %1312 = vmatprep.subr.bf16.mxu1 %v1983_v58  ;;  %v328_v57 = vld [vmem:[#allocation2 + $0x58] sm:$0x3] }
  0x97   : > { %1211 = vmatpush1.bf16.msra.mxu0 %v1978_v59  ;;  %1313 = vmatpush1.bf16.msra.mxu1 %v1981_v60 }
  0x98   : > { %1212 = vmatprep.subr.bf16.mxu0 %v1986_v61  ;;  %1314 = vmatprep.subr.bf16.mxu1 %v1989_v62 }
  0x9b   : > { %1213 = vmatpush1.bf16.msra.mxu0 %v1984_v63  ;;  %1315 = vmatpush1.bf16.msra.mxu1 %v1987_v0 }
  0x9c   : > { %1214 = vmatprep.subr.bf16.mxu0 %v1993_v1  ;;  %1316 = vmatprep.subr.bf16.mxu1 %v1996_v2 }
  0x9f   : > { %1215 = vmatpush1.bf16.msra.mxu0 %v1991_v3  ;;  %1317 = vmatpush1.bf16.msra.mxu1 %v1994_v4 }
  0xa0   : > { %1216 = vmatprep.subr.bf16.mxu0 %v2000_v5  ;;  %1318 = vmatprep.subr.bf16.mxu1 %v2003_v6  ;;  %v1383_v5 = vlaneseq (!%p1743_p11) }
  0xa2   : > { %v1384_v6 = vshrl.u32 (!%p1743_p11), %v1383_v5, 7 }
  0xa3   : > { %1217 = vmatpush1.bf16.msra.mxu0 %v1998_v7  ;;  %1319 = vmatpush1.bf16.msra.mxu1 %v2001_v8  ;;  %v1381_v7 = vld [vmem:[%s2304_s2] sm:$0xf] (!%p1743_p11) }
  0xa4   : > { %1218 = vmatprep.subr.bf16.mxu0 %v2006_v9  ;;  %1320 = vmatprep.subr.bf16.mxu1 %v2009_v10  ;;  %v1385_v10 = vsub.s32 (!%p1743_p11), 0, %v1384_v6  ;;  %v1397_v13 = vsub.s32 (!%p1743_p11), 3, %v1384_v6 }
  0xa7   : > { %1219 = vmatpush1.bf16.msra.mxu0 %v2004_v11  ;;  %1321 = vmatpush1.bf16.msra.mxu1 %v2007_v12  ;;  %v1389_v11 = vsub.s32 (!%p1743_p11), 1, %v1384_v6  ;;  %v1393_v12 = vsub.s32 (!%p1743_p11), 2, %v1384_v6 }
  0xaa   : > { %1221 = vmatmul.mubr.bf16.vlgmr.msra.gmra.mrb[0].mxu0 %v2010_v14  ;;  %1323 = vmatmul.mubr.bf16.vlgmr.msra.gmra.mrb[0].mxu1 %v2010_v14 }
  0xab   : > { %1230 = vmatprep.mubr.bf16.mxu0 %v1614_v15  ;;  %1332 = vmatprep.mubr.bf16.mxu1 %v1614_v15 }
  0xb2   : > { %1231 = vmatmul.mubr.bf16.gmra.mrb[8].mxu0 %v1613_v16  ;;  %1333 = vmatmul.mubr.bf16.gmra.mrb[8].mxu1 %v1613_v16 }
 0x145   : > { %v1181_v17 = vpop.f32.mrb[4].mxu0  ;;  %v1283_v18 = vpop.f32.mrb[4].mxu1 }
 0x146   : > { %v1183_v19 = vpop.f32.mrb[5].mxu0  ;;  %v1285_v20 = vpop.f32.mrb[5].mxu1 }
 0x147   : > { %v1185_v21 = vpop.f32.mrb[6].mxu0  ;;  %v1287_v22 = vpop.f32.mrb[6].mxu1 }
 0x148   : > { %v1186_v23 = vpop.f32.mrb[7].mxu0  ;;  %v1288_v24 = vpop.f32.mrb[7].mxu1 }
 0x17d   : > { %v1222_v29 = vpop.f32.mrb[0].mxu0  ;;  %v1324_v30 = vpop.f32.mrb[0].mxu1 }
 0x17e   : > { %v1341_v33 = vadd.f32 %v1222_v29, %v317_v25  ;;  %v1343_v34 = vadd.f32 %v1324_v30, %v319_v26  ;;  %v1224_v35 = vpop.f32.mrb[1].mxu0  ;;  %v1326_v36 = vpop.f32.mrb[1].mxu1 }
 0x17f   : > { %v1342_v39 = vadd.f32 %v1224_v35, %v318_v27  ;;  %v1344_v40 = vadd.f32 %v1326_v36, %v320_v28  ;;  %v1226_v41 = vpop.f32.mrb[2].mxu0  ;;  %v1328_v42 = vpop.f32.mrb[2].mxu1 }
 0x180   : > { %1353 = vst [vmem:[#allocation2] sm:$0xff] %v1341_v33  ;;  %1355 = vst [vmem:[#allocation2 + $0x10] sm:$0xff] %v1343_v34  ;;  %v1345_v43 = vadd.f32 %v1226_v41, %v321_v31  ;;  %v1347_v44 = vadd.f32 %v1328_v42, %v323_v32  ;;  %v1228_v45 = vpop.f32.mrb[3].mxu0  ;;  %v1330_v46 = vpop.f32.mrb[3].mxu1 }
 0x181   : > { %1354 = vst [vmem:[#allocation2 + $0x8] sm:$0xff] %v1342_v39  ;;  %1356 = vst [vmem:[#allocation2 + $0x18] sm:$0xff] %v1344_v40  ;;  %v1346_v47 = vadd.f32 %v1228_v45, %v322_v37  ;;  %v1348_v48 = vadd.f32 %v1330_v46, %v324_v38 }
 0x182   : > { %1357 = vst [vmem:[#allocation2 + $0x20] sm:$0xff] %v1345_v43  ;;  %1359 = vst [vmem:[#allocation2 + $0x30] sm:$0xff] %v1347_v44 }
 0x183   : > { %1358 = vst [vmem:[#allocation2 + $0x28] sm:$0xff] %v1346_v47  ;;  %1360 = vst [vmem:[#allocation2 + $0x38] sm:$0xff] %v1348_v48 }
 0x185   : > { %v1232_v50 = vpop.f32.mrb[8].mxu0  ;;  %v1334_v52 = vpop.f32.mrb[8].mxu1  ;;  %1368 = sbr.rel (%p1743_p11) target bundleno = 410 (0x19a), region = 63 }
 0x186   : > { %v1233_v53 = vadd.f32 %v1232_v50, %v1181_v17  ;;  %v1335_v54 = vadd.f32 %v1334_v52, %v1283_v18  ;;  %v1234_v56 = vpop.f32.mrb[9].mxu0  ;;  %v1336_v58 = vpop.f32.mrb[9].mxu1  ;;  %v1386_v17 = vrot.slane (!%p1743_p11), %v1381_v7, %v1385_v10  ;;  %v1390_v18 = vrot.slane (!%p1743_p11), %v1381_v7, %v1389_v11 }
 0x187   : > { %v1235_v59 = vadd.f32 %v1234_v56, %v1183_v19  ;;  %v1337_v60 = vadd.f32 %v1336_v58, %v1285_v20  ;;  %v1236_v61 = vpop.f32.mrb[10].mxu0  ;;  %v1338_v62 = vpop.f32.mrb[10].mxu1  ;;  %v1369_v8 = vld [vmem:[#allocation2] sm:$0xff] (!%p1743_p11)  ;;  %v1371_v14 = vld [vmem:[#allocation2 + $0x10] sm:$0xff] (!%p1743_p11)  ;;  %v1394_v19 = vrot.slane (!%p1743_p11), %v1381_v7, %v1393_v12  ;;  %v1398_v20 = vrot.slane (!%p1743_p11), %v1381_v7, %v1397_v13 }
 0x188   : > { %v1349_v63 = vadd.f32 %v1233_v53, %v325_v49  ;;  %v1351_v0 = vadd.f32 %v1335_v54, %v327_v51  ;;  %v1237_v1 = vpop.f32.mrb[11].mxu0  ;;  %v1339_v2 = vpop.f32.mrb[11].mxu1  ;;  %v1370_v9 = vld [vmem:[#allocation2 + $0x8] sm:$0xff] (!%p1743_p11)  ;;  %v1372_v15 = vld [vmem:[#allocation2 + $0x18] sm:$0xff] (!%p1743_p11)  ;;  %v1403_v24 = vadd.f32 (!%p1743_p11), %v1386_v17, %v1369_v8 }
 0x189   : > { %v1350_v3 = vadd.f32 %v1235_v59, %v326_v55  ;;  %v1352_v4 = vadd.f32 %v1337_v60, %v328_v57  ;;  %v1373_v16 = vld [vmem:[#allocation2 + $0x20] sm:$0xff] (!%p1743_p11)  ;;  %v1375_v22 = vld [vmem:[#allocation2 + $0x30] sm:$0xff] (!%p1743_p11)  ;;  %v1404_v25 = vadd.f32 (!%p1743_p11), %v1390_v18, %v1370_v9  ;;  %v1405_v26 = vadd.f32 (!%p1743_p11), %v1394_v19, %v1371_v14 }
 0x18a   : > { %1361 = vst [vmem:[#allocation2 + $0x40] sm:$0x3] %v1349_v63  ;;  %1363 = vst [vmem:[#allocation2 + $0x50] sm:$0x3] %v1351_v0  ;;  %v1374_v21 = vld [vmem:[#allocation2 + $0x28] sm:$0xff] (!%p1743_p11)  ;;  %v1376_v23 = vld [vmem:[#allocation2 + $0x38] sm:$0xff] (!%p1743_p11)  ;;  %v1406_v27 = vadd.f32 (!%p1743_p11), %v1398_v20, %v1372_v15  ;;  %v1407_v28 = vadd.f32 (!%p1743_p11), %v1386_v17, %v1373_v16  ;;  %v1409_v30 = vadd.f32 (!%p1743_p11), %v1394_v19, %v1375_v22 }
 0x18b   : > { %1362 = vst [vmem:[#allocation2 + $0x48] sm:$0x3] %v1350_v3  ;;  %1364 = vst [vmem:[#allocation2 + $0x58] sm:$0x3] %v1352_v4  ;;  %v1408_v29 = vadd.f32 (!%p1743_p11), %v1390_v18, %v1374_v21  ;;  %v1410_v31 = vadd.f32 (!%p1743_p11), %v1398_v20, %v1376_v23  ;;  %v1415_v35 = vmax.f32 (!%p1743_p11), %v1403_v24, 0.0  ;;  %v1416_v36 = vmax.f32 (!%p1743_p11), %v1404_v25, 0.0 }
 0x18c   : > { %v1417_v37 = vmax.f32 %v1405_v26, 0.0  ;;  %v1418_v38 = vmax.f32 %v1406_v27, 0.0  ;;  %v1419_v40 = vmax.f32 %v1407_v28, 0.0  ;;  %v1421_v42 = vmax.f32 %v1409_v30, 0.0 }
 0x18d   : > { %v1420_v41 = vmax.f32 %v1408_v29, 0.0  ;;  %v1422_v43 = vmax.f32 %v1410_v31, 0.0  ;;  %v1756_v44 = vpack.c.bf16 %v1416_v36, %v1415_v35 }
 0x18e   : > { %v1757_v45 = vpack.c.bf16 %v1418_v38, %v1417_v37 }
 0x18f   : > { %v1758_v48 = vpack.c.bf16 %v1420_v41, %v1419_v40  ;;  %v1759_v49 = vpack.c.bf16 %v1422_v43, %v1421_v42  ;;  %1467 = vst [vmem:[%s2305_s3] sm:$0xff] %v1756_v44 }
 0x190   : > { %1468 = vst [vmem:[%s2305_s3 + $0x8] sm:$0xff] %v1757_v45 }
 0x191   : > { %v1377_v32 = vld [vmem:[#allocation2 + $0x40] sm:$0x3]  ;;  %v1379_v34 = vld [vmem:[#allocation2 + $0x50] sm:$0x3]  ;;  %1469 = vst [vmem:[%s2305_s3 + $0x10] sm:$0xff] %v1758_v48  ;;  %1470 = vst [vmem:[%s2305_s3 + $0x18] sm:$0xff] %v1759_v49 }
 0x192   : > { %v1378_v33 = vld [vmem:[#allocation2 + $0x48] sm:$0x3]  ;;  %v1380_v39 = vld [vmem:[#allocation2 + $0x58] sm:$0x3]  ;;  %v1411_v46 = vadd.f32 %v1386_v17, %v1377_v32  ;;  %v1413_v50 = vadd.f32 %v1394_v19, %v1379_v34 }
 0x193   : > { %v1412_v47 = vadd.f32 %v1390_v18, %v1378_v33  ;;  %v1414_v51 = vadd.f32 %v1398_v20, %v1380_v39 }
 0x194   : > { %v1423_v52 = vmax.f32 %v1411_v46, 0.0  ;;  %v1425_v54 = vmax.f32 %v1413_v50, 0.0 }
 0x195   : > { %v1424_v53 = vmax.f32 %v1412_v47, 0.0  ;;  %v1426_v55 = vmax.f32 %v1414_v51, 0.0 }
 0x197   : > { %v1760_v56 = vpack.c.bf16 %v1424_v53, %v1423_v52  ;;  %v1761_v57 = vpack.c.bf16 %v1426_v55, %v1425_v54 }
 0x199   : > { %1471 = vst [vmem:[%s2305_s3 + $0x20] sm:$0x11] %v1760_v56  ;;  %1472 = vst [vmem:[%s2305_s3 + $0x28] sm:$0x11] %v1761_v57 }
 0x19a PF: > { %s13_s16 = sadd.s32 1, %s2053_s16   ;;  %s2306_s12 = smov %s2041_s13 }
 0x19b   : > { %p10_p12 = scmp.ge.s32.totalorder %s13_s16, 11   ;;  %s2307_s13 = smov %s2111_s20 }
 0x19c   : > { %s2308_s14 = smov %s2049_s15  ;;  %s2309_s15 = smov %s2311_s17 }
 0x19d   :  { %12 = sbr.rel (!%p10_p12) target bundleno = 3 (0x3), region = 104 }

// kernel: vggnet_forward.26
= control target key start
LH: loop header
LB: loop body
LE: loop exit
PB: predicated region body
PF: predicated region fallthrough
CT: control target
= control target key end

     0   :  { %s1837_s12 = smov 0   ;;  %s1839_s13 = smov 0   ;;  %s2031_s0 = inlined_call_operand.vmem [shape: bf16[8,4608], index: 0, kind: input, shape index: {}]   ;;  %s2032_s1 = inlined_call_operand.vmem [shape: bf16[4608,512], index: 1, kind: input, shape index: {}]   ;;  %s2033_s2 = inlined_call_operand.vmem [shape: f32[1,512], index: 2, kind: input, shape index: {}]   ;;  %s2034_s3 = inlined_call_operand.vmem [shape: bf16[8,512], index: 3, kind: output, shape index: {}]  }
   0x1   :  { %s1841_s14 = smov 0  }
   0x2 LB: > { %s25_s15 = sadd.s32 1, %s1810_s13  ;;  %p1422_p0 = scmp.ge.s32.totalorder %s1814_s14, 1  ;;  %s1814_s14 = sphi %s1841_s14, %s13_s14   ;;  %s1810_s13 = sphi %s1839_s13, %s2036_s13   ;;  %s1806_s12 = sphi %s1837_s12, %s2035_s12  }
   0x3   : > { %p26_p1 = scmp.ge.s32.totalorder %s25_s15, 9  ;;  %p194_p2 = scmp.lt.s32.totalorder %s1814_s14, 10 }
   0x5   : > { %s2038_s15 = smov (%p26_p1, %s25_s15), 0  ;;  %p195_p3 = pnand %p1422_p0, %p194_p2 }
   0x6   : > { %s1423_s16 = sshll.u32 (!%p195_p3), %s1806_s12, 2  ;;  %s1425_s17 = sshll.u32 (!%p195_p3), %s1806_s12, 6 }
   0x7   : > { %198 = sbr.rel (%p195_p3) target bundleno = 386 (0x182), region = 32  ;;  %p243_p4 = scmp.lt.s32.totalorder (!%p195_p3), %s1423_s16, 35 }
   0x8   : > { %p252_p5 = scmp.lt.s32.totalorder (!%p195_p3), %s1425_s17, 575  ;;  %p1428_p6 = scmp.ne.s32.totalorder (!%p195_p3), %s1806_s12, 0 }
   0xe   : > { %s2040_s16 = smov (!%p243_p4, %s1423_s16), 35  ;;  %s2042_s17 = smov (!%p252_p5, %s1425_s17), 575 }
   0xf   : > { %s1424_s18 = sshll.u32 %s2040_s16, 2  ;;  %s1568_s22 = sshll.u32 %s2042_s17, 4  ;;  %v1816_v0 = vmov (!%p1428_p6), 0.0  }
  0x10   : > { %s1862_s21 = scalar_lea.vmem %s2031_s0, %s1424_s18  ;;  %s1867_s25 = scalar_lea.vmem %s2032_s1, %s1568_s22  ;;  %281 = vst [vmem:[#allocation2] sm:$0xff] (!%p1428_p6), %v1816_v0  ;;  %282 = vst [vmem:[#allocation2 + $0x8] sm:$0xff] (!%p1428_p6), %v1816_v0 }
  0x11   : > { %280 = sbr.rel (%p1428_p6) target bundleno = 24 (0x18), region = 36  ;;  %283 = vst [vmem:[#allocation2 + $0x10] sm:$0xff] (!%p1428_p6), %v1816_v0  ;;  %284 = vst [vmem:[#allocation2 + $0x18] sm:$0xff] (!%p1428_p6), %v1816_v0 }
  0x18 PF: > { %v1596_v1 = vld [vmem:[%s1867_s25 + $0x4] ss:$16 sps:$4 sm:$0xff]   ;;  %v1600_v3 = vld [vmem:[%s1867_s25] ss:$16 sps:$4 sm:$0xff]   ;;  %v290_v49 = vld [vmem:[%s1862_s21 + $0x8] sm:$0xff]  ;;  %p1561_p7 = scmp.ne.s32.totalorder %s1806_s12, 8 }
  0x19   : > { %v1598_v2 = vld [vmem:[%s1867_s25 + $0x204] ss:$16 sps:$4 sm:$0xff]   ;;  %1073 = vmatprep.subr.bf16.mxu0 %v1596_v1  ;;  %v1601_v4 = vld [vmem:[%s1867_s25 + $0x200] ss:$16 sps:$4 sm:$0xff]   ;;  %v1432_v52 = vcombine.high %v290_v49, %v290_v49 }
  0x1a   : > { %1114 = vmatprep.subr.bf16.mxu1 %v1598_v2  ;;  %v1602_v5 = vld [vmem:[%s1867_s25 + $0x24] ss:$16 sps:$4 sm:$0xff]   ;;  %1074 = vmatpush1.bf16.msra.mxu0 %v1600_v3  ;;  %v1606_v7 = vld [vmem:[%s1867_s25 + $0x20] ss:$16 sps:$4 sm:$0xff]  }
  0x1b   : > { %1115 = vmatpush1.bf16.msra.mxu1 %v1601_v4  ;;  %v1604_v6 = vld [vmem:[%s1867_s25 + $0x224] ss:$16 sps:$4 sm:$0xff]   ;;  %1075 = vmatprep.subr.bf16.mxu0 %v1602_v5  ;;  %v1607_v8 = vld [vmem:[%s1867_s25 + $0x220] ss:$16 sps:$4 sm:$0xff]   ;;  %v1698_v5 = vld [vmem:[%s1867_s25 + $0xc] ss:$16 sps:$4 sm:$0xff]  }
  0x1c   : > { %1116 = vmatprep.subr.bf16.mxu1 %v1604_v6  ;;  %v1608_v9 = vld [vmem:[%s1867_s25 + $0x44] ss:$16 sps:$4 sm:$0xff]   ;;  %v1612_v11 = vld [vmem:[%s1867_s25 + $0x40] ss:$16 sps:$4 sm:$0xff]   ;;  %1146 = vmatprep.mubr.bf16.mxu1 %v1432_v52  ;;  %v1701_v6 = vld [vmem:[%s1867_s25 + $0x20c] ss:$16 sps:$4 sm:$0xff]  }
  0x1d   : > { %v1610_v10 = vld [vmem:[%s1867_s25 + $0x244] ss:$16 sps:$4 sm:$0xff]   ;;  %v1613_v12 = vld [vmem:[%s1867_s25 + $0x240] ss:$16 sps:$4 sm:$0xff]  }
  0x1e   : > { %1076 = vmatpush1.bf16.msra.mxu0 %v1606_v7  ;;  %v1614_v13 = vld [vmem:[%s1867_s25 + $0x64] ss:$16 sps:$4 sm:$0xff]   ;;  %v1618_v15 = vld [vmem:[%s1867_s25 + $0x60] ss:$16 sps:$4 sm:$0xff]  }
  0x1f   : > { %1117 = vmatpush1.bf16.msra.mxu1 %v1607_v8  ;;  %1077 = vmatprep.subr.bf16.mxu0 %v1608_v9  ;;  %v1616_v14 = vld [vmem:[%s1867_s25 + $0x264] ss:$16 sps:$4 sm:$0xff]   ;;  %v1619_v16 = vld [vmem:[%s1867_s25 + $0x260] ss:$16 sps:$4 sm:$0xff]   ;;  %v1943_v8 = vcombine.low %v290_v49, %v290_v49  ;;  %v1696_v9 = vld [vmem:[%s1867_s25 + $0x8] ss:$16 sps:$4 sm:$0xff]  }
  0x20   : > { %1118 = vmatprep.subr.bf16.mxu1 %v1610_v10  ;;  %v1620_v17 = vld [vmem:[%s1867_s25 + $0x84] ss:$16 sps:$4 sm:$0xff]   ;;  %v1624_v19 = vld [vmem:[%s1867_s25 + $0x80] ss:$16 sps:$4 sm:$0xff]   ;;  %v1699_v10 = vld [vmem:[%s1867_s25 + $0x208] ss:$16 sps:$4 sm:$0xff]  }
  0x21   : > { %v1622_v18 = vld [vmem:[%s1867_s25 + $0x284] ss:$16 sps:$4 sm:$0xff]   ;;  %v1625_v20 = vld [vmem:[%s1867_s25 + $0x280] ss:$16 sps:$4 sm:$0xff]   ;;  %v1756_v49 = vld [vmem:[%s1867_s25 + $0x148] ss:$16 sps:$4 sm:$0xff]  }
  0x22   : > { %1078 = vmatpush1.bf16.msra.mxu0 %v1612_v11  ;;  %v1626_v21 = vld [vmem:[%s1867_s25 + $0xa4] ss:$16 sps:$4 sm:$0xff]   ;;  %v1630_v23 = vld [vmem:[%s1867_s25 + $0xa0] ss:$16 sps:$4 sm:$0xff]   ;;  %v1704_v11 = vld [vmem:[%s1867_s25 + $0x2c] ss:$16 sps:$4 sm:$0xff]  }
  0x23   : > { %1119 = vmatpush1.bf16.msra.mxu1 %v1613_v12  ;;  %1079 = vmatprep.subr.bf16.mxu0 %v1614_v13  ;;  %v1628_v22 = vld [vmem:[%s1867_s25 + $0x2a4] ss:$16 sps:$4 sm:$0xff]   ;;  %v1631_v24 = vld [vmem:[%s1867_s25 + $0x2a0] ss:$16 sps:$4 sm:$0xff]   ;;  %v1707_v12 = vld [vmem:[%s1867_s25 + $0x22c] ss:$16 sps:$4 sm:$0xff]  }
  0x24   : > { %1120 = vmatprep.subr.bf16.mxu1 %v1616_v14  ;;  %v1632_v25 = vld [vmem:[%s1867_s25 + $0xc4] ss:$16 sps:$4 sm:$0xff]   ;;  %v1636_v27 = vld [vmem:[%s1867_s25 + $0xc0] ss:$16 sps:$4 sm:$0xff]   ;;  %v1702_v13 = vld [vmem:[%s1867_s25 + $0x28] ss:$16 sps:$4 sm:$0xff]  }
  0x25   : > { %v1634_v26 = vld [vmem:[%s1867_s25 + $0x2c4] ss:$16 sps:$4 sm:$0xff]   ;;  %v1637_v28 = vld [vmem:[%s1867_s25 + $0x2c0] ss:$16 sps:$4 sm:$0xff]   ;;  %v1705_v14 = vld [vmem:[%s1867_s25 + $0x228] ss:$16 sps:$4 sm:$0xff]  }
  0x26   : > { %1080 = vmatpush1.bf16.msra.mxu0 %v1618_v15  ;;  %v1638_v29 = vld [vmem:[%s1867_s25 + $0xe4] ss:$16 sps:$4 sm:$0xff]   ;;  %v1642_v31 = vld [vmem:[%s1867_s25 + $0xe0] ss:$16 sps:$4 sm:$0xff]   ;;  %v1710_v15 = vld [vmem:[%s1867_s25 + $0x4c] ss:$16 sps:$4 sm:$0xff]  }
  0x27   : > { %1121 = vmatpush1.bf16.msra.mxu1 %v1619_v16  ;;  %1081 = vmatprep.subr.bf16.mxu0 %v1620_v17  ;;  %v1640_v30 = vld [vmem:[%s1867_s25 + $0x2e4] ss:$16 sps:$4 sm:$0xff]   ;;  %v1643_v32 = vld [vmem:[%s1867_s25 + $0x2e0] ss:$16 sps:$4 sm:$0xff]   ;;  %v1713_v16 = vld [vmem:[%s1867_s25 + $0x24c] ss:$16 sps:$4 sm:$0xff]  }
  0x28   : > { %1122 = vmatprep.subr.bf16.mxu1 %v1622_v18  ;;  %v1644_v33 = vld [vmem:[%s1867_s25 + $0x104] ss:$16 sps:$4 sm:$0xff]   ;;  %v1648_v35 = vld [vmem:[%s1867_s25 + $0x100] ss:$16 sps:$4 sm:$0xff]   ;;  %v1708_v17 = vld [vmem:[%s1867_s25 + $0x48] ss:$16 sps:$4 sm:$0xff]  }
  0x29   : > { %v1646_v34 = vld [vmem:[%s1867_s25 + $0x304] ss:$16 sps:$4 sm:$0xff]   ;;  %v1649_v36 = vld [vmem:[%s1867_s25 + $0x300] ss:$16 sps:$4 sm:$0xff]   ;;  %v1711_v18 = vld [vmem:[%s1867_s25 + $0x248] ss:$16 sps:$4 sm:$0xff]  }
  0x2a   : > { %1082 = vmatpush1.bf16.msra.mxu0 %v1624_v19  ;;  %v1650_v37 = vld [vmem:[%s1867_s25 + $0x124] ss:$16 sps:$4 sm:$0xff]   ;;  %v1654_v39 = vld [vmem:[%s1867_s25 + $0x120] ss:$16 sps:$4 sm:$0xff]   ;;  %v1716_v19 = vld [vmem:[%s1867_s25 + $0x6c] ss:$16 sps:$4 sm:$0xff]  }
  0x2b   : > { %1123 = vmatpush1.bf16.msra.mxu1 %v1625_v20  ;;  %1083 = vmatprep.subr.bf16.mxu0 %v1626_v21  ;;  %v1652_v38 = vld [vmem:[%s1867_s25 + $0x324] ss:$16 sps:$4 sm:$0xff]   ;;  %v1655_v40 = vld [vmem:[%s1867_s25 + $0x320] ss:$16 sps:$4 sm:$0xff]   ;;  %v1719_v20 = vld [vmem:[%s1867_s25 + $0x26c] ss:$16 sps:$4 sm:$0xff]  }
  0x2c   : > { %1124 = vmatprep.subr.bf16.mxu1 %v1628_v22  ;;  %v1656_v41 = vld [vmem:[%s1867_s25 + $0x144] ss:$16 sps:$4 sm:$0xff]   ;;  %v1660_v43 = vld [vmem:[%s1867_s25 + $0x140] ss:$16 sps:$4 sm:$0xff]   ;;  %v1714_v21 = vld [vmem:[%s1867_s25 + $0x68] ss:$16 sps:$4 sm:$0xff]  }
  0x2d   : > { %v1658_v42 = vld [vmem:[%s1867_s25 + $0x344] ss:$16 sps:$4 sm:$0xff]   ;;  %v1661_v44 = vld [vmem:[%s1867_s25 + $0x340] ss:$16 sps:$4 sm:$0xff]   ;;  %v1717_v22 = vld [vmem:[%s1867_s25 + $0x268] ss:$16 sps:$4 sm:$0xff]  }
  0x2e   : > { %1084 = vmatpush1.bf16.msra.mxu0 %v1630_v23  ;;  %v1662_v45 = vld [vmem:[%s1867_s25 + $0x164] ss:$16 sps:$4 sm:$0xff]   ;;  %v1666_v50 = vld [vmem:[%s1867_s25 + $0x160] ss:$16 sps:$4 sm:$0xff]   ;;  %v1722_v23 = vld [vmem:[%s1867_s25 + $0x8c] ss:$16 sps:$4 sm:$0xff]  }
  0x2f   : > { %1125 = vmatpush1.bf16.msra.mxu1 %v1631_v24  ;;  %1085 = vmatprep.subr.bf16.mxu0 %v1632_v25  ;;  %v1664_v46 = vld [vmem:[%s1867_s25 + $0x364] ss:$16 sps:$4 sm:$0xff]   ;;  %v1667_v51 = vld [vmem:[%s1867_s25 + $0x360] ss:$16 sps:$4 sm:$0xff]   ;;  %v1725_v24 = vld [vmem:[%s1867_s25 + $0x28c] ss:$16 sps:$4 sm:$0xff]  }
  0x30   : > { %1126 = vmatprep.subr.bf16.mxu1 %v1634_v26  ;;  %v289_v47 = vld [vmem:[%s1862_s21] sm:$0xff]  ;;  %v1720_v25 = vld [vmem:[%s1867_s25 + $0x88] ss:$16 sps:$4 sm:$0xff]  }
  0x31   : > { %v1917_v48 = vcombine.high %v289_v47, %v289_v47  ;;  %v1668_v53 = vld [vmem:[%s1867_s25 + $0x184] ss:$16 sps:$4 sm:$0xff]   ;;  %v1672_v55 = vld [vmem:[%s1867_s25 + $0x180] ss:$16 sps:$4 sm:$0xff]   ;;  %v1941_v7 = vcombine.low %v289_v47, %v289_v47  ;;  %v1723_v26 = vld [vmem:[%s1867_s25 + $0x288] ss:$16 sps:$4 sm:$0xff]  }
  0x32   : > { %1086 = vmatpush1.bf16.msra.mxu0 %v1636_v27  ;;  %v1670_v54 = vld [vmem:[%s1867_s25 + $0x384] ss:$16 sps:$4 sm:$0xff]   ;;  %v1673_v56 = vld [vmem:[%s1867_s25 + $0x380] ss:$16 sps:$4 sm:$0xff]   ;;  %v1728_v27 = vld [vmem:[%s1867_s25 + $0xac] ss:$16 sps:$4 sm:$0xff]  }
  0x33   : > { %1127 = vmatpush1.bf16.msra.mxu1 %v1637_v28  ;;  %1087 = vmatprep.subr.bf16.mxu0 %v1638_v29  ;;  %v1674_v57 = vld [vmem:[%s1867_s25 + $0x1a4] ss:$16 sps:$4 sm:$0xff]   ;;  %v1678_v59 = vld [vmem:[%s1867_s25 + $0x1a0] ss:$16 sps:$4 sm:$0xff]   ;;  %v1731_v28 = vld [vmem:[%s1867_s25 + $0x2ac] ss:$16 sps:$4 sm:$0xff]  }
  0x34   : > { %1128 = vmatprep.subr.bf16.mxu1 %v1640_v30  ;;  %1105 = vmatprep.mubr.bf16.mxu0 %v1917_v48  ;;  %v1676_v58 = vld [vmem:[%s1867_s25 + $0x3a4] ss:$16 sps:$4 sm:$0xff]   ;;  %v1679_v60 = vld [vmem:[%s1867_s25 + $0x3a0] ss:$16 sps:$4 sm:$0xff]   ;;  %v1726_v29 = vld [vmem:[%s1867_s25 + $0xa8] ss:$16 sps:$4 sm:$0xff]  }
  0x35   : > { %v1680_v61 = vld [vmem:[%s1867_s25 + $0x1c4] ss:$16 sps:$4 sm:$0xff]   ;;  %v1684_v63 = vld [vmem:[%s1867_s25 + $0x1c0] ss:$16 sps:$4 sm:$0xff]   ;;  %v1729_v30 = vld [vmem:[%s1867_s25 + $0x2a8] ss:$16 sps:$4 sm:$0xff]  }
  0x36   : > { %1088 = vmatpush1.bf16.msra.mxu0 %v1642_v31  ;;  %v1682_v62 = vld [vmem:[%s1867_s25 + $0x3c4] ss:$16 sps:$4 sm:$0xff]   ;;  %v1685_v0 = vld [vmem:[%s1867_s25 + $0x3c0] ss:$16 sps:$4 sm:$0xff]   ;;  %v1734_v31 = vld [vmem:[%s1867_s25 + $0xcc] ss:$16 sps:$4 sm:$0xff]  }
  0x37   : > { %1129 = vmatpush1.bf16.msra.mxu1 %v1643_v32  ;;  %1089 = vmatprep.subr.bf16.mxu0 %v1644_v33  ;;  %v1686_v1 = vld [vmem:[%s1867_s25 + $0x1e4] ss:$16 sps:$4 sm:$0xff]   ;;  %v1690_v3 = vld [vmem:[%s1867_s25 + $0x1e0] ss:$16 sps:$4 sm:$0xff]   ;;  %v1737_v32 = vld [vmem:[%s1867_s25 + $0x2cc] ss:$16 sps:$4 sm:$0xff]  }
  0x38   : > { %1130 = vmatprep.subr.bf16.mxu1 %v1646_v34  ;;  %v1688_v2 = vld [vmem:[%s1867_s25 + $0x3e4] ss:$16 sps:$4 sm:$0xff]   ;;  %v1691_v4 = vld [vmem:[%s1867_s25 + $0x3e0] ss:$16 sps:$4 sm:$0xff]   ;;  %v1732_v33 = vld [vmem:[%s1867_s25 + $0xc8] ss:$16 sps:$4 sm:$0xff]  }
  0x39   : > { %v1735_v34 = vld [vmem:[%s1867_s25 + $0x2c8] ss:$16 sps:$4 sm:$0xff]   ;;  %v1758_v47 = vld [vmem:[%s1867_s25 + $0x14c] ss:$16 sps:$4 sm:$0xff]  }
  0x3a   : > { %1090 = vmatpush1.bf16.msra.mxu0 %v1648_v35  ;;  %v1740_v35 = vld [vmem:[%s1867_s25 + $0xec] ss:$16 sps:$4 sm:$0xff]  }
  0x3b   : > { %1131 = vmatpush1.bf16.msra.mxu1 %v1649_v36  ;;  %1091 = vmatprep.subr.bf16.mxu0 %v1650_v37  ;;  %v1743_v36 = vld [vmem:[%s1867_s25 + $0x2ec] ss:$16 sps:$4 sm:$0xff]   ;;  %v1738_v37 = vld [vmem:[%s1867_s25 + $0xe8] ss:$16 sps:$4 sm:$0xff]  }
  0x3c   : > { %1132 = vmatprep.subr.bf16.mxu1 %v1652_v38  ;;  %v1741_v38 = vld [vmem:[%s1867_s25 + $0x2e8] ss:$16 sps:$4 sm:$0xff]  }
  0x3e   : > { %1092 = vmatpush1.bf16.msra.mxu0 %v1654_v39  ;;  %v1746_v39 = vld [vmem:[%s1867_s25 + $0x10c] ss:$16 sps:$4 sm:$0xff]  }
  0x3f   : > { %1133 = vmatpush1.bf16.msra.mxu1 %v1655_v40  ;;  %1093 = vmatprep.subr.bf16.mxu0 %v1656_v41  ;;  %v1749_v40 = vld [vmem:[%s1867_s25 + $0x30c] ss:$16 sps:$4 sm:$0xff]   ;;  %v1744_v41 = vld [vmem:[%s1867_s25 + $0x108] ss:$16 sps:$4 sm:$0xff]  }
  0x40   : > { %1134 = vmatprep.subr.bf16.mxu1 %v1658_v42  ;;  %v1747_v42 = vld [vmem:[%s1867_s25 + $0x308] ss:$16 sps:$4 sm:$0xff]  }
  0x42   : > { %1094 = vmatpush1.bf16.msra.mxu0 %v1660_v43  ;;  %v1752_v43 = vld [vmem:[%s1867_s25 + $0x12c] ss:$16 sps:$4 sm:$0xff]  }
  0x43   : > { %1135 = vmatpush1.bf16.msra.mxu1 %v1661_v44  ;;  %1095 = vmatprep.subr.bf16.mxu0 %v1662_v45  ;;  %v1755_v44 = vld [vmem:[%s1867_s25 + $0x32c] ss:$16 sps:$4 sm:$0xff]   ;;  %v1750_v45 = vld [vmem:[%s1867_s25 + $0x128] ss:$16 sps:$4 sm:$0xff]  }
  0x44   : > { %1136 = vmatprep.subr.bf16.mxu1 %v1664_v46  ;;  %v1753_v46 = vld [vmem:[%s1867_s25 + $0x328] ss:$16 sps:$4 sm:$0xff]  }
  0x46   : > { %1096 = vmatpush1.bf16.msra.mxu0 %v1666_v50  ;;  %v1759_v50 = vld [vmem:[%s1867_s25 + $0x348] ss:$16 sps:$4 sm:$0xff]  }
  0x47   : > { %1137 = vmatpush1.bf16.msra.mxu1 %v1667_v51  ;;  %1097 = vmatprep.subr.bf16.mxu0 %v1668_v53  ;;  %v1764_v51 = vld [vmem:[%s1867_s25 + $0x16c] ss:$16 sps:$4 sm:$0xff]   ;;  %v1762_v53 = vld [vmem:[%s1867_s25 + $0x168] ss:$16 sps:$4 sm:$0xff]  }
  0x48   : > { %1138 = vmatprep.subr.bf16.mxu1 %v1670_v54  ;;  %v1765_v54 = vld [vmem:[%s1867_s25 + $0x368] ss:$16 sps:$4 sm:$0xff]  }
  0x4a   : > { %1098 = vmatpush1.bf16.msra.mxu0 %v1672_v55  ;;  %v1770_v55 = vld [vmem:[%s1867_s25 + $0x18c] ss:$16 sps:$4 sm:$0xff]  }
  0x4b   : > { %1139 = vmatpush1.bf16.msra.mxu1 %v1673_v56  ;;  %1099 = vmatprep.subr.bf16.mxu0 %v1674_v57  ;;  %v1773_v56 = vld [vmem:[%s1867_s25 + $0x38c] ss:$16 sps:$4 sm:$0xff]   ;;  %v1768_v57 = vld [vmem:[%s1867_s25 + $0x188] ss:$16 sps:$4 sm:$0xff]  }
  0x4c   : > { %1140 = vmatprep.subr.bf16.mxu1 %v1676_v58  ;;  %v1771_v58 = vld [vmem:[%s1867_s25 + $0x388] ss:$16 sps:$4 sm:$0xff]  }
  0x4e   : > { %1100 = vmatpush1.bf16.msra.mxu0 %v1678_v59  ;;  %v1776_v59 = vld [vmem:[%s1867_s25 + $0x1ac] ss:$16 sps:$4 sm:$0xff]  }
  0x4f   : > { %1141 = vmatpush1.bf16.msra.mxu1 %v1679_v60  ;;  %1101 = vmatprep.subr.bf16.mxu0 %v1680_v61  ;;  %v1779_v60 = vld [vmem:[%s1867_s25 + $0x3ac] ss:$16 sps:$4 sm:$0xff]   ;;  %v1774_v61 = vld [vmem:[%s1867_s25 + $0x1a8] ss:$16 sps:$4 sm:$0xff]  }
  0x50   : > { %1142 = vmatprep.subr.bf16.mxu1 %v1682_v62  ;;  %v1777_v62 = vld [vmem:[%s1867_s25 + $0x3a8] ss:$16 sps:$4 sm:$0xff]  }
  0x52   : > { %1102 = vmatpush1.bf16.msra.mxu0 %v1684_v63  ;;  %v1782_v63 = vld [vmem:[%s1867_s25 + $0x1cc] ss:$16 sps:$4 sm:$0xff]  }
  0x53   : > { %1143 = vmatpush1.bf16.msra.mxu1 %v1685_v0  ;;  %1103 = vmatprep.subr.bf16.mxu0 %v1686_v1  ;;  %v1785_v0 = vld [vmem:[%s1867_s25 + $0x3cc] ss:$16 sps:$4 sm:$0xff]   ;;  %v1780_v1 = vld [vmem:[%s1867_s25 + $0x1c8] ss:$16 sps:$4 sm:$0xff]  }
  0x54   : > { %1144 = vmatprep.subr.bf16.mxu1 %v1688_v2  ;;  %v1783_v2 = vld [vmem:[%s1867_s25 + $0x3c8] ss:$16 sps:$4 sm:$0xff]  }
  0x56   : > { %1104 = vmatpush1.bf16.msra.mxu0 %v1690_v3  ;;  %v1788_v3 = vld [vmem:[%s1867_s25 + $0x1ec] ss:$16 sps:$4 sm:$0xff]  }
  0x57   : > { %1145 = vmatpush1.bf16.msra.mxu1 %v1691_v4  ;;  %1155 = vmatprep.subr.bf16.mxu0 %v1698_v5  ;;  %v1791_v4 = vld [vmem:[%s1867_s25 + $0x3ec] ss:$16 sps:$4 sm:$0xff]   ;;  %v1786_v5 = vld [vmem:[%s1867_s25 + $0x1e8] ss:$16 sps:$4 sm:$0xff]  }
  0x58   : > { %1196 = vmatprep.subr.bf16.mxu1 %v1701_v6  ;;  %v1789_v6 = vld [vmem:[%s1867_s25 + $0x3e8] ss:$16 sps:$4 sm:$0xff]  }
  0x59   : > { %1106 = vmatmul.mubr.bf16.vlgmr.msra.gmra.mrb[0].mxu0 %v1941_v7 }
  0x5a   : > { %1147 = vmatmul.mubr.bf16.vlgmr.msra.gmra.mrb[0].mxu1 %v1943_v8  ;;  %1156 = vmatpush1.bf16.msra.mxu0 %v1696_v9 }
  0x5b   : > { %1197 = vmatpush1.bf16.msra.mxu1 %v1699_v10  ;;  %1157 = vmatprep.subr.bf16.mxu0 %v1704_v11  ;;  %v285_v10 = vld [vmem:[#allocation2] sm:$0xff] }
  0x5c   : > { %1198 = vmatprep.subr.bf16.mxu1 %v1707_v12  ;;  %1187 = vmatprep.mubr.bf16.mxu0 %v1917_v48  ;;  %v1761_v48 = vld [vmem:[%s1867_s25 + $0x34c] ss:$16 sps:$4 sm:$0xff]  }
  0x5d   : > { %1228 = vmatprep.mubr.bf16.mxu1 %v1432_v52  ;;  %v1767_v52 = vld [vmem:[%s1867_s25 + $0x36c] ss:$16 sps:$4 sm:$0xff]  }
  0x5e   : > { %1158 = vmatpush1.bf16.msra.mxu0 %v1702_v13 }
  0x5f   : > { %1199 = vmatpush1.bf16.msra.mxu1 %v1705_v14  ;;  %1159 = vmatprep.subr.bf16.mxu0 %v1710_v15  ;;  %v286_v14 = vld [vmem:[#allocation2 + $0x8] sm:$0xff] }
  0x60   : > { %1200 = vmatprep.subr.bf16.mxu1 %v1713_v16 }
  0x62   : > { %1160 = vmatpush1.bf16.msra.mxu0 %v1708_v17 }
  0x63   : > { %1201 = vmatpush1.bf16.msra.mxu1 %v1711_v18  ;;  %1161 = vmatprep.subr.bf16.mxu0 %v1716_v19 }
  0x64   : > { %1202 = vmatprep.subr.bf16.mxu1 %v1719_v20 }
  0x66   : > { %1162 = vmatpush1.bf16.msra.mxu0 %v1714_v21 }
  0x67   : > { %1203 = vmatpush1.bf16.msra.mxu1 %v1717_v22  ;;  %1163 = vmatprep.subr.bf16.mxu0 %v1722_v23 }
  0x68   : > { %1204 = vmatprep.subr.bf16.mxu1 %v1725_v24 }
  0x6a   : > { %1164 = vmatpush1.bf16.msra.mxu0 %v1720_v25 }
  0x6b   : > { %1205 = vmatpush1.bf16.msra.mxu1 %v1723_v26  ;;  %1165 = vmatprep.subr.bf16.mxu0 %v1728_v27  ;;  %v288_v26 = vld [vmem:[#allocation2 + $0x18] sm:$0xff] }
  0x6c   : > { %1206 = vmatprep.subr.bf16.mxu1 %v1731_v28 }
  0x6e   : > { %1166 = vmatpush1.bf16.msra.mxu0 %v1726_v29 }
  0x6f   : > { %1207 = vmatpush1.bf16.msra.mxu1 %v1729_v30  ;;  %1167 = vmatprep.subr.bf16.mxu0 %v1734_v31 }
  0x70   : > { %1208 = vmatprep.subr.bf16.mxu1 %v1737_v32 }
  0x72   : > { %1168 = vmatpush1.bf16.msra.mxu0 %v1732_v33 }
  0x73   : > { %1209 = vmatpush1.bf16.msra.mxu1 %v1735_v34  ;;  %1169 = vmatprep.subr.bf16.mxu0 %v1740_v35  ;;  %v1255_v35 = vlaneseq (!%p1561_p7) }
  0x74   : > { %1210 = vmatprep.subr.bf16.mxu1 %v1743_v36 }
  0x75   : > { %v1256_v36 = vshrl.u32 (!%p1561_p7), %v1255_v35, 7 }
  0x76   : > { %1170 = vmatpush1.bf16.msra.mxu0 %v1738_v37  ;;  %v1253_v37 = vld [vmem:[%s2033_s2] sm:$0xf] (!%p1561_p7) }
  0x77   : > { %1211 = vmatpush1.bf16.msra.mxu1 %v1741_v38  ;;  %1171 = vmatprep.subr.bf16.mxu0 %v1746_v39  ;;  %v1257_v39 = vsub.s32 (!%p1561_p7), 0, %v1256_v36 }
  0x78   : > { %1212 = vmatprep.subr.bf16.mxu1 %v1749_v40  ;;  %v1261_v40 = vsub.s32 (!%p1561_p7), 1, %v1256_v36 }
  0x7a   : > { %1172 = vmatpush1.bf16.msra.mxu0 %v1744_v41  ;;  %v1265_v41 = vsub.s32 (!%p1561_p7), 2, %v1256_v36 }
  0x7b   : > { %1213 = vmatpush1.bf16.msra.mxu1 %v1747_v42  ;;  %1173 = vmatprep.subr.bf16.mxu0 %v1752_v43  ;;  %v1269_v42 = vsub.s32 (!%p1561_p7), 3, %v1256_v36 }
  0x7c   : > { %1214 = vmatprep.subr.bf16.mxu1 %v1755_v44 }
  0x7e   : > { %1174 = vmatpush1.bf16.msra.mxu0 %v1750_v45 }
  0x7f   : > { %1215 = vmatpush1.bf16.msra.mxu1 %v1753_v46  ;;  %1175 = vmatprep.subr.bf16.mxu0 %v1758_v47  ;;  %v1258_v46 = vrot.slane (!%p1561_p7), %v1253_v37, %v1257_v39  ;;  %v1262_v47 = vrot.slane (!%p1561_p7), %v1253_v37, %v1261_v40 }
  0x80   : > { %1216 = vmatprep.subr.bf16.mxu1 %v1761_v48  ;;  %v1266_v48 = vrot.slane (!%p1561_p7), %v1253_v37, %v1265_v41 }
  0x82   : > { %1176 = vmatpush1.bf16.msra.mxu0 %v1756_v49  ;;  %v1270_v49 = vrot.slane (!%p1561_p7), %v1253_v37, %v1269_v42 }
  0x83   : > { %1217 = vmatpush1.bf16.msra.mxu1 %v1759_v50  ;;  %1177 = vmatprep.subr.bf16.mxu0 %v1764_v51 }
  0x84   : > { %1218 = vmatprep.subr.bf16.mxu1 %v1767_v52 }
  0x86   : > { %1178 = vmatpush1.bf16.msra.mxu0 %v1762_v53 }
  0x87   : > { %1219 = vmatpush1.bf16.msra.mxu1 %v1765_v54  ;;  %1179 = vmatprep.subr.bf16.mxu0 %v1770_v55 }
  0x88   : > { %1220 = vmatprep.subr.bf16.mxu1 %v1773_v56 }
  0x8a   : > { %1180 = vmatpush1.bf16.msra.mxu0 %v1768_v57 }
  0x8b   : > { %1221 = vmatpush1.bf16.msra.mxu1 %v1771_v58  ;;  %1181 = vmatprep.subr.bf16.mxu0 %v1776_v59 }
  0x8c   : > { %1222 = vmatprep.subr.bf16.mxu1 %v1779_v60 }
  0x8e   : > { %1182 = vmatpush1.bf16.msra.mxu0 %v1774_v61 }
  0x8f   : > { %1223 = vmatpush1.bf16.msra.mxu1 %v1777_v62  ;;  %1183 = vmatprep.subr.bf16.mxu0 %v1782_v63 }
  0x90   : > { %1224 = vmatprep.subr.bf16.mxu1 %v1785_v0 }
  0x92   : > { %1184 = vmatpush1.bf16.msra.mxu0 %v1780_v1 }
  0x93   : > { %1225 = vmatpush1.bf16.msra.mxu1 %v1783_v2  ;;  %1185 = vmatprep.subr.bf16.mxu0 %v1788_v3 }
  0x94   : > { %1226 = vmatprep.subr.bf16.mxu1 %v1791_v4 }
  0x96   : > { %1186 = vmatpush1.bf16.msra.mxu0 %v1786_v5 }
  0x97   : > { %1227 = vmatpush1.bf16.msra.mxu1 %v1789_v6 }
  0x99   : > { %1188 = vmatmul.mubr.bf16.vlgmr.msra.gmra.mrb[4].mxu0 %v1941_v7  ;;  %v287_v7 = vld [vmem:[#allocation2 + $0x10] sm:$0xff] }
  0x9a   : > { %1229 = vmatmul.mubr.bf16.vlgmr.msra.gmra.mrb[4].mxu1 %v1943_v8 }
 0x12c   : > { %v1107_v9 = vpop.f32.mrb[0].mxu0 }
 0x12d   : > { %v1148_v11 = vpop.f32.mrb[0].mxu1  ;;  %v1109_v13 = vpop.f32.mrb[1].mxu0 }
 0x12e   : > { %v1149_v12 = vadd.f32 %v1148_v11, %v1107_v9  ;;  %v1150_v15 = vpop.f32.mrb[1].mxu1  ;;  %v1111_v17 = vpop.f32.mrb[2].mxu0 }
 0x12f   : > { %v1151_v16 = vadd.f32 %v1150_v15, %v1109_v13  ;;  %v1152_v18 = vpop.f32.mrb[2].mxu1  ;;  %v1112_v20 = vpop.f32.mrb[3].mxu0 }
 0x130   : > { %v1237_v19 = vadd.f32 %v1149_v12, %v285_v10  ;;  %v1153_v21 = vpop.f32.mrb[3].mxu1 }
 0x131   : > { %v1238_v22 = vadd.f32 %v1151_v16, %v286_v14 }
 0x132   : > { %1241 = vst [vmem:[#allocation2] sm:$0xff] %v1237_v19 }
 0x133   : > { %1242 = vst [vmem:[#allocation2 + $0x8] sm:$0xff] %v1238_v22 }
 0x139   : > { %v1249_v38 = vld [vmem:[#allocation2] sm:$0xff] (!%p1561_p7) }
 0x13a   : > { %v1250_v43 = vld [vmem:[#allocation2 + $0x8] sm:$0xff] (!%p1561_p7)  ;;  %v1275_v50 = vadd.f32 (!%p1561_p7), %v1258_v46, %v1249_v38 }
 0x13b   : > { %v1276_v51 = vadd.f32 (!%p1561_p7), %v1262_v47, %v1250_v43 }
 0x13c   : > { %v1279_v54 = vmax.f32 (!%p1561_p7), %v1275_v50, 0.0 }
 0x13d   : > { %v1280_v55 = vmax.f32 (!%p1561_p7), %v1276_v51, 0.0 }
 0x13f   : > { %v1569_v58 = vpack.c.bf16 (!%p1561_p7), %v1280_v55, %v1279_v54 }
 0x141   : > { %1299 = vst [vmem:[%s2034_s3] sm:$0xff] (!%p1561_p7), %v1569_v58 }
 0x16c   : > { %v1189_v23 = vpop.f32.mrb[4].mxu0 }
 0x16d   : > { %v1230_v24 = vpop.f32.mrb[4].mxu1  ;;  %v1191_v25 = vpop.f32.mrb[5].mxu0  ;;  %1248 = sbr.rel (%p1561_p7) target bundleno = 386 (0x182), region = 40 }
 0x16e   : > { %v1231_v8 = vadd.f32 %v1230_v24, %v1189_v23  ;;  %v1232_v27 = vpop.f32.mrb[5].mxu1  ;;  %v1193_v29 = vpop.f32.mrb[6].mxu0 }
 0x16f   : > { %v1233_v28 = vadd.f32 %v1232_v27, %v1191_v25  ;;  %v1234_v30 = vpop.f32.mrb[6].mxu1  ;;  %v1194_v32 = vpop.f32.mrb[7].mxu0 }
 0x170   : > { %v1239_v31 = vadd.f32 %v1231_v8, %v287_v7  ;;  %v1235_v33 = vpop.f32.mrb[7].mxu1 }
 0x171   : > { %v1240_v34 = vadd.f32 %v1233_v28, %v288_v26 }
 0x172   : > { %1243 = vst [vmem:[#allocation2 + $0x10] sm:$0xff] %v1239_v31 }
 0x173   : > { %1244 = vst [vmem:[#allocation2 + $0x18] sm:$0xff] %v1240_v34 }
 0x179   : > { %v1251_v44 = vld [vmem:[#allocation2 + $0x10] sm:$0xff] }
 0x17a   : > { %v1252_v45 = vld [vmem:[#allocation2 + $0x18] sm:$0xff]  ;;  %v1277_v52 = vadd.f32 %v1266_v48, %v1251_v44 }
 0x17b   : > { %v1278_v53 = vadd.f32 %v1270_v49, %v1252_v45 }
 0x17c   : > { %v1281_v56 = vmax.f32 %v1277_v52, 0.0 }
 0x17d   : > { %v1282_v57 = vmax.f32 %v1278_v53, 0.0 }
 0x17f   : > { %v1570_v59 = vpack.c.bf16 %v1282_v57, %v1281_v56 }
 0x181   : > { %1300 = vst [vmem:[%s2034_s3 + $0x8] sm:$0xff] %v1570_v59 }
 0x182 PF: > { %s13_s14 = sadd.s32 1, %s1814_s14   ;;  %s2035_s12 = smov %s1810_s13 }
 0x183   : > { %p10_p8 = scmp.ge.s32.totalorder %s13_s14, 11   ;;  %s2036_s13 = smov %s2038_s15 }
 0x185   :  { %12 = sbr.rel (!%p10_p8) target bundleno = 2 (0x2), region = 76 }

// kernel: vggnet_forward.29
= control target key start
LH: loop header
LB: loop body
LE: loop exit
PB: predicated region body
PF: predicated region fallthrough
CT: control target
= control target key end

     0   :  { %s2121_s12 = smov 0   ;;  %s2123_s13 = smov 0   ;;  %s2616_s0 = inlined_call_operand.vmem [shape: bf16[2,512], index: 0, kind: input, shape index: {}]   ;;  %s2617_s1 = inlined_call_operand.vmem [shape: bf16[512,4096], index: 1, kind: input, shape index: {}]   ;;  %s2618_s2 = inlined_call_operand.vmem [shape: f32[1,4096], index: 2, kind: input, shape index: {}]   ;;  %s2619_s3 = inlined_call_operand.vmem [shape: bf16[2,4096], index: 3, kind: output, shape index: {}]  }
   0x1   :  { %s2125_s14 = smov 0   ;;  %s2127_s15 = smov 0  }
   0x2   :  { %s2129_s16 = smov 0  }
   0x3 LB: > { %s28_s17 = sadd.s32 1, %s2094_s15  ;;  %p76_p1 = scmp.ne.s32.totalorder %s2086_s13, %s2082_s12  ;;  %s2098_s16 = sphi %s2129_s16, %s13_s16   ;;  %s2094_s15 = sphi %s2127_s15, %s2623_s15   ;;  %s2090_s14 = sphi %s2125_s14, %s2622_s14   ;;  %s2086_s13 = sphi %s2123_s13, %s2621_s13   ;;  %s2082_s12 = sphi %s2121_s12, %s2620_s12  }
   0x4   : > { %p30_p0 = scmp.ge.s32.totalorder %s28_s17, 8  ;;  %p77_p2 = scmp.eq.s32.totalorder %s2098_s16, 0 }
   0x5   : > { %s69_s19 = sadd.s32 1, %s2086_s13  ;;  %p1672_p5 = scmp.ge.s32.totalorder %s2098_s16, 8 }
   0x6   : > { %s2625_s17 = smov (%p30_p0, %s28_s17), 0  ;;  %p78_p3 = por %p77_p2, %p76_p1 }
   0x7   : > { %s65_s18 = ssub.s32 %s2094_s15, %s2625_s17  ;;  %168 = sbr.rel (%p1672_p5) target bundleno = 82 (0x52), region = 20 }
   0x8   : > { %p67_p4 = scmp.eq.s32.totalorder %s65_s18, 0 }
   0xa   : > { %s2156_s20 = scalar_select %p67_p4, %s2086_s13, %s69_s19  }
   0xe   : > { %171 = sbr.rel (!%p78_p3) target bundleno = 82 (0x52), region = 24  ;;  %s173_s21 = sand.u32 (%p78_p3), 1, %s2086_s13  }
   0xf   : > { %s1814_s22 = sshll.u32 (%p78_p3), %s2094_s15, 4  ;;  %s1673_s23 = sshll.u32 (%p78_p3), %s173_s21, 10 }
  0x10   : > { %s2164_s26 = scalar_lea.vmem (%p78_p3), %s2617_s1, %s1814_s22  ;;  %s2169_s27 = scalar_lea.vmem (%p78_p3), [#allocation2], %s1673_s23 }
  0x11   : > { %v194_v0 = vld [vmem:[%s2164_s26] sm:$0xff] (%p78_p3)  ;;  %v196_v1 = vld [vmem:[%s2164_s26 + $0x8] sm:$0xff] (%p78_p3) }
  0x12   : > { %v198_v2 = vld [vmem:[%s2164_s26 + $0x80] sm:$0xff] (%p78_p3)  ;;  %195 = vst [vmem:[%s2169_s27] sm:$0xff] (%p78_p3), %v194_v0  ;;  %197 = vst [vmem:[%s2169_s27 + $0x8] sm:$0xff] (%p78_p3), %v196_v1  ;;  %v200_v3 = vld [vmem:[%s2164_s26 + $0x88] sm:$0xff] (%p78_p3) }
  0x13   : > { %199 = vst [vmem:[%s2169_s27 + $0x10] sm:$0xff] (%p78_p3), %v198_v2  ;;  %v202_v4 = vld [vmem:[%s2164_s26 + $0x100] sm:$0xff] (%p78_p3)  ;;  %v204_v5 = vld [vmem:[%s2164_s26 + $0x108] sm:$0xff] (%p78_p3)  ;;  %201 = vst [vmem:[%s2169_s27 + $0x18] sm:$0xff] (%p78_p3), %v200_v3 }
  0x14   : > { %203 = vst [vmem:[%s2169_s27 + $0x20] sm:$0xff] (%p78_p3), %v202_v4  ;;  %205 = vst [vmem:[%s2169_s27 + $0x28] sm:$0xff] (%p78_p3), %v204_v5  ;;  %v206_v6 = vld [vmem:[%s2164_s26 + $0x180] sm:$0xff] (%p78_p3)  ;;  %v208_v7 = vld [vmem:[%s2164_s26 + $0x188] sm:$0xff] (%p78_p3) }
  0x15   : > { %v210_v8 = vld [vmem:[%s2164_s26 + $0x200] sm:$0xff]  ;;  %207 = vst [vmem:[%s2169_s27 + $0x30] sm:$0xff] %v206_v6  ;;  %209 = vst [vmem:[%s2169_s27 + $0x38] sm:$0xff] %v208_v7  ;;  %v212_v9 = vld [vmem:[%s2164_s26 + $0x208] sm:$0xff] }
  0x16   : > { %211 = vst [vmem:[%s2169_s27 + $0x40] sm:$0xff] %v210_v8  ;;  %v214_v10 = vld [vmem:[%s2164_s26 + $0x280] sm:$0xff]  ;;  %v216_v11 = vld [vmem:[%s2164_s26 + $0x288] sm:$0xff]  ;;  %213 = vst [vmem:[%s2169_s27 + $0x48] sm:$0xff] %v212_v9 }
  0x17   : > { %215 = vst [vmem:[%s2169_s27 + $0x50] sm:$0xff] %v214_v10  ;;  %217 = vst [vmem:[%s2169_s27 + $0x58] sm:$0xff] %v216_v11  ;;  %v218_v12 = vld [vmem:[%s2164_s26 + $0x300] sm:$0xff]  ;;  %v220_v13 = vld [vmem:[%s2164_s26 + $0x308] sm:$0xff] }
  0x18   : > { %v222_v14 = vld [vmem:[%s2164_s26 + $0x380] sm:$0xff]  ;;  %219 = vst [vmem:[%s2169_s27 + $0x60] sm:$0xff] %v218_v12  ;;  %221 = vst [vmem:[%s2169_s27 + $0x68] sm:$0xff] %v220_v13  ;;  %v224_v15 = vld [vmem:[%s2164_s26 + $0x388] sm:$0xff] }
  0x19   : > { %223 = vst [vmem:[%s2169_s27 + $0x70] sm:$0xff] %v222_v14  ;;  %v226_v16 = vld [vmem:[%s2164_s26 + $0x400] sm:$0xff]  ;;  %v228_v17 = vld [vmem:[%s2164_s26 + $0x408] sm:$0xff]  ;;  %225 = vst [vmem:[%s2169_s27 + $0x78] sm:$0xff] %v224_v15 }
  0x1a   : > { %227 = vst [vmem:[%s2169_s27 + $0x80] sm:$0xff] %v226_v16  ;;  %229 = vst [vmem:[%s2169_s27 + $0x88] sm:$0xff] %v228_v17  ;;  %v230_v18 = vld [vmem:[%s2164_s26 + $0x480] sm:$0xff]  ;;  %v232_v19 = vld [vmem:[%s2164_s26 + $0x488] sm:$0xff] }
  0x1b   : > { %v234_v20 = vld [vmem:[%s2164_s26 + $0x500] sm:$0xff]  ;;  %231 = vst [vmem:[%s2169_s27 + $0x90] sm:$0xff] %v230_v18  ;;  %233 = vst [vmem:[%s2169_s27 + $0x98] sm:$0xff] %v232_v19  ;;  %v236_v21 = vld [vmem:[%s2164_s26 + $0x508] sm:$0xff] }
  0x1c   : > { %235 = vst [vmem:[%s2169_s27 + $0xa0] sm:$0xff] %v234_v20  ;;  %v238_v22 = vld [vmem:[%s2164_s26 + $0x580] sm:$0xff]  ;;  %v240_v23 = vld [vmem:[%s2164_s26 + $0x588] sm:$0xff]  ;;  %237 = vst [vmem:[%s2169_s27 + $0xa8] sm:$0xff] %v236_v21 }
  0x1d   : > { %239 = vst [vmem:[%s2169_s27 + $0xb0] sm:$0xff] %v238_v22  ;;  %241 = vst [vmem:[%s2169_s27 + $0xb8] sm:$0xff] %v240_v23  ;;  %v242_v24 = vld [vmem:[%s2164_s26 + $0x600] sm:$0xff]  ;;  %v244_v25 = vld [vmem:[%s2164_s26 + $0x608] sm:$0xff] }
  0x1e   : > { %v246_v26 = vld [vmem:[%s2164_s26 + $0x680] sm:$0xff]  ;;  %243 = vst [vmem:[%s2169_s27 + $0xc0] sm:$0xff] %v242_v24  ;;  %245 = vst [vmem:[%s2169_s27 + $0xc8] sm:$0xff] %v244_v25  ;;  %v248_v27 = vld [vmem:[%s2164_s26 + $0x688] sm:$0xff] }
  0x1f   : > { %247 = vst [vmem:[%s2169_s27 + $0xd0] sm:$0xff] %v246_v26  ;;  %v250_v28 = vld [vmem:[%s2164_s26 + $0x700] sm:$0xff]  ;;  %v252_v29 = vld [vmem:[%s2164_s26 + $0x708] sm:$0xff]  ;;  %249 = vst [vmem:[%s2169_s27 + $0xd8] sm:$0xff] %v248_v27 }
  0x20   : > { %251 = vst [vmem:[%s2169_s27 + $0xe0] sm:$0xff] %v250_v28  ;;  %253 = vst [vmem:[%s2169_s27 + $0xe8] sm:$0xff] %v252_v29  ;;  %v254_v30 = vld [vmem:[%s2164_s26 + $0x780] sm:$0xff]  ;;  %v256_v31 = vld [vmem:[%s2164_s26 + $0x788] sm:$0xff] }
  0x21   : > { %v258_v32 = vld [vmem:[%s2164_s26 + $0x800] sm:$0xff]  ;;  %255 = vst [vmem:[%s2169_s27 + $0xf0] sm:$0xff] %v254_v30  ;;  %257 = vst [vmem:[%s2169_s27 + $0xf8] sm:$0xff] %v256_v31  ;;  %v260_v33 = vld [vmem:[%s2164_s26 + $0x808] sm:$0xff] }
  0x22   : > { %259 = vst [vmem:[%s2169_s27 + $0x100] sm:$0xff] %v258_v32  ;;  %v262_v34 = vld [vmem:[%s2164_s26 + $0x880] sm:$0xff]  ;;  %v264_v35 = vld [vmem:[%s2164_s26 + $0x888] sm:$0xff]  ;;  %261 = vst [vmem:[%s2169_s27 + $0x108] sm:$0xff] %v260_v33 }
  0x23   : > { %263 = vst [vmem:[%s2169_s27 + $0x110] sm:$0xff] %v262_v34  ;;  %265 = vst [vmem:[%s2169_s27 + $0x118] sm:$0xff] %v264_v35  ;;  %v266_v36 = vld [vmem:[%s2164_s26 + $0x900] sm:$0xff]  ;;  %v268_v37 = vld [vmem:[%s2164_s26 + $0x908] sm:$0xff] }
  0x24   : > { %v270_v38 = vld [vmem:[%s2164_s26 + $0x980] sm:$0xff]  ;;  %267 = vst [vmem:[%s2169_s27 + $0x120] sm:$0xff] %v266_v36  ;;  %269 = vst [vmem:[%s2169_s27 + $0x128] sm:$0xff] %v268_v37  ;;  %v272_v39 = vld [vmem:[%s2164_s26 + $0x988] sm:$0xff] }
  0x25   : > { %271 = vst [vmem:[%s2169_s27 + $0x130] sm:$0xff] %v270_v38  ;;  %v274_v40 = vld [vmem:[%s2164_s26 + $0xa00] sm:$0xff]  ;;  %v276_v41 = vld [vmem:[%s2164_s26 + $0xa08] sm:$0xff]  ;;  %273 = vst [vmem:[%s2169_s27 + $0x138] sm:$0xff] %v272_v39 }
  0x26   : > { %275 = vst [vmem:[%s2169_s27 + $0x140] sm:$0xff] %v274_v40  ;;  %277 = vst [vmem:[%s2169_s27 + $0x148] sm:$0xff] %v276_v41  ;;  %v278_v42 = vld [vmem:[%s2164_s26 + $0xa80] sm:$0xff]  ;;  %v280_v43 = vld [vmem:[%s2164_s26 + $0xa88] sm:$0xff] }
  0x27   : > { %v282_v44 = vld [vmem:[%s2164_s26 + $0xb00] sm:$0xff]  ;;  %279 = vst [vmem:[%s2169_s27 + $0x150] sm:$0xff] %v278_v42  ;;  %281 = vst [vmem:[%s2169_s27 + $0x158] sm:$0xff] %v280_v43  ;;  %v284_v45 = vld [vmem:[%s2164_s26 + $0xb08] sm:$0xff] }
  0x28   : > { %283 = vst [vmem:[%s2169_s27 + $0x160] sm:$0xff] %v282_v44  ;;  %v286_v46 = vld [vmem:[%s2164_s26 + $0xb80] sm:$0xff]  ;;  %v288_v47 = vld [vmem:[%s2164_s26 + $0xb88] sm:$0xff]  ;;  %285 = vst [vmem:[%s2169_s27 + $0x168] sm:$0xff] %v284_v45 }
  0x29   : > { %287 = vst [vmem:[%s2169_s27 + $0x170] sm:$0xff] %v286_v46  ;;  %289 = vst [vmem:[%s2169_s27 + $0x178] sm:$0xff] %v288_v47  ;;  %v290_v48 = vld [vmem:[%s2164_s26 + $0xc00] sm:$0xff]  ;;  %v292_v49 = vld [vmem:[%s2164_s26 + $0xc08] sm:$0xff] }
  0x2a   : > { %v294_v50 = vld [vmem:[%s2164_s26 + $0xc80] sm:$0xff]  ;;  %291 = vst [vmem:[%s2169_s27 + $0x180] sm:$0xff] %v290_v48  ;;  %293 = vst [vmem:[%s2169_s27 + $0x188] sm:$0xff] %v292_v49  ;;  %v296_v51 = vld [vmem:[%s2164_s26 + $0xc88] sm:$0xff] }
  0x2b   : > { %295 = vst [vmem:[%s2169_s27 + $0x190] sm:$0xff] %v294_v50  ;;  %v298_v52 = vld [vmem:[%s2164_s26 + $0xd00] sm:$0xff]  ;;  %v300_v53 = vld [vmem:[%s2164_s26 + $0xd08] sm:$0xff]  ;;  %297 = vst [vmem:[%s2169_s27 + $0x198] sm:$0xff] %v296_v51 }
  0x2c   : > { %299 = vst [vmem:[%s2169_s27 + $0x1a0] sm:$0xff] %v298_v52  ;;  %301 = vst [vmem:[%s2169_s27 + $0x1a8] sm:$0xff] %v300_v53  ;;  %v302_v54 = vld [vmem:[%s2164_s26 + $0xd80] sm:$0xff]  ;;  %v304_v55 = vld [vmem:[%s2164_s26 + $0xd88] sm:$0xff] }
  0x2d   : > { %v306_v56 = vld [vmem:[%s2164_s26 + $0xe00] sm:$0xff]  ;;  %303 = vst [vmem:[%s2169_s27 + $0x1b0] sm:$0xff] %v302_v54  ;;  %305 = vst [vmem:[%s2169_s27 + $0x1b8] sm:$0xff] %v304_v55  ;;  %v308_v57 = vld [vmem:[%s2164_s26 + $0xe08] sm:$0xff] }
  0x2e   : > { %307 = vst [vmem:[%s2169_s27 + $0x1c0] sm:$0xff] %v306_v56  ;;  %v310_v58 = vld [vmem:[%s2164_s26 + $0xe80] sm:$0xff]  ;;  %v312_v59 = vld [vmem:[%s2164_s26 + $0xe88] sm:$0xff]  ;;  %309 = vst [vmem:[%s2169_s27 + $0x1c8] sm:$0xff] %v308_v57 }
  0x2f   : > { %311 = vst [vmem:[%s2169_s27 + $0x1d0] sm:$0xff] %v310_v58  ;;  %313 = vst [vmem:[%s2169_s27 + $0x1d8] sm:$0xff] %v312_v59  ;;  %v314_v60 = vld [vmem:[%s2164_s26 + $0xf00] sm:$0xff]  ;;  %v316_v61 = vld [vmem:[%s2164_s26 + $0xf08] sm:$0xff] }
  0x30   : > { %v318_v62 = vld [vmem:[%s2164_s26 + $0xf80] sm:$0xff]  ;;  %315 = vst [vmem:[%s2169_s27 + $0x1e0] sm:$0xff] %v314_v60  ;;  %317 = vst [vmem:[%s2169_s27 + $0x1e8] sm:$0xff] %v316_v61  ;;  %v320_v63 = vld [vmem:[%s2164_s26 + $0xf88] sm:$0xff] }
  0x31   : > { %319 = vst [vmem:[%s2169_s27 + $0x1f0] sm:$0xff] %v318_v62  ;;  %v322_v0 = vld [vmem:[%s2164_s26 + $0x1000] sm:$0xff]  ;;  %v324_v1 = vld [vmem:[%s2164_s26 + $0x1008] sm:$0xff]  ;;  %321 = vst [vmem:[%s2169_s27 + $0x1f8] sm:$0xff] %v320_v63 }
  0x32   : > { %323 = vst [vmem:[%s2169_s27 + $0x200] sm:$0xff] %v322_v0  ;;  %325 = vst [vmem:[%s2169_s27 + $0x208] sm:$0xff] %v324_v1  ;;  %v326_v2 = vld [vmem:[%s2164_s26 + $0x1080] sm:$0xff]  ;;  %v328_v3 = vld [vmem:[%s2164_s26 + $0x1088] sm:$0xff] }
  0x33   : > { %v330_v4 = vld [vmem:[%s2164_s26 + $0x1100] sm:$0xff]  ;;  %327 = vst [vmem:[%s2169_s27 + $0x210] sm:$0xff] %v326_v2  ;;  %329 = vst [vmem:[%s2169_s27 + $0x218] sm:$0xff] %v328_v3  ;;  %v332_v5 = vld [vmem:[%s2164_s26 + $0x1108] sm:$0xff] }
  0x34   : > { %331 = vst [vmem:[%s2169_s27 + $0x220] sm:$0xff] %v330_v4  ;;  %v334_v6 = vld [vmem:[%s2164_s26 + $0x1180] sm:$0xff]  ;;  %v336_v7 = vld [vmem:[%s2164_s26 + $0x1188] sm:$0xff]  ;;  %333 = vst [vmem:[%s2169_s27 + $0x228] sm:$0xff] %v332_v5 }
  0x35   : > { %335 = vst [vmem:[%s2169_s27 + $0x230] sm:$0xff] %v334_v6  ;;  %337 = vst [vmem:[%s2169_s27 + $0x238] sm:$0xff] %v336_v7  ;;  %v338_v8 = vld [vmem:[%s2164_s26 + $0x1200] sm:$0xff]  ;;  %v340_v9 = vld [vmem:[%s2164_s26 + $0x1208] sm:$0xff] }
  0x36   : > { %v342_v10 = vld [vmem:[%s2164_s26 + $0x1280] sm:$0xff]  ;;  %339 = vst [vmem:[%s2169_s27 + $0x240] sm:$0xff] %v338_v8  ;;  %341 = vst [vmem:[%s2169_s27 + $0x248] sm:$0xff] %v340_v9  ;;  %v344_v11 = vld [vmem:[%s2164_s26 + $0x1288] sm:$0xff] }
  0x37   : > { %343 = vst [vmem:[%s2169_s27 + $0x250] sm:$0xff] %v342_v10  ;;  %v346_v12 = vld [vmem:[%s2164_s26 + $0x1300] sm:$0xff]  ;;  %v348_v13 = vld [vmem:[%s2164_s26 + $0x1308] sm:$0xff]  ;;  %345 = vst [vmem:[%s2169_s27 + $0x258] sm:$0xff] %v344_v11 }
  0x38   : > { %347 = vst [vmem:[%s2169_s27 + $0x260] sm:$0xff] %v346_v12  ;;  %349 = vst [vmem:[%s2169_s27 + $0x268] sm:$0xff] %v348_v13  ;;  %v350_v14 = vld [vmem:[%s2164_s26 + $0x1380] sm:$0xff]  ;;  %v352_v15 = vld [vmem:[%s2164_s26 + $0x1388] sm:$0xff] }
  0x39   : > { %v354_v16 = vld [vmem:[%s2164_s26 + $0x1400] sm:$0xff]  ;;  %351 = vst [vmem:[%s2169_s27 + $0x270] sm:$0xff] %v350_v14  ;;  %353 = vst [vmem:[%s2169_s27 + $0x278] sm:$0xff] %v352_v15  ;;  %v356_v17 = vld [vmem:[%s2164_s26 + $0x1408] sm:$0xff] }
  0x3a   : > { %355 = vst [vmem:[%s2169_s27 + $0x280] sm:$0xff] %v354_v16  ;;  %v358_v18 = vld [vmem:[%s2164_s26 + $0x1480] sm:$0xff]  ;;  %v360_v19 = vld [vmem:[%s2164_s26 + $0x1488] sm:$0xff]  ;;  %357 = vst [vmem:[%s2169_s27 + $0x288] sm:$0xff] %v356_v17 }
  0x3b   : > { %359 = vst [vmem:[%s2169_s27 + $0x290] sm:$0xff] %v358_v18  ;;  %361 = vst [vmem:[%s2169_s27 + $0x298] sm:$0xff] %v360_v19  ;;  %v362_v20 = vld [vmem:[%s2164_s26 + $0x1500] sm:$0xff]  ;;  %v364_v21 = vld [vmem:[%s2164_s26 + $0x1508] sm:$0xff] }
  0x3c   : > { %v366_v22 = vld [vmem:[%s2164_s26 + $0x1580] sm:$0xff]  ;;  %363 = vst [vmem:[%s2169_s27 + $0x2a0] sm:$0xff] %v362_v20  ;;  %365 = vst [vmem:[%s2169_s27 + $0x2a8] sm:$0xff] %v364_v21  ;;  %v368_v23 = vld [vmem:[%s2164_s26 + $0x1588] sm:$0xff] }
  0x3d   : > { %367 = vst [vmem:[%s2169_s27 + $0x2b0] sm:$0xff] %v366_v22  ;;  %v370_v24 = vld [vmem:[%s2164_s26 + $0x1600] sm:$0xff]  ;;  %v372_v25 = vld [vmem:[%s2164_s26 + $0x1608] sm:$0xff]  ;;  %369 = vst [vmem:[%s2169_s27 + $0x2b8] sm:$0xff] %v368_v23 }
  0x3e   : > { %371 = vst [vmem:[%s2169_s27 + $0x2c0] sm:$0xff] %v370_v24  ;;  %373 = vst [vmem:[%s2169_s27 + $0x2c8] sm:$0xff] %v372_v25  ;;  %v374_v26 = vld [vmem:[%s2164_s26 + $0x1680] sm:$0xff]  ;;  %v376_v27 = vld [vmem:[%s2164_s26 + $0x1688] sm:$0xff] }
  0x3f   : > { %v378_v28 = vld [vmem:[%s2164_s26 + $0x1700] sm:$0xff]  ;;  %375 = vst [vmem:[%s2169_s27 + $0x2d0] sm:$0xff] %v374_v26  ;;  %377 = vst [vmem:[%s2169_s27 + $0x2d8] sm:$0xff] %v376_v27  ;;  %v380_v29 = vld [vmem:[%s2164_s26 + $0x1708] sm:$0xff] }
  0x40   : > { %379 = vst [vmem:[%s2169_s27 + $0x2e0] sm:$0xff] %v378_v28  ;;  %v382_v30 = vld [vmem:[%s2164_s26 + $0x1780] sm:$0xff]  ;;  %v384_v31 = vld [vmem:[%s2164_s26 + $0x1788] sm:$0xff]  ;;  %381 = vst [vmem:[%s2169_s27 + $0x2e8] sm:$0xff] %v380_v29 }
  0x41   : > { %383 = vst [vmem:[%s2169_s27 + $0x2f0] sm:$0xff] %v382_v30  ;;  %385 = vst [vmem:[%s2169_s27 + $0x2f8] sm:$0xff] %v384_v31  ;;  %v386_v32 = vld [vmem:[%s2164_s26 + $0x1800] sm:$0xff]  ;;  %v388_v33 = vld [vmem:[%s2164_s26 + $0x1808] sm:$0xff] }
  0x42   : > { %v390_v34 = vld [vmem:[%s2164_s26 + $0x1880] sm:$0xff]  ;;  %387 = vst [vmem:[%s2169_s27 + $0x300] sm:$0xff] %v386_v32  ;;  %389 = vst [vmem:[%s2169_s27 + $0x308] sm:$0xff] %v388_v33  ;;  %v392_v35 = vld [vmem:[%s2164_s26 + $0x1888] sm:$0xff] }
  0x43   : > { %391 = vst [vmem:[%s2169_s27 + $0x310] sm:$0xff] %v390_v34  ;;  %v394_v36 = vld [vmem:[%s2164_s26 + $0x1900] sm:$0xff]  ;;  %v396_v37 = vld [vmem:[%s2164_s26 + $0x1908] sm:$0xff]  ;;  %393 = vst [vmem:[%s2169_s27 + $0x318] sm:$0xff] %v392_v35 }
  0x44   : > { %395 = vst [vmem:[%s2169_s27 + $0x320] sm:$0xff] %v394_v36  ;;  %397 = vst [vmem:[%s2169_s27 + $0x328] sm:$0xff] %v396_v37  ;;  %v398_v38 = vld [vmem:[%s2164_s26 + $0x1980] sm:$0xff]  ;;  %v400_v39 = vld [vmem:[%s2164_s26 + $0x1988] sm:$0xff] }
  0x45   : > { %v402_v40 = vld [vmem:[%s2164_s26 + $0x1a00] sm:$0xff]  ;;  %399 = vst [vmem:[%s2169_s27 + $0x330] sm:$0xff] %v398_v38  ;;  %401 = vst [vmem:[%s2169_s27 + $0x338] sm:$0xff] %v400_v39  ;;  %v404_v41 = vld [vmem:[%s2164_s26 + $0x1a08] sm:$0xff] }
  0x46   : > { %403 = vst [vmem:[%s2169_s27 + $0x340] sm:$0xff] %v402_v40  ;;  %v406_v42 = vld [vmem:[%s2164_s26 + $0x1a80] sm:$0xff]  ;;  %v408_v43 = vld [vmem:[%s2164_s26 + $0x1a88] sm:$0xff]  ;;  %405 = vst [vmem:[%s2169_s27 + $0x348] sm:$0xff] %v404_v41 }
  0x47   : > { %407 = vst [vmem:[%s2169_s27 + $0x350] sm:$0xff] %v406_v42  ;;  %409 = vst [vmem:[%s2169_s27 + $0x358] sm:$0xff] %v408_v43  ;;  %v410_v44 = vld [vmem:[%s2164_s26 + $0x1b00] sm:$0xff]  ;;  %v412_v45 = vld [vmem:[%s2164_s26 + $0x1b08] sm:$0xff] }
  0x48   : > { %v414_v46 = vld [vmem:[%s2164_s26 + $0x1b80] sm:$0xff]  ;;  %411 = vst [vmem:[%s2169_s27 + $0x360] sm:$0xff] %v410_v44  ;;  %413 = vst [vmem:[%s2169_s27 + $0x368] sm:$0xff] %v412_v45  ;;  %v416_v47 = vld [vmem:[%s2164_s26 + $0x1b88] sm:$0xff] }
  0x49   : > { %415 = vst [vmem:[%s2169_s27 + $0x370] sm:$0xff] %v414_v46  ;;  %v418_v48 = vld [vmem:[%s2164_s26 + $0x1c00] sm:$0xff]  ;;  %v420_v49 = vld [vmem:[%s2164_s26 + $0x1c08] sm:$0xff]  ;;  %417 = vst [vmem:[%s2169_s27 + $0x378] sm:$0xff] %v416_v47 }
  0x4a   : > { %419 = vst [vmem:[%s2169_s27 + $0x380] sm:$0xff] %v418_v48  ;;  %421 = vst [vmem:[%s2169_s27 + $0x388] sm:$0xff] %v420_v49  ;;  %v422_v50 = vld [vmem:[%s2164_s26 + $0x1c80] sm:$0xff]  ;;  %v424_v51 = vld [vmem:[%s2164_s26 + $0x1c88] sm:$0xff] }
  0x4b   : > { %v426_v52 = vld [vmem:[%s2164_s26 + $0x1d00] sm:$0xff]  ;;  %423 = vst [vmem:[%s2169_s27 + $0x390] sm:$0xff] %v422_v50  ;;  %425 = vst [vmem:[%s2169_s27 + $0x398] sm:$0xff] %v424_v51  ;;  %v428_v53 = vld [vmem:[%s2164_s26 + $0x1d08] sm:$0xff] }
  0x4c   : > { %427 = vst [vmem:[%s2169_s27 + $0x3a0] sm:$0xff] %v426_v52  ;;  %v430_v54 = vld [vmem:[%s2164_s26 + $0x1d80] sm:$0xff]  ;;  %v432_v55 = vld [vmem:[%s2164_s26 + $0x1d88] sm:$0xff]  ;;  %429 = vst [vmem:[%s2169_s27 + $0x3a8] sm:$0xff] %v428_v53 }
  0x4d   : > { %431 = vst [vmem:[%s2169_s27 + $0x3b0] sm:$0xff] %v430_v54  ;;  %433 = vst [vmem:[%s2169_s27 + $0x3b8] sm:$0xff] %v432_v55  ;;  %v434_v56 = vld [vmem:[%s2164_s26 + $0x1e00] sm:$0xff]  ;;  %v436_v57 = vld [vmem:[%s2164_s26 + $0x1e08] sm:$0xff] }
  0x4e   : > { %v438_v58 = vld [vmem:[%s2164_s26 + $0x1e80] sm:$0xff]  ;;  %435 = vst [vmem:[%s2169_s27 + $0x3c0] sm:$0xff] %v434_v56  ;;  %437 = vst [vmem:[%s2169_s27 + $0x3c8] sm:$0xff] %v436_v57  ;;  %v440_v59 = vld [vmem:[%s2164_s26 + $0x1e88] sm:$0xff] }
  0x4f   : > { %439 = vst [vmem:[%s2169_s27 + $0x3d0] sm:$0xff] %v438_v58  ;;  %v442_v60 = vld [vmem:[%s2164_s26 + $0x1f00] sm:$0xff]  ;;  %v444_v61 = vld [vmem:[%s2164_s26 + $0x1f08] sm:$0xff]  ;;  %441 = vst [vmem:[%s2169_s27 + $0x3d8] sm:$0xff] %v440_v59 }
  0x50   : > { %443 = vst [vmem:[%s2169_s27 + $0x3e0] sm:$0xff] %v442_v60  ;;  %445 = vst [vmem:[%s2169_s27 + $0x3e8] sm:$0xff] %v444_v61  ;;  %v446_v62 = vld [vmem:[%s2164_s26 + $0x1f80] sm:$0xff]  ;;  %v448_v63 = vld [vmem:[%s2164_s26 + $0x1f88] sm:$0xff] }
  0x51   : > { %447 = vst [vmem:[%s2169_s27 + $0x3f0] sm:$0xff] %v446_v62  ;;  %449 = vst [vmem:[%s2169_s27 + $0x3f8] sm:$0xff] %v448_v63 }
  0x52 PF: > { %p1676_p6 = scmp.ge.s32.totalorder %s2098_s16, 1  ;;  %p462_p7 = scmp.lt.s32.totalorder %s2098_s16, 9 }
  0x54   : > { %p463_p8 = pnand %p1676_p6, %p462_p7 }
  0x55   : > { %s469_s28 = sand.u32 (!%p463_p8), 1, %s2082_s12   ;;  %v2430_v0 = vld.sshfl [vmem:[%s2616_s0] sm:$0x33 pattern:$0x75316420] (!%p463_p8)  ;;  %v663_v1 = vlaneseq (!%p463_p8)  ;;  %s1678_s6 = sshll.u32 (!%p463_p8), %s2090_s14, 2 }
  0x56   : > { %466 = sbr.rel (%p463_p8) target bundleno = 441 (0x1b9), region = 51  ;;  %s1677_s4 = sshll.u32 (!%p463_p8), %s469_s28, 10  ;;  %v2100_v3 = vmov (!%p463_p8), 1966171168   ;;  %v691_v7 = vcombine.high (!%p463_p8), %v2430_v0, %v2430_v0 }
  0x57   : > { %v2432_v2 = vshrl.u32 (!%p463_p8), %v663_v1, 7  ;;  %v693_v4 = vunpack.c.l.s4 (!%p463_p8), %v2100_v3  ;;  %s2434_s5 = scalar_lea.vmem (!%p463_p8), [#allocation2], %s1677_s4  ;;  %p519_p9 = scmp.lt.s32.totalorder (!%p463_p8), %s1678_s6, 31 }
  0x58   : > { %v1868_v5 = vld [vmem:[%s2434_s5 + $0x4] ss:$16 sps:$4 sm:$0xff] (!%p463_p8)   ;;  %v1870_v6 = vld [vmem:[%s2434_s5 + $0xc] ss:$16 sps:$4 sm:$0xff] (!%p463_p8)   ;;  %v1872_v9 = vld [vmem:[%s2434_s5] ss:$16 sps:$4 sm:$0xff] (!%p463_p8)  }
  0x59   : > { %v694_v8 = vunpack.c.0.s8 (!%p463_p8), %v693_v4  ;;  %1352 = vmatprep.subr.bf16.mxu0 (!%p463_p8), %v1868_v5  ;;  %v1873_v10 = vld [vmem:[%s2434_s5 + $0x8] ss:$16 sps:$4 sm:$0xff] (!%p463_p8)   ;;  %1434 = vmatprep.subr.bf16.mxu1 (!%p463_p8), %v1870_v6  ;;  %v1874_v11 = vld [vmem:[%s2434_s5 + $0x24] ss:$16 sps:$4 sm:$0xff] (!%p463_p8)   ;;  %v1876_v13 = vld [vmem:[%s2434_s5 + $0x2c] ss:$16 sps:$4 sm:$0xff] (!%p463_p8)  }
  0x5a   : > { %1353 = vmatpush1.bf16.msra.mxu0 (!%p463_p8), %v1872_v9  ;;  %1435 = vmatpush1.bf16.msra.mxu1 (!%p463_p8), %v1873_v10  ;;  %v1878_v14 = vld [vmem:[%s2434_s5 + $0x20] ss:$16 sps:$4 sm:$0xff] (!%p463_p8)   ;;  %v1879_v15 = vld [vmem:[%s2434_s5 + $0x28] ss:$16 sps:$4 sm:$0xff] (!%p463_p8)   ;;  %v1880_v17 = vld [vmem:[%s2434_s5 + $0x44] ss:$16 sps:$4 sm:$0xff] (!%p463_p8)  }
  0x5b   : > { %v2444_v12 = vsub.s32 (!%p463_p8), %v694_v8, %v2432_v2  ;;  %1354 = vmatprep.subr.bf16.mxu0 (!%p463_p8), %v1874_v11  ;;  %1436 = vmatprep.subr.bf16.mxu1 (!%p463_p8), %v1876_v13  ;;  %v1882_v18 = vld [vmem:[%s2434_s5 + $0x4c] ss:$16 sps:$4 sm:$0xff] (!%p463_p8)   ;;  %v1884_v19 = vld [vmem:[%s2434_s5 + $0x40] ss:$16 sps:$4 sm:$0xff] (!%p463_p8)   ;;  %v1885_v20 = vld [vmem:[%s2434_s5 + $0x48] ss:$16 sps:$4 sm:$0xff] (!%p463_p8)  }
  0x5c   : > { %v1886_v21 = vld [vmem:[%s2434_s5 + $0x64] ss:$16 sps:$4 sm:$0xff] (!%p463_p8)   ;;  %v1888_v22 = vld [vmem:[%s2434_s5 + $0x6c] ss:$16 sps:$4 sm:$0xff] (!%p463_p8)   ;;  %v1890_v23 = vld [vmem:[%s2434_s5 + $0x60] ss:$16 sps:$4 sm:$0xff] (!%p463_p8)  }
  0x5d   : > { %v2450_v16 = vrot.slane %v691_v7, %v2444_v12  ;;  %v1891_v24 = vld [vmem:[%s2434_s5 + $0x68] ss:$16 sps:$4 sm:$0xff]   ;;  %v1892_v25 = vld [vmem:[%s2434_s5 + $0x84] ss:$16 sps:$4 sm:$0xff]   ;;  %v1894_v26 = vld [vmem:[%s2434_s5 + $0x8c] ss:$16 sps:$4 sm:$0xff]  }
  0x5e   : > { %1355 = vmatpush1.bf16.msra.mxu0 %v1878_v14  ;;  %1437 = vmatpush1.bf16.msra.mxu1 %v1879_v15  ;;  %v1896_v27 = vld [vmem:[%s2434_s5 + $0x80] ss:$16 sps:$4 sm:$0xff]   ;;  %v1897_v28 = vld [vmem:[%s2434_s5 + $0x88] ss:$16 sps:$4 sm:$0xff]   ;;  %v1898_v29 = vld [vmem:[%s2434_s5 + $0xa4] ss:$16 sps:$4 sm:$0xff]  }
  0x5f   : > { %1384 = vmatprep.mubr.bf16.mxu0 %v2450_v16  ;;  %1466 = vmatprep.mubr.bf16.mxu1 %v2450_v16  ;;  %v1900_v30 = vld [vmem:[%s2434_s5 + $0xac] ss:$16 sps:$4 sm:$0xff]   ;;  %v1902_v31 = vld [vmem:[%s2434_s5 + $0xa0] ss:$16 sps:$4 sm:$0xff]   ;;  %v1903_v32 = vld [vmem:[%s2434_s5 + $0xa8] ss:$16 sps:$4 sm:$0xff]  }
  0x60   : > { %1356 = vmatprep.subr.bf16.mxu0 %v1880_v17  ;;  %1438 = vmatprep.subr.bf16.mxu1 %v1882_v18  ;;  %v1904_v33 = vld [vmem:[%s2434_s5 + $0xc4] ss:$16 sps:$4 sm:$0xff]   ;;  %v1906_v34 = vld [vmem:[%s2434_s5 + $0xcc] ss:$16 sps:$4 sm:$0xff]   ;;  %v1908_v35 = vld [vmem:[%s2434_s5 + $0xc0] ss:$16 sps:$4 sm:$0xff]   ;;  %v2516_v17 = vrot.slane %v2430_v0, %v2444_v12 }
  0x61   : > { %v1909_v36 = vld [vmem:[%s2434_s5 + $0xc8] ss:$16 sps:$4 sm:$0xff]   ;;  %v1910_v37 = vld [vmem:[%s2434_s5 + $0xe4] ss:$16 sps:$4 sm:$0xff]   ;;  %v1912_v38 = vld [vmem:[%s2434_s5 + $0xec] ss:$16 sps:$4 sm:$0xff]  }
  0x62   : > { %1357 = vmatpush1.bf16.msra.mxu0 %v1884_v19  ;;  %1439 = vmatpush1.bf16.msra.mxu1 %v1885_v20  ;;  %v1914_v39 = vld [vmem:[%s2434_s5 + $0xe0] ss:$16 sps:$4 sm:$0xff]   ;;  %v1915_v40 = vld [vmem:[%s2434_s5 + $0xe8] ss:$16 sps:$4 sm:$0xff]   ;;  %v1916_v41 = vld [vmem:[%s2434_s5 + $0x104] ss:$16 sps:$4 sm:$0xff]   ;;  %v707_v20 = vcombine.high %v2450_v16, %v2450_v16 }
  0x63   : > { %1358 = vmatprep.subr.bf16.mxu0 %v1886_v21  ;;  %1440 = vmatprep.subr.bf16.mxu1 %v1888_v22  ;;  %v1918_v42 = vld [vmem:[%s2434_s5 + $0x10c] ss:$16 sps:$4 sm:$0xff]   ;;  %v1920_v43 = vld [vmem:[%s2434_s5 + $0x100] ss:$16 sps:$4 sm:$0xff]   ;;  %v1921_v44 = vld [vmem:[%s2434_s5 + $0x108] ss:$16 sps:$4 sm:$0xff]  }
  0x64   : > { %v1922_v45 = vld [vmem:[%s2434_s5 + $0x124] ss:$16 sps:$4 sm:$0xff]   ;;  %v1924_v46 = vld [vmem:[%s2434_s5 + $0x12c] ss:$16 sps:$4 sm:$0xff]   ;;  %v1926_v47 = vld [vmem:[%s2434_s5 + $0x120] ss:$16 sps:$4 sm:$0xff]  }
  0x65   : > { %v1927_v48 = vld [vmem:[%s2434_s5 + $0x128] ss:$16 sps:$4 sm:$0xff]   ;;  %v1928_v49 = vld [vmem:[%s2434_s5 + $0x144] ss:$16 sps:$4 sm:$0xff]   ;;  %v1930_v50 = vld [vmem:[%s2434_s5 + $0x14c] ss:$16 sps:$4 sm:$0xff]  }
  0x66   : > { %1359 = vmatpush1.bf16.msra.mxu0 %v1890_v23  ;;  %1441 = vmatpush1.bf16.msra.mxu1 %v1891_v24  ;;  %v1932_v51 = vld [vmem:[%s2434_s5 + $0x140] ss:$16 sps:$4 sm:$0xff]   ;;  %v1933_v52 = vld [vmem:[%s2434_s5 + $0x148] ss:$16 sps:$4 sm:$0xff]   ;;  %v1934_v53 = vld [vmem:[%s2434_s5 + $0x164] ss:$16 sps:$4 sm:$0xff]  }
  0x67   : > { %1360 = vmatprep.subr.bf16.mxu0 %v1892_v25  ;;  %1442 = vmatprep.subr.bf16.mxu1 %v1894_v26  ;;  %v1936_v54 = vld [vmem:[%s2434_s5 + $0x16c] ss:$16 sps:$4 sm:$0xff]   ;;  %v1938_v55 = vld [vmem:[%s2434_s5 + $0x160] ss:$16 sps:$4 sm:$0xff]   ;;  %v1939_v56 = vld [vmem:[%s2434_s5 + $0x168] ss:$16 sps:$4 sm:$0xff]  }
  0x68   : > { %v1940_v57 = vld [vmem:[%s2434_s5 + $0x184] ss:$16 sps:$4 sm:$0xff]   ;;  %v1942_v58 = vld [vmem:[%s2434_s5 + $0x18c] ss:$16 sps:$4 sm:$0xff]   ;;  %v1944_v59 = vld [vmem:[%s2434_s5 + $0x180] ss:$16 sps:$4 sm:$0xff]  }
  0x69   : > { %v1945_v60 = vld [vmem:[%s2434_s5 + $0x188] ss:$16 sps:$4 sm:$0xff]   ;;  %v1946_v61 = vld [vmem:[%s2434_s5 + $0x1a4] ss:$16 sps:$4 sm:$0xff]   ;;  %v1948_v62 = vld [vmem:[%s2434_s5 + $0x1ac] ss:$16 sps:$4 sm:$0xff]  }
  0x6a   : > { %1361 = vmatpush1.bf16.msra.mxu0 %v1896_v27  ;;  %1443 = vmatpush1.bf16.msra.mxu1 %v1897_v28  ;;  %v1950_v63 = vld [vmem:[%s2434_s5 + $0x1a0] ss:$16 sps:$4 sm:$0xff]   ;;  %v1951_v1 = vld [vmem:[%s2434_s5 + $0x1a8] ss:$16 sps:$4 sm:$0xff]   ;;  %v1952_v3 = vld [vmem:[%s2434_s5 + $0x1c4] ss:$16 sps:$4 sm:$0xff]  }
  0x6b   : > { %1362 = vmatprep.subr.bf16.mxu0 %v1898_v29  ;;  %1444 = vmatprep.subr.bf16.mxu1 %v1900_v30  ;;  %v1954_v4 = vld [vmem:[%s2434_s5 + $0x1cc] ss:$16 sps:$4 sm:$0xff]   ;;  %v1956_v5 = vld [vmem:[%s2434_s5 + $0x1c0] ss:$16 sps:$4 sm:$0xff]   ;;  %v1957_v6 = vld [vmem:[%s2434_s5 + $0x1c8] ss:$16 sps:$4 sm:$0xff]  }
  0x6c   : > { %v1958_v7 = vld [vmem:[%s2434_s5 + $0x1e4] ss:$16 sps:$4 sm:$0xff]   ;;  %v1960_v8 = vld [vmem:[%s2434_s5 + $0x1ec] ss:$16 sps:$4 sm:$0xff]   ;;  %v1962_v9 = vld [vmem:[%s2434_s5 + $0x1e0] ss:$16 sps:$4 sm:$0xff]  }
  0x6d   : > { %v1963_v10 = vld [vmem:[%s2434_s5 + $0x1e8] ss:$16 sps:$4 sm:$0xff]   ;;  %v1966_v11 = vld [vmem:[%s2434_s5 + $0x204] ss:$16 sps:$4 sm:$0xff]   ;;  %v1969_v13 = vld [vmem:[%s2434_s5 + $0x20c] ss:$16 sps:$4 sm:$0xff]  }
  0x6e   : > { %1363 = vmatpush1.bf16.msra.mxu0 %v1902_v31  ;;  %1445 = vmatpush1.bf16.msra.mxu1 %v1903_v32  ;;  %v1964_v14 = vld [vmem:[%s2434_s5 + $0x200] ss:$16 sps:$4 sm:$0xff]   ;;  %v1967_v15 = vld [vmem:[%s2434_s5 + $0x208] ss:$16 sps:$4 sm:$0xff]   ;;  %v1972_v18 = vld [vmem:[%s2434_s5 + $0x224] ss:$16 sps:$4 sm:$0xff]  }
  0x6f   : > { %1364 = vmatprep.subr.bf16.mxu0 %v1904_v33  ;;  %1446 = vmatprep.subr.bf16.mxu1 %v1906_v34  ;;  %v1975_v19 = vld [vmem:[%s2434_s5 + $0x22c] ss:$16 sps:$4 sm:$0xff]   ;;  %v1970_v21 = vld [vmem:[%s2434_s5 + $0x220] ss:$16 sps:$4 sm:$0xff]   ;;  %v1973_v0 = vld [vmem:[%s2434_s5 + $0x228] ss:$16 sps:$4 sm:$0xff]  }
  0x70   : > { %v1978_v22 = vld [vmem:[%s2434_s5 + $0x244] ss:$16 sps:$4 sm:$0xff]   ;;  %v1981_v23 = vld [vmem:[%s2434_s5 + $0x24c] ss:$16 sps:$4 sm:$0xff]   ;;  %v1976_v16 = vld [vmem:[%s2434_s5 + $0x240] ss:$16 sps:$4 sm:$0xff]  }
  0x71   : > { %v1979_v24 = vld [vmem:[%s2434_s5 + $0x248] ss:$16 sps:$4 sm:$0xff]   ;;  %v1984_v25 = vld [vmem:[%s2434_s5 + $0x264] ss:$16 sps:$4 sm:$0xff]   ;;  %v1987_v26 = vld [vmem:[%s2434_s5 + $0x26c] ss:$16 sps:$4 sm:$0xff]  }
  0x72   : > { %1365 = vmatpush1.bf16.msra.mxu0 %v1908_v35  ;;  %1447 = vmatpush1.bf16.msra.mxu1 %v1909_v36  ;;  %v1982_v27 = vld [vmem:[%s2434_s5 + $0x260] ss:$16 sps:$4 sm:$0xff]   ;;  %v1985_v28 = vld [vmem:[%s2434_s5 + $0x268] ss:$16 sps:$4 sm:$0xff]   ;;  %v1990_v29 = vld [vmem:[%s2434_s5 + $0x284] ss:$16 sps:$4 sm:$0xff]  }
  0x73   : > { %1366 = vmatprep.subr.bf16.mxu0 %v1910_v37  ;;  %1448 = vmatprep.subr.bf16.mxu1 %v1912_v38  ;;  %v1993_v30 = vld [vmem:[%s2434_s5 + $0x28c] ss:$16 sps:$4 sm:$0xff]   ;;  %v1988_v31 = vld [vmem:[%s2434_s5 + $0x280] ss:$16 sps:$4 sm:$0xff]   ;;  %v1991_v32 = vld [vmem:[%s2434_s5 + $0x288] ss:$16 sps:$4 sm:$0xff]  }
  0x74   : > { %v1996_v33 = vld [vmem:[%s2434_s5 + $0x2a4] ss:$16 sps:$4 sm:$0xff]   ;;  %v1999_v34 = vld [vmem:[%s2434_s5 + $0x2ac] ss:$16 sps:$4 sm:$0xff]   ;;  %v1994_v35 = vld [vmem:[%s2434_s5 + $0x2a0] ss:$16 sps:$4 sm:$0xff]  }
  0x75   : > { %v1997_v36 = vld [vmem:[%s2434_s5 + $0x2a8] ss:$16 sps:$4 sm:$0xff]   ;;  %v2002_v37 = vld [vmem:[%s2434_s5 + $0x2c4] ss:$16 sps:$4 sm:$0xff]   ;;  %v2005_v38 = vld [vmem:[%s2434_s5 + $0x2cc] ss:$16 sps:$4 sm:$0xff]  }
  0x76   : > { %1367 = vmatpush1.bf16.msra.mxu0 %v1914_v39  ;;  %1449 = vmatpush1.bf16.msra.mxu1 %v1915_v40  ;;  %v2000_v39 = vld [vmem:[%s2434_s5 + $0x2c0] ss:$16 sps:$4 sm:$0xff]   ;;  %v2003_v40 = vld [vmem:[%s2434_s5 + $0x2c8] ss:$16 sps:$4 sm:$0xff]   ;;  %s2627_s6 = smov (!%p519_p9, %s1678_s6), 31 }
  0x77   : > { %1368 = vmatprep.subr.bf16.mxu0 %v1916_v41  ;;  %1450 = vmatprep.subr.bf16.mxu1 %v1918_v42  ;;  %v2008_v41 = vld [vmem:[%s2434_s5 + $0x2e4] ss:$16 sps:$4 sm:$0xff]   ;;  %v2011_v42 = vld [vmem:[%s2434_s5 + $0x2ec] ss:$16 sps:$4 sm:$0xff]   ;;  %s521_s9 = scalar_lea.vmem %s2618_s2, %s2627_s6  ;;  %s530_s12 = scalar_lea.vmem %s2619_s3, %s2627_s6 }
  0x7a   : > { %1369 = vmatpush1.bf16.msra.mxu0 %v1920_v43  ;;  %1451 = vmatpush1.bf16.msra.mxu1 %v1921_v44  ;;  %v2006_v43 = vld [vmem:[%s2434_s5 + $0x2e0] ss:$16 sps:$4 sm:$0xff]   ;;  %v2009_v44 = vld [vmem:[%s2434_s5 + $0x2e8] ss:$16 sps:$4 sm:$0xff]  }
  0x7b   : > { %1370 = vmatprep.subr.bf16.mxu0 %v1922_v45  ;;  %1452 = vmatprep.subr.bf16.mxu1 %v1924_v46  ;;  %v2014_v45 = vld [vmem:[%s2434_s5 + $0x304] ss:$16 sps:$4 sm:$0xff]   ;;  %v2017_v46 = vld [vmem:[%s2434_s5 + $0x30c] ss:$16 sps:$4 sm:$0xff]  }
  0x7e   : > { %1371 = vmatpush1.bf16.msra.mxu0 %v1926_v47  ;;  %1453 = vmatpush1.bf16.msra.mxu1 %v1927_v48  ;;  %v2012_v47 = vld [vmem:[%s2434_s5 + $0x300] ss:$16 sps:$4 sm:$0xff]   ;;  %v2015_v48 = vld [vmem:[%s2434_s5 + $0x308] ss:$16 sps:$4 sm:$0xff]  }
  0x7f   : > { %1372 = vmatprep.subr.bf16.mxu0 %v1928_v49  ;;  %1454 = vmatprep.subr.bf16.mxu1 %v1930_v50  ;;  %v2020_v49 = vld [vmem:[%s2434_s5 + $0x324] ss:$16 sps:$4 sm:$0xff]   ;;  %v2023_v50 = vld [vmem:[%s2434_s5 + $0x32c] ss:$16 sps:$4 sm:$0xff]  }
  0x82   : > { %1373 = vmatpush1.bf16.msra.mxu0 %v1932_v51  ;;  %1455 = vmatpush1.bf16.msra.mxu1 %v1933_v52  ;;  %v2018_v51 = vld [vmem:[%s2434_s5 + $0x320] ss:$16 sps:$4 sm:$0xff]   ;;  %v2021_v52 = vld [vmem:[%s2434_s5 + $0x328] ss:$16 sps:$4 sm:$0xff]  }
  0x83   : > { %1374 = vmatprep.subr.bf16.mxu0 %v1934_v53  ;;  %1456 = vmatprep.subr.bf16.mxu1 %v1936_v54  ;;  %v2026_v53 = vld [vmem:[%s2434_s5 + $0x344] ss:$16 sps:$4 sm:$0xff]   ;;  %v2029_v54 = vld [vmem:[%s2434_s5 + $0x34c] ss:$16 sps:$4 sm:$0xff]  }
  0x86   : > { %1375 = vmatpush1.bf16.msra.mxu0 %v1938_v55  ;;  %1457 = vmatpush1.bf16.msra.mxu1 %v1939_v56  ;;  %v2024_v55 = vld [vmem:[%s2434_s5 + $0x340] ss:$16 sps:$4 sm:$0xff]   ;;  %v2027_v56 = vld [vmem:[%s2434_s5 + $0x348] ss:$16 sps:$4 sm:$0xff]  }
  0x87   : > { %1376 = vmatprep.subr.bf16.mxu0 %v1940_v57  ;;  %1458 = vmatprep.subr.bf16.mxu1 %v1942_v58  ;;  %v2032_v57 = vld [vmem:[%s2434_s5 + $0x364] ss:$16 sps:$4 sm:$0xff]   ;;  %v2035_v58 = vld [vmem:[%s2434_s5 + $0x36c] ss:$16 sps:$4 sm:$0xff]  }
  0x8a   : > { %1377 = vmatpush1.bf16.msra.mxu0 %v1944_v59  ;;  %1459 = vmatpush1.bf16.msra.mxu1 %v1945_v60  ;;  %v2030_v59 = vld [vmem:[%s2434_s5 + $0x360] ss:$16 sps:$4 sm:$0xff]   ;;  %v2033_v60 = vld [vmem:[%s2434_s5 + $0x368] ss:$16 sps:$4 sm:$0xff]  }
  0x8b   : > { %1378 = vmatprep.subr.bf16.mxu0 %v1946_v61  ;;  %1460 = vmatprep.subr.bf16.mxu1 %v1948_v62  ;;  %v2038_v61 = vld [vmem:[%s2434_s5 + $0x384] ss:$16 sps:$4 sm:$0xff]   ;;  %v2041_v62 = vld [vmem:[%s2434_s5 + $0x38c] ss:$16 sps:$4 sm:$0xff]  }
  0x8e   : > { %1379 = vmatpush1.bf16.msra.mxu0 %v1950_v63  ;;  %1461 = vmatpush1.bf16.msra.mxu1 %v1951_v1  ;;  %v2036_v63 = vld [vmem:[%s2434_s5 + $0x380] ss:$16 sps:$4 sm:$0xff]   ;;  %v2039_v1 = vld [vmem:[%s2434_s5 + $0x388] ss:$16 sps:$4 sm:$0xff]  }
  0x8f   : > { %1380 = vmatprep.subr.bf16.mxu0 %v1952_v3  ;;  %1462 = vmatprep.subr.bf16.mxu1 %v1954_v4  ;;  %v2044_v3 = vld [vmem:[%s2434_s5 + $0x3a4] ss:$16 sps:$4 sm:$0xff]   ;;  %v2047_v4 = vld [vmem:[%s2434_s5 + $0x3ac] ss:$16 sps:$4 sm:$0xff]  }
  0x92   : > { %1381 = vmatpush1.bf16.msra.mxu0 %v1956_v5  ;;  %1463 = vmatpush1.bf16.msra.mxu1 %v1957_v6  ;;  %v2042_v5 = vld [vmem:[%s2434_s5 + $0x3a0] ss:$16 sps:$4 sm:$0xff]   ;;  %v2045_v6 = vld [vmem:[%s2434_s5 + $0x3a8] ss:$16 sps:$4 sm:$0xff]  }
  0x93   : > { %1382 = vmatprep.subr.bf16.mxu0 %v1958_v7  ;;  %1464 = vmatprep.subr.bf16.mxu1 %v1960_v8  ;;  %v2050_v7 = vld [vmem:[%s2434_s5 + $0x3c4] ss:$16 sps:$4 sm:$0xff]   ;;  %v2053_v8 = vld [vmem:[%s2434_s5 + $0x3cc] ss:$16 sps:$4 sm:$0xff]  }
  0x96   : > { %1383 = vmatpush1.bf16.msra.mxu0 %v1962_v9  ;;  %1465 = vmatpush1.bf16.msra.mxu1 %v1963_v10  ;;  %v2048_v9 = vld [vmem:[%s2434_s5 + $0x3c0] ss:$16 sps:$4 sm:$0xff]   ;;  %v2051_v10 = vld [vmem:[%s2434_s5 + $0x3c8] ss:$16 sps:$4 sm:$0xff]  }
  0x97   : > { %1393 = vmatprep.subr.bf16.mxu0 %v1966_v11  ;;  %1475 = vmatprep.subr.bf16.mxu1 %v1969_v13  ;;  %v2056_v11 = vld [vmem:[%s2434_s5 + $0x3e4] ss:$16 sps:$4 sm:$0xff]   ;;  %v2059_v13 = vld [vmem:[%s2434_s5 + $0x3ec] ss:$16 sps:$4 sm:$0xff]  }
  0x99   : > { %1385 = vmatmul.mubr.bf16.vlgmr.msra.gmra.mrb[0].mxu0 %v2516_v17  ;;  %1467 = vmatmul.mubr.bf16.vlgmr.msra.gmra.mrb[0].mxu1 %v2516_v17 }
  0x9a   : > { %1394 = vmatpush1.bf16.msra.mxu0 %v1964_v14  ;;  %1476 = vmatpush1.bf16.msra.mxu1 %v1967_v15  ;;  %v2054_v14 = vld [vmem:[%s2434_s5 + $0x3e0] ss:$16 sps:$4 sm:$0xff]   ;;  %v2057_v15 = vld [vmem:[%s2434_s5 + $0x3e8] ss:$16 sps:$4 sm:$0xff]  }
  0x9b   : > { %1395 = vmatprep.subr.bf16.mxu0 %v1972_v18  ;;  %1477 = vmatprep.subr.bf16.mxu1 %v1975_v19  ;;  %v706_v18 = vcombine.high %v2516_v17, %v2516_v17  ;;  %v665_v19 = vsub.s32 0, %v2432_v2  ;;  %v669_v17 = vsub.s32 1, %v2432_v2 }
  0x9c   : > { %1425 = vmatprep.mubr.bf16.mxu0 %v707_v20  ;;  %1507 = vmatprep.mubr.bf16.mxu1 %v707_v20  ;;  %v673_v20 = vsub.s32 2, %v2432_v2 }
  0x9e   : > { %1396 = vmatpush1.bf16.msra.mxu0 %v1970_v21  ;;  %1478 = vmatpush1.bf16.msra.mxu1 %v1973_v0  ;;  %v661_v21 = vld [vmem:[%s521_s9] sm:$0xf]  ;;  %v677_v0 = vsub.s32 3, %v2432_v2 }
  0x9f   : > { %1397 = vmatprep.subr.bf16.mxu0 %v1978_v22  ;;  %1479 = vmatprep.subr.bf16.mxu1 %v1981_v23  ;;  %v666_v22 = vrot.slane %v661_v21, %v665_v19  ;;  %v674_v23 = vrot.slane %v661_v21, %v673_v20 }
  0xa2   : > { %1398 = vmatpush1.bf16.msra.mxu0 %v1976_v16  ;;  %1480 = vmatpush1.bf16.msra.mxu1 %v1979_v24  ;;  %v670_v16 = vrot.slane %v661_v21, %v669_v17  ;;  %v678_v24 = vrot.slane %v661_v21, %v677_v0 }
  0xa3   : > { %1399 = vmatprep.subr.bf16.mxu0 %v1984_v25  ;;  %1481 = vmatprep.subr.bf16.mxu1 %v1987_v26 }
  0xa6   : > { %1400 = vmatpush1.bf16.msra.mxu0 %v1982_v27  ;;  %1482 = vmatpush1.bf16.msra.mxu1 %v1985_v28 }
  0xa7   : > { %1401 = vmatprep.subr.bf16.mxu0 %v1990_v29  ;;  %1483 = vmatprep.subr.bf16.mxu1 %v1993_v30 }
  0xaa   : > { %1402 = vmatpush1.bf16.msra.mxu0 %v1988_v31  ;;  %1484 = vmatpush1.bf16.msra.mxu1 %v1991_v32 }
  0xab   : > { %1403 = vmatprep.subr.bf16.mxu0 %v1996_v33  ;;  %1485 = vmatprep.subr.bf16.mxu1 %v1999_v34 }
  0xae   : > { %1404 = vmatpush1.bf16.msra.mxu0 %v1994_v35  ;;  %1486 = vmatpush1.bf16.msra.mxu1 %v1997_v36 }
  0xaf   : > { %1405 = vmatprep.subr.bf16.mxu0 %v2002_v37  ;;  %1487 = vmatprep.subr.bf16.mxu1 %v2005_v38 }
  0xb2   : > { %1406 = vmatpush1.bf16.msra.mxu0 %v2000_v39  ;;  %1488 = vmatpush1.bf16.msra.mxu1 %v2003_v40 }
  0xb3   : > { %1407 = vmatprep.subr.bf16.mxu0 %v2008_v41  ;;  %1489 = vmatprep.subr.bf16.mxu1 %v2011_v42 }
  0xb6   : > { %1408 = vmatpush1.bf16.msra.mxu0 %v2006_v43  ;;  %1490 = vmatpush1.bf16.msra.mxu1 %v2009_v44 }
  0xb7   : > { %1409 = vmatprep.subr.bf16.mxu0 %v2014_v45  ;;  %1491 = vmatprep.subr.bf16.mxu1 %v2017_v46 }
  0xba   : > { %1410 = vmatpush1.bf16.msra.mxu0 %v2012_v47  ;;  %1492 = vmatpush1.bf16.msra.mxu1 %v2015_v48 }
  0xbb   : > { %1411 = vmatprep.subr.bf16.mxu0 %v2020_v49  ;;  %1493 = vmatprep.subr.bf16.mxu1 %v2023_v50 }
  0xbe   : > { %1412 = vmatpush1.bf16.msra.mxu0 %v2018_v51  ;;  %1494 = vmatpush1.bf16.msra.mxu1 %v2021_v52 }
  0xbf   : > { %1413 = vmatprep.subr.bf16.mxu0 %v2026_v53  ;;  %1495 = vmatprep.subr.bf16.mxu1 %v2029_v54 }
  0xc2   : > { %1414 = vmatpush1.bf16.msra.mxu0 %v2024_v55  ;;  %1496 = vmatpush1.bf16.msra.mxu1 %v2027_v56 }
  0xc3   : > { %1415 = vmatprep.subr.bf16.mxu0 %v2032_v57  ;;  %1497 = vmatprep.subr.bf16.mxu1 %v2035_v58 }
  0xc6   : > { %1416 = vmatpush1.bf16.msra.mxu0 %v2030_v59  ;;  %1498 = vmatpush1.bf16.msra.mxu1 %v2033_v60 }
  0xc7   : > { %1417 = vmatprep.subr.bf16.mxu0 %v2038_v61  ;;  %1499 = vmatprep.subr.bf16.mxu1 %v2041_v62 }
  0xca   : > { %1418 = vmatpush1.bf16.msra.mxu0 %v2036_v63  ;;  %1500 = vmatpush1.bf16.msra.mxu1 %v2039_v1 }
  0xcb   : > { %1419 = vmatprep.subr.bf16.mxu0 %v2044_v3  ;;  %1501 = vmatprep.subr.bf16.mxu1 %v2047_v4 }
  0xce   : > { %1420 = vmatpush1.bf16.msra.mxu0 %v2042_v5  ;;  %1502 = vmatpush1.bf16.msra.mxu1 %v2045_v6 }
  0xcf   : > { %1421 = vmatprep.subr.bf16.mxu0 %v2050_v7  ;;  %1503 = vmatprep.subr.bf16.mxu1 %v2053_v8 }
  0xd2   : > { %1422 = vmatpush1.bf16.msra.mxu0 %v2048_v9  ;;  %1504 = vmatpush1.bf16.msra.mxu1 %v2051_v10 }
  0xd3   : > { %1423 = vmatprep.subr.bf16.mxu0 %v2056_v11  ;;  %1505 = vmatprep.subr.bf16.mxu1 %v2059_v13 }
  0xd6   : > { %1424 = vmatpush1.bf16.msra.mxu0 %v2054_v14  ;;  %1506 = vmatpush1.bf16.msra.mxu1 %v2057_v15 }
  0xd9   : > { %1426 = vmatmul.mubr.bf16.vlgmr.msra.gmra.mrb[0].mxu0 %v706_v18  ;;  %1508 = vmatmul.mubr.bf16.vlgmr.msra.gmra.mrb[0].mxu1 %v706_v18 }
 0x1ac   : > { %v1427_v25 = vpop.f32.mrb[0].mxu0  ;;  %v1509_v26 = vpop.f32.mrb[0].mxu1 }
 0x1ad   : > { %v1815_v27 = vadd.f32 %v1427_v25, %v666_v22  ;;  %v1817_v28 = vadd.f32 %v1509_v26, %v674_v23  ;;  %v1429_v29 = vpop.f32.mrb[1].mxu0  ;;  %v1511_v30 = vpop.f32.mrb[1].mxu1 }
 0x1ae   : > { %v1816_v31 = vadd.f32 %v1429_v29, %v670_v16  ;;  %v1818_v32 = vadd.f32 %v1511_v30, %v678_v24  ;;  %v1431_v33 = vpop.f32.mrb[2].mxu0  ;;  %v1513_v34 = vpop.f32.mrb[2].mxu1 }
 0x1af   : > { %v1516_v35 = vmax.f32 %v1815_v27, 0.0  ;;  %v1518_v36 = vmax.f32 %v1817_v28, 0.0  ;;  %v1432_v37 = vpop.f32.mrb[3].mxu0  ;;  %v1514_v38 = vpop.f32.mrb[3].mxu1 }
 0x1b0   : > { %v1517_v2 = vmax.f32 %v1816_v31, 0.0  ;;  %v1519_v39 = vmax.f32 %v1818_v32, 0.0 }
 0x1b2   : > { %v1809_v40 = vpack.c.bf16 %v1517_v2, %v1516_v35  ;;  %v1810_v41 = vpack.c.bf16 %v1519_v39, %v1518_v36 }
 0x1b4   : > { %v1536_v42 = vrot.slane %v1809_v40, %v2444_v12  ;;  %v1543_v43 = vrot.slane %v1810_v41, %v2444_v12 }
 0x1b6   : > { %v1544_v44 = vcombine.low %v1536_v42, %v1543_v43 }
 0x1b8   : > { %1811 = vst.sshfl [vmem:[%s530_s12] sm:$0x55 pattern:$0x73625140] %v1544_v44 }
 0x1b9 PF: > { %s13_s16 = sadd.s32 1, %s2098_s16   ;;  %s2620_s12 = smov %s2086_s13 }
 0x1ba   : > { %p10_p10 = scmp.ge.s32.totalorder %s13_s16, 10   ;;  %s2621_s13 = smov %s2156_s20 }
 0x1bb   : > { %s2622_s14 = smov %s2094_s15  ;;  %s2623_s15 = smov %s2625_s17 }
 0x1bc   :  { %12 = sbr.rel (!%p10_p10) target bundleno = 3 (0x3), region = 96 }

// kernel: vggnet_forward.30
= control target key start
LH: loop header
LB: loop body
LE: loop exit
PB: predicated region body
PF: predicated region fallthrough
CT: control target
= control target key end

     0   :  { %8 = vsyncpa [#allocation4], 0  ;;  %s2370_s0 = inlined_call_operand.vmem [shape: bf16[2,4096], index: 0, kind: input, shape index: {}]   ;;  %s2371_s1 = inlined_call_operand.hbm [shape: bf16[4096,4096], index: 1, kind: input, shape index: {}]   ;;  %s2372_s2 = inlined_call_operand.vmem [shape: f32[1,4096], index: 2, kind: input, shape index: {}]   ;;  %s2373_s3 = inlined_call_operand.vmem [shape: bf16[2,4096], index: 3, kind: output, shape index: {}]  }
   0x1   :  { %10 = vsyncpa [#allocation4 + $0x1], 0  ;;  %s2041_s12 = smov 0   ;;  %s2043_s13 = smov 0  }
   0x2   :  { %s2045_s14 = smov 0   ;;  %s2047_s15 = smov 0  }
   0x3   :  { %s2049_s16 = smov 0   ;;  %s2051_s17 = smov 0  }
   0x4   :  { %s2053_s18 = smov 0   ;;  %s2055_s19 = smov 0  }
   0x5 LB: > { %s1488_s20 = sadd.s32 4294967295, %s2012_s19   ;;  %s28_s21 = sadd.s32 1, %s2004_s17  ;;  %s2012_s19 = sphi %s2055_s19, %s16_s19   ;;  %s2008_s18 = sphi %s2053_s18, %s2383_s18   ;;  %s2004_s17 = sphi %s2051_s17, %s2382_s17   ;;  %s2000_s16 = sphi %s2049_s16, %s2381_s16   ;;  %s1996_s15 = sphi %s2047_s15, %s2380_s15   ;;  %s1992_s14 = sphi %s2045_s14, %s2379_s14   ;;  %s1988_s13 = sphi %s2043_s13, %s2378_s13   ;;  %s1984_s12 = sphi %s2041_s12, %s2377_s12  }
   0x6   : > { %p29_p0 = scmp.ge.s32.totalorder %s28_s21, 8  ;;  %s31_s22 = sadd.s32 1, %s2008_s18 }
   0x7   : > { %s72_s23 = sadd.s32 1, %s1992_s14  ;;  %p79_p1 = scmp.ne.s32.totalorder %s1992_s14, %s1988_s13 }
   0x8   : > { %s2385_s21 = smov (%p29_p0, %s28_s21), 0  ;;  %s2387_s22 = smov (!%p29_p0, %s31_s22), %s2008_s18 }
   0x9   : > { %s67_s24 = ssub.s32 %s2004_s17, %s2385_s21  ;;  %p80_p2 = scmp.eq.s32.totalorder %s2012_s19, 0 }
   0xa   : > { %p33_p3 = scmp.ge.s32.totalorder %s2387_s22, 8  ;;  %p85_p4 = scmp.ne.s32.totalorder %s1988_s13, %s1984_s12 }
   0xb   : > { %p2092_p5 = por %p80_p2, %p79_p1  ;;  %p86_p6 = scmp.eq.s32.totalorder %s1488_s20, 0 }
   0xc   : > { %s2389_s22 = smov (%p33_p3, %s2387_s22), 0  ;;  %p1653_p8 = scmp.lt.s32.totalorder %s2012_s19, 64 }
   0xd   : > { %p2098_p7 = por %p86_p6, %p85_p4  ;;  %s68_s27 = ssub.s32 %s2008_s18, %s2389_s22 }
   0xe   : > { %s69_s28 = sor.u32 %s68_s27, %s67_s24  ;;  %s175_s29 = sand.u32 1, %s1992_s14  }
   0xf   : > { %p70_p9 = scmp.eq.s32.totalorder %s69_s28, 0  ;;  %s1492_s30 = sshll.u32 %s175_s29, 10 }
  0x10   : > { %s1494_s4 = sshll.u32 %s2008_s18, 2  ;;  %s1638_s6 = sshll.u32 %s2004_s17, 11 }
  0x11   : > { %s2108_s5 = scalar_select %p70_p9, %s1992_s14, %s72_s23  }
  0x12   : > { %s186_s7 = sadd.s32 %s1638_s6, %s1494_s4  ;;  %s179_s8 = scalar_lea.vmem [#allocation3], %s1492_s30 }
  0x13   : > { %s189_s9 = sshll.u32 %s179_s8, 4  ;;  %s1496_s10 = sshll.u32 %s186_s7, 6  ;;  %s2111_s9 = int_to_ptr.vmem [resolvable:$true] %s189_s9 }
  0x14   : > { %s2116_s20 = scalar_lea.hbm %s2371_s1, %s1496_s10  ;;  %p2122_p10 = pnand %p1653_p8, %p2092_p5 }
  0x15   : > { %s2126_s24 = scalar_lea.sflag [#allocation4], %s175_s29  ;;  %s1916_s27 = scalar_lea.hbm %s2116_s20, 16384 }
  0x16   : > { %p1917_p11 = scmp.ne.s32.totalorder %s2116_s20, %s1916_s27  ;;  %p1918_p12 = pneg %p2122_p10 }
  0x17   : > { %s1921_s30 = scalar_lea.hbm %s2371_s1, 1048576  ;;  %p1922_p1 = scmp.lt.u32.totalorder %s2116_s20, %s2371_s1 }
  0x18   : > { %p1919_p13 = pnand %p1918_p12, %p1917_p11  ;;  %p1923_p2 = scmp.lt.u32.totalorder %s1921_s30, %s1916_s27 }
  0x19   : > { %p1925_p4 = scmp.lt.u32.totalorder %s1916_s27, %s2116_s20 }
  0x1a   : > { %p1920_p0 = pneg %p1919_p13  ;;  %p1924_p3 = por %p1923_p2, %p1922_p1 }
  0x1c   : > { %p1926_p5 = por %p1925_p4, %p1924_p3 }
  0x1e   : > { %p1927_p6 = pnand %p1926_p5, %p1920_p0 }
  0x20   : > { %1930 = shalt.err (!%p1927_p6)
}
  0x21   : > { %s1931_s29 = scalar_lea.vmem %s2111_s9, 16384  ;;  %s2014_s7 = smov [#allocation3]  }
  0x22   : > { %p1932_p8 = scmp.ne.s32.totalorder %s2111_s9, %s1931_s29  ;;  %s1936_s8 = sshll.u32 %s2014_s7, 4  ;;  %s1937_s8 = int_to_ptr.vmem [resolvable:$false] %s1936_s8 }
  0x23   : > { %s1938_s10 = scalar_lea.vmem %s1937_s8, 32768  ;;  %p1939_p13 = scmp.lt.s32.totalorder %s2111_s9, %s1937_s8 }
  0x24   : > { %p1934_p9 = pnand %p1932_p8, %p1918_p12  ;;  %p1940_p1 = scmp.lt.s32.totalorder %s1938_s10, %s1931_s29 }
  0x26   : > { %p1935_p11 = pneg %p1934_p9  ;;  %p1941_p2 = por %p1940_p1, %p1939_p13 }
  0x28   : > { %p1942_p3 = pnand %p1941_p2, %p1935_p11 }
  0x2a   : > { %1945 = shalt.err (!%p1942_p3)
}
  0x2b   : > { %s2015_s11 = smov 2048   ;;  %s2016_s12 = smov 256  }
  0x2c   : > { %s2017_s27 = smov 16   ;;  %p1497_p12 = scmp.ge.s32.totalorder %s2012_s19, 1 }
  0x2d   : > { %1652 = dma.hbm_to_vmem [thread:$0]  (!%p2122_p10), %s2116_s20, 16384, %s2111_s9, %s2126_s24, %s2015_s11, %s2016_s12, %s2017_s27  }
  0x2e   : > { %p205_p0 = scmp.lt.s32.totalorder %s2012_s19, 65 }
  0x30   : > { %p206_p4 = pnand %p1497_p12, %p205_p0 }
  0x31   : > { %s211_s25 = sand.u32 (!%p206_p4), 1, %s1988_s13  }
  0x32   : > { %209 = sbr.rel (%p206_p4) target bundleno = 445 (0x1bd), region = 32  ;;  %s1498_s28 = sshll.u32 (!%p206_p4), %s211_s25, 10 }
  0x33   : > { %s212_s30 = scalar_lea.sflag (!%p206_p4), [#allocation4], %s211_s25  ;;  %s2157_s4 = scalar_lea.vmem (!%p206_p4), [#allocation3], %s1498_s28 }
  0x39   : > { %1979 = dma.done.wait (%p2098_p7), %s212_s30, 16384  }
  0x3a   : > { %1981 = vsyncadd (%p2098_p7), %s212_s30, 4294950912  ;;  %s1499_s23 = sshll.u32 %s1996_s15, 2  ;;  %s1500_s9 = sshll.u32 %s2000_s16, 2 }
  0x3b   : > { %p256_p10 = scmp.lt.s32.totalorder %s1499_s23, 31  ;;  %p265_p5 = scmp.lt.s32.totalorder %s1500_s9, 31 }
  0x3c   : > { %p1502_p7 = scmp.ne.s32.totalorder %s1996_s15, 0 }
  0x3d   : > { %s2391_s23 = smov (!%p256_p10, %s1499_s23), 31  ;;  %s2393_s9 = smov (!%p265_p5, %s1500_s9), 31 }
  0x3e   : > { %s260_s6 = scalar_lea.vmem %s2370_s0, %s2391_s23  ;;  %s267_s7 = scalar_lea.vmem %s2372_s2, %s2393_s9  ;;  %v2018_v0 = vmov (!%p1502_p7), 0.0  }
  0x3f   : > { %s276_s16 = scalar_lea.vmem %s2373_s3, %s2393_s9  ;;  %281 = sbr.rel (%p1502_p7) target bundleno = 70 (0x46), region = 40  ;;  %282 = vst [vmem:[#allocation2] sm:$0xff] (!%p1502_p7), %v2018_v0 }
  0x46 PF: > { %v1724_v1 = vld [vmem:[%s2157_s4 + $0x4] ss:$16 sps:$4 sm:$0xff]   ;;  %v1726_v2 = vld [vmem:[%s2157_s4 + $0xc] ss:$16 sps:$4 sm:$0xff]   ;;  %v1728_v3 = vld [vmem:[%s2157_s4] ss:$16 sps:$4 sm:$0xff]   ;;  %v425_v41 = vlaneseq }
  0x47   : > { %1082 = vmatprep.subr.bf16.mxu0 %v1724_v1  ;;  %v1729_v4 = vld [vmem:[%s2157_s4 + $0x8] ss:$16 sps:$4 sm:$0xff]   ;;  %1164 = vmatprep.subr.bf16.mxu1 %v1726_v2  ;;  %v1730_v5 = vld [vmem:[%s2157_s4 + $0x24] ss:$16 sps:$4 sm:$0xff]   ;;  %v1732_v6 = vld [vmem:[%s2157_s4 + $0x2c] ss:$16 sps:$4 sm:$0xff]  }
  0x48   : > { %1083 = vmatpush1.bf16.msra.mxu0 %v1728_v3  ;;  %1165 = vmatpush1.bf16.msra.mxu1 %v1729_v4  ;;  %v1734_v7 = vld [vmem:[%s2157_s4 + $0x20] ss:$16 sps:$4 sm:$0xff]   ;;  %v1735_v8 = vld [vmem:[%s2157_s4 + $0x28] ss:$16 sps:$4 sm:$0xff]   ;;  %v1736_v9 = vld [vmem:[%s2157_s4 + $0x44] ss:$16 sps:$4 sm:$0xff]  }
  0x49   : > { %1084 = vmatprep.subr.bf16.mxu0 %v1730_v5  ;;  %1166 = vmatprep.subr.bf16.mxu1 %v1732_v6  ;;  %v1738_v10 = vld [vmem:[%s2157_s4 + $0x4c] ss:$16 sps:$4 sm:$0xff]   ;;  %v1740_v11 = vld [vmem:[%s2157_s4 + $0x40] ss:$16 sps:$4 sm:$0xff]   ;;  %v1741_v12 = vld [vmem:[%s2157_s4 + $0x48] ss:$16 sps:$4 sm:$0xff]  }
  0x4a   : > { %v1742_v13 = vld [vmem:[%s2157_s4 + $0x64] ss:$16 sps:$4 sm:$0xff]   ;;  %v1744_v14 = vld [vmem:[%s2157_s4 + $0x6c] ss:$16 sps:$4 sm:$0xff]   ;;  %v1746_v15 = vld [vmem:[%s2157_s4 + $0x60] ss:$16 sps:$4 sm:$0xff]  }
  0x4b   : > { %v1747_v16 = vld [vmem:[%s2157_s4 + $0x68] ss:$16 sps:$4 sm:$0xff]   ;;  %v1748_v17 = vld [vmem:[%s2157_s4 + $0x84] ss:$16 sps:$4 sm:$0xff]   ;;  %v1750_v18 = vld [vmem:[%s2157_s4 + $0x8c] ss:$16 sps:$4 sm:$0xff]  }
  0x4c   : > { %1085 = vmatpush1.bf16.msra.mxu0 %v1734_v7  ;;  %1167 = vmatpush1.bf16.msra.mxu1 %v1735_v8  ;;  %v1752_v19 = vld [vmem:[%s2157_s4 + $0x80] ss:$16 sps:$4 sm:$0xff]   ;;  %v1753_v20 = vld [vmem:[%s2157_s4 + $0x88] ss:$16 sps:$4 sm:$0xff]   ;;  %v1754_v21 = vld [vmem:[%s2157_s4 + $0xa4] ss:$16 sps:$4 sm:$0xff]  }
  0x4d   : > { %1086 = vmatprep.subr.bf16.mxu0 %v1736_v9  ;;  %1168 = vmatprep.subr.bf16.mxu1 %v1738_v10  ;;  %v1756_v22 = vld [vmem:[%s2157_s4 + $0xac] ss:$16 sps:$4 sm:$0xff]   ;;  %v1758_v23 = vld [vmem:[%s2157_s4 + $0xa0] ss:$16 sps:$4 sm:$0xff]   ;;  %v1759_v24 = vld [vmem:[%s2157_s4 + $0xa8] ss:$16 sps:$4 sm:$0xff]  }
  0x4e   : > { %v1760_v25 = vld [vmem:[%s2157_s4 + $0xc4] ss:$16 sps:$4 sm:$0xff]   ;;  %v1762_v26 = vld [vmem:[%s2157_s4 + $0xcc] ss:$16 sps:$4 sm:$0xff]   ;;  %v1764_v27 = vld [vmem:[%s2157_s4 + $0xc0] ss:$16 sps:$4 sm:$0xff]  }
  0x4f   : > { %v1765_v28 = vld [vmem:[%s2157_s4 + $0xc8] ss:$16 sps:$4 sm:$0xff]   ;;  %v1766_v29 = vld [vmem:[%s2157_s4 + $0xe4] ss:$16 sps:$4 sm:$0xff]   ;;  %v1768_v30 = vld [vmem:[%s2157_s4 + $0xec] ss:$16 sps:$4 sm:$0xff]  }
  0x50   : > { %1087 = vmatpush1.bf16.msra.mxu0 %v1740_v11  ;;  %1169 = vmatpush1.bf16.msra.mxu1 %v1741_v12  ;;  %v1770_v31 = vld [vmem:[%s2157_s4 + $0xe0] ss:$16 sps:$4 sm:$0xff]   ;;  %v1771_v32 = vld [vmem:[%s2157_s4 + $0xe8] ss:$16 sps:$4 sm:$0xff]   ;;  %v1772_v33 = vld [vmem:[%s2157_s4 + $0x104] ss:$16 sps:$4 sm:$0xff]  }
  0x51   : > { %1088 = vmatprep.subr.bf16.mxu0 %v1742_v13  ;;  %1170 = vmatprep.subr.bf16.mxu1 %v1744_v14  ;;  %v1774_v34 = vld [vmem:[%s2157_s4 + $0x10c] ss:$16 sps:$4 sm:$0xff]   ;;  %v1776_v35 = vld [vmem:[%s2157_s4 + $0x100] ss:$16 sps:$4 sm:$0xff]   ;;  %v1777_v36 = vld [vmem:[%s2157_s4 + $0x108] ss:$16 sps:$4 sm:$0xff]  }
  0x52   : > { %v1778_v37 = vld [vmem:[%s2157_s4 + $0x124] ss:$16 sps:$4 sm:$0xff]   ;;  %v1780_v38 = vld [vmem:[%s2157_s4 + $0x12c] ss:$16 sps:$4 sm:$0xff]   ;;  %v2019_v39 = vmov 1966171168  }
  0x53   : > { %v423_v40 = vunpack.c.l.s4 %v2019_v39  ;;  %v1782_v42 = vld [vmem:[%s2157_s4 + $0x120] ss:$16 sps:$4 sm:$0xff]   ;;  %v1783_v43 = vld [vmem:[%s2157_s4 + $0x128] ss:$16 sps:$4 sm:$0xff]   ;;  %v1784_v44 = vld [vmem:[%s2157_s4 + $0x144] ss:$16 sps:$4 sm:$0xff]  }
  0x54   : > { %1089 = vmatpush1.bf16.msra.mxu0 %v1746_v15  ;;  %1171 = vmatpush1.bf16.msra.mxu1 %v1747_v16  ;;  %v1786_v45 = vld [vmem:[%s2157_s4 + $0x14c] ss:$16 sps:$4 sm:$0xff]   ;;  %v2224_v47 = vshrl.u32 %v425_v41, 7  ;;  %v1788_v48 = vld [vmem:[%s2157_s4 + $0x140] ss:$16 sps:$4 sm:$0xff]   ;;  %p1632_p6 = scmp.ne.s32.totalorder %s1996_s15, 7 }
  0x55   : > { %1090 = vmatprep.subr.bf16.mxu0 %v1748_v17  ;;  %1172 = vmatprep.subr.bf16.mxu1 %v1750_v18  ;;  %v424_v46 = vunpack.c.0.s8 %v423_v40  ;;  %v1789_v49 = vld [vmem:[%s2157_s4 + $0x148] ss:$16 sps:$4 sm:$0xff]   ;;  %v1790_v50 = vld [vmem:[%s2157_s4 + $0x164] ss:$16 sps:$4 sm:$0xff]   ;;  %v1792_v51 = vld [vmem:[%s2157_s4 + $0x16c] ss:$16 sps:$4 sm:$0xff]  }
  0x56   : > { %v1503_v53 = vld.sshfl [vmem:[%s260_s6] sm:$0x33 pattern:$0x75316420]  ;;  %v1794_v54 = vld [vmem:[%s2157_s4 + $0x160] ss:$16 sps:$4 sm:$0xff]  }
  0x57   : > { %v2231_v52 = vsub.s32 %v424_v46, %v2224_v47  ;;  %v1795_v55 = vld [vmem:[%s2157_s4 + $0x168] ss:$16 sps:$4 sm:$0xff]   ;;  %v421_v56 = vcombine.high %v1503_v53, %v1503_v53  ;;  %v1796_v57 = vld [vmem:[%s2157_s4 + $0x184] ss:$16 sps:$4 sm:$0xff]   ;;  %v1798_v58 = vld [vmem:[%s2157_s4 + $0x18c] ss:$16 sps:$4 sm:$0xff]  }
  0x58   : > { %1091 = vmatpush1.bf16.msra.mxu0 %v1752_v19  ;;  %1173 = vmatpush1.bf16.msra.mxu1 %v1753_v20  ;;  %v1800_v60 = vld [vmem:[%s2157_s4 + $0x180] ss:$16 sps:$4 sm:$0xff]   ;;  %v1801_v61 = vld [vmem:[%s2157_s4 + $0x188] ss:$16 sps:$4 sm:$0xff]   ;;  %v1802_v62 = vld [vmem:[%s2157_s4 + $0x1a4] ss:$16 sps:$4 sm:$0xff]  }
  0x59   : > { %1092 = vmatprep.subr.bf16.mxu0 %v1754_v21  ;;  %1174 = vmatprep.subr.bf16.mxu1 %v1756_v22  ;;  %v435_v59 = vrot.slane %v421_v56, %v2231_v52  ;;  %v1804_v63 = vld [vmem:[%s2157_s4 + $0x1ac] ss:$16 sps:$4 sm:$0xff]   ;;  %v1806_v0 = vld [vmem:[%s2157_s4 + $0x1a0] ss:$16 sps:$4 sm:$0xff]   ;;  %v1807_v1 = vld [vmem:[%s2157_s4 + $0x1a8] ss:$16 sps:$4 sm:$0xff]   ;;  %v2261_v13 = vrot.slane %v1503_v53, %v2231_v52 }
  0x5a   : > { %v1808_v2 = vld [vmem:[%s2157_s4 + $0x1c4] ss:$16 sps:$4 sm:$0xff]   ;;  %v1810_v3 = vld [vmem:[%s2157_s4 + $0x1cc] ss:$16 sps:$4 sm:$0xff]   ;;  %v1812_v4 = vld [vmem:[%s2157_s4 + $0x1c0] ss:$16 sps:$4 sm:$0xff]  }
  0x5b   : > { %1114 = vmatprep.mubr.bf16.mxu0 %v435_v59  ;;  %1196 = vmatprep.mubr.bf16.mxu1 %v435_v59  ;;  %v1813_v5 = vld [vmem:[%s2157_s4 + $0x1c8] ss:$16 sps:$4 sm:$0xff]   ;;  %v1814_v6 = vld [vmem:[%s2157_s4 + $0x1e4] ss:$16 sps:$4 sm:$0xff]   ;;  %v1816_v7 = vld [vmem:[%s2157_s4 + $0x1ec] ss:$16 sps:$4 sm:$0xff]   ;;  %v437_v17 = vcombine.high %v435_v59, %v435_v59 }
  0x5c   : > { %1093 = vmatpush1.bf16.msra.mxu0 %v1758_v23  ;;  %1175 = vmatpush1.bf16.msra.mxu1 %v1759_v24  ;;  %v1818_v8 = vld [vmem:[%s2157_s4 + $0x1e0] ss:$16 sps:$4 sm:$0xff]   ;;  %v1819_v9 = vld [vmem:[%s2157_s4 + $0x1e8] ss:$16 sps:$4 sm:$0xff]   ;;  %v1822_v10 = vld [vmem:[%s2157_s4 + $0x204] ss:$16 sps:$4 sm:$0xff]  }
  0x5d   : > { %1094 = vmatprep.subr.bf16.mxu0 %v1760_v25  ;;  %1176 = vmatprep.subr.bf16.mxu1 %v1762_v26  ;;  %v1825_v11 = vld [vmem:[%s2157_s4 + $0x20c] ss:$16 sps:$4 sm:$0xff]   ;;  %v1820_v12 = vld [vmem:[%s2157_s4 + $0x200] ss:$16 sps:$4 sm:$0xff]   ;;  %v1823_v14 = vld [vmem:[%s2157_s4 + $0x208] ss:$16 sps:$4 sm:$0xff]  }
  0x5e   : > { %v1828_v15 = vld [vmem:[%s2157_s4 + $0x224] ss:$16 sps:$4 sm:$0xff]   ;;  %v1831_v16 = vld [vmem:[%s2157_s4 + $0x22c] ss:$16 sps:$4 sm:$0xff]   ;;  %v1826_v18 = vld [vmem:[%s2157_s4 + $0x220] ss:$16 sps:$4 sm:$0xff]  }
  0x5f   : > { %v1829_v19 = vld [vmem:[%s2157_s4 + $0x228] ss:$16 sps:$4 sm:$0xff]   ;;  %v1834_v20 = vld [vmem:[%s2157_s4 + $0x244] ss:$16 sps:$4 sm:$0xff]   ;;  %v1837_v21 = vld [vmem:[%s2157_s4 + $0x24c] ss:$16 sps:$4 sm:$0xff]  }
  0x60   : > { %1095 = vmatpush1.bf16.msra.mxu0 %v1764_v27  ;;  %1177 = vmatpush1.bf16.msra.mxu1 %v1765_v28  ;;  %v1832_v22 = vld [vmem:[%s2157_s4 + $0x240] ss:$16 sps:$4 sm:$0xff]   ;;  %v1835_v23 = vld [vmem:[%s2157_s4 + $0x248] ss:$16 sps:$4 sm:$0xff]   ;;  %v1840_v24 = vld [vmem:[%s2157_s4 + $0x264] ss:$16 sps:$4 sm:$0xff]  }
  0x61   : > { %1096 = vmatprep.subr.bf16.mxu0 %v1766_v29  ;;  %1178 = vmatprep.subr.bf16.mxu1 %v1768_v30  ;;  %v1843_v25 = vld [vmem:[%s2157_s4 + $0x26c] ss:$16 sps:$4 sm:$0xff]   ;;  %v1838_v26 = vld [vmem:[%s2157_s4 + $0x260] ss:$16 sps:$4 sm:$0xff]   ;;  %v1841_v27 = vld [vmem:[%s2157_s4 + $0x268] ss:$16 sps:$4 sm:$0xff]  }
  0x62   : > { %v1846_v28 = vld [vmem:[%s2157_s4 + $0x284] ss:$16 sps:$4 sm:$0xff]   ;;  %v1849_v29 = vld [vmem:[%s2157_s4 + $0x28c] ss:$16 sps:$4 sm:$0xff]   ;;  %v1844_v30 = vld [vmem:[%s2157_s4 + $0x280] ss:$16 sps:$4 sm:$0xff]  }
  0x63   : > { %v1859_v39 = vld [vmem:[%s2157_s4 + $0x2c8] ss:$16 sps:$4 sm:$0xff]   ;;  %v1864_v40 = vld [vmem:[%s2157_s4 + $0x2e4] ss:$16 sps:$4 sm:$0xff]   ;;  %v1867_v41 = vld [vmem:[%s2157_s4 + $0x2ec] ss:$16 sps:$4 sm:$0xff]  }
  0x64   : > { %1097 = vmatpush1.bf16.msra.mxu0 %v1770_v31  ;;  %1179 = vmatpush1.bf16.msra.mxu1 %v1771_v32  ;;  %v1847_v31 = vld [vmem:[%s2157_s4 + $0x288] ss:$16 sps:$4 sm:$0xff]   ;;  %v1852_v32 = vld [vmem:[%s2157_s4 + $0x2a4] ss:$16 sps:$4 sm:$0xff]   ;;  %v1868_v46 = vld [vmem:[%s2157_s4 + $0x300] ss:$16 sps:$4 sm:$0xff]  }
  0x65   : > { %1098 = vmatprep.subr.bf16.mxu0 %v1772_v33  ;;  %1180 = vmatprep.subr.bf16.mxu1 %v1774_v34  ;;  %v1855_v33 = vld [vmem:[%s2157_s4 + $0x2ac] ss:$16 sps:$4 sm:$0xff]   ;;  %v1850_v34 = vld [vmem:[%s2157_s4 + $0x2a0] ss:$16 sps:$4 sm:$0xff]   ;;  %v1877_v53 = vld [vmem:[%s2157_s4 + $0x328] ss:$16 sps:$4 sm:$0xff]  }
  0x66   : > { %v1880_v56 = vld [vmem:[%s2157_s4 + $0x340] ss:$16 sps:$4 sm:$0xff]   ;;  %v1891_v59 = vld [vmem:[%s2157_s4 + $0x36c] ss:$16 sps:$4 sm:$0xff]  }
  0x68   : > { %1099 = vmatpush1.bf16.msra.mxu0 %v1776_v35  ;;  %1181 = vmatpush1.bf16.msra.mxu1 %v1777_v36  ;;  %v1853_v35 = vld [vmem:[%s2157_s4 + $0x2a8] ss:$16 sps:$4 sm:$0xff]   ;;  %v1858_v36 = vld [vmem:[%s2157_s4 + $0x2c4] ss:$16 sps:$4 sm:$0xff]  }
  0x69   : > { %1100 = vmatprep.subr.bf16.mxu0 %v1778_v37  ;;  %1182 = vmatprep.subr.bf16.mxu1 %v1780_v38  ;;  %v1861_v37 = vld [vmem:[%s2157_s4 + $0x2cc] ss:$16 sps:$4 sm:$0xff]   ;;  %v1856_v38 = vld [vmem:[%s2157_s4 + $0x2c0] ss:$16 sps:$4 sm:$0xff]  }
  0x6c   : > { %1101 = vmatpush1.bf16.msra.mxu0 %v1782_v42  ;;  %1183 = vmatpush1.bf16.msra.mxu1 %v1783_v43  ;;  %v1862_v42 = vld [vmem:[%s2157_s4 + $0x2e0] ss:$16 sps:$4 sm:$0xff]   ;;  %v1865_v43 = vld [vmem:[%s2157_s4 + $0x2e8] ss:$16 sps:$4 sm:$0xff]  }
  0x6d   : > { %1102 = vmatprep.subr.bf16.mxu0 %v1784_v44  ;;  %1184 = vmatprep.subr.bf16.mxu1 %v1786_v45  ;;  %v1870_v44 = vld [vmem:[%s2157_s4 + $0x304] ss:$16 sps:$4 sm:$0xff]   ;;  %v1873_v45 = vld [vmem:[%s2157_s4 + $0x30c] ss:$16 sps:$4 sm:$0xff]  }
  0x70   : > { %1103 = vmatpush1.bf16.msra.mxu0 %v1788_v48  ;;  %1185 = vmatpush1.bf16.msra.mxu1 %v1789_v49  ;;  %v1871_v48 = vld [vmem:[%s2157_s4 + $0x308] ss:$16 sps:$4 sm:$0xff]   ;;  %v1876_v49 = vld [vmem:[%s2157_s4 + $0x324] ss:$16 sps:$4 sm:$0xff]  }
  0x71   : > { %1104 = vmatprep.subr.bf16.mxu0 %v1790_v50  ;;  %1186 = vmatprep.subr.bf16.mxu1 %v1792_v51  ;;  %v1879_v50 = vld [vmem:[%s2157_s4 + $0x32c] ss:$16 sps:$4 sm:$0xff]   ;;  %v1874_v51 = vld [vmem:[%s2157_s4 + $0x320] ss:$16 sps:$4 sm:$0xff]  }
  0x74   : > { %1105 = vmatpush1.bf16.msra.mxu0 %v1794_v54  ;;  %1187 = vmatpush1.bf16.msra.mxu1 %v1795_v55  ;;  %v1882_v54 = vld [vmem:[%s2157_s4 + $0x344] ss:$16 sps:$4 sm:$0xff]   ;;  %v1885_v55 = vld [vmem:[%s2157_s4 + $0x34c] ss:$16 sps:$4 sm:$0xff]  }
  0x75   : > { %1106 = vmatprep.subr.bf16.mxu0 %v1796_v57  ;;  %1188 = vmatprep.subr.bf16.mxu1 %v1798_v58  ;;  %v1883_v57 = vld [vmem:[%s2157_s4 + $0x348] ss:$16 sps:$4 sm:$0xff]   ;;  %v1888_v58 = vld [vmem:[%s2157_s4 + $0x364] ss:$16 sps:$4 sm:$0xff]  }
  0x78   : > { %1107 = vmatpush1.bf16.msra.mxu0 %v1800_v60  ;;  %1189 = vmatpush1.bf16.msra.mxu1 %v1801_v61  ;;  %v1886_v60 = vld [vmem:[%s2157_s4 + $0x360] ss:$16 sps:$4 sm:$0xff]   ;;  %v1889_v61 = vld [vmem:[%s2157_s4 + $0x368] ss:$16 sps:$4 sm:$0xff]  }
  0x79   : > { %1108 = vmatprep.subr.bf16.mxu0 %v1802_v62  ;;  %1190 = vmatprep.subr.bf16.mxu1 %v1804_v63  ;;  %v1894_v62 = vld [vmem:[%s2157_s4 + $0x384] ss:$16 sps:$4 sm:$0xff]   ;;  %v1897_v63 = vld [vmem:[%s2157_s4 + $0x38c] ss:$16 sps:$4 sm:$0xff]  }
  0x7c   : > { %1109 = vmatpush1.bf16.msra.mxu0 %v1806_v0  ;;  %1191 = vmatpush1.bf16.msra.mxu1 %v1807_v1  ;;  %v1892_v0 = vld [vmem:[%s2157_s4 + $0x380] ss:$16 sps:$4 sm:$0xff]   ;;  %v1895_v1 = vld [vmem:[%s2157_s4 + $0x388] ss:$16 sps:$4 sm:$0xff]  }
  0x7d   : > { %1110 = vmatprep.subr.bf16.mxu0 %v1808_v2  ;;  %1192 = vmatprep.subr.bf16.mxu1 %v1810_v3  ;;  %v1900_v2 = vld [vmem:[%s2157_s4 + $0x3a4] ss:$16 sps:$4 sm:$0xff]   ;;  %v1903_v3 = vld [vmem:[%s2157_s4 + $0x3ac] ss:$16 sps:$4 sm:$0xff]  }
  0x80   : > { %1111 = vmatpush1.bf16.msra.mxu0 %v1812_v4  ;;  %1193 = vmatpush1.bf16.msra.mxu1 %v1813_v5  ;;  %v1898_v4 = vld [vmem:[%s2157_s4 + $0x3a0] ss:$16 sps:$4 sm:$0xff]   ;;  %v1901_v5 = vld [vmem:[%s2157_s4 + $0x3a8] ss:$16 sps:$4 sm:$0xff]  }
  0x81   : > { %1112 = vmatprep.subr.bf16.mxu0 %v1814_v6  ;;  %1194 = vmatprep.subr.bf16.mxu1 %v1816_v7  ;;  %v1906_v6 = vld [vmem:[%s2157_s4 + $0x3c4] ss:$16 sps:$4 sm:$0xff]   ;;  %v1909_v7 = vld [vmem:[%s2157_s4 + $0x3cc] ss:$16 sps:$4 sm:$0xff]  }
  0x84   : > { %1113 = vmatpush1.bf16.msra.mxu0 %v1818_v8  ;;  %1195 = vmatpush1.bf16.msra.mxu1 %v1819_v9  ;;  %v1904_v8 = vld [vmem:[%s2157_s4 + $0x3c0] ss:$16 sps:$4 sm:$0xff]   ;;  %v1907_v9 = vld [vmem:[%s2157_s4 + $0x3c8] ss:$16 sps:$4 sm:$0xff]  }
  0x85   : > { %1123 = vmatprep.subr.bf16.mxu0 %v1822_v10  ;;  %1205 = vmatprep.subr.bf16.mxu1 %v1825_v11  ;;  %v1912_v10 = vld [vmem:[%s2157_s4 + $0x3e4] ss:$16 sps:$4 sm:$0xff]   ;;  %v1915_v11 = vld [vmem:[%s2157_s4 + $0x3ec] ss:$16 sps:$4 sm:$0xff]  }
  0x87   : > { %1115 = vmatmul.mubr.bf16.vlgmr.msra.gmra.mrb[0].mxu0 %v2261_v13  ;;  %1197 = vmatmul.mubr.bf16.vlgmr.msra.gmra.mrb[0].mxu1 %v2261_v13 }
  0x88   : > { %1124 = vmatpush1.bf16.msra.mxu0 %v1820_v12  ;;  %1206 = vmatpush1.bf16.msra.mxu1 %v1823_v14  ;;  %v1910_v12 = vld [vmem:[%s2157_s4 + $0x3e0] ss:$16 sps:$4 sm:$0xff]   ;;  %v1913_v14 = vld [vmem:[%s2157_s4 + $0x3e8] ss:$16 sps:$4 sm:$0xff]  }
  0x89   : > { %1125 = vmatprep.subr.bf16.mxu0 %v1828_v15  ;;  %1207 = vmatprep.subr.bf16.mxu1 %v1831_v16  ;;  %v436_v15 = vcombine.high %v2261_v13, %v2261_v13  ;;  %v2020_v16 = vmov 1983009808  }
  0x8a   : > { %1155 = vmatprep.mubr.bf16.mxu0 %v437_v17  ;;  %1237 = vmatprep.mubr.bf16.mxu1 %v437_v17  ;;  %v1253_v17 = vunpack.c.l.s4 %v2020_v16 }
  0x8c   : > { %1126 = vmatpush1.bf16.msra.mxu0 %v1826_v18  ;;  %1208 = vmatpush1.bf16.msra.mxu1 %v1829_v19  ;;  %v1254_v18 = vunpack.c.0.s8 %v1253_v17 }
  0x8d   : > { %1127 = vmatprep.subr.bf16.mxu0 %v1834_v20  ;;  %1209 = vmatprep.subr.bf16.mxu1 %v1837_v21 }
  0x8e   : > { %v1257_v21 = vsub.s32 %v1254_v18, %v2224_v47 }
  0x90   : > { %1128 = vmatpush1.bf16.msra.mxu0 %v1832_v22  ;;  %1210 = vmatpush1.bf16.msra.mxu1 %v1835_v23 }
  0x91   : > { %1129 = vmatprep.subr.bf16.mxu0 %v1840_v24  ;;  %1211 = vmatprep.subr.bf16.mxu1 %v1843_v25 }
  0x94   : > { %1130 = vmatpush1.bf16.msra.mxu0 %v1838_v26  ;;  %1212 = vmatpush1.bf16.msra.mxu1 %v1841_v27 }
  0x95   : > { %1131 = vmatprep.subr.bf16.mxu0 %v1846_v28  ;;  %1213 = vmatprep.subr.bf16.mxu1 %v1849_v29 }
  0x98   : > { %1132 = vmatpush1.bf16.msra.mxu0 %v1844_v30  ;;  %1214 = vmatpush1.bf16.msra.mxu1 %v1847_v31  ;;  %v283_v31 = vld [vmem:[#allocation2] sm:$0xff] }
  0x99   : > { %1133 = vmatprep.subr.bf16.mxu0 %v1852_v32  ;;  %1215 = vmatprep.subr.bf16.mxu1 %v1855_v33 }
  0x9c   : > { %1134 = vmatpush1.bf16.msra.mxu0 %v1850_v34  ;;  %1216 = vmatpush1.bf16.msra.mxu1 %v1853_v35  ;;  %v1275_v34 = vld [vmem:[%s267_s7] sm:$0xf] (!%p1632_p6)  ;;  %v1279_v35 = vsub.s32 (!%p1632_p6), 0, %v2224_v47 }
  0x9d   : > { %1135 = vmatprep.subr.bf16.mxu0 %v1858_v36  ;;  %1217 = vmatprep.subr.bf16.mxu1 %v1861_v37  ;;  %v1283_v36 = vsub.s32 (!%p1632_p6), 1, %v2224_v47  ;;  %v1287_v37 = vsub.s32 (!%p1632_p6), 2, %v2224_v47 }
  0xa0   : > { %1136 = vmatpush1.bf16.msra.mxu0 %v1856_v38  ;;  %1218 = vmatpush1.bf16.msra.mxu1 %v1859_v39  ;;  %v1291_v38 = vsub.s32 (!%p1632_p6), 3, %v2224_v47  ;;  %v1280_v39 = vrot.slane (!%p1632_p6), %v1275_v34, %v1279_v35 }
  0xa1   : > { %1137 = vmatprep.subr.bf16.mxu0 %v1864_v40  ;;  %1219 = vmatprep.subr.bf16.mxu1 %v1867_v41  ;;  %v1284_v40 = vrot.slane (!%p1632_p6), %v1275_v34, %v1283_v36  ;;  %v1288_v41 = vrot.slane (!%p1632_p6), %v1275_v34, %v1287_v37 }
  0xa4   : > { %1138 = vmatpush1.bf16.msra.mxu0 %v1862_v42  ;;  %1220 = vmatpush1.bf16.msra.mxu1 %v1865_v43  ;;  %v1292_v42 = vrot.slane (!%p1632_p6), %v1275_v34, %v1291_v38  ;;  %v1293_v43 = vcombine.low (!%p1632_p6), %v1280_v39, %v1284_v40 }
  0xa5   : > { %1139 = vmatprep.subr.bf16.mxu0 %v1870_v44  ;;  %1221 = vmatprep.subr.bf16.mxu1 %v1873_v45 }
  0xa6   : > { %v1294_v44 = vcombine.low (!%p1632_p6), %v1288_v41, %v1292_v42  ;;  %v1301_v45 = vrot.slane (!%p1632_p6), %v1293_v43, %v1257_v21 }
  0xa8   : > { %1140 = vmatpush1.bf16.msra.mxu0 %v1868_v46  ;;  %1222 = vmatpush1.bf16.msra.mxu1 %v1871_v48  ;;  %v1308_v46 = vrot.slane (!%p1632_p6), %v1294_v44, %v1257_v21 }
  0xa9   : > { %1141 = vmatprep.subr.bf16.mxu0 %v1876_v49  ;;  %1223 = vmatprep.subr.bf16.mxu1 %v1879_v50 }
  0xaa   : > { %v1309_v49 = vcombine.low (!%p1632_p6), %v1301_v45, %v1308_v46 }
  0xac   : > { %1142 = vmatpush1.bf16.msra.mxu0 %v1874_v51  ;;  %1224 = vmatpush1.bf16.msra.mxu1 %v1877_v53 }
  0xad   : > { %1143 = vmatprep.subr.bf16.mxu0 %v1882_v54  ;;  %1225 = vmatprep.subr.bf16.mxu1 %v1885_v55 }
  0xb0   : > { %1144 = vmatpush1.bf16.msra.mxu0 %v1880_v56  ;;  %1226 = vmatpush1.bf16.msra.mxu1 %v1883_v57 }
  0xb1   : > { %1145 = vmatprep.subr.bf16.mxu0 %v1888_v58  ;;  %1227 = vmatprep.subr.bf16.mxu1 %v1891_v59 }
  0xb4   : > { %1146 = vmatpush1.bf16.msra.mxu0 %v1886_v60  ;;  %1228 = vmatpush1.bf16.msra.mxu1 %v1889_v61 }
  0xb5   : > { %1147 = vmatprep.subr.bf16.mxu0 %v1894_v62  ;;  %1229 = vmatprep.subr.bf16.mxu1 %v1897_v63 }
  0xb8   : > { %1148 = vmatpush1.bf16.msra.mxu0 %v1892_v0  ;;  %1230 = vmatpush1.bf16.msra.mxu1 %v1895_v1 }
  0xb9   : > { %1149 = vmatprep.subr.bf16.mxu0 %v1900_v2  ;;  %1231 = vmatprep.subr.bf16.mxu1 %v1903_v3 }
  0xbc   : > { %1150 = vmatpush1.bf16.msra.mxu0 %v1898_v4  ;;  %1232 = vmatpush1.bf16.msra.mxu1 %v1901_v5 }
  0xbd   : > { %1151 = vmatprep.subr.bf16.mxu0 %v1906_v6  ;;  %1233 = vmatprep.subr.bf16.mxu1 %v1909_v7 }
  0xc0   : > { %1152 = vmatpush1.bf16.msra.mxu0 %v1904_v8  ;;  %1234 = vmatpush1.bf16.msra.mxu1 %v1907_v9 }
  0xc1   : > { %1153 = vmatprep.subr.bf16.mxu0 %v1912_v10  ;;  %1235 = vmatprep.subr.bf16.mxu1 %v1915_v11 }
  0xc4   : > { %1154 = vmatpush1.bf16.msra.mxu0 %v1910_v12  ;;  %1236 = vmatpush1.bf16.msra.mxu1 %v1913_v14 }
  0xc7   : > { %1156 = vmatmul.mubr.bf16.vlgmr.msra.gmra.mrb[0].mxu0 %v436_v15  ;;  %1238 = vmatmul.mubr.bf16.vlgmr.msra.gmra.mrb[0].mxu1 %v436_v15 }
 0x19a   : > { %v1157_v19 = vpop.f32.mrb[0].mxu0  ;;  %v1239_v20 = vpop.f32.mrb[0].mxu1 }
 0x19b   : > { %v1159_v22 = vpop.f32.mrb[1].mxu0  ;;  %v1241_v23 = vpop.f32.mrb[1].mxu1 }
 0x19c   : > { %v1250_v24 = vcombine.low %v1157_v19, %v1159_v22  ;;  %v1251_v25 = vcombine.low %v1239_v20, %v1241_v23  ;;  %v1161_v26 = vpop.f32.mrb[2].mxu0  ;;  %v1243_v27 = vpop.f32.mrb[2].mxu1 }
 0x19d   : > { %v1162_v28 = vpop.f32.mrb[3].mxu0  ;;  %v1244_v29 = vpop.f32.mrb[3].mxu1 }
 0x19e   : > { %v1258_v13 = vrot.slane %v1250_v24, %v1257_v21  ;;  %v1265_v30 = vrot.slane %v1251_v25, %v1257_v21  ;;  %1273 = sbr.rel (%p1632_p6) target bundleno = 445 (0x1bd), region = 44 }
 0x1a0   : > { %v1266_v32 = vcombine.low %v1258_v13, %v1265_v30 }
 0x1a2   : > { %v1268_v33 = vadd.f32 %v1266_v32, %v283_v31 }
 0x1a4   : > { %1269 = vst [vmem:[#allocation2] sm:$0xff] %v1268_v33 }
 0x1ab   : > { %v1274_v48 = vld [vmem:[#allocation2] sm:$0xff] }
 0x1ac   : > { %v1311_v50 = vadd.f32 %v1309_v49, %v1274_v48 }
 0x1ae   : > { %v1312_v51 = vmax.f32 %v1311_v50, 0.0 }
 0x1b0   : > { %v1314_v53 = vcombine.high %v1312_v51, %v1312_v51  ;;  %v1321_v54 = vrot.slane %v1312_v51, %v1257_v21 }
 0x1b2   : > { %v1328_v55 = vrot.slane %v1314_v53, %v1257_v21  ;;  %v1329_v56 = vcombine.high %v1321_v54, %v1321_v54 }
 0x1b4   : > { %v1330_v57 = vcombine.high %v1328_v55, %v1328_v55  ;;  %v1633_v58 = vpack.c.bf16 %v1329_v56, %v1321_v54 }
 0x1b6   : > { %v1634_v47 = vpack.c.bf16 %v1330_v57, %v1328_v55  ;;  %v1351_v59 = vrot.slane %v1633_v58, %v2231_v52 }
 0x1b8   : > { %v1358_v60 = vrot.slane %v1634_v47, %v2231_v52 }
 0x1ba   : > { %v1359_v61 = vcombine.low %v1351_v59, %v1358_v60 }
 0x1bc   : > { %1635 = vst.sshfl [vmem:[%s276_s16] sm:$0x55 pattern:$0x73625140] %v1359_v61 }
 0x1bd PF: > { %s16_s19 = sadd.s32 1, %s2012_s19   ;;  %s2377_s12 = smov %s1988_s13 }
 0x1be   : > { %p13_p8 = scmp.ge.s32.totalorder %s16_s19, 66   ;;  %s2378_s13 = smov %s1992_s14 }
 0x1bf   : > { %s2379_s14 = smov %s2108_s5  ;;  %s2380_s15 = smov %s2004_s17 }
 0x1c0   : > { %s2381_s16 = smov %s2008_s18  ;;  %s2382_s17 = smov %s2385_s21 }
 0x1c1   : > { %s2383_s18 = smov %s2389_s22  ;;  %15 = sbr.rel (!%p13_p8) target bundleno = 5 (0x5), region = 86 }
 0x1c8   :  { %1397 = vsyncpa [#allocation4], 1 }
 0x1c9   :  { %1399 = vsyncpa [#allocation4 + $0x1], 1 }

// kernel: vggnet_forward.28
= control target key start
LH: loop header
LB: loop body
LE: loop exit
PB: predicated region body
PF: predicated region fallthrough
CT: control target
= control target key end

     0   :  { %8 = vsyncpa [#allocation4], 0  ;;  %s2228_s0 = inlined_call_operand.vmem [shape: bf16[8,4608], index: 0, kind: input, shape index: {}]   ;;  %s2229_s1 = inlined_call_operand.hbm [shape: bf16[4608,512], index: 1, kind: input, shape index: {}]   ;;  %s2230_s2 = inlined_call_operand.vmem [shape: f32[1,512], index: 2, kind: input, shape index: {}]   ;;  %s2231_s3 = inlined_call_operand.vmem [shape: bf16[8,512], index: 3, kind: output, shape index: {}]  }
   0x1   :  { %10 = vsyncpa [#allocation4 + $0x1], 0  ;;  %s1948_s12 = smov 0   ;;  %s1950_s13 = smov 0  }
   0x2   :  { %s1952_s14 = smov 0   ;;  %s1954_s15 = smov 0  }
   0x3   :  { %s1956_s16 = smov 0   ;;  %s1958_s17 = smov 0  }
   0x4 LB: > { %s1432_s18 = sadd.s32 4294967295, %s1922_s17   ;;  %s28_s19 = sadd.s32 1, %s1918_s16  ;;  %s1922_s17 = sphi %s1958_s17, %s16_s17   ;;  %s1918_s16 = sphi %s1956_s16, %s2239_s16   ;;  %s1914_s15 = sphi %s1954_s15, %s2238_s15   ;;  %s1910_s14 = sphi %s1952_s14, %s2237_s14   ;;  %s1906_s13 = sphi %s1950_s13, %s2236_s13   ;;  %s1902_s12 = sphi %s1948_s12, %s2235_s12  }
   0x5   : > { %p29_p0 = scmp.ge.s32.totalorder %s28_s19, 9  ;;  %s72_s20 = sadd.s32 1, %s1910_s14 }
   0x6   : > { %p79_p1 = scmp.ne.s32.totalorder %s1910_s14, %s1906_s13  ;;  %p80_p2 = scmp.eq.s32.totalorder %s1922_s17, 0 }
   0x7   : > { %s2241_s19 = smov (%p29_p0, %s28_s19), 0  ;;  %p85_p4 = scmp.ne.s32.totalorder %s1906_s13, %s1902_s12 }
   0x8   : > { %p1984_p3 = por %p80_p2, %p79_p1  ;;  %s67_s22 = ssub.s32 %s1918_s16, %s2241_s19 }
   0x9   : > { %p86_p5 = scmp.eq.s32.totalorder %s1432_s18, 0  ;;  %p70_p6 = scmp.eq.s32.totalorder %s67_s22, 0 }
   0xa   : > { %p1594_p8 = scmp.lt.s32.totalorder %s1922_s17, 9  ;;  %s184_s25 = sand.u32 1, %s1910_s14  }
   0xb   : > { %p1991_p7 = por %p86_p5, %p85_p4  ;;  %s1585_s26 = sshll.u32 %s1918_s16, 14 }
   0xc   : > { %s1997_s24 = scalar_select %p70_p6, %s1910_s14, %s72_s20  }
   0xd   : > { %s1436_s27 = sshll.u32 %s184_s25, 10  ;;  %s2004_s30 = scalar_lea.hbm %s2229_s1, %s1585_s26 }
   0xe   : > { %s188_s4 = scalar_lea.vmem [#allocation3], %s1436_s27  ;;  %p2008_p9 = pnand %p1594_p8, %p1984_p3 }
   0xf   : > { %s198_s5 = sshll.u32 %s188_s4, 4  ;;  %s2014_s7 = scalar_lea.sflag [#allocation4], %s184_s25  ;;  %s2012_s5 = int_to_ptr.vmem [resolvable:$true] %s198_s5 }
  0x10   : > { %s1842_s8 = scalar_lea.hbm %s2004_s30, 16384  ;;  %p1844_p11 = pneg %p2008_p9 }
  0x11   : > { %p1843_p10 = scmp.ne.s32.totalorder %s2004_s30, %s1842_s8  ;;  %s1847_s11 = scalar_lea.hbm %s2229_s1, 147456 }
  0x12   : > { %p1848_p0 = scmp.lt.u32.totalorder %s2004_s30, %s2229_s1  ;;  %p1849_p1 = scmp.lt.u32.totalorder %s1847_s11, %s1842_s8 }
  0x13   : > { %p1845_p12 = pnand %p1844_p11, %p1843_p10  ;;  %p1851_p3 = scmp.lt.u32.totalorder %s1842_s8, %s2004_s30 }
  0x14   : > { %p1850_p2 = por %p1849_p1, %p1848_p0 }
  0x15   : > { %p1846_p13 = pneg %p1845_p12 }
  0x16   : > { %p1852_p4 = por %p1851_p3, %p1850_p2 }
  0x18   : > { %p1853_p5 = pnand %p1852_p4, %p1846_p13 }
  0x1a   : > { %1856 = shalt.err (!%p1853_p5)
}
  0x1b   : > { %s1857_s20 = scalar_lea.vmem %s2012_s5, 16384  ;;  %s1924_s21 = smov [#allocation3]  }
  0x1c   : > { %p1858_p6 = scmp.ne.s32.totalorder %s2012_s5, %s1857_s20  ;;  %s1862_s22 = sshll.u32 %s1924_s21, 4  ;;  %s1863_s22 = int_to_ptr.vmem [resolvable:$false] %s1862_s22 }
  0x1d   : > { %s1864_s25 = scalar_lea.vmem %s1863_s22, 32768  ;;  %p1865_p12 = scmp.lt.s32.totalorder %s2012_s5, %s1863_s22 }
  0x1e   : > { %p1860_p8 = pnand %p1858_p6, %p1844_p11  ;;  %p1866_p0 = scmp.lt.s32.totalorder %s1864_s25, %s1857_s20 }
  0x20   : > { %p1861_p10 = pneg %p1860_p8  ;;  %p1867_p1 = por %p1866_p0, %p1865_p12 }
  0x22   : > { %p1868_p2 = pnand %p1867_p1, %p1861_p10 }
  0x24   : > { %1871 = shalt.err (!%p1868_p2)
}
  0x25   : > { %s1925_s26 = smov 256   ;;  %s1926_s27 = smov 16  }
  0x26   : > { %1593 = dma.hbm_to_vmem [thread:$0]  (!%p2008_p9), %s2004_s30, 16384, %s2012_s5, %s2014_s7, %s1925_s26, %s1925_s26, %s1926_s27  }
  0x27   : > { %p1440_p11 = scmp.ge.s32.totalorder %s1922_s17, 1  ;;  %p206_p13 = scmp.lt.s32.totalorder %s1922_s17, 10 }
  0x29   : > { %p207_p3 = pnand %p1440_p11, %p206_p13 }
  0x2a   : > { %s212_s28 = sand.u32 (!%p207_p3), 1, %s1906_s13  }
  0x2b   : > { %210 = sbr.rel (%p207_p3) target bundleno = 422 (0x1a6), region = 32  ;;  %s1441_s29 = sshll.u32 (!%p207_p3), %s212_s28, 10 }
  0x2c   : > { %s213_s4 = scalar_lea.sflag (!%p207_p3), [#allocation4], %s212_s28  ;;  %s2045_s8 = scalar_lea.vmem (!%p207_p3), [#allocation3], %s1441_s29 }
  0x32   : > { %1897 = dma.done.wait (%p1991_p7), %s213_s4, 16384  }
  0x33   : > { %1899 = vsyncadd (%p1991_p7), %s213_s4, 4294950912  ;;  %s1442_s9 = sshll.u32 %s1914_s15, 2  ;;  %p1444_p9 = scmp.ne.s32.totalorder %s1914_s15, 0 }
  0x34   : > { %p259_p4 = scmp.lt.s32.totalorder %s1442_s9, 35  ;;  %v1927_v0 = vmov (!%p1444_p9), 0.0  }
  0x35   : > { %286 = sbr.rel (%p1444_p9) target bundleno = 60 (0x3c), region = 40  ;;  %287 = vst [vmem:[#allocation2] sm:$0xff] (!%p1444_p9), %v1927_v0  ;;  %288 = vst [vmem:[#allocation2 + $0x8] sm:$0xff] (!%p1444_p9), %v1927_v0 }
  0x36   : > { %s2243_s9 = smov (!%p259_p4, %s1442_s9), 35  ;;  %289 = vst [vmem:[#allocation2 + $0x10] sm:$0xff] (!%p1444_p9), %v1927_v0  ;;  %290 = vst [vmem:[#allocation2 + $0x18] sm:$0xff] (!%p1444_p9), %v1927_v0 }
  0x37   : > { %s1443_s30 = sshll.u32 %s2243_s9, 2 }
  0x38   : > { %s2055_s7 = scalar_lea.vmem %s2228_s0, %s1443_s30 }
  0x3c PF: > { %v1646_v1 = vld [vmem:[%s2045_s8 + $0x4] ss:$16 sps:$4 sm:$0xff]   ;;  %v1650_v3 = vld [vmem:[%s2045_s8] ss:$16 sps:$4 sm:$0xff]   ;;  %v296_v49 = vld [vmem:[%s2055_s7 + $0x8] sm:$0xff]  ;;  %p1577_p7 = scmp.ne.s32.totalorder %s1914_s15, 8 }
  0x3d   : > { %v1648_v2 = vld [vmem:[%s2045_s8 + $0x204] ss:$16 sps:$4 sm:$0xff]   ;;  %1079 = vmatprep.subr.bf16.mxu0 %v1646_v1  ;;  %v1651_v4 = vld [vmem:[%s2045_s8 + $0x200] ss:$16 sps:$4 sm:$0xff]   ;;  %v1448_v52 = vcombine.high %v296_v49, %v296_v49 }
  0x3e   : > { %1120 = vmatprep.subr.bf16.mxu1 %v1648_v2  ;;  %v1652_v5 = vld [vmem:[%s2045_s8 + $0x24] ss:$16 sps:$4 sm:$0xff]   ;;  %1080 = vmatpush1.bf16.msra.mxu0 %v1650_v3  ;;  %v1656_v7 = vld [vmem:[%s2045_s8 + $0x20] ss:$16 sps:$4 sm:$0xff]  }
  0x3f   : > { %1121 = vmatpush1.bf16.msra.mxu1 %v1651_v4  ;;  %v1654_v6 = vld [vmem:[%s2045_s8 + $0x224] ss:$16 sps:$4 sm:$0xff]   ;;  %1081 = vmatprep.subr.bf16.mxu0 %v1652_v5  ;;  %v1657_v8 = vld [vmem:[%s2045_s8 + $0x220] ss:$16 sps:$4 sm:$0xff]   ;;  %v1748_v5 = vld [vmem:[%s2045_s8 + $0xc] ss:$16 sps:$4 sm:$0xff]  }
  0x40   : > { %1122 = vmatprep.subr.bf16.mxu1 %v1654_v6  ;;  %v1658_v9 = vld [vmem:[%s2045_s8 + $0x44] ss:$16 sps:$4 sm:$0xff]   ;;  %v1662_v11 = vld [vmem:[%s2045_s8 + $0x40] ss:$16 sps:$4 sm:$0xff]   ;;  %1152 = vmatprep.mubr.bf16.mxu1 %v1448_v52  ;;  %v1751_v6 = vld [vmem:[%s2045_s8 + $0x20c] ss:$16 sps:$4 sm:$0xff]  }
  0x41   : > { %v1660_v10 = vld [vmem:[%s2045_s8 + $0x244] ss:$16 sps:$4 sm:$0xff]   ;;  %v1663_v12 = vld [vmem:[%s2045_s8 + $0x240] ss:$16 sps:$4 sm:$0xff]  }
  0x42   : > { %1082 = vmatpush1.bf16.msra.mxu0 %v1656_v7  ;;  %v1664_v13 = vld [vmem:[%s2045_s8 + $0x64] ss:$16 sps:$4 sm:$0xff]   ;;  %v1668_v15 = vld [vmem:[%s2045_s8 + $0x60] ss:$16 sps:$4 sm:$0xff]  }
  0x43   : > { %1123 = vmatpush1.bf16.msra.mxu1 %v1657_v8  ;;  %1083 = vmatprep.subr.bf16.mxu0 %v1658_v9  ;;  %v1666_v14 = vld [vmem:[%s2045_s8 + $0x264] ss:$16 sps:$4 sm:$0xff]   ;;  %v1669_v16 = vld [vmem:[%s2045_s8 + $0x260] ss:$16 sps:$4 sm:$0xff]   ;;  %v2131_v8 = vcombine.low %v296_v49, %v296_v49  ;;  %v1746_v9 = vld [vmem:[%s2045_s8 + $0x8] ss:$16 sps:$4 sm:$0xff]  }
  0x44   : > { %1124 = vmatprep.subr.bf16.mxu1 %v1660_v10  ;;  %v1670_v17 = vld [vmem:[%s2045_s8 + $0x84] ss:$16 sps:$4 sm:$0xff]   ;;  %v1674_v19 = vld [vmem:[%s2045_s8 + $0x80] ss:$16 sps:$4 sm:$0xff]   ;;  %v1749_v10 = vld [vmem:[%s2045_s8 + $0x208] ss:$16 sps:$4 sm:$0xff]  }
  0x45   : > { %v1672_v18 = vld [vmem:[%s2045_s8 + $0x284] ss:$16 sps:$4 sm:$0xff]   ;;  %v1675_v20 = vld [vmem:[%s2045_s8 + $0x280] ss:$16 sps:$4 sm:$0xff]   ;;  %v1806_v49 = vld [vmem:[%s2045_s8 + $0x148] ss:$16 sps:$4 sm:$0xff]  }
  0x46   : > { %1084 = vmatpush1.bf16.msra.mxu0 %v1662_v11  ;;  %v1676_v21 = vld [vmem:[%s2045_s8 + $0xa4] ss:$16 sps:$4 sm:$0xff]   ;;  %v1680_v23 = vld [vmem:[%s2045_s8 + $0xa0] ss:$16 sps:$4 sm:$0xff]   ;;  %v1754_v11 = vld [vmem:[%s2045_s8 + $0x2c] ss:$16 sps:$4 sm:$0xff]  }
  0x47   : > { %1125 = vmatpush1.bf16.msra.mxu1 %v1663_v12  ;;  %1085 = vmatprep.subr.bf16.mxu0 %v1664_v13  ;;  %v1678_v22 = vld [vmem:[%s2045_s8 + $0x2a4] ss:$16 sps:$4 sm:$0xff]   ;;  %v1681_v24 = vld [vmem:[%s2045_s8 + $0x2a0] ss:$16 sps:$4 sm:$0xff]   ;;  %v1757_v12 = vld [vmem:[%s2045_s8 + $0x22c] ss:$16 sps:$4 sm:$0xff]  }
  0x48   : > { %1126 = vmatprep.subr.bf16.mxu1 %v1666_v14  ;;  %v1682_v25 = vld [vmem:[%s2045_s8 + $0xc4] ss:$16 sps:$4 sm:$0xff]   ;;  %v1686_v27 = vld [vmem:[%s2045_s8 + $0xc0] ss:$16 sps:$4 sm:$0xff]   ;;  %v1752_v13 = vld [vmem:[%s2045_s8 + $0x28] ss:$16 sps:$4 sm:$0xff]  }
  0x49   : > { %v1684_v26 = vld [vmem:[%s2045_s8 + $0x2c4] ss:$16 sps:$4 sm:$0xff]   ;;  %v1687_v28 = vld [vmem:[%s2045_s8 + $0x2c0] ss:$16 sps:$4 sm:$0xff]   ;;  %v1755_v14 = vld [vmem:[%s2045_s8 + $0x228] ss:$16 sps:$4 sm:$0xff]  }
  0x4a   : > { %1086 = vmatpush1.bf16.msra.mxu0 %v1668_v15  ;;  %v1688_v29 = vld [vmem:[%s2045_s8 + $0xe4] ss:$16 sps:$4 sm:$0xff]   ;;  %v1692_v31 = vld [vmem:[%s2045_s8 + $0xe0] ss:$16 sps:$4 sm:$0xff]   ;;  %v1760_v15 = vld [vmem:[%s2045_s8 + $0x4c] ss:$16 sps:$4 sm:$0xff]  }
  0x4b   : > { %1127 = vmatpush1.bf16.msra.mxu1 %v1669_v16  ;;  %1087 = vmatprep.subr.bf16.mxu0 %v1670_v17  ;;  %v1690_v30 = vld [vmem:[%s2045_s8 + $0x2e4] ss:$16 sps:$4 sm:$0xff]   ;;  %v1693_v32 = vld [vmem:[%s2045_s8 + $0x2e0] ss:$16 sps:$4 sm:$0xff]   ;;  %v1763_v16 = vld [vmem:[%s2045_s8 + $0x24c] ss:$16 sps:$4 sm:$0xff]  }
  0x4c   : > { %1128 = vmatprep.subr.bf16.mxu1 %v1672_v18  ;;  %v1694_v33 = vld [vmem:[%s2045_s8 + $0x104] ss:$16 sps:$4 sm:$0xff]   ;;  %v1698_v35 = vld [vmem:[%s2045_s8 + $0x100] ss:$16 sps:$4 sm:$0xff]   ;;  %v1758_v17 = vld [vmem:[%s2045_s8 + $0x48] ss:$16 sps:$4 sm:$0xff]  }
  0x4d   : > { %v1696_v34 = vld [vmem:[%s2045_s8 + $0x304] ss:$16 sps:$4 sm:$0xff]   ;;  %v1699_v36 = vld [vmem:[%s2045_s8 + $0x300] ss:$16 sps:$4 sm:$0xff]   ;;  %v1761_v18 = vld [vmem:[%s2045_s8 + $0x248] ss:$16 sps:$4 sm:$0xff]  }
  0x4e   : > { %1088 = vmatpush1.bf16.msra.mxu0 %v1674_v19  ;;  %v1700_v37 = vld [vmem:[%s2045_s8 + $0x124] ss:$16 sps:$4 sm:$0xff]   ;;  %v1704_v39 = vld [vmem:[%s2045_s8 + $0x120] ss:$16 sps:$4 sm:$0xff]   ;;  %v1766_v19 = vld [vmem:[%s2045_s8 + $0x6c] ss:$16 sps:$4 sm:$0xff]  }
  0x4f   : > { %1129 = vmatpush1.bf16.msra.mxu1 %v1675_v20  ;;  %1089 = vmatprep.subr.bf16.mxu0 %v1676_v21  ;;  %v1702_v38 = vld [vmem:[%s2045_s8 + $0x324] ss:$16 sps:$4 sm:$0xff]   ;;  %v1705_v40 = vld [vmem:[%s2045_s8 + $0x320] ss:$16 sps:$4 sm:$0xff]   ;;  %v1769_v20 = vld [vmem:[%s2045_s8 + $0x26c] ss:$16 sps:$4 sm:$0xff]  }
  0x50   : > { %1130 = vmatprep.subr.bf16.mxu1 %v1678_v22  ;;  %v1706_v41 = vld [vmem:[%s2045_s8 + $0x144] ss:$16 sps:$4 sm:$0xff]   ;;  %v1710_v43 = vld [vmem:[%s2045_s8 + $0x140] ss:$16 sps:$4 sm:$0xff]   ;;  %v1764_v21 = vld [vmem:[%s2045_s8 + $0x68] ss:$16 sps:$4 sm:$0xff]  }
  0x51   : > { %v1708_v42 = vld [vmem:[%s2045_s8 + $0x344] ss:$16 sps:$4 sm:$0xff]   ;;  %v1711_v44 = vld [vmem:[%s2045_s8 + $0x340] ss:$16 sps:$4 sm:$0xff]   ;;  %v1767_v22 = vld [vmem:[%s2045_s8 + $0x268] ss:$16 sps:$4 sm:$0xff]  }
  0x52   : > { %1090 = vmatpush1.bf16.msra.mxu0 %v1680_v23  ;;  %v1712_v45 = vld [vmem:[%s2045_s8 + $0x164] ss:$16 sps:$4 sm:$0xff]   ;;  %v1716_v50 = vld [vmem:[%s2045_s8 + $0x160] ss:$16 sps:$4 sm:$0xff]   ;;  %v1772_v23 = vld [vmem:[%s2045_s8 + $0x8c] ss:$16 sps:$4 sm:$0xff]  }
  0x53   : > { %1131 = vmatpush1.bf16.msra.mxu1 %v1681_v24  ;;  %1091 = vmatprep.subr.bf16.mxu0 %v1682_v25  ;;  %v1714_v46 = vld [vmem:[%s2045_s8 + $0x364] ss:$16 sps:$4 sm:$0xff]   ;;  %v1717_v51 = vld [vmem:[%s2045_s8 + $0x360] ss:$16 sps:$4 sm:$0xff]   ;;  %v1775_v24 = vld [vmem:[%s2045_s8 + $0x28c] ss:$16 sps:$4 sm:$0xff]  }
  0x54   : > { %1132 = vmatprep.subr.bf16.mxu1 %v1684_v26  ;;  %v295_v47 = vld [vmem:[%s2055_s7] sm:$0xff]  ;;  %v1770_v25 = vld [vmem:[%s2045_s8 + $0x88] ss:$16 sps:$4 sm:$0xff]  }
  0x55   : > { %v2105_v48 = vcombine.high %v295_v47, %v295_v47  ;;  %v1718_v53 = vld [vmem:[%s2045_s8 + $0x184] ss:$16 sps:$4 sm:$0xff]   ;;  %v1722_v55 = vld [vmem:[%s2045_s8 + $0x180] ss:$16 sps:$4 sm:$0xff]   ;;  %v2129_v7 = vcombine.low %v295_v47, %v295_v47  ;;  %v1773_v26 = vld [vmem:[%s2045_s8 + $0x288] ss:$16 sps:$4 sm:$0xff]  }
  0x56   : > { %1092 = vmatpush1.bf16.msra.mxu0 %v1686_v27  ;;  %v1720_v54 = vld [vmem:[%s2045_s8 + $0x384] ss:$16 sps:$4 sm:$0xff]   ;;  %v1723_v56 = vld [vmem:[%s2045_s8 + $0x380] ss:$16 sps:$4 sm:$0xff]   ;;  %v1778_v27 = vld [vmem:[%s2045_s8 + $0xac] ss:$16 sps:$4 sm:$0xff]  }
  0x57   : > { %1133 = vmatpush1.bf16.msra.mxu1 %v1687_v28  ;;  %1093 = vmatprep.subr.bf16.mxu0 %v1688_v29  ;;  %v1724_v57 = vld [vmem:[%s2045_s8 + $0x1a4] ss:$16 sps:$4 sm:$0xff]   ;;  %v1728_v59 = vld [vmem:[%s2045_s8 + $0x1a0] ss:$16 sps:$4 sm:$0xff]   ;;  %v1781_v28 = vld [vmem:[%s2045_s8 + $0x2ac] ss:$16 sps:$4 sm:$0xff]  }
  0x58   : > { %1134 = vmatprep.subr.bf16.mxu1 %v1690_v30  ;;  %1111 = vmatprep.mubr.bf16.mxu0 %v2105_v48  ;;  %v1726_v58 = vld [vmem:[%s2045_s8 + $0x3a4] ss:$16 sps:$4 sm:$0xff]   ;;  %v1729_v60 = vld [vmem:[%s2045_s8 + $0x3a0] ss:$16 sps:$4 sm:$0xff]   ;;  %v1776_v29 = vld [vmem:[%s2045_s8 + $0xa8] ss:$16 sps:$4 sm:$0xff]  }
  0x59   : > { %v1730_v61 = vld [vmem:[%s2045_s8 + $0x1c4] ss:$16 sps:$4 sm:$0xff]   ;;  %v1734_v63 = vld [vmem:[%s2045_s8 + $0x1c0] ss:$16 sps:$4 sm:$0xff]   ;;  %v1779_v30 = vld [vmem:[%s2045_s8 + $0x2a8] ss:$16 sps:$4 sm:$0xff]  }
  0x5a   : > { %1094 = vmatpush1.bf16.msra.mxu0 %v1692_v31  ;;  %v1732_v62 = vld [vmem:[%s2045_s8 + $0x3c4] ss:$16 sps:$4 sm:$0xff]   ;;  %v1735_v0 = vld [vmem:[%s2045_s8 + $0x3c0] ss:$16 sps:$4 sm:$0xff]   ;;  %v1784_v31 = vld [vmem:[%s2045_s8 + $0xcc] ss:$16 sps:$4 sm:$0xff]  }
  0x5b   : > { %1135 = vmatpush1.bf16.msra.mxu1 %v1693_v32  ;;  %1095 = vmatprep.subr.bf16.mxu0 %v1694_v33  ;;  %v1736_v1 = vld [vmem:[%s2045_s8 + $0x1e4] ss:$16 sps:$4 sm:$0xff]   ;;  %v1740_v3 = vld [vmem:[%s2045_s8 + $0x1e0] ss:$16 sps:$4 sm:$0xff]   ;;  %v1787_v32 = vld [vmem:[%s2045_s8 + $0x2cc] ss:$16 sps:$4 sm:$0xff]  }
  0x5c   : > { %1136 = vmatprep.subr.bf16.mxu1 %v1696_v34  ;;  %v1738_v2 = vld [vmem:[%s2045_s8 + $0x3e4] ss:$16 sps:$4 sm:$0xff]   ;;  %v1741_v4 = vld [vmem:[%s2045_s8 + $0x3e0] ss:$16 sps:$4 sm:$0xff]   ;;  %v1782_v33 = vld [vmem:[%s2045_s8 + $0xc8] ss:$16 sps:$4 sm:$0xff]  }
  0x5d   : > { %v1785_v34 = vld [vmem:[%s2045_s8 + $0x2c8] ss:$16 sps:$4 sm:$0xff]   ;;  %v1808_v47 = vld [vmem:[%s2045_s8 + $0x14c] ss:$16 sps:$4 sm:$0xff]  }
  0x5e   : > { %1096 = vmatpush1.bf16.msra.mxu0 %v1698_v35  ;;  %v1790_v35 = vld [vmem:[%s2045_s8 + $0xec] ss:$16 sps:$4 sm:$0xff]  }
  0x5f   : > { %1137 = vmatpush1.bf16.msra.mxu1 %v1699_v36  ;;  %1097 = vmatprep.subr.bf16.mxu0 %v1700_v37  ;;  %v1793_v36 = vld [vmem:[%s2045_s8 + $0x2ec] ss:$16 sps:$4 sm:$0xff]   ;;  %v1788_v37 = vld [vmem:[%s2045_s8 + $0xe8] ss:$16 sps:$4 sm:$0xff]  }
  0x60   : > { %1138 = vmatprep.subr.bf16.mxu1 %v1702_v38  ;;  %v1791_v38 = vld [vmem:[%s2045_s8 + $0x2e8] ss:$16 sps:$4 sm:$0xff]  }
  0x62   : > { %1098 = vmatpush1.bf16.msra.mxu0 %v1704_v39  ;;  %v1796_v39 = vld [vmem:[%s2045_s8 + $0x10c] ss:$16 sps:$4 sm:$0xff]  }
  0x63   : > { %1139 = vmatpush1.bf16.msra.mxu1 %v1705_v40  ;;  %1099 = vmatprep.subr.bf16.mxu0 %v1706_v41  ;;  %v1799_v40 = vld [vmem:[%s2045_s8 + $0x30c] ss:$16 sps:$4 sm:$0xff]   ;;  %v1794_v41 = vld [vmem:[%s2045_s8 + $0x108] ss:$16 sps:$4 sm:$0xff]  }
  0x64   : > { %1140 = vmatprep.subr.bf16.mxu1 %v1708_v42  ;;  %v1797_v42 = vld [vmem:[%s2045_s8 + $0x308] ss:$16 sps:$4 sm:$0xff]  }
  0x66   : > { %1100 = vmatpush1.bf16.msra.mxu0 %v1710_v43  ;;  %v1802_v43 = vld [vmem:[%s2045_s8 + $0x12c] ss:$16 sps:$4 sm:$0xff]  }
  0x67   : > { %1141 = vmatpush1.bf16.msra.mxu1 %v1711_v44  ;;  %1101 = vmatprep.subr.bf16.mxu0 %v1712_v45  ;;  %v1805_v44 = vld [vmem:[%s2045_s8 + $0x32c] ss:$16 sps:$4 sm:$0xff]   ;;  %v1800_v45 = vld [vmem:[%s2045_s8 + $0x128] ss:$16 sps:$4 sm:$0xff]  }
  0x68   : > { %1142 = vmatprep.subr.bf16.mxu1 %v1714_v46  ;;  %v1803_v46 = vld [vmem:[%s2045_s8 + $0x328] ss:$16 sps:$4 sm:$0xff]  }
  0x6a   : > { %1102 = vmatpush1.bf16.msra.mxu0 %v1716_v50  ;;  %v1809_v50 = vld [vmem:[%s2045_s8 + $0x348] ss:$16 sps:$4 sm:$0xff]  }
  0x6b   : > { %1143 = vmatpush1.bf16.msra.mxu1 %v1717_v51  ;;  %1103 = vmatprep.subr.bf16.mxu0 %v1718_v53  ;;  %v1814_v51 = vld [vmem:[%s2045_s8 + $0x16c] ss:$16 sps:$4 sm:$0xff]   ;;  %v1812_v53 = vld [vmem:[%s2045_s8 + $0x168] ss:$16 sps:$4 sm:$0xff]  }
  0x6c   : > { %1144 = vmatprep.subr.bf16.mxu1 %v1720_v54  ;;  %v1815_v54 = vld [vmem:[%s2045_s8 + $0x368] ss:$16 sps:$4 sm:$0xff]  }
  0x6e   : > { %1104 = vmatpush1.bf16.msra.mxu0 %v1722_v55  ;;  %v1820_v55 = vld [vmem:[%s2045_s8 + $0x18c] ss:$16 sps:$4 sm:$0xff]  }
  0x6f   : > { %1145 = vmatpush1.bf16.msra.mxu1 %v1723_v56  ;;  %1105 = vmatprep.subr.bf16.mxu0 %v1724_v57  ;;  %v1823_v56 = vld [vmem:[%s2045_s8 + $0x38c] ss:$16 sps:$4 sm:$0xff]   ;;  %v1818_v57 = vld [vmem:[%s2045_s8 + $0x188] ss:$16 sps:$4 sm:$0xff]  }
  0x70   : > { %1146 = vmatprep.subr.bf16.mxu1 %v1726_v58  ;;  %v1821_v58 = vld [vmem:[%s2045_s8 + $0x388] ss:$16 sps:$4 sm:$0xff]  }
  0x72   : > { %1106 = vmatpush1.bf16.msra.mxu0 %v1728_v59  ;;  %v1826_v59 = vld [vmem:[%s2045_s8 + $0x1ac] ss:$16 sps:$4 sm:$0xff]  }
  0x73   : > { %1147 = vmatpush1.bf16.msra.mxu1 %v1729_v60  ;;  %1107 = vmatprep.subr.bf16.mxu0 %v1730_v61  ;;  %v1829_v60 = vld [vmem:[%s2045_s8 + $0x3ac] ss:$16 sps:$4 sm:$0xff]   ;;  %v1824_v61 = vld [vmem:[%s2045_s8 + $0x1a8] ss:$16 sps:$4 sm:$0xff]  }
  0x74   : > { %1148 = vmatprep.subr.bf16.mxu1 %v1732_v62  ;;  %v1827_v62 = vld [vmem:[%s2045_s8 + $0x3a8] ss:$16 sps:$4 sm:$0xff]  }
  0x76   : > { %1108 = vmatpush1.bf16.msra.mxu0 %v1734_v63  ;;  %v1832_v63 = vld [vmem:[%s2045_s8 + $0x1cc] ss:$16 sps:$4 sm:$0xff]  }
  0x77   : > { %1149 = vmatpush1.bf16.msra.mxu1 %v1735_v0  ;;  %1109 = vmatprep.subr.bf16.mxu0 %v1736_v1  ;;  %v1835_v0 = vld [vmem:[%s2045_s8 + $0x3cc] ss:$16 sps:$4 sm:$0xff]   ;;  %v1830_v1 = vld [vmem:[%s2045_s8 + $0x1c8] ss:$16 sps:$4 sm:$0xff]  }
  0x78   : > { %1150 = vmatprep.subr.bf16.mxu1 %v1738_v2  ;;  %v1833_v2 = vld [vmem:[%s2045_s8 + $0x3c8] ss:$16 sps:$4 sm:$0xff]  }
  0x7a   : > { %1110 = vmatpush1.bf16.msra.mxu0 %v1740_v3  ;;  %v1838_v3 = vld [vmem:[%s2045_s8 + $0x1ec] ss:$16 sps:$4 sm:$0xff]  }
  0x7b   : > { %1151 = vmatpush1.bf16.msra.mxu1 %v1741_v4  ;;  %1161 = vmatprep.subr.bf16.mxu0 %v1748_v5  ;;  %v1841_v4 = vld [vmem:[%s2045_s8 + $0x3ec] ss:$16 sps:$4 sm:$0xff]   ;;  %v1836_v5 = vld [vmem:[%s2045_s8 + $0x1e8] ss:$16 sps:$4 sm:$0xff]  }
  0x7c   : > { %1202 = vmatprep.subr.bf16.mxu1 %v1751_v6  ;;  %v1839_v6 = vld [vmem:[%s2045_s8 + $0x3e8] ss:$16 sps:$4 sm:$0xff]  }
  0x7d   : > { %1112 = vmatmul.mubr.bf16.vlgmr.msra.gmra.mrb[0].mxu0 %v2129_v7 }
  0x7e   : > { %1153 = vmatmul.mubr.bf16.vlgmr.msra.gmra.mrb[0].mxu1 %v2131_v8  ;;  %1162 = vmatpush1.bf16.msra.mxu0 %v1746_v9 }
  0x7f   : > { %1203 = vmatpush1.bf16.msra.mxu1 %v1749_v10  ;;  %1163 = vmatprep.subr.bf16.mxu0 %v1754_v11  ;;  %v291_v10 = vld [vmem:[#allocation2] sm:$0xff] }
  0x80   : > { %1204 = vmatprep.subr.bf16.mxu1 %v1757_v12  ;;  %1193 = vmatprep.mubr.bf16.mxu0 %v2105_v48  ;;  %v1811_v48 = vld [vmem:[%s2045_s8 + $0x34c] ss:$16 sps:$4 sm:$0xff]  }
  0x81   : > { %1234 = vmatprep.mubr.bf16.mxu1 %v1448_v52  ;;  %v1817_v52 = vld [vmem:[%s2045_s8 + $0x36c] ss:$16 sps:$4 sm:$0xff]  }
  0x82   : > { %1164 = vmatpush1.bf16.msra.mxu0 %v1752_v13 }
  0x83   : > { %1205 = vmatpush1.bf16.msra.mxu1 %v1755_v14  ;;  %1165 = vmatprep.subr.bf16.mxu0 %v1760_v15  ;;  %v292_v14 = vld [vmem:[#allocation2 + $0x8] sm:$0xff] }
  0x84   : > { %1206 = vmatprep.subr.bf16.mxu1 %v1763_v16 }
  0x86   : > { %1166 = vmatpush1.bf16.msra.mxu0 %v1758_v17 }
  0x87   : > { %1207 = vmatpush1.bf16.msra.mxu1 %v1761_v18  ;;  %1167 = vmatprep.subr.bf16.mxu0 %v1766_v19 }
  0x88   : > { %1208 = vmatprep.subr.bf16.mxu1 %v1769_v20 }
  0x8a   : > { %1168 = vmatpush1.bf16.msra.mxu0 %v1764_v21 }
  0x8b   : > { %1209 = vmatpush1.bf16.msra.mxu1 %v1767_v22  ;;  %1169 = vmatprep.subr.bf16.mxu0 %v1772_v23 }
  0x8c   : > { %1210 = vmatprep.subr.bf16.mxu1 %v1775_v24 }
  0x8e   : > { %1170 = vmatpush1.bf16.msra.mxu0 %v1770_v25 }
  0x8f   : > { %1211 = vmatpush1.bf16.msra.mxu1 %v1773_v26  ;;  %1171 = vmatprep.subr.bf16.mxu0 %v1778_v27  ;;  %v294_v26 = vld [vmem:[#allocation2 + $0x18] sm:$0xff] }
  0x90   : > { %1212 = vmatprep.subr.bf16.mxu1 %v1781_v28 }
  0x92   : > { %1172 = vmatpush1.bf16.msra.mxu0 %v1776_v29 }
  0x93   : > { %1213 = vmatpush1.bf16.msra.mxu1 %v1779_v30  ;;  %1173 = vmatprep.subr.bf16.mxu0 %v1784_v31 }
  0x94   : > { %1214 = vmatprep.subr.bf16.mxu1 %v1787_v32 }
  0x96   : > { %1174 = vmatpush1.bf16.msra.mxu0 %v1782_v33 }
  0x97   : > { %1215 = vmatpush1.bf16.msra.mxu1 %v1785_v34  ;;  %1175 = vmatprep.subr.bf16.mxu0 %v1790_v35  ;;  %v1261_v35 = vlaneseq (!%p1577_p7) }
  0x98   : > { %1216 = vmatprep.subr.bf16.mxu1 %v1793_v36 }
  0x99   : > { %v1262_v36 = vshrl.u32 (!%p1577_p7), %v1261_v35, 7 }
  0x9a   : > { %1176 = vmatpush1.bf16.msra.mxu0 %v1788_v37  ;;  %v1259_v37 = vld [vmem:[%s2230_s2] sm:$0xf] (!%p1577_p7) }
  0x9b   : > { %1217 = vmatpush1.bf16.msra.mxu1 %v1791_v38  ;;  %1177 = vmatprep.subr.bf16.mxu0 %v1796_v39  ;;  %v1263_v39 = vsub.s32 (!%p1577_p7), 0, %v1262_v36 }
  0x9c   : > { %1218 = vmatprep.subr.bf16.mxu1 %v1799_v40  ;;  %v1267_v40 = vsub.s32 (!%p1577_p7), 1, %v1262_v36 }
  0x9e   : > { %1178 = vmatpush1.bf16.msra.mxu0 %v1794_v41  ;;  %v1271_v41 = vsub.s32 (!%p1577_p7), 2, %v1262_v36 }
  0x9f   : > { %1219 = vmatpush1.bf16.msra.mxu1 %v1797_v42  ;;  %1179 = vmatprep.subr.bf16.mxu0 %v1802_v43  ;;  %v1275_v42 = vsub.s32 (!%p1577_p7), 3, %v1262_v36 }
  0xa0   : > { %1220 = vmatprep.subr.bf16.mxu1 %v1805_v44 }
  0xa2   : > { %1180 = vmatpush1.bf16.msra.mxu0 %v1800_v45 }
  0xa3   : > { %1221 = vmatpush1.bf16.msra.mxu1 %v1803_v46  ;;  %1181 = vmatprep.subr.bf16.mxu0 %v1808_v47  ;;  %v1264_v46 = vrot.slane (!%p1577_p7), %v1259_v37, %v1263_v39  ;;  %v1268_v47 = vrot.slane (!%p1577_p7), %v1259_v37, %v1267_v40 }
  0xa4   : > { %1222 = vmatprep.subr.bf16.mxu1 %v1811_v48  ;;  %v1272_v48 = vrot.slane (!%p1577_p7), %v1259_v37, %v1271_v41 }
  0xa6   : > { %1182 = vmatpush1.bf16.msra.mxu0 %v1806_v49  ;;  %v1276_v49 = vrot.slane (!%p1577_p7), %v1259_v37, %v1275_v42 }
  0xa7   : > { %1223 = vmatpush1.bf16.msra.mxu1 %v1809_v50  ;;  %1183 = vmatprep.subr.bf16.mxu0 %v1814_v51 }
  0xa8   : > { %1224 = vmatprep.subr.bf16.mxu1 %v1817_v52 }
  0xaa   : > { %1184 = vmatpush1.bf16.msra.mxu0 %v1812_v53 }
  0xab   : > { %1225 = vmatpush1.bf16.msra.mxu1 %v1815_v54  ;;  %1185 = vmatprep.subr.bf16.mxu0 %v1820_v55 }
  0xac   : > { %1226 = vmatprep.subr.bf16.mxu1 %v1823_v56 }
  0xae   : > { %1186 = vmatpush1.bf16.msra.mxu0 %v1818_v57 }
  0xaf   : > { %1227 = vmatpush1.bf16.msra.mxu1 %v1821_v58  ;;  %1187 = vmatprep.subr.bf16.mxu0 %v1826_v59 }
  0xb0   : > { %1228 = vmatprep.subr.bf16.mxu1 %v1829_v60 }
  0xb2   : > { %1188 = vmatpush1.bf16.msra.mxu0 %v1824_v61 }
  0xb3   : > { %1229 = vmatpush1.bf16.msra.mxu1 %v1827_v62  ;;  %1189 = vmatprep.subr.bf16.mxu0 %v1832_v63 }
  0xb4   : > { %1230 = vmatprep.subr.bf16.mxu1 %v1835_v0 }
  0xb6   : > { %1190 = vmatpush1.bf16.msra.mxu0 %v1830_v1 }
  0xb7   : > { %1231 = vmatpush1.bf16.msra.mxu1 %v1833_v2  ;;  %1191 = vmatprep.subr.bf16.mxu0 %v1838_v3 }
  0xb8   : > { %1232 = vmatprep.subr.bf16.mxu1 %v1841_v4 }
  0xba   : > { %1192 = vmatpush1.bf16.msra.mxu0 %v1836_v5 }
  0xbb   : > { %1233 = vmatpush1.bf16.msra.mxu1 %v1839_v6 }
  0xbd   : > { %1194 = vmatmul.mubr.bf16.vlgmr.msra.gmra.mrb[4].mxu0 %v2129_v7  ;;  %v293_v7 = vld [vmem:[#allocation2 + $0x10] sm:$0xff] }
  0xbe   : > { %1235 = vmatmul.mubr.bf16.vlgmr.msra.gmra.mrb[4].mxu1 %v2131_v8 }
 0x150   : > { %v1113_v9 = vpop.f32.mrb[0].mxu0 }
 0x151   : > { %v1154_v11 = vpop.f32.mrb[0].mxu1  ;;  %v1115_v13 = vpop.f32.mrb[1].mxu0 }
 0x152   : > { %v1155_v12 = vadd.f32 %v1154_v11, %v1113_v9  ;;  %v1156_v15 = vpop.f32.mrb[1].mxu1  ;;  %v1117_v17 = vpop.f32.mrb[2].mxu0 }
 0x153   : > { %v1157_v16 = vadd.f32 %v1156_v15, %v1115_v13  ;;  %v1158_v18 = vpop.f32.mrb[2].mxu1  ;;  %v1118_v20 = vpop.f32.mrb[3].mxu0 }
 0x154   : > { %v1243_v19 = vadd.f32 %v1155_v12, %v291_v10  ;;  %v1159_v21 = vpop.f32.mrb[3].mxu1 }
 0x155   : > { %v1244_v22 = vadd.f32 %v1157_v16, %v292_v14 }
 0x156   : > { %1247 = vst [vmem:[#allocation2] sm:$0xff] %v1243_v19 }
 0x157   : > { %1248 = vst [vmem:[#allocation2 + $0x8] sm:$0xff] %v1244_v22 }
 0x15d   : > { %v1255_v38 = vld [vmem:[#allocation2] sm:$0xff] (!%p1577_p7) }
 0x15e   : > { %v1256_v43 = vld [vmem:[#allocation2 + $0x8] sm:$0xff] (!%p1577_p7)  ;;  %v1281_v50 = vadd.f32 (!%p1577_p7), %v1264_v46, %v1255_v38 }
 0x15f   : > { %v1282_v51 = vadd.f32 (!%p1577_p7), %v1268_v47, %v1256_v43 }
 0x160   : > { %v1285_v54 = vmax.f32 (!%p1577_p7), %v1281_v50, 0.0 }
 0x161   : > { %v1286_v55 = vmax.f32 (!%p1577_p7), %v1282_v51, 0.0 }
 0x163   : > { %v1586_v58 = vpack.c.bf16 (!%p1577_p7), %v1286_v55, %v1285_v54 }
 0x165   : > { %1305 = vst [vmem:[%s2231_s3] sm:$0xff] (!%p1577_p7), %v1586_v58 }
 0x190   : > { %v1195_v23 = vpop.f32.mrb[4].mxu0 }
 0x191   : > { %v1236_v24 = vpop.f32.mrb[4].mxu1  ;;  %v1197_v25 = vpop.f32.mrb[5].mxu0  ;;  %1254 = sbr.rel (%p1577_p7) target bundleno = 422 (0x1a6), region = 44 }
 0x192   : > { %v1237_v8 = vadd.f32 %v1236_v24, %v1195_v23  ;;  %v1238_v27 = vpop.f32.mrb[5].mxu1  ;;  %v1199_v29 = vpop.f32.mrb[6].mxu0 }
 0x193   : > { %v1239_v28 = vadd.f32 %v1238_v27, %v1197_v25  ;;  %v1240_v30 = vpop.f32.mrb[6].mxu1  ;;  %v1200_v32 = vpop.f32.mrb[7].mxu0 }
 0x194   : > { %v1245_v31 = vadd.f32 %v1237_v8, %v293_v7  ;;  %v1241_v33 = vpop.f32.mrb[7].mxu1 }
 0x195   : > { %v1246_v34 = vadd.f32 %v1239_v28, %v294_v26 }
 0x196   : > { %1249 = vst [vmem:[#allocation2 + $0x10] sm:$0xff] %v1245_v31 }
 0x197   : > { %1250 = vst [vmem:[#allocation2 + $0x18] sm:$0xff] %v1246_v34 }
 0x19d   : > { %v1257_v44 = vld [vmem:[#allocation2 + $0x10] sm:$0xff] }
 0x19e   : > { %v1258_v45 = vld [vmem:[#allocation2 + $0x18] sm:$0xff]  ;;  %v1283_v52 = vadd.f32 %v1272_v48, %v1257_v44 }
 0x19f   : > { %v1284_v53 = vadd.f32 %v1276_v49, %v1258_v45 }
 0x1a0   : > { %v1287_v56 = vmax.f32 %v1283_v52, 0.0 }
 0x1a1   : > { %v1288_v57 = vmax.f32 %v1284_v53, 0.0 }
 0x1a3   : > { %v1587_v59 = vpack.c.bf16 %v1288_v57, %v1287_v56 }
 0x1a5   : > { %1306 = vst [vmem:[%s2231_s3 + $0x8] sm:$0xff] %v1587_v59 }
 0x1a6 PF: > { %s16_s17 = sadd.s32 1, %s1922_s17   ;;  %s2235_s12 = smov %s1906_s13 }
 0x1a7   : > { %p13_p5 = scmp.ge.s32.totalorder %s16_s17, 11   ;;  %s2236_s13 = smov %s1910_s14 }
 0x1a8   : > { %s2237_s14 = smov %s1997_s24  ;;  %s2238_s15 = smov %s1918_s16 }
 0x1a9   : > { %s2239_s16 = smov %s2241_s19  ;;  %15 = sbr.rel (!%p13_p5) target bundleno = 4 (0x4), region = 86 }
 0x1b0   :  { %1337 = vsyncpa [#allocation4], 1 }
 0x1b1   :  { %1339 = vsyncpa [#allocation4 + $0x1], 1 }

// kernel: vggnet_forward.31
= control target key start
LH: loop header
LB: loop body
LE: loop exit
PB: predicated region body
PF: predicated region fallthrough
CT: control target
= control target key end

     0   :  { %8 = vsyncpa [#allocation4], 0  ;;  %s977_s12 = smov 0   ;;  %s979_s13 = smov 0   ;;  %s1094_s0 = inlined_call_operand.vmem [shape: bf16[2,4096], index: 0, kind: input, shape index: {}]   ;;  %s1095_s1 = inlined_call_operand.vmem [shape: bf16[4096,10], index: 1, kind: input, shape index: {}]   ;;  %s1096_s2 = inlined_call_operand.vmem [shape: f32[1,10], index: 2, kind: input, shape index: {}]   ;;  %s1097_s3 = inlined_call_operand.hbm [shape: f32[2,10], index: 3, kind: output, shape index: {}]  }
   0x1   :  { %s981_s14 = smov 0  }
   0x2 LB: > { %s739_s15 = sadd.s32 4294967295, %s952_s14   ;;  %s26_s16 = sadd.s32 1, %s948_s13  ;;  %s952_s14 = sphi %s981_s14, %s14_s14   ;;  %s948_s13 = sphi %s979_s13, %s1100_s13   ;;  %s944_s12 = sphi %s977_s12, %s1099_s12  }
   0x3   : > { %p27_p0 = scmp.ge.s32.totalorder %s26_s16, 8  ;;  %p743_p1 = scmp.ge.s32.totalorder %s952_s14, 1 }
   0x4   : > { %p189_p2 = scmp.lt.s32.totalorder %s952_s14, 9 }
   0x5   : > { %s1102_s16 = smov (%p27_p0, %s26_s16), 0 }
   0x6   : > { %p190_p3 = pnand %p743_p1, %p189_p2 }
   0x7   : > { %s744_s17 = sshll.u32 (!%p190_p3), %s944_s12, 2  ;;  %s745_s18 = sshll.u32 (!%p190_p3), %s944_s12, 6 }
   0x8   : > { %193 = sbr.rel (%p190_p3) target bundleno = 628 (0x274), region = 32  ;;  %p225_p4 = scmp.lt.s32.totalorder (!%p190_p3), %s744_s17, 31 }
   0x9   : > { %p232_p5 = scmp.lt.s32.totalorder (!%p190_p3), %s745_s18, 511  ;;  %p747_p6 = scmp.ne.s32.totalorder (!%p190_p3), %s944_s12, 0 }
   0xf   : > { %s1104_s17 = smov (!%p225_p4, %s744_s17), 31  ;;  %s1106_s18 = smov (!%p232_p5, %s745_s18), 511 }
  0x10   : > { %s229_s21 = scalar_lea.vmem %s1094_s0, %s1104_s17  ;;  %s746_s22 = sshll.u32 %s1106_s18, 2  ;;  %vm248_vm0 = vcmask (!%p747_p6), 74752   ;;  %v954_v0 = vmov (!%p747_p6), 0.0  }
  0x11   : > { %s1009_s25 = scalar_lea.vmem %s1095_s1, %s746_s22  ;;  %247 = sbr.rel (%p747_p6) target bundleno = 24 (0x18), region = 36  ;;  %249 = vst.msk [vmem:[#allocation2] sm:$0x3] (!%p747_p6), %vm248_vm0, %v954_v0 }
  0x18 PF: > { %v864_v1 = vld [vmem:[%s1009_s25 + $0x40] sm:$0xff]   ;;  %v868_v5 = vld [vmem:[%s1009_s25 + $0x48] sm:$0xff]   ;;  %v872_v9 = vld [vmem:[%s1009_s25 + $0x50] sm:$0xff]   ;;  %v328_v31 = vlaneseq  ;;  %v955_v35 = vmov 1966171168   ;;  %vm618_vm1 = vcmask 74752  }
  0x19   : > { %v865_v2 = vld [vmem:[%s1009_s25 + $0xc0] sm:$0xff]   ;;  %787 = vmatprep.subr.bf16.mxu0 %v864_v1  ;;  %v869_v6 = vld [vmem:[%s1009_s25 + $0xc8] sm:$0xff]   ;;  %v873_v10 = vld [vmem:[%s1009_s25 + $0xd0] sm:$0xff]   ;;  %v326_v36 = vunpack.c.l.s4 %v955_v35  ;;  %p781_p7 = scmp.ne.s32.totalorder %s944_s12, 7 }
  0x1a   : > { %v866_v3 = vld [vmem:[%s1009_s25] sm:$0xff]   ;;  %809 = vmatprep.subr.bf16.mxu1 %v865_v2  ;;  %v870_v7 = vld [vmem:[%s1009_s25 + $0x8] sm:$0xff]   ;;  %v874_v11 = vld [vmem:[%s1009_s25 + $0x10] sm:$0xff]   ;;  %v329_v37 = vshrl.u32 %v328_v31, 7 }
  0x1b   : > { %v867_v4 = vld [vmem:[%s1009_s25 + $0x80] sm:$0xff]   ;;  %788 = vmatpush3.bf16.msra.mxu0 %v866_v3  ;;  %v871_v8 = vld [vmem:[%s1009_s25 + $0x88] sm:$0xff]   ;;  %v875_v12 = vld [vmem:[%s1009_s25 + $0x90] sm:$0xff]   ;;  %v327_v39 = vunpack.c.0.s8 %v326_v36 }
  0x1c   : > { %810 = vmatpush3.bf16.msra.mxu1 %v867_v4  ;;  %789 = vmatprep.subr.bf16.mxu0 %v868_v5  ;;  %v876_v13 = vld [vmem:[%s1009_s25 + $0x58] sm:$0xff]   ;;  %v880_v17 = vld [vmem:[%s1009_s25 + $0x60] sm:$0xff]   ;;  %v884_v21 = vld [vmem:[%s1009_s25 + $0x68] sm:$0xff]  }
  0x1d   : > { %811 = vmatprep.subr.bf16.mxu1 %v869_v6  ;;  %v877_v14 = vld [vmem:[%s1009_s25 + $0xd8] sm:$0xff]   ;;  %v881_v18 = vld [vmem:[%s1009_s25 + $0xe0] sm:$0xff]   ;;  %v885_v22 = vld [vmem:[%s1009_s25 + $0xe8] sm:$0xff]   ;;  %v330_v40 = vsub.s32 %v327_v39, %v329_v37 }
  0x1e   : > { %v878_v15 = vld [vmem:[%s1009_s25 + $0x18] sm:$0xff]   ;;  %v882_v19 = vld [vmem:[%s1009_s25 + $0x20] sm:$0xff]   ;;  %v886_v23 = vld [vmem:[%s1009_s25 + $0x28] sm:$0xff]  }
  0x1f   : > { %790 = vmatpush3.bf16.msra.mxu0 %v870_v7  ;;  %v879_v16 = vld [vmem:[%s1009_s25 + $0x98] sm:$0xff]   ;;  %v883_v20 = vld [vmem:[%s1009_s25 + $0xa0] sm:$0xff]   ;;  %v887_v24 = vld [vmem:[%s1009_s25 + $0xa8] sm:$0xff]  }
  0x20   : > { %812 = vmatpush3.bf16.msra.mxu1 %v871_v8  ;;  %791 = vmatprep.subr.bf16.mxu0 %v872_v9  ;;  %v888_v25 = vld [vmem:[%s1009_s25 + $0x70] sm:$0xff]   ;;  %v892_v29 = vld [vmem:[%s1009_s25 + $0x78] sm:$0xff]   ;;  %v748_v34 = vld.sshfl [vmem:[%s229_s21] sm:$0x33 pattern:$0x75316420] }
  0x21   : > { %813 = vmatprep.subr.bf16.mxu1 %v873_v10  ;;  %v889_v26 = vld [vmem:[%s1009_s25 + $0xf0] sm:$0xff]   ;;  %v893_v30 = vld [vmem:[%s1009_s25 + $0xf8] sm:$0xff]   ;;  %v324_v38 = vcombine.high %v748_v34, %v748_v34  ;;  %v331_v42 = vrot.slane %v748_v34, %v330_v40  ;;  %v250_v54 = vld [vmem:[#allocation2] sm:$0x3] }
  0x22   : > { %v890_v27 = vld [vmem:[%s1009_s25 + $0x30] sm:$0xff]   ;;  %v894_v32 = vld [vmem:[%s1009_s25 + $0x38] sm:$0xff]   ;;  %v782_v59 = vld [vmem:[%s1096_s2] ss:$0 sm:$0xff] (!%p781_p7) }
  0x23   : > { %792 = vmatpush3.bf16.msra.mxu0 %v874_v11  ;;  %v891_v28 = vld [vmem:[%s1009_s25 + $0xb0] sm:$0xff]   ;;  %v895_v33 = vld [vmem:[%s1009_s25 + $0xb8] sm:$0xff]   ;;  %v338_v41 = vrot.slane %v324_v38, %v330_v40  ;;  %v339_v44 = vcombine.high %v331_v42, %v331_v42 }
  0x24   : > { %814 = vmatpush3.bf16.msra.mxu1 %v875_v12  ;;  %793 = vmatprep.subr.bf16.mxu0 %v876_v13 }
  0x25   : > { %815 = vmatprep.subr.bf16.mxu1 %v877_v14  ;;  %569 = vmatprep.mubr.bf16.mxu0 %v338_v41  ;;  %v340_v43 = vcombine.high %v338_v41, %v338_v41 }
  0x27   : > { %794 = vmatpush3.bf16.msra.mxu0 %v878_v15  ;;  %609 = vmatprep.mubr.bf16.mxu1 %v340_v43 }
  0x28   : > { %816 = vmatpush3.bf16.msra.mxu1 %v879_v16  ;;  %795 = vmatprep.subr.bf16.mxu0 %v880_v17 }
  0x29   : > { %817 = vmatprep.subr.bf16.mxu1 %v881_v18 }
  0x2b   : > { %796 = vmatpush3.bf16.msra.mxu0 %v882_v19 }
  0x2c   : > { %818 = vmatpush3.bf16.msra.mxu1 %v883_v20  ;;  %797 = vmatprep.subr.bf16.mxu0 %v884_v21 }
  0x2d   : > { %819 = vmatprep.subr.bf16.mxu1 %v885_v22 }
  0x2f   : > { %798 = vmatpush3.bf16.msra.mxu0 %v886_v23 }
  0x30   : > { %820 = vmatpush3.bf16.msra.mxu1 %v887_v24  ;;  %799 = vmatprep.subr.bf16.mxu0 %v888_v25 }
  0x31   : > { %821 = vmatprep.subr.bf16.mxu1 %v889_v26 }
  0x33   : > { %800 = vmatpush3.bf16.msra.mxu0 %v890_v27 }
  0x34   : > { %822 = vmatpush3.bf16.msra.mxu1 %v891_v28  ;;  %801 = vmatprep.subr.bf16.mxu0 %v892_v29 }
  0x35   : > { %823 = vmatprep.subr.bf16.mxu1 %v893_v30 }
  0x37   : > { %802 = vmatpush3.bf16.msra.mxu0 %v894_v32 }
  0x38   : > { %824 = vmatpush3.bf16.msra.mxu1 %v895_v33 }
  0x3a   : > { %570 = vmatmul.mubr.bf16.vlgmr.msra.gmra.mrb[0].mxu0 %v331_v42 }
  0x3b   : > { %610 = vmatmul.mubr.bf16.vlgmr.msra.gmra.mrb[0].mxu1 %v339_v44 }
 0x10d   : > { %v803_v45 = vpop.f32.mrb[0].mxu0 }
 0x10e   : > { %v804_v46 = vpop.f32.mrb[1].mxu0  ;;  %v825_v47 = vpop.f32.mrb[0].mxu1 }
 0x10f   : > { %v805_v48 = vadd.f32 %v804_v46, %v803_v45  ;;  %v806_v49 = vpop.f32.mrb[2].mxu0  ;;  %v826_v50 = vpop.f32.mrb[1].mxu1 }
 0x110   : > { %v807_v51 = vpop.f32.mrb[3].mxu0  ;;  %v827_v52 = vadd.f32 %v826_v50, %v825_v47  ;;  %v828_v53 = vpop.f32.mrb[2].mxu1  ;;  %623 = sbr.rel (%p781_p7) target bundleno = 603 (0x25b), region = 40 }
 0x111   : > { %v829_v55 = vpop.f32.mrb[3].mxu1 }
 0x112   : > { %v612_v56 = vadd.f32 %v827_v52, %v805_v48 }
 0x114   : > { %v617_v57 = vadd.f32 %v612_v56, %v250_v54 }
 0x116   : > { %619 = vst.msk [vmem:[#allocation2] sm:$0x3] %vm618_vm1, %v617_v57 }
 0x11d   : > { %v624_v58 = vld [vmem:[#allocation2] sm:$0x3] }
 0x11e   : > { %v632_v60 = vadd.f32 %v782_v59, %v624_v58 }
 0x120   : > { %v633_v61 = vsel %vm618_vm1, %v632_v60, -inf }
 0x121   : > { %634 = vmax.xlane.f32.xlu0 %v633_v61 }
 0x1ae   : > { %v635_v62 = vpop.xlane.xlu0 %634 }
 0x1af   : > { %v636_v63 = vsub.f32 %v632_v60, %v635_v62 }
 0x1b1   : > { %v637_v0 = vmul.f32 1.442695, %v636_v63 }
 0x1b3   : > { %896 = vpow2.f32 %v637_v0 }
 0x1bd   : > { %v897_v1 = vpop.eup %896 }
 0x1be   : > { %v639_v2 = vsel %vm618_vm1, %v897_v1, 0.0 }
 0x1bf   : > { %640 = vadd.xlane.f32.xlu0 %v639_v2 }
 0x24c   : > { %v641_v3 = vpop.xlane.xlu0 %640 }
 0x24d   : > { %898 = vrcp.f32 %v641_v3 }
 0x257   : > { %v899_v4 = vpop.eup %898 }
 0x258   : > { %v643_v5 = vmul.f32 %v899_v4, %v897_v1 }
 0x25a   : > { %644 = vst.msk [vmem:[#allocation3] sm:$0x3] %vm618_vm1, %v643_v5 }
 0x25b PF: > { %p1059_p8 = scmp.eq.s32.totalorder %s739_s15, 7  ;;  %s956_s4 = smov [#allocation3]  }
 0x25c   : > { %s655_s5 = sshll.u32 %s956_s4, 4  ;;  %s656_s5 = int_to_ptr.vmem [resolvable:$true] %s655_s5 }
 0x25d   : > { %s900_s6 = scalar_lea.vmem %s656_s5, 32  ;;  %p907_p12 = scmp.lt.s32.totalorder %s656_s5, %s656_s5 }
 0x25e   : > { %p901_p9 = scmp.ne.s32.totalorder %s656_s5, %s900_s6  ;;  %p908_p13 = scmp.lt.s32.totalorder %s900_s6, %s900_s6 }
 0x260   : > { %p902_p10 = pnand %p901_p9, %p1059_p8  ;;  %p909_p0 = por %p908_p13, %p907_p12 }
 0x262   : > { %p903_p11 = pneg %p902_p10 }
 0x264   : > { %p910_p1 = pnand %p909_p0, %p903_p11 }
 0x266   : > { %913 = shalt.err (!%p910_p1)
}
 0x267   : > { %s914_s9 = scalar_lea.hbm %s1097_s3, 32 }
 0x268   : > { %p915_p2 = scmp.ne.s32.totalorder %s1097_s3, %s914_s9  ;;  %p920_p5 = scmp.lt.u32.totalorder %s914_s9, %s1097_s3 }
 0x26a   : > { %p916_p3 = pnand %p915_p2, %p1059_p8 }
 0x26c   : > { %p917_p4 = pneg %p916_p3 }
 0x26e   : > { %p922_p6 = pnand %p920_p5, %p917_p4 }
 0x270   : > { %925 = shalt.err (!%p922_p6)
}
 0x271   : > { %832 = dma.vmem_to_hbm [thread:$0]  (%p1059_p8), %s656_s5, 32, %s1097_s3, [#allocation4]  }
 0x272   : > { %939 = dma.done.wait (%p1059_p8), [#allocation4], 32  }
 0x273   : > { %941 = vsyncadd (%p1059_p8), [#allocation4], 4294967264 }
 0x274 PF: > { %s14_s14 = sadd.s32 1, %s952_s14   ;;  %s1099_s12 = smov %s948_s13 }
 0x275   : > { %p11_p7 = scmp.ge.s32.totalorder %s14_s14, 10   ;;  %s1100_s13 = smov %s1102_s16 }
 0x277   :  { %13 = sbr.rel (!%p11_p7) target bundleno = 2 (0x2), region = 74 }
 0x27e   :  { %668 = vsyncpa [#allocation4], 1 }
 0x27f   :  { %670 = vsyncpa [#allocation4 + $0x1], 1 }

</bundles_post_ra>
